<compile_context>
chip_gen: v7x
topology: tpu7x:2x2x1
jax: 0.10.0
libtpu: 0.0.40
codegen_flags: <defaults>
</compile_context>

<pallas_src>
import math

import jax
import jax.numpy as jnp
from jax.experimental import pallas as pl
from jax.experimental.pallas import tpu as pltpu


# ----------------------------------------------------------------------------
# Fused kernel: LSTM over time-blocks + FNN head on the last block.
# ----------------------------------------------------------------------------
def rnn_fused_kernel(x_ref,                       # (t_blk*B, in_dim)  f32
                     wih0_ref, whh0_ref, b0_ref,  # layer 0: (in,4H) (H,4H) bf16, (1,4H) f32
                     w1_ref, b1_ref,              # layer 1 fused: (2H,4H) bf16, (1,4H) f32
                     w2_ref, b2_ref,              # layer 2 fused: (2H,4H) bf16, (1,4H) f32
                     fw0_ref, fb0_ref, fw1_ref, fb1_ref,
                     fw2_ref, fb2_ref, fw3_ref, fb3_ref,
                     out_ref,                     # (B, out_dim) f32 (real part)
                     h_scr, c_scr, xp_scr):
    tb = pl.program_id(0)
    n_tb = pl.num_programs(0)

    H = whh0_ref.shape[0]
    B = h_scr.shape[1]
    rows = x_ref.shape[0]
    t_blk = rows // B

    @pl.when(tb == 0)
    def _init():
        h_scr[...] = jnp.zeros_like(h_scr)
        c_scr[...] = jnp.zeros_like(c_scr)

    # Layer-0 input projection for the whole time-block: one dense MXU dot, no
    # recurrence; layer-0 bias folded in.  Stored in VMEM scratch, sliced per step.
    xp_scr[...] = (jnp.dot(x_ref[...].astype(jnp.bfloat16), wih0_ref[...],
                           preferred_element_type=jnp.float32)
                   + b0_ref[...])

    # Hoist weight loads and bias broadcasts out of the time loop (broadcast_in_dim
    # is not CSE'd by JAX when left inside the loop body).
    whh0 = whh0_ref[...]
    w1 = w1_ref[...]
    w2 = w2_ref[...]
    b1 = jnp.broadcast_to(b1_ref[...], (B, 4 * H))
    b2 = jnp.broadcast_to(b2_ref[...], (B, 4 * H))

    def lstm_cell(gates, c_prev):
        # PyTorch gate order: i, f, g, o.  All elementwise math in f32.
        i_g = jax.nn.sigmoid(gates[:, 0 * H:1 * H])
        f_g = jax.nn.sigmoid(gates[:, 1 * H:2 * H])
        g_g = jnp.tanh(gates[:, 2 * H:3 * H])
        o_g = jax.nn.sigmoid(gates[:, 3 * H:4 * H])
        c_new = f_g * c_prev + i_g * g_g
        h_new = o_g * jnp.tanh(c_new)
        return h_new, c_new

    def step(t, carry):
        h0, c0, h1, c1, h2, c2 = carry
        # Layer 0: only the recurrent dot remains inside the time loop.
        g0 = xp_scr[pl.ds(t * B, B), :] + jnp.dot(
            h0.astype(jnp.bfloat16), whh0, preferred_element_type=jnp.float32)
        h0, c0 = lstm_cell(g0, c0)
        # Layers 1 & 2: single fused dot  [h_below, h_prev] @ [W_ih^T ; W_hh^T].
        g1 = jnp.dot(jnp.concatenate([h0, h1], axis=-1).astype(jnp.bfloat16),
                     w1, preferred_element_type=jnp.float32) + b1
        h1, c1 = lstm_cell(g1, c1)
        g2 = jnp.dot(jnp.concatenate([h1, h2], axis=-1).astype(jnp.bfloat16),
                     w2, preferred_element_type=jnp.float32) + b2
        h2, c2 = lstm_cell(g2, c2)
        return h0, c0, h1, c1, h2, c2

    carry = (h_scr[0], c_scr[0], h_scr[1], c_scr[1], h_scr[2], c_scr[2])
    carry = jax.lax.fori_loop(0, t_blk, step, carry, unroll=True)
    h0, c0, h1, c1, h2, c2 = carry

    # Carry (h, c) across time-blocks.
    h_scr[0] = h0
    c_scr[0] = c0
    h_scr[1] = h1
    c_scr[1] = c1
    h_scr[2] = h2
    c_scr[2] = c2

    # FNN head (real branch) fused into the epilogue of the last time-block.
    @pl.when(tb == n_tb - 1)
    def _head():
        v = jnp.tanh(jnp.dot(h2.astype(jnp.bfloat16), fw0_ref[...],
                             preferred_element_type=jnp.float32) + fb0_ref[...])
        v = jnp.tanh(jnp.dot(v.astype(jnp.bfloat16), fw1_ref[...],
                             preferred_element_type=jnp.float32) + fb1_ref[...])
        v = jnp.tanh(jnp.dot(v.astype(jnp.bfloat16), fw2_ref[...],
                             preferred_element_type=jnp.float32) + fb2_ref[...])
        v = jnp.dot(v.astype(jnp.bfloat16), fw3_ref[...],
                    preferred_element_type=jnp.float32) + fb3_ref[...]
        out_ref[...] = v.astype(out_ref.dtype)


def _choose_t_blk(T, B, cap=64):
    """Largest divisor of T (<= cap) keeping the flattened x block sublane-friendly."""
    for cand in range(min(T, cap), 0, -1):
        if T % cand == 0 and (cand == T or (cand * B) % 8 == 0):
            return cand
    return T


def _fnn_zero_input(fnn_params):
    """FNN applied to an all-zero input == pure bias propagation -> (1, out_dim)."""
    v = jnp.zeros((1, fnn_params[0][0].shape[0]), jnp.float32)
    for k, (w, b) in enumerate(fnn_params):
        v = jnp.dot(v, w.astype(jnp.float32)) + b
        if k < len(fnn_params) - 1:
            v = jnp.tanh(v)
    return v


def rnn_forward(x, lstm_params, fnn_params):
    """x: (B, T, in_dim) f32. Returns complex64 (B, out_dim)."""
    B, T, in_dim = x.shape
    H = lstm_params[0][1].shape[0]
    out_dim = fnn_params[-1][0].shape[1]
    n_layers = len(lstm_params)
    assert n_layers == 3

    t_blk = _choose_t_blk(T, B)
    n_tb = T // t_blk

    # Time-major and flattened to (T*B, in_dim) so the layer-0 input projection is
    # a single 2-D matmul per block (no in-kernel reshape needed).
    x_tm = jnp.transpose(x, (1, 0, 2)).reshape(T * B, in_dim)

    wih0, whh0, b0 = lstm_params[0]
    wih1, whh1, b1 = lstm_params[1]
    wih2, whh2, b2 = lstm_params[2]
    w1c = jnp.concatenate([wih1, whh1], axis=0)   # (2H, 4H) bf16
    w2c = jnp.concatenate([wih2, whh2], axis=0)   # (2H, 4H) bf16

    weight_args = [wih0, whh0, b0, w1c, b1, w2c, b2]
    for (w, b) in fnn_params:
        weight_args += [w, b]

    in_specs = [pl.BlockSpec((t_blk * B, in_dim), lambda tb: (tb, 0))]
    # Weights: full-array blocks, constant index map -> DMA'd once, stay resident.
    in_specs += [pl.BlockSpec(a.shape, lambda tb: (0, 0)) for a in weight_args]

    out_real = pl.pallas_call(
        rnn_fused_kernel,
        out_shape=jax.ShapeDtypeStruct((B, out_dim), jnp.float32),
        grid=(n_tb,),
        in_specs=in_specs,
        out_specs=pl.BlockSpec((B, out_dim), lambda tb: (0, 0)),
        scratch_shapes=[
            pltpu.VMEM((n_layers, B, H), jnp.float32),        # h state
            pltpu.VMEM((n_layers, B, H), jnp.float32),        # c state
            pltpu.VMEM((t_blk * B, 4 * H), jnp.float32),      # layer-0 input proj
        ],
        compiler_params=pltpu.CompilerParams(
            dimension_semantics=("arbitrary",)),              # recurrent axis
    )(x_tm, *weight_args)

    # Imaginary branch: input is real, so this is the MLP of zeros == bias
    # propagation only; a (1, out_dim) constant computed once and broadcast.
    out_imag = jnp.broadcast_to(_fnn_zero_input(fnn_params), out_real.shape)
    return jax.lax.complex(out_real, out_imag)


# ----------------------------------------------------------------------------
# Pure-JAX reference (for correctness check only; same bf16 weights, f32 math).
# ----------------------------------------------------------------------------
def rnn_reference(x, lstm_params, fnn_params):
    B, T, _ = x.shape
    H = lstm_params[0][1].shape[0]
    n_layers = len(lstm_params)
    h = [jnp.zeros((B, H), jnp.float32) for _ in range(n_layers)]
    c = [jnp.zeros((B, H), jnp.float32) for _ in range(n_layers)]
    for t in range(T):
        inp = x[:, t, :]
        for l, (wih, whh, b) in enumerate(lstm_params):
            gates = (inp @ wih.astype(jnp.float32)
                     + h[l] @ whh.astype(jnp.float32) + b)
            i_g = jax.nn.sigmoid(gates[:, 0 * H:1 * H])
            f_g = jax.nn.sigmoid(gates[:, 1 * H:2 * H])
            g_g = jnp.tanh(gates[:, 2 * H:3 * H])
            o_g = jax.nn.sigmoid(gates[:, 3 * H:4 * H])
            c[l] = f_g * c[l] + i_g * g_g
            h[l] = o_g * jnp.tanh(c[l])
            inp = h[l]

    def mlp(v):
        for k, (w, b) in enumerate(fnn_params):
            v = v @ w.astype(jnp.float32) + b
            if k < len(fnn_params) - 1:
                v = jnp.tanh(v)
        return v

    hr = h[-1]
    return jax.lax.complex(mlp(hr), mlp(jnp.zeros_like(hr)))


# ----------------------------------------------------------------------------
# Deterministic parameter construction (PyTorch-style uniform init).
# Weights stored in bf16 (MXU-native); biases kept in f32.
# ----------------------------------------------------------------------------
def make_params(key, in_dim, hidden_dim, out_dim, n_layers=3,
                layer_sizes=(1024, 1024, 1024)):
    def u(k, shape, bound):
        return jax.random.uniform(k, shape, jnp.float32, -bound, bound)

    keys = jax.random.split(key, 3 * n_layers + 2 * (len(layer_sizes) + 1))
    ki = iter(keys)

    lstm_params = []
    kb = 1.0 / math.sqrt(hidden_dim)
    for l in range(n_layers):
        d_in = in_dim if l == 0 else hidden_dim
        wih_t = u(next(ki), (d_in, 4 * hidden_dim), kb).astype(jnp.bfloat16)       # W_ih^T
        whh_t = u(next(ki), (hidden_dim, 4 * hidden_dim), kb).astype(jnp.bfloat16)  # W_hh^T
        bias = u(next(ki), (1, 4 * hidden_dim), kb)                                 # b_ih + b_hh
        lstm_params.append((wih_t, whh_t, bias))

    fnn_params = []
    dims = [hidden_dim] + list(layer_sizes) + [out_dim]
    for k in range(len(dims) - 1):
        kb = 1.0 / math.sqrt(dims[k])
        w_t = u(next(ki), (dims[k], dims[k + 1]), kb).astype(jnp.bfloat16)          # Linear W^T
        b = u(next(ki), (1, dims[k + 1]), kb)
        fnn_params.append((w_t, b))

    # nn.Parameter self.scale = 0.001 exists in FNN but is unused in forward.
    return lstm_params, fnn_params


if __name__ == "__main__":
    B, T, in_dim = 2, 8, 4
    hidden_dim, out_dim = 32, 4

    key = jax.random.PRNGKey(0)
    k_x, k_p = jax.random.split(key)
    x = jax.random.normal(k_x, (B, T, in_dim), jnp.float32)
    lstm_params, fnn_params = make_params(k_p, in_dim, hidden_dim, out_dim)

    out = rnn_forward(x, lstm_params, fnn_params)
    out = jax.block_until_ready(out)

    ref = rnn_reference(x, lstm_params, fnn_params)
    assert out.shape == (B, out_dim) and out.dtype == jnp.complex64
    assert jnp.allclose(out.real, ref.real, atol=1e-2, rtol=1e-2)
    assert jnp.allclose(out.imag, ref.imag, atol=1e-2, rtol=1e-2)

    print("KERNEL_OK")
</pallas_src>

<mosaic_0001>
module attributes {stable_mosaic.version = 11 : i64} {
  func.func @rnn_fused_kernel(%arg0: i32, %arg1: memref<16x4xf32, #tpu.memory_space<vmem>>, %arg2: memref<4x128xbf16, #tpu.memory_space<vmem>>, %arg3: memref<32x128xbf16, #tpu.memory_space<vmem>>, %arg4: memref<1x128xf32, #tpu.memory_space<vmem>>, %arg5: memref<64x128xbf16, #tpu.memory_space<vmem>>, %arg6: memref<1x128xf32, #tpu.memory_space<vmem>>, %arg7: memref<64x128xbf16, #tpu.memory_space<vmem>>, %arg8: memref<1x128xf32, #tpu.memory_space<vmem>>, %arg9: memref<32x1024xbf16, #tpu.memory_space<vmem>>, %arg10: memref<1x1024xf32, #tpu.memory_space<vmem>>, %arg11: memref<1024x1024xbf16, #tpu.memory_space<vmem>>, %arg12: memref<1x1024xf32, #tpu.memory_space<vmem>>, %arg13: memref<1024x1024xbf16, #tpu.memory_space<vmem>>, %arg14: memref<1x1024xf32, #tpu.memory_space<vmem>>, %arg15: memref<1024x4xbf16, #tpu.memory_space<vmem>>, %arg16: memref<1x4xf32, #tpu.memory_space<vmem>>, %arg17: memref<2x4xf32, #tpu.memory_space<vmem>>, %arg18: memref<3x2x32xf32, #tpu.memory_space<vmem>>, %arg19: memref<3x2x32xf32, #tpu.memory_space<vmem>>, %arg20: memref<16x128xf32, #tpu.memory_space<vmem>>) attributes {dimension_semantics = [#tpu.dimension_semantics<arbitrary>], iteration_bounds = array<i64: 1>, scalar_prefetch = 0 : i64, scratch_operands = 3 : i64, tpu.core_type = #tpu.core_type<tc>, window_params = [{transform_indices = @transform_0, window_bounds = array<i64: 16, 4>}, {pipeline_mode = #tpu.pipeline_mode<synchronous>, transform_indices = @transform_1, window_bounds = array<i64: 4, 128>}, {pipeline_mode = #tpu.pipeline_mode<synchronous>, transform_indices = @transform_2, window_bounds = array<i64: 32, 128>}, {pipeline_mode = #tpu.pipeline_mode<synchronous>, transform_indices = @transform_3, window_bounds = array<i64: 1, 128>}, {pipeline_mode = #tpu.pipeline_mode<synchronous>, transform_indices = @transform_4, window_bounds = array<i64: 64, 128>}, {pipeline_mode = #tpu.pipeline_mode<synchronous>, transform_indices = @transform_5, window_bounds = array<i64: 1, 128>}, {pipeline_mode = #tpu.pipeline_mode<synchronous>, transform_indices = @transform_6, window_bounds = array<i64: 64, 128>}, {pipeline_mode = #tpu.pipeline_mode<synchronous>, transform_indices = @transform_7, window_bounds = array<i64: 1, 128>}, {pipeline_mode = #tpu.pipeline_mode<synchronous>, transform_indices = @transform_8, window_bounds = array<i64: 32, 1024>}, {pipeline_mode = #tpu.pipeline_mode<synchronous>, transform_indices = @transform_9, window_bounds = array<i64: 1, 1024>}, {pipeline_mode = #tpu.pipeline_mode<synchronous>, transform_indices = @transform_10, window_bounds = array<i64: 1024, 1024>}, {pipeline_mode = #tpu.pipeline_mode<synchronous>, transform_indices = @transform_11, window_bounds = array<i64: 1, 1024>}, {pipeline_mode = #tpu.pipeline_mode<synchronous>, transform_indices = @transform_12, window_bounds = array<i64: 1024, 1024>}, {pipeline_mode = #tpu.pipeline_mode<synchronous>, transform_indices = @transform_13, window_bounds = array<i64: 1, 1024>}, {pipeline_mode = #tpu.pipeline_mode<synchronous>, transform_indices = @transform_14, window_bounds = array<i64: 1024, 4>}, {pipeline_mode = #tpu.pipeline_mode<synchronous>, transform_indices = @transform_15, window_bounds = array<i64: 1, 4>}, {pipeline_mode = #tpu.pipeline_mode<synchronous>, transform_indices = @transform_16, window_bounds = array<i64: 2, 4>}]} {
    %c0_i32 = arith.constant 0 : i32
    %0 = arith.cmpi eq, %arg0, %c0_i32 : i32
    %1 = arith.extui %0 : i1 to i32
    %c0_i32_0 = arith.constant 0 : i32
    %2 = arith.cmpi ne, %1, %c0_i32_0 : i32
    scf.if %2 {
      %cst_167 = arith.constant 0.000000e+00 : f32
      %765 = vector.broadcast %cst_167 : f32 to vector<3x2x32xf32>
      %c0_168 = arith.constant 0 : index
      %c0_169 = arith.constant 0 : index
      %c0_170 = arith.constant 0 : index
      %766 = vector.load %arg18[%c0_168, %c0_169, %c0_170] : memref<3x2x32xf32, #tpu.memory_space<vmem>>, vector<3x2x32xf32>
      tpu.vector_store %arg18[%c0_168, %c0_169, %c0_170], %765 {strides = array<i32>} : memref<3x2x32xf32, #tpu.memory_space<vmem>>, vector<3x2x32xf32>,
      %cst_171 = arith.constant 0.000000e+00 : f32
      %767 = vector.broadcast %cst_171 : f32 to vector<3x2x32xf32>
      %c0_172 = arith.constant 0 : index
      %c0_173 = arith.constant 0 : index
      %c0_174 = arith.constant 0 : index
      %768 = vector.load %arg19[%c0_172, %c0_173, %c0_174] : memref<3x2x32xf32, #tpu.memory_space<vmem>>, vector<3x2x32xf32>
      tpu.vector_store %arg19[%c0_172, %c0_173, %c0_174], %767 {strides = array<i32>} : memref<3x2x32xf32, #tpu.memory_space<vmem>>, vector<3x2x32xf32>,
    } else {
    }
    %c0 = arith.constant 0 : index
    %c0_1 = arith.constant 0 : index
    %3 = vector.load %arg1[%c0, %c0_1] : memref<16x4xf32, #tpu.memory_space<vmem>>, vector<16x4xf32>
    %4 = arith.truncf %3 : vector<16x4xf32> to vector<16x4xbf16>
    %c0_2 = arith.constant 0 : index
    %c0_3 = arith.constant 0 : index
    %5 = vector.load %arg2[%c0_2, %c0_3] : memref<4x128xbf16, #tpu.memory_space<vmem>>, vector<4x128xbf16>
    %cst = arith.constant dense<0.000000e+00> : vector<16x128xf32>
    %6 = tpu.matmul %4, %5, %cst {dimension_numbers = #tpu.dot_dimension_numbers<[1], [0], [0], [1], [0, 0, 1, 1], [], []>} : vector<16x4xbf16>, vector<4x128xbf16>, vector<16x128xf32> -> vector<16x128xf32>
    %c0_4 = arith.constant 0 : index
    %c0_5 = arith.constant 0 : index
    %7 = vector.load %arg4[%c0_4, %c0_5] : memref<1x128xf32, #tpu.memory_space<vmem>>, vector<1x128xf32>
    %8 = vector.broadcast %7 : vector<1x128xf32> to vector<16x128xf32>
    %9 = arith.addf %6, %8 : vector<16x128xf32>
    %c0_6 = arith.constant 0 : index
    %c0_7 = arith.constant 0 : index
    %10 = vector.load %arg20[%c0_6, %c0_7] : memref<16x128xf32, #tpu.memory_space<vmem>>, vector<16x128xf32>
    tpu.vector_store %arg20[%c0_6, %c0_7], %9 {strides = array<i32>} : memref<16x128xf32, #tpu.memory_space<vmem>>, vector<16x128xf32>,
    %c0_8 = arith.constant 0 : index
    %c0_9 = arith.constant 0 : index
    %11 = vector.load %arg3[%c0_8, %c0_9] : memref<32x128xbf16, #tpu.memory_space<vmem>>, vector<32x128xbf16>
    %c0_10 = arith.constant 0 : index
    %c0_11 = arith.constant 0 : index
    %12 = vector.load %arg5[%c0_10, %c0_11] : memref<64x128xbf16, #tpu.memory_space<vmem>>, vector<64x128xbf16>
    %c0_12 = arith.constant 0 : index
    %c0_13 = arith.constant 0 : index
    %13 = vector.load %arg7[%c0_12, %c0_13] : memref<64x128xbf16, #tpu.memory_space<vmem>>, vector<64x128xbf16>
    %c0_14 = arith.constant 0 : index
    %c0_15 = arith.constant 0 : index
    %14 = vector.load %arg6[%c0_14, %c0_15] : memref<1x128xf32, #tpu.memory_space<vmem>>, vector<1x128xf32>
    %15 = vector.shape_cast %14 : vector<1x128xf32> to vector<1x128xf32>
    %16 = vector.broadcast %15 : vector<1x128xf32> to vector<2x128xf32>
    %c0_16 = arith.constant 0 : index
    %c0_17 = arith.constant 0 : index
    %17 = vector.load %arg8[%c0_16, %c0_17] : memref<1x128xf32, #tpu.memory_space<vmem>>, vector<1x128xf32>
    %18 = vector.shape_cast %17 : vector<1x128xf32> to vector<1x128xf32>
    %19 = vector.broadcast %18 : vector<1x128xf32> to vector<2x128xf32>
    %c0_18 = arith.constant 0 : index
    %c0_19 = arith.constant 0 : index
    %c0_20 = arith.constant 0 : index
    %20 = vector.load %arg18[%c0_18, %c0_19, %c0_20] : memref<3x2x32xf32, #tpu.memory_space<vmem>>, vector<1x2x32xf32>
    %21 = vector.shape_cast %20 : vector<1x2x32xf32> to vector<2x32xf32>
    %c0_21 = arith.constant 0 : index
    %c0_22 = arith.constant 0 : index
    %c0_23 = arith.constant 0 : index
    %22 = vector.load %arg19[%c0_21, %c0_22, %c0_23] : memref<3x2x32xf32, #tpu.memory_space<vmem>>, vector<1x2x32xf32>
    %23 = vector.shape_cast %22 : vector<1x2x32xf32> to vector<2x32xf32>
    %c1 = arith.constant 1 : index
    %c0_24 = arith.constant 0 : index
    %c0_25 = arith.constant 0 : index
    %24 = vector.load %arg18[%c1, %c0_24, %c0_25] : memref<3x2x32xf32, #tpu.memory_space<vmem>>, vector<1x2x32xf32>
    %25 = vector.shape_cast %24 : vector<1x2x32xf32> to vector<2x32xf32>
    %c1_26 = arith.constant 1 : index
    %c0_27 = arith.constant 0 : index
    %c0_28 = arith.constant 0 : index
    %26 = vector.load %arg19[%c1_26, %c0_27, %c0_28] : memref<3x2x32xf32, #tpu.memory_space<vmem>>, vector<1x2x32xf32>
    %27 = vector.shape_cast %26 : vector<1x2x32xf32> to vector<2x32xf32>
    %c2 = arith.constant 2 : index
    %c0_29 = arith.constant 0 : index
    %c0_30 = arith.constant 0 : index
    %28 = vector.load %arg18[%c2, %c0_29, %c0_30] : memref<3x2x32xf32, #tpu.memory_space<vmem>>, vector<1x2x32xf32>
    %29 = vector.shape_cast %28 : vector<1x2x32xf32> to vector<2x32xf32>
    %c2_31 = arith.constant 2 : index
    %c0_32 = arith.constant 0 : index
    %c0_33 = arith.constant 0 : index
    %30 = vector.load %arg19[%c2_31, %c0_32, %c0_33] : memref<3x2x32xf32, #tpu.memory_space<vmem>>, vector<1x2x32xf32>
    %31 = vector.shape_cast %30 : vector<1x2x32xf32> to vector<2x32xf32>
    %c0_i32_34 = arith.constant 0 : i32
    %c2_i32 = arith.constant 2 : i32
    %32 = arith.muli %c0_i32_34, %c2_i32 : i32
    %33 = arith.index_cast %32 : i32 to index
    %c0_35 = arith.constant 0 : index
    %34 = vector.load %arg20[%33, %c0_35] : memref<16x128xf32, #tpu.memory_space<vmem>>, vector<2x128xf32>
    %35 = arith.truncf %21 : vector<2x32xf32> to vector<2x32xbf16>
    %cst_36 = arith.constant dense<0.000000e+00> : vector<2x128xf32>
    %36 = tpu.matmul %35, %11, %cst_36 {dimension_numbers = #tpu.dot_dimension_numbers<[1], [0], [0], [1], [0, 0, 1, 1], [], []>} : vector<2x32xbf16>, vector<32x128xbf16>, vector<2x128xf32> -> vector<2x128xf32>
    %37 = arith.addf %34, %36 : vector<2x128xf32>
    %38 = vector.extract_strided_slice %37 {offsets = [0, 0], sizes = [2, 32], strides = [1, 1]} : vector<2x128xf32> to vector<2x32xf32>
    %39 = arith.negf %38 : vector<2x32xf32>
    %40 = math.exp %39 : vector<2x32xf32>
    %cst_37 = arith.constant 1.000000e+00 : f32
    %41 = vector.broadcast %cst_37 : f32 to vector<2x32xf32>
    %42 = arith.addf %41, %40 : vector<2x32xf32>
    %43 = arith.divf %41, %42 : vector<2x32xf32>
    %44 = vector.extract_strided_slice %37 {offsets = [0, 32], sizes = [2, 32], strides = [1, 1]} : vector<2x128xf32> to vector<2x32xf32>
    %45 = arith.negf %44 : vector<2x32xf32>
    %46 = math.exp %45 : vector<2x32xf32>
    %cst_38 = arith.constant 1.000000e+00 : f32
    %47 = vector.broadcast %cst_38 : f32 to vector<2x32xf32>
    %48 = arith.addf %47, %46 : vector<2x32xf32>
    %49 = arith.divf %47, %48 : vector<2x32xf32>
    %50 = vector.extract_strided_slice %37 {offsets = [0, 64], sizes = [2, 32], strides = [1, 1]} : vector<2x128xf32> to vector<2x32xf32>
    %51 = math.tanh %50 : vector<2x32xf32>
    %52 = vector.extract_strided_slice %37 {offsets = [0, 96], sizes = [2, 32], strides = [1, 1]} : vector<2x128xf32> to vector<2x32xf32>
    %53 = arith.negf %52 : vector<2x32xf32>
    %54 = math.exp %53 : vector<2x32xf32>
    %cst_39 = arith.constant 1.000000e+00 : f32
    %55 = vector.broadcast %cst_39 : f32 to vector<2x32xf32>
    %56 = arith.addf %55, %54 : vector<2x32xf32>
    %57 = arith.divf %55, %56 : vector<2x32xf32>
    %58 = arith.mulf %49, %23 : vector<2x32xf32>
    %59 = arith.mulf %43, %51 : vector<2x32xf32>
    %60 = arith.addf %58, %59 : vector<2x32xf32>
    %61 = math.tanh %60 : vector<2x32xf32>
    %62 = arith.mulf %57, %61 : vector<2x32xf32>
    %63 = tpu.concatenate %62, %25 in 1 : vector<2x32xf32>, vector<2x32xf32> -> vector<2x64xf32>
    %64 = arith.truncf %63 : vector<2x64xf32> to vector<2x64xbf16>
    %cst_40 = arith.constant dense<0.000000e+00> : vector<2x128xf32>
    %65 = tpu.matmul %64, %12, %cst_40 {dimension_numbers = #tpu.dot_dimension_numbers<[1], [0], [0], [1], [0, 0, 1, 1], [], []>} : vector<2x64xbf16>, vector<64x128xbf16>, vector<2x128xf32> -> vector<2x128xf32>
    %66 = arith.addf %65, %16 : vector<2x128xf32>
    %67 = vector.extract_strided_slice %66 {offsets = [0, 0], sizes = [2, 32], strides = [1, 1]} : vector<2x128xf32> to vector<2x32xf32>
    %68 = arith.negf %67 : vector<2x32xf32>
    %69 = math.exp %68 : vector<2x32xf32>
    %cst_41 = arith.constant 1.000000e+00 : f32
    %70 = vector.broadcast %cst_41 : f32 to vector<2x32xf32>
    %71 = arith.addf %70, %69 : vector<2x32xf32>
    %72 = arith.divf %70, %71 : vector<2x32xf32>
    %73 = vector.extract_strided_slice %66 {offsets = [0, 32], sizes = [2, 32], strides = [1, 1]} : vector<2x128xf32> to vector<2x32xf32>
    %74 = arith.negf %73 : vector<2x32xf32>
    %75 = math.exp %74 : vector<2x32xf32>
    %cst_42 = arith.constant 1.000000e+00 : f32
    %76 = vector.broadcast %cst_42 : f32 to vector<2x32xf32>
    %77 = arith.addf %76, %75 : vector<2x32xf32>
    %78 = arith.divf %76, %77 : vector<2x32xf32>
    %79 = vector.extract_strided_slice %66 {offsets = [0, 64], sizes = [2, 32], strides = [1, 1]} : vector<2x128xf32> to vector<2x32xf32>
    %80 = math.tanh %79 : vector<2x32xf32>
    %81 = vector.extract_strided_slice %66 {offsets = [0, 96], sizes = [2, 32], strides = [1, 1]} : vector<2x128xf32> to vector<2x32xf32>
    %82 = arith.negf %81 : vector<2x32xf32>
    %83 = math.exp %82 : vector<2x32xf32>
    %cst_43 = arith.constant 1.000000e+00 : f32
    %84 = vector.broadcast %cst_43 : f32 to vector<2x32xf32>
    %85 = arith.addf %84, %83 : vector<2x32xf32>
    %86 = arith.divf %84, %85 : vector<2x32xf32>
    %87 = arith.mulf %78, %27 : vector<2x32xf32>
    %88 = arith.mulf %72, %80 : vector<2x32xf32>
    %89 = arith.addf %87, %88 : vector<2x32xf32>
    %90 = math.tanh %89 : vector<2x32xf32>
    %91 = arith.mulf %86, %90 : vector<2x32xf32>
    %92 = tpu.concatenate %91, %29 in 1 : vector<2x32xf32>, vector<2x32xf32> -> vector<2x64xf32>
    %93 = arith.truncf %92 : vector<2x64xf32> to vector<2x64xbf16>
    %cst_44 = arith.constant dense<0.000000e+00> : vector<2x128xf32>
    %94 = tpu.matmul %93, %13, %cst_44 {dimension_numbers = #tpu.dot_dimension_numbers<[1], [0], [0], [1], [0, 0, 1, 1], [], []>} : vector<2x64xbf16>, vector<64x128xbf16>, vector<2x128xf32> -> vector<2x128xf32>
    %95 = arith.addf %94, %19 : vector<2x128xf32>
    %96 = vector.extract_strided_slice %95 {offsets = [0, 0], sizes = [2, 32], strides = [1, 1]} : vector<2x128xf32> to vector<2x32xf32>
    %97 = arith.negf %96 : vector<2x32xf32>
    %98 = math.exp %97 : vector<2x32xf32>
    %cst_45 = arith.constant 1.000000e+00 : f32
    %99 = vector.broadcast %cst_45 : f32 to vector<2x32xf32>
    %100 = arith.addf %99, %98 : vector<2x32xf32>
    %101 = arith.divf %99, %100 : vector<2x32xf32>
    %102 = vector.extract_strided_slice %95 {offsets = [0, 32], sizes = [2, 32], strides = [1, 1]} : vector<2x128xf32> to vector<2x32xf32>
    %103 = arith.negf %102 : vector<2x32xf32>
    %104 = math.exp %103 : vector<2x32xf32>
    %cst_46 = arith.constant 1.000000e+00 : f32
    %105 = vector.broadcast %cst_46 : f32 to vector<2x32xf32>
    %106 = arith.addf %105, %104 : vector<2x32xf32>
    %107 = arith.divf %105, %106 : vector<2x32xf32>
    %108 = vector.extract_strided_slice %95 {offsets = [0, 64], sizes = [2, 32], strides = [1, 1]} : vector<2x128xf32> to vector<2x32xf32>
    %109 = math.tanh %108 : vector<2x32xf32>
    %110 = vector.extract_strided_slice %95 {offsets = [0, 96], sizes = [2, 32], strides = [1, 1]} : vector<2x128xf32> to vector<2x32xf32>
    %111 = arith.negf %110 : vector<2x32xf32>
    %112 = math.exp %111 : vector<2x32xf32>
    %cst_47 = arith.constant 1.000000e+00 : f32
    %113 = vector.broadcast %cst_47 : f32 to vector<2x32xf32>
    %114 = arith.addf %113, %112 : vector<2x32xf32>
    %115 = arith.divf %113, %114 : vector<2x32xf32>
    %116 = arith.mulf %107, %31 : vector<2x32xf32>
    %117 = arith.mulf %101, %109 : vector<2x32xf32>
    %118 = arith.addf %116, %117 : vector<2x32xf32>
    %119 = math.tanh %118 : vector<2x32xf32>
    %120 = arith.mulf %115, %119 : vector<2x32xf32>
    %c1_i32 = arith.constant 1 : i32
    %c2_i32_48 = arith.constant 2 : i32
    %121 = arith.muli %c1_i32, %c2_i32_48 : i32
    %122 = arith.index_cast %121 : i32 to index
    %c0_49 = arith.constant 0 : index
    %123 = vector.load %arg20[%122, %c0_49] : memref<16x128xf32, #tpu.memory_space<vmem>>, vector<2x128xf32>
    %124 = arith.truncf %62 : vector<2x32xf32> to vector<2x32xbf16>
    %cst_50 = arith.constant dense<0.000000e+00> : vector<2x128xf32>
    %125 = tpu.matmul %124, %11, %cst_50 {dimension_numbers = #tpu.dot_dimension_numbers<[1], [0], [0], [1], [0, 0, 1, 1], [], []>} : vector<2x32xbf16>, vector<32x128xbf16>, vector<2x128xf32> -> vector<2x128xf32>
    %126 = arith.addf %123, %125 : vector<2x128xf32>
    %127 = vector.extract_strided_slice %126 {offsets = [0, 0], sizes = [2, 32], strides = [1, 1]} : vector<2x128xf32> to vector<2x32xf32>
    %128 = arith.negf %127 : vector<2x32xf32>
    %129 = math.exp %128 : vector<2x32xf32>
    %cst_51 = arith.constant 1.000000e+00 : f32
    %130 = vector.broadcast %cst_51 : f32 to vector<2x32xf32>
    %131 = arith.addf %130, %129 : vector<2x32xf32>
    %132 = arith.divf %130, %131 : vector<2x32xf32>
    %133 = vector.extract_strided_slice %126 {offsets = [0, 32], sizes = [2, 32], strides = [1, 1]} : vector<2x128xf32> to vector<2x32xf32>
    %134 = arith.negf %133 : vector<2x32xf32>
    %135 = math.exp %134 : vector<2x32xf32>
    %cst_52 = arith.constant 1.000000e+00 : f32
    %136 = vector.broadcast %cst_52 : f32 to vector<2x32xf32>
    %137 = arith.addf %136, %135 : vector<2x32xf32>
    %138 = arith.divf %136, %137 : vector<2x32xf32>
    %139 = vector.extract_strided_slice %126 {offsets = [0, 64], sizes = [2, 32], strides = [1, 1]} : vector<2x128xf32> to vector<2x32xf32>
    %140 = math.tanh %139 : vector<2x32xf32>
    %141 = vector.extract_strided_slice %126 {offsets = [0, 96], sizes = [2, 32], strides = [1, 1]} : vector<2x128xf32> to vector<2x32xf32>
    %142 = arith.negf %141 : vector<2x32xf32>
    %143 = math.exp %142 : vector<2x32xf32>
    %cst_53 = arith.constant 1.000000e+00 : f32
    %144 = vector.broadcast %cst_53 : f32 to vector<2x32xf32>
    %145 = arith.addf %144, %143 : vector<2x32xf32>
    %146 = arith.divf %144, %145 : vector<2x32xf32>
    %147 = arith.mulf %138, %60 : vector<2x32xf32>
    %148 = arith.mulf %132, %140 : vector<2x32xf32>
    %149 = arith.addf %147, %148 : vector<2x32xf32>
    %150 = math.tanh %149 : vector<2x32xf32>
    %151 = arith.mulf %146, %150 : vector<2x32xf32>
    %152 = tpu.concatenate %151, %91 in 1 : vector<2x32xf32>, vector<2x32xf32> -> vector<2x64xf32>
    %153 = arith.truncf %152 : vector<2x64xf32> to vector<2x64xbf16>
    %cst_54 = arith.constant dense<0.000000e+00> : vector<2x128xf32>
    %154 = tpu.matmul %153, %12, %cst_54 {dimension_numbers = #tpu.dot_dimension_numbers<[1], [0], [0], [1], [0, 0, 1, 1], [], []>} : vector<2x64xbf16>, vector<64x128xbf16>, vector<2x128xf32> -> vector<2x128xf32>
    %155 = arith.addf %154, %16 : vector<2x128xf32>
    %156 = vector.extract_strided_slice %155 {offsets = [0, 0], sizes = [2, 32], strides = [1, 1]} : vector<2x128xf32> to vector<2x32xf32>
    %157 = arith.negf %156 : vector<2x32xf32>
    %158 = math.exp %157 : vector<2x32xf32>
    %cst_55 = arith.constant 1.000000e+00 : f32
    %159 = vector.broadcast %cst_55 : f32 to vector<2x32xf32>
    %160 = arith.addf %159, %158 : vector<2x32xf32>
    %161 = arith.divf %159, %160 : vector<2x32xf32>
    %162 = vector.extract_strided_slice %155 {offsets = [0, 32], sizes = [2, 32], strides = [1, 1]} : vector<2x128xf32> to vector<2x32xf32>
    %163 = arith.negf %162 : vector<2x32xf32>
    %164 = math.exp %163 : vector<2x32xf32>
    %cst_56 = arith.constant 1.000000e+00 : f32
    %165 = vector.broadcast %cst_56 : f32 to vector<2x32xf32>
    %166 = arith.addf %165, %164 : vector<2x32xf32>
    %167 = arith.divf %165, %166 : vector<2x32xf32>
    %168 = vector.extract_strided_slice %155 {offsets = [0, 64], sizes = [2, 32], strides = [1, 1]} : vector<2x128xf32> to vector<2x32xf32>
    %169 = math.tanh %168 : vector<2x32xf32>
    %170 = vector.extract_strided_slice %155 {offsets = [0, 96], sizes = [2, 32], strides = [1, 1]} : vector<2x128xf32> to vector<2x32xf32>
    %171 = arith.negf %170 : vector<2x32xf32>
    %172 = math.exp %171 : vector<2x32xf32>
    %cst_57 = arith.constant 1.000000e+00 : f32
    %173 = vector.broadcast %cst_57 : f32 to vector<2x32xf32>
    %174 = arith.addf %173, %172 : vector<2x32xf32>
    %175 = arith.divf %173, %174 : vector<2x32xf32>
    %176 = arith.mulf %167, %89 : vector<2x32xf32>
    %177 = arith.mulf %161, %169 : vector<2x32xf32>
    %178 = arith.addf %176, %177 : vector<2x32xf32>
    %179 = math.tanh %178 : vector<2x32xf32>
    %180 = arith.mulf %175, %179 : vector<2x32xf32>
    %181 = tpu.concatenate %180, %120 in 1 : vector<2x32xf32>, vector<2x32xf32> -> vector<2x64xf32>
    %182 = arith.truncf %181 : vector<2x64xf32> to vector<2x64xbf16>
    %cst_58 = arith.constant dense<0.000000e+00> : vector<2x128xf32>
    %183 = tpu.matmul %182, %13, %cst_58 {dimension_numbers = #tpu.dot_dimension_numbers<[1], [0], [0], [1], [0, 0, 1, 1], [], []>} : vector<2x64xbf16>, vector<64x128xbf16>, vector<2x128xf32> -> vector<2x128xf32>
    %184 = arith.addf %183, %19 : vector<2x128xf32>
    %185 = vector.extract_strided_slice %184 {offsets = [0, 0], sizes = [2, 32], strides = [1, 1]} : vector<2x128xf32> to vector<2x32xf32>
    %186 = arith.negf %185 : vector<2x32xf32>
    %187 = math.exp %186 : vector<2x32xf32>
    %cst_59 = arith.constant 1.000000e+00 : f32
    %188 = vector.broadcast %cst_59 : f32 to vector<2x32xf32>
    %189 = arith.addf %188, %187 : vector<2x32xf32>
    %190 = arith.divf %188, %189 : vector<2x32xf32>
    %191 = vector.extract_strided_slice %184 {offsets = [0, 32], sizes = [2, 32], strides = [1, 1]} : vector<2x128xf32> to vector<2x32xf32>
    %192 = arith.negf %191 : vector<2x32xf32>
    %193 = math.exp %192 : vector<2x32xf32>
    %cst_60 = arith.constant 1.000000e+00 : f32
    %194 = vector.broadcast %cst_60 : f32 to vector<2x32xf32>
    %195 = arith.addf %194, %193 : vector<2x32xf32>
    %196 = arith.divf %194, %195 : vector<2x32xf32>
    %197 = vector.extract_strided_slice %184 {offsets = [0, 64], sizes = [2, 32], strides = [1, 1]} : vector<2x128xf32> to vector<2x32xf32>
    %198 = math.tanh %197 : vector<2x32xf32>
    %199 = vector.extract_strided_slice %184 {offsets = [0, 96], sizes = [2, 32], strides = [1, 1]} : vector<2x128xf32> to vector<2x32xf32>
    %200 = arith.negf %199 : vector<2x32xf32>
    %201 = math.exp %200 : vector<2x32xf32>
    %cst_61 = arith.constant 1.000000e+00 : f32
    %202 = vector.broadcast %cst_61 : f32 to vector<2x32xf32>
    %203 = arith.addf %202, %201 : vector<2x32xf32>
    %204 = arith.divf %202, %203 : vector<2x32xf32>
    %205 = arith.mulf %196, %118 : vector<2x32xf32>
    %206 = arith.mulf %190, %198 : vector<2x32xf32>
    %207 = arith.addf %205, %206 : vector<2x32xf32>
    %208 = math.tanh %207 : vector<2x32xf32>
    %209 = arith.mulf %204, %208 : vector<2x32xf32>
    %c2_i32_62 = arith.constant 2 : i32
    %c2_i32_63 = arith.constant 2 : i32
    %210 = arith.muli %c2_i32_62, %c2_i32_63 : i32
    %211 = arith.index_cast %210 : i32 to index
    %c0_64 = arith.constant 0 : index
    %212 = vector.load %arg20[%211, %c0_64] : memref<16x128xf32, #tpu.memory_space<vmem>>, vector<2x128xf32>
    %213 = arith.truncf %151 : vector<2x32xf32> to vector<2x32xbf16>
    %cst_65 = arith.constant dense<0.000000e+00> : vector<2x128xf32>
    %214 = tpu.matmul %213, %11, %cst_65 {dimension_numbers = #tpu.dot_dimension_numbers<[1], [0], [0], [1], [0, 0, 1, 1], [], []>} : vector<2x32xbf16>, vector<32x128xbf16>, vector<2x128xf32> -> vector<2x128xf32>
    %215 = arith.addf %212, %214 : vector<2x128xf32>
    %216 = vector.extract_strided_slice %215 {offsets = [0, 0], sizes = [2, 32], strides = [1, 1]} : vector<2x128xf32> to vector<2x32xf32>
    %217 = arith.negf %216 : vector<2x32xf32>
    %218 = math.exp %217 : vector<2x32xf32>
    %cst_66 = arith.constant 1.000000e+00 : f32
    %219 = vector.broadcast %cst_66 : f32 to vector<2x32xf32>
    %220 = arith.addf %219, %218 : vector<2x32xf32>
    %221 = arith.divf %219, %220 : vector<2x32xf32>
    %222 = vector.extract_strided_slice %215 {offsets = [0, 32], sizes = [2, 32], strides = [1, 1]} : vector<2x128xf32> to vector<2x32xf32>
    %223 = arith.negf %222 : vector<2x32xf32>
    %224 = math.exp %223 : vector<2x32xf32>
    %cst_67 = arith.constant 1.000000e+00 : f32
    %225 = vector.broadcast %cst_67 : f32 to vector<2x32xf32>
    %226 = arith.addf %225, %224 : vector<2x32xf32>
    %227 = arith.divf %225, %226 : vector<2x32xf32>
    %228 = vector.extract_strided_slice %215 {offsets = [0, 64], sizes = [2, 32], strides = [1, 1]} : vector<2x128xf32> to vector<2x32xf32>
    %229 = math.tanh %228 : vector<2x32xf32>
    %230 = vector.extract_strided_slice %215 {offsets = [0, 96], sizes = [2, 32], strides = [1, 1]} : vector<2x128xf32> to vector<2x32xf32>
    %231 = arith.negf %230 : vector<2x32xf32>
    %232 = math.exp %231 : vector<2x32xf32>
    %cst_68 = arith.constant 1.000000e+00 : f32
    %233 = vector.broadcast %cst_68 : f32 to vector<2x32xf32>
    %234 = arith.addf %233, %232 : vector<2x32xf32>
    %235 = arith.divf %233, %234 : vector<2x32xf32>
    %236 = arith.mulf %227, %149 : vector<2x32xf32>
    %237 = arith.mulf %221, %229 : vector<2x32xf32>
    %238 = arith.addf %236, %237 : vector<2x32xf32>
    %239 = math.tanh %238 : vector<2x32xf32>
    %240 = arith.mulf %235, %239 : vector<2x32xf32>
    %241 = tpu.concatenate %240, %180 in 1 : vector<2x32xf32>, vector<2x32xf32> -> vector<2x64xf32>
    %242 = arith.truncf %241 : vector<2x64xf32> to vector<2x64xbf16>
    %cst_69 = arith.constant dense<0.000000e+00> : vector<2x128xf32>
    %243 = tpu.matmul %242, %12, %cst_69 {dimension_numbers = #tpu.dot_dimension_numbers<[1], [0], [0], [1], [0, 0, 1, 1], [], []>} : vector<2x64xbf16>, vector<64x128xbf16>, vector<2x128xf32> -> vector<2x128xf32>
    %244 = arith.addf %243, %16 : vector<2x128xf32>
    %245 = vector.extract_strided_slice %244 {offsets = [0, 0], sizes = [2, 32], strides = [1, 1]} : vector<2x128xf32> to vector<2x32xf32>
    %246 = arith.negf %245 : vector<2x32xf32>
    %247 = math.exp %246 : vector<2x32xf32>
    %cst_70 = arith.constant 1.000000e+00 : f32
    %248 = vector.broadcast %cst_70 : f32 to vector<2x32xf32>
    %249 = arith.addf %248, %247 : vector<2x32xf32>
    %250 = arith.divf %248, %249 : vector<2x32xf32>
    %251 = vector.extract_strided_slice %244 {offsets = [0, 32], sizes = [2, 32], strides = [1, 1]} : vector<2x128xf32> to vector<2x32xf32>
    %252 = arith.negf %251 : vector<2x32xf32>
    %253 = math.exp %252 : vector<2x32xf32>
    %cst_71 = arith.constant 1.000000e+00 : f32
    %254 = vector.broadcast %cst_71 : f32 to vector<2x32xf32>
    %255 = arith.addf %254, %253 : vector<2x32xf32>
    %256 = arith.divf %254, %255 : vector<2x32xf32>
    %257 = vector.extract_strided_slice %244 {offsets = [0, 64], sizes = [2, 32], strides = [1, 1]} : vector<2x128xf32> to vector<2x32xf32>
    %258 = math.tanh %257 : vector<2x32xf32>
    %259 = vector.extract_strided_slice %244 {offsets = [0, 96], sizes = [2, 32], strides = [1, 1]} : vector<2x128xf32> to vector<2x32xf32>
    %260 = arith.negf %259 : vector<2x32xf32>
    %261 = math.exp %260 : vector<2x32xf32>
    %cst_72 = arith.constant 1.000000e+00 : f32
    %262 = vector.broadcast %cst_72 : f32 to vector<2x32xf32>
    %263 = arith.addf %262, %261 : vector<2x32xf32>
    %264 = arith.divf %262, %263 : vector<2x32xf32>
    %265 = arith.mulf %256, %178 : vector<2x32xf32>
    %266 = arith.mulf %250, %258 : vector<2x32xf32>
    %267 = arith.addf %265, %266 : vector<2x32xf32>
    %268 = math.tanh %267 : vector<2x32xf32>
    %269 = arith.mulf %264, %268 : vector<2x32xf32>
    %270 = tpu.concatenate %269, %209 in 1 : vector<2x32xf32>, vector<2x32xf32> -> vector<2x64xf32>
    %271 = arith.truncf %270 : vector<2x64xf32> to vector<2x64xbf16>
    %cst_73 = arith.constant dense<0.000000e+00> : vector<2x128xf32>
    %272 = tpu.matmul %271, %13, %cst_73 {dimension_numbers = #tpu.dot_dimension_numbers<[1], [0], [0], [1], [0, 0, 1, 1], [], []>} : vector<2x64xbf16>, vector<64x128xbf16>, vector<2x128xf32> -> vector<2x128xf32>
    %273 = arith.addf %272, %19 : vector<2x128xf32>
    %274 = vector.extract_strided_slice %273 {offsets = [0, 0], sizes = [2, 32], strides = [1, 1]} : vector<2x128xf32> to vector<2x32xf32>
    %275 = arith.negf %274 : vector<2x32xf32>
    %276 = math.exp %275 : vector<2x32xf32>
    %cst_74 = arith.constant 1.000000e+00 : f32
    %277 = vector.broadcast %cst_74 : f32 to vector<2x32xf32>
    %278 = arith.addf %277, %276 : vector<2x32xf32>
    %279 = arith.divf %277, %278 : vector<2x32xf32>
    %280 = vector.extract_strided_slice %273 {offsets = [0, 32], sizes = [2, 32], strides = [1, 1]} : vector<2x128xf32> to vector<2x32xf32>
    %281 = arith.negf %280 : vector<2x32xf32>
    %282 = math.exp %281 : vector<2x32xf32>
    %cst_75 = arith.constant 1.000000e+00 : f32
    %283 = vector.broadcast %cst_75 : f32 to vector<2x32xf32>
    %284 = arith.addf %283, %282 : vector<2x32xf32>
    %285 = arith.divf %283, %284 : vector<2x32xf32>
    %286 = vector.extract_strided_slice %273 {offsets = [0, 64], sizes = [2, 32], strides = [1, 1]} : vector<2x128xf32> to vector<2x32xf32>
    %287 = math.tanh %286 : vector<2x32xf32>
    %288 = vector.extract_strided_slice %273 {offsets = [0, 96], sizes = [2, 32], strides = [1, 1]} : vector<2x128xf32> to vector<2x32xf32>
    %289 = arith.negf %288 : vector<2x32xf32>
    %290 = math.exp %289 : vector<2x32xf32>
    %cst_76 = arith.constant 1.000000e+00 : f32
    %291 = vector.broadcast %cst_76 : f32 to vector<2x32xf32>
    %292 = arith.addf %291, %290 : vector<2x32xf32>
    %293 = arith.divf %291, %292 : vector<2x32xf32>
    %294 = arith.mulf %285, %207 : vector<2x32xf32>
    %295 = arith.mulf %279, %287 : vector<2x32xf32>
    %296 = arith.addf %294, %295 : vector<2x32xf32>
    %297 = math.tanh %296 : vector<2x32xf32>
    %298 = arith.mulf %293, %297 : vector<2x32xf32>
    %c3_i32 = arith.constant 3 : i32
    %c2_i32_77 = arith.constant 2 : i32
    %299 = arith.muli %c3_i32, %c2_i32_77 : i32
    %300 = arith.index_cast %299 : i32 to index
    %c0_78 = arith.constant 0 : index
    %301 = vector.load %arg20[%300, %c0_78] : memref<16x128xf32, #tpu.memory_space<vmem>>, vector<2x128xf32>
    %302 = arith.truncf %240 : vector<2x32xf32> to vector<2x32xbf16>
    %cst_79 = arith.constant dense<0.000000e+00> : vector<2x128xf32>
    %303 = tpu.matmul %302, %11, %cst_79 {dimension_numbers = #tpu.dot_dimension_numbers<[1], [0], [0], [1], [0, 0, 1, 1], [], []>} : vector<2x32xbf16>, vector<32x128xbf16>, vector<2x128xf32> -> vector<2x128xf32>
    %304 = arith.addf %301, %303 : vector<2x128xf32>
    %305 = vector.extract_strided_slice %304 {offsets = [0, 0], sizes = [2, 32], strides = [1, 1]} : vector<2x128xf32> to vector<2x32xf32>
    %306 = arith.negf %305 : vector<2x32xf32>
    %307 = math.exp %306 : vector<2x32xf32>
    %cst_80 = arith.constant 1.000000e+00 : f32
    %308 = vector.broadcast %cst_80 : f32 to vector<2x32xf32>
    %309 = arith.addf %308, %307 : vector<2x32xf32>
    %310 = arith.divf %308, %309 : vector<2x32xf32>
    %311 = vector.extract_strided_slice %304 {offsets = [0, 32], sizes = [2, 32], strides = [1, 1]} : vector<2x128xf32> to vector<2x32xf32>
    %312 = arith.negf %311 : vector<2x32xf32>
    %313 = math.exp %312 : vector<2x32xf32>
    %cst_81 = arith.constant 1.000000e+00 : f32
    %314 = vector.broadcast %cst_81 : f32 to vector<2x32xf32>
    %315 = arith.addf %314, %313 : vector<2x32xf32>
    %316 = arith.divf %314, %315 : vector<2x32xf32>
    %317 = vector.extract_strided_slice %304 {offsets = [0, 64], sizes = [2, 32], strides = [1, 1]} : vector<2x128xf32> to vector<2x32xf32>
    %318 = math.tanh %317 : vector<2x32xf32>
    %319 = vector.extract_strided_slice %304 {offsets = [0, 96], sizes = [2, 32], strides = [1, 1]} : vector<2x128xf32> to vector<2x32xf32>
    %320 = arith.negf %319 : vector<2x32xf32>
    %321 = math.exp %320 : vector<2x32xf32>
    %cst_82 = arith.constant 1.000000e+00 : f32
    %322 = vector.broadcast %cst_82 : f32 to vector<2x32xf32>
    %323 = arith.addf %322, %321 : vector<2x32xf32>
    %324 = arith.divf %322, %323 : vector<2x32xf32>
    %325 = arith.mulf %316, %238 : vector<2x32xf32>
    %326 = arith.mulf %310, %318 : vector<2x32xf32>
    %327 = arith.addf %325, %326 : vector<2x32xf32>
    %328 = math.tanh %327 : vector<2x32xf32>
    %329 = arith.mulf %324, %328 : vector<2x32xf32>
    %330 = tpu.concatenate %329, %269 in 1 : vector<2x32xf32>, vector<2x32xf32> -> vector<2x64xf32>
    %331 = arith.truncf %330 : vector<2x64xf32> to vector<2x64xbf16>
    %cst_83 = arith.constant dense<0.000000e+00> : vector<2x128xf32>
    %332 = tpu.matmul %331, %12, %cst_83 {dimension_numbers = #tpu.dot_dimension_numbers<[1], [0], [0], [1], [0, 0, 1, 1], [], []>} : vector<2x64xbf16>, vector<64x128xbf16>, vector<2x128xf32> -> vector<2x128xf32>
    %333 = arith.addf %332, %16 : vector<2x128xf32>
    %334 = vector.extract_strided_slice %333 {offsets = [0, 0], sizes = [2, 32], strides = [1, 1]} : vector<2x128xf32> to vector<2x32xf32>
    %335 = arith.negf %334 : vector<2x32xf32>
    %336 = math.exp %335 : vector<2x32xf32>
    %cst_84 = arith.constant 1.000000e+00 : f32
    %337 = vector.broadcast %cst_84 : f32 to vector<2x32xf32>
    %338 = arith.addf %337, %336 : vector<2x32xf32>
    %339 = arith.divf %337, %338 : vector<2x32xf32>
    %340 = vector.extract_strided_slice %333 {offsets = [0, 32], sizes = [2, 32], strides = [1, 1]} : vector<2x128xf32> to vector<2x32xf32>
    %341 = arith.negf %340 : vector<2x32xf32>
    %342 = math.exp %341 : vector<2x32xf32>
    %cst_85 = arith.constant 1.000000e+00 : f32
    %343 = vector.broadcast %cst_85 : f32 to vector<2x32xf32>
    %344 = arith.addf %343, %342 : vector<2x32xf32>
    %345 = arith.divf %343, %344 : vector<2x32xf32>
    %346 = vector.extract_strided_slice %333 {offsets = [0, 64], sizes = [2, 32], strides = [1, 1]} : vector<2x128xf32> to vector<2x32xf32>
    %347 = math.tanh %346 : vector<2x32xf32>
    %348 = vector.extract_strided_slice %333 {offsets = [0, 96], sizes = [2, 32], strides = [1, 1]} : vector<2x128xf32> to vector<2x32xf32>
    %349 = arith.negf %348 : vector<2x32xf32>
    %350 = math.exp %349 : vector<2x32xf32>
    %cst_86 = arith.constant 1.000000e+00 : f32
    %351 = vector.broadcast %cst_86 : f32 to vector<2x32xf32>
    %352 = arith.addf %351, %350 : vector<2x32xf32>
    %353 = arith.divf %351, %352 : vector<2x32xf32>
    %354 = arith.mulf %345, %267 : vector<2x32xf32>
    %355 = arith.mulf %339, %347 : vector<2x32xf32>
    %356 = arith.addf %354, %355 : vector<2x32xf32>
    %357 = math.tanh %356 : vector<2x32xf32>
    %358 = arith.mulf %353, %357 : vector<2x32xf32>
    %359 = tpu.concatenate %358, %298 in 1 : vector<2x32xf32>, vector<2x32xf32> -> vector<2x64xf32>
    %360 = arith.truncf %359 : vector<2x64xf32> to vector<2x64xbf16>
    %cst_87 = arith.constant dense<0.000000e+00> : vector<2x128xf32>
    %361 = tpu.matmul %360, %13, %cst_87 {dimension_numbers = #tpu.dot_dimension_numbers<[1], [0], [0], [1], [0, 0, 1, 1], [], []>} : vector<2x64xbf16>, vector<64x128xbf16>, vector<2x128xf32> -> vector<2x128xf32>
    %362 = arith.addf %361, %19 : vector<2x128xf32>
    %363 = vector.extract_strided_slice %362 {offsets = [0, 0], sizes = [2, 32], strides = [1, 1]} : vector<2x128xf32> to vector<2x32xf32>
    %364 = arith.negf %363 : vector<2x32xf32>
    %365 = math.exp %364 : vector<2x32xf32>
    %cst_88 = arith.constant 1.000000e+00 : f32
    %366 = vector.broadcast %cst_88 : f32 to vector<2x32xf32>
    %367 = arith.addf %366, %365 : vector<2x32xf32>
    %368 = arith.divf %366, %367 : vector<2x32xf32>
    %369 = vector.extract_strided_slice %362 {offsets = [0, 32], sizes = [2, 32], strides = [1, 1]} : vector<2x128xf32> to vector<2x32xf32>
    %370 = arith.negf %369 : vector<2x32xf32>
    %371 = math.exp %370 : vector<2x32xf32>
    %cst_89 = arith.constant 1.000000e+00 : f32
    %372 = vector.broadcast %cst_89 : f32 to vector<2x32xf32>
    %373 = arith.addf %372, %371 : vector<2x32xf32>
    %374 = arith.divf %372, %373 : vector<2x32xf32>
    %375 = vector.extract_strided_slice %362 {offsets = [0, 64], sizes = [2, 32], strides = [1, 1]} : vector<2x128xf32> to vector<2x32xf32>
    %376 = math.tanh %375 : vector<2x32xf32>
    %377 = vector.extract_strided_slice %362 {offsets = [0, 96], sizes = [2, 32], strides = [1, 1]} : vector<2x128xf32> to vector<2x32xf32>
    %378 = arith.negf %377 : vector<2x32xf32>
    %379 = math.exp %378 : vector<2x32xf32>
    %cst_90 = arith.constant 1.000000e+00 : f32
    %380 = vector.broadcast %cst_90 : f32 to vector<2x32xf32>
    %381 = arith.addf %380, %379 : vector<2x32xf32>
    %382 = arith.divf %380, %381 : vector<2x32xf32>
    %383 = arith.mulf %374, %296 : vector<2x32xf32>
    %384 = arith.mulf %368, %376 : vector<2x32xf32>
    %385 = arith.addf %383, %384 : vector<2x32xf32>
    %386 = math.tanh %385 : vector<2x32xf32>
    %387 = arith.mulf %382, %386 : vector<2x32xf32>
    %c4_i32 = arith.constant 4 : i32
    %c2_i32_91 = arith.constant 2 : i32
    %388 = arith.muli %c4_i32, %c2_i32_91 : i32
    %389 = arith.index_cast %388 : i32 to index
    %c0_92 = arith.constant 0 : index
    %390 = vector.load %arg20[%389, %c0_92] : memref<16x128xf32, #tpu.memory_space<vmem>>, vector<2x128xf32>
    %391 = arith.truncf %329 : vector<2x32xf32> to vector<2x32xbf16>
    %cst_93 = arith.constant dense<0.000000e+00> : vector<2x128xf32>
    %392 = tpu.matmul %391, %11, %cst_93 {dimension_numbers = #tpu.dot_dimension_numbers<[1], [0], [0], [1], [0, 0, 1, 1], [], []>} : vector<2x32xbf16>, vector<32x128xbf16>, vector<2x128xf32> -> vector<2x128xf32>
    %393 = arith.addf %390, %392 : vector<2x128xf32>
    %394 = vector.extract_strided_slice %393 {offsets = [0, 0], sizes = [2, 32], strides = [1, 1]} : vector<2x128xf32> to vector<2x32xf32>
    %395 = arith.negf %394 : vector<2x32xf32>
    %396 = math.exp %395 : vector<2x32xf32>
    %cst_94 = arith.constant 1.000000e+00 : f32
    %397 = vector.broadcast %cst_94 : f32 to vector<2x32xf32>
    %398 = arith.addf %397, %396 : vector<2x32xf32>
    %399 = arith.divf %397, %398 : vector<2x32xf32>
    %400 = vector.extract_strided_slice %393 {offsets = [0, 32], sizes = [2, 32], strides = [1, 1]} : vector<2x128xf32> to vector<2x32xf32>
    %401 = arith.negf %400 : vector<2x32xf32>
    %402 = math.exp %401 : vector<2x32xf32>
    %cst_95 = arith.constant 1.000000e+00 : f32
    %403 = vector.broadcast %cst_95 : f32 to vector<2x32xf32>
    %404 = arith.addf %403, %402 : vector<2x32xf32>
    %405 = arith.divf %403, %404 : vector<2x32xf32>
    %406 = vector.extract_strided_slice %393 {offsets = [0, 64], sizes = [2, 32], strides = [1, 1]} : vector<2x128xf32> to vector<2x32xf32>
    %407 = math.tanh %406 : vector<2x32xf32>
    %408 = vector.extract_strided_slice %393 {offsets = [0, 96], sizes = [2, 32], strides = [1, 1]} : vector<2x128xf32> to vector<2x32xf32>
    %409 = arith.negf %408 : vector<2x32xf32>
    %410 = math.exp %409 : vector<2x32xf32>
    %cst_96 = arith.constant 1.000000e+00 : f32
    %411 = vector.broadcast %cst_96 : f32 to vector<2x32xf32>
    %412 = arith.addf %411, %410 : vector<2x32xf32>
    %413 = arith.divf %411, %412 : vector<2x32xf32>
    %414 = arith.mulf %405, %327 : vector<2x32xf32>
    %415 = arith.mulf %399, %407 : vector<2x32xf32>
    %416 = arith.addf %414, %415 : vector<2x32xf32>
    %417 = math.tanh %416 : vector<2x32xf32>
    %418 = arith.mulf %413, %417 : vector<2x32xf32>
    %419 = tpu.concatenate %418, %358 in 1 : vector<2x32xf32>, vector<2x32xf32> -> vector<2x64xf32>
    %420 = arith.truncf %419 : vector<2x64xf32> to vector<2x64xbf16>
    %cst_97 = arith.constant dense<0.000000e+00> : vector<2x128xf32>
    %421 = tpu.matmul %420, %12, %cst_97 {dimension_numbers = #tpu.dot_dimension_numbers<[1], [0], [0], [1], [0, 0, 1, 1], [], []>} : vector<2x64xbf16>, vector<64x128xbf16>, vector<2x128xf32> -> vector<2x128xf32>
    %422 = arith.addf %421, %16 : vector<2x128xf32>
    %423 = vector.extract_strided_slice %422 {offsets = [0, 0], sizes = [2, 32], strides = [1, 1]} : vector<2x128xf32> to vector<2x32xf32>
    %424 = arith.negf %423 : vector<2x32xf32>
    %425 = math.exp %424 : vector<2x32xf32>
    %cst_98 = arith.constant 1.000000e+00 : f32
    %426 = vector.broadcast %cst_98 : f32 to vector<2x32xf32>
    %427 = arith.addf %426, %425 : vector<2x32xf32>
    %428 = arith.divf %426, %427 : vector<2x32xf32>
    %429 = vector.extract_strided_slice %422 {offsets = [0, 32], sizes = [2, 32], strides = [1, 1]} : vector<2x128xf32> to vector<2x32xf32>
    %430 = arith.negf %429 : vector<2x32xf32>
    %431 = math.exp %430 : vector<2x32xf32>
    %cst_99 = arith.constant 1.000000e+00 : f32
    %432 = vector.broadcast %cst_99 : f32 to vector<2x32xf32>
    %433 = arith.addf %432, %431 : vector<2x32xf32>
    %434 = arith.divf %432, %433 : vector<2x32xf32>
    %435 = vector.extract_strided_slice %422 {offsets = [0, 64], sizes = [2, 32], strides = [1, 1]} : vector<2x128xf32> to vector<2x32xf32>
    %436 = math.tanh %435 : vector<2x32xf32>
    %437 = vector.extract_strided_slice %422 {offsets = [0, 96], sizes = [2, 32], strides = [1, 1]} : vector<2x128xf32> to vector<2x32xf32>
    %438 = arith.negf %437 : vector<2x32xf32>
    %439 = math.exp %438 : vector<2x32xf32>
    %cst_100 = arith.constant 1.000000e+00 : f32
    %440 = vector.broadcast %cst_100 : f32 to vector<2x32xf32>
    %441 = arith.addf %440, %439 : vector<2x32xf32>
    %442 = arith.divf %440, %441 : vector<2x32xf32>
    %443 = arith.mulf %434, %356 : vector<2x32xf32>
    %444 = arith.mulf %428, %436 : vector<2x32xf32>
    %445 = arith.addf %443, %444 : vector<2x32xf32>
    %446 = math.tanh %445 : vector<2x32xf32>
    %447 = arith.mulf %442, %446 : vector<2x32xf32>
    %448 = tpu.concatenate %447, %387 in 1 : vector<2x32xf32>, vector<2x32xf32> -> vector<2x64xf32>
    %449 = arith.truncf %448 : vector<2x64xf32> to vector<2x64xbf16>
    %cst_101 = arith.constant dense<0.000000e+00> : vector<2x128xf32>
    %450 = tpu.matmul %449, %13, %cst_101 {dimension_numbers = #tpu.dot_dimension_numbers<[1], [0], [0], [1], [0, 0, 1, 1], [], []>} : vector<2x64xbf16>, vector<64x128xbf16>, vector<2x128xf32> -> vector<2x128xf32>
    %451 = arith.addf %450, %19 : vector<2x128xf32>
    %452 = vector.extract_strided_slice %451 {offsets = [0, 0], sizes = [2, 32], strides = [1, 1]} : vector<2x128xf32> to vector<2x32xf32>
    %453 = arith.negf %452 : vector<2x32xf32>
    %454 = math.exp %453 : vector<2x32xf32>
    %cst_102 = arith.constant 1.000000e+00 : f32
    %455 = vector.broadcast %cst_102 : f32 to vector<2x32xf32>
    %456 = arith.addf %455, %454 : vector<2x32xf32>
    %457 = arith.divf %455, %456 : vector<2x32xf32>
    %458 = vector.extract_strided_slice %451 {offsets = [0, 32], sizes = [2, 32], strides = [1, 1]} : vector<2x128xf32> to vector<2x32xf32>
    %459 = arith.negf %458 : vector<2x32xf32>
    %460 = math.exp %459 : vector<2x32xf32>
    %cst_103 = arith.constant 1.000000e+00 : f32
    %461 = vector.broadcast %cst_103 : f32 to vector<2x32xf32>
    %462 = arith.addf %461, %460 : vector<2x32xf32>
    %463 = arith.divf %461, %462 : vector<2x32xf32>
    %464 = vector.extract_strided_slice %451 {offsets = [0, 64], sizes = [2, 32], strides = [1, 1]} : vector<2x128xf32> to vector<2x32xf32>
    %465 = math.tanh %464 : vector<2x32xf32>
    %466 = vector.extract_strided_slice %451 {offsets = [0, 96], sizes = [2, 32], strides = [1, 1]} : vector<2x128xf32> to vector<2x32xf32>
    %467 = arith.negf %466 : vector<2x32xf32>
    %468 = math.exp %467 : vector<2x32xf32>
    %cst_104 = arith.constant 1.000000e+00 : f32
    %469 = vector.broadcast %cst_104 : f32 to vector<2x32xf32>
    %470 = arith.addf %469, %468 : vector<2x32xf32>
    %471 = arith.divf %469, %470 : vector<2x32xf32>
    %472 = arith.mulf %463, %385 : vector<2x32xf32>
    %473 = arith.mulf %457, %465 : vector<2x32xf32>
    %474 = arith.addf %472, %473 : vector<2x32xf32>
    %475 = math.tanh %474 : vector<2x32xf32>
    %476 = arith.mulf %471, %475 : vector<2x32xf32>
    %c5_i32 = arith.constant 5 : i32
    %c2_i32_105 = arith.constant 2 : i32
    %477 = arith.muli %c5_i32, %c2_i32_105 : i32
    %478 = arith.index_cast %477 : i32 to index
    %c0_106 = arith.constant 0 : index
    %479 = vector.load %arg20[%478, %c0_106] : memref<16x128xf32, #tpu.memory_space<vmem>>, vector<2x128xf32>
    %480 = arith.truncf %418 : vector<2x32xf32> to vector<2x32xbf16>
    %cst_107 = arith.constant dense<0.000000e+00> : vector<2x128xf32>
    %481 = tpu.matmul %480, %11, %cst_107 {dimension_numbers = #tpu.dot_dimension_numbers<[1], [0], [0], [1], [0, 0, 1, 1], [], []>} : vector<2x32xbf16>, vector<32x128xbf16>, vector<2x128xf32> -> vector<2x128xf32>
    %482 = arith.addf %479, %481 : vector<2x128xf32>
    %483 = vector.extract_strided_slice %482 {offsets = [0, 0], sizes = [2, 32], strides = [1, 1]} : vector<2x128xf32> to vector<2x32xf32>
    %484 = arith.negf %483 : vector<2x32xf32>
    %485 = math.exp %484 : vector<2x32xf32>
    %cst_108 = arith.constant 1.000000e+00 : f32
    %486 = vector.broadcast %cst_108 : f32 to vector<2x32xf32>
    %487 = arith.addf %486, %485 : vector<2x32xf32>
    %488 = arith.divf %486, %487 : vector<2x32xf32>
    %489 = vector.extract_strided_slice %482 {offsets = [0, 32], sizes = [2, 32], strides = [1, 1]} : vector<2x128xf32> to vector<2x32xf32>
    %490 = arith.negf %489 : vector<2x32xf32>
    %491 = math.exp %490 : vector<2x32xf32>
    %cst_109 = arith.constant 1.000000e+00 : f32
    %492 = vector.broadcast %cst_109 : f32 to vector<2x32xf32>
    %493 = arith.addf %492, %491 : vector<2x32xf32>
    %494 = arith.divf %492, %493 : vector<2x32xf32>
    %495 = vector.extract_strided_slice %482 {offsets = [0, 64], sizes = [2, 32], strides = [1, 1]} : vector<2x128xf32> to vector<2x32xf32>
    %496 = math.tanh %495 : vector<2x32xf32>
    %497 = vector.extract_strided_slice %482 {offsets = [0, 96], sizes = [2, 32], strides = [1, 1]} : vector<2x128xf32> to vector<2x32xf32>
    %498 = arith.negf %497 : vector<2x32xf32>
    %499 = math.exp %498 : vector<2x32xf32>
    %cst_110 = arith.constant 1.000000e+00 : f32
    %500 = vector.broadcast %cst_110 : f32 to vector<2x32xf32>
    %501 = arith.addf %500, %499 : vector<2x32xf32>
    %502 = arith.divf %500, %501 : vector<2x32xf32>
    %503 = arith.mulf %494, %416 : vector<2x32xf32>
    %504 = arith.mulf %488, %496 : vector<2x32xf32>
    %505 = arith.addf %503, %504 : vector<2x32xf32>
    %506 = math.tanh %505 : vector<2x32xf32>
    %507 = arith.mulf %502, %506 : vector<2x32xf32>
    %508 = tpu.concatenate %507, %447 in 1 : vector<2x32xf32>, vector<2x32xf32> -> vector<2x64xf32>
    %509 = arith.truncf %508 : vector<2x64xf32> to vector<2x64xbf16>
    %cst_111 = arith.constant dense<0.000000e+00> : vector<2x128xf32>
    %510 = tpu.matmul %509, %12, %cst_111 {dimension_numbers = #tpu.dot_dimension_numbers<[1], [0], [0], [1], [0, 0, 1, 1], [], []>} : vector<2x64xbf16>, vector<64x128xbf16>, vector<2x128xf32> -> vector<2x128xf32>
    %511 = arith.addf %510, %16 : vector<2x128xf32>
    %512 = vector.extract_strided_slice %511 {offsets = [0, 0], sizes = [2, 32], strides = [1, 1]} : vector<2x128xf32> to vector<2x32xf32>
    %513 = arith.negf %512 : vector<2x32xf32>
    %514 = math.exp %513 : vector<2x32xf32>
    %cst_112 = arith.constant 1.000000e+00 : f32
    %515 = vector.broadcast %cst_112 : f32 to vector<2x32xf32>
    %516 = arith.addf %515, %514 : vector<2x32xf32>
    %517 = arith.divf %515, %516 : vector<2x32xf32>
    %518 = vector.extract_strided_slice %511 {offsets = [0, 32], sizes = [2, 32], strides = [1, 1]} : vector<2x128xf32> to vector<2x32xf32>
    %519 = arith.negf %518 : vector<2x32xf32>
    %520 = math.exp %519 : vector<2x32xf32>
    %cst_113 = arith.constant 1.000000e+00 : f32
    %521 = vector.broadcast %cst_113 : f32 to vector<2x32xf32>
    %522 = arith.addf %521, %520 : vector<2x32xf32>
    %523 = arith.divf %521, %522 : vector<2x32xf32>
    %524 = vector.extract_strided_slice %511 {offsets = [0, 64], sizes = [2, 32], strides = [1, 1]} : vector<2x128xf32> to vector<2x32xf32>
    %525 = math.tanh %524 : vector<2x32xf32>
    %526 = vector.extract_strided_slice %511 {offsets = [0, 96], sizes = [2, 32], strides = [1, 1]} : vector<2x128xf32> to vector<2x32xf32>
    %527 = arith.negf %526 : vector<2x32xf32>
    %528 = math.exp %527 : vector<2x32xf32>
    %cst_114 = arith.constant 1.000000e+00 : f32
    %529 = vector.broadcast %cst_114 : f32 to vector<2x32xf32>
    %530 = arith.addf %529, %528 : vector<2x32xf32>
    %531 = arith.divf %529, %530 : vector<2x32xf32>
    %532 = arith.mulf %523, %445 : vector<2x32xf32>
    %533 = arith.mulf %517, %525 : vector<2x32xf32>
    %534 = arith.addf %532, %533 : vector<2x32xf32>
    %535 = math.tanh %534 : vector<2x32xf32>
    %536 = arith.mulf %531, %535 : vector<2x32xf32>
    %537 = tpu.concatenate %536, %476 in 1 : vector<2x32xf32>, vector<2x32xf32> -> vector<2x64xf32>
    %538 = arith.truncf %537 : vector<2x64xf32> to vector<2x64xbf16>
    %cst_115 = arith.constant dense<0.000000e+00> : vector<2x128xf32>
    %539 = tpu.matmul %538, %13, %cst_115 {dimension_numbers = #tpu.dot_dimension_numbers<[1], [0], [0], [1], [0, 0, 1, 1], [], []>} : vector<2x64xbf16>, vector<64x128xbf16>, vector<2x128xf32> -> vector<2x128xf32>
    %540 = arith.addf %539, %19 : vector<2x128xf32>
    %541 = vector.extract_strided_slice %540 {offsets = [0, 0], sizes = [2, 32], strides = [1, 1]} : vector<2x128xf32> to vector<2x32xf32>
    %542 = arith.negf %541 : vector<2x32xf32>
    %543 = math.exp %542 : vector<2x32xf32>
    %cst_116 = arith.constant 1.000000e+00 : f32
    %544 = vector.broadcast %cst_116 : f32 to vector<2x32xf32>
    %545 = arith.addf %544, %543 : vector<2x32xf32>
    %546 = arith.divf %544, %545 : vector<2x32xf32>
    %547 = vector.extract_strided_slice %540 {offsets = [0, 32], sizes = [2, 32], strides = [1, 1]} : vector<2x128xf32> to vector<2x32xf32>
    %548 = arith.negf %547 : vector<2x32xf32>
    %549 = math.exp %548 : vector<2x32xf32>
    %cst_117 = arith.constant 1.000000e+00 : f32
    %550 = vector.broadcast %cst_117 : f32 to vector<2x32xf32>
    %551 = arith.addf %550, %549 : vector<2x32xf32>
    %552 = arith.divf %550, %551 : vector<2x32xf32>
    %553 = vector.extract_strided_slice %540 {offsets = [0, 64], sizes = [2, 32], strides = [1, 1]} : vector<2x128xf32> to vector<2x32xf32>
    %554 = math.tanh %553 : vector<2x32xf32>
    %555 = vector.extract_strided_slice %540 {offsets = [0, 96], sizes = [2, 32], strides = [1, 1]} : vector<2x128xf32> to vector<2x32xf32>
    %556 = arith.negf %555 : vector<2x32xf32>
    %557 = math.exp %556 : vector<2x32xf32>
    %cst_118 = arith.constant 1.000000e+00 : f32
    %558 = vector.broadcast %cst_118 : f32 to vector<2x32xf32>
    %559 = arith.addf %558, %557 : vector<2x32xf32>
    %560 = arith.divf %558, %559 : vector<2x32xf32>
    %561 = arith.mulf %552, %474 : vector<2x32xf32>
    %562 = arith.mulf %546, %554 : vector<2x32xf32>
    %563 = arith.addf %561, %562 : vector<2x32xf32>
    %564 = math.tanh %563 : vector<2x32xf32>
    %565 = arith.mulf %560, %564 : vector<2x32xf32>
    %c6_i32 = arith.constant 6 : i32
    %c2_i32_119 = arith.constant 2 : i32
    %566 = arith.muli %c6_i32, %c2_i32_119 : i32
    %567 = arith.index_cast %566 : i32 to index
    %c0_120 = arith.constant 0 : index
    %568 = vector.load %arg20[%567, %c0_120] : memref<16x128xf32, #tpu.memory_space<vmem>>, vector<2x128xf32>
    %569 = arith.truncf %507 : vector<2x32xf32> to vector<2x32xbf16>
    %cst_121 = arith.constant dense<0.000000e+00> : vector<2x128xf32>
    %570 = tpu.matmul %569, %11, %cst_121 {dimension_numbers = #tpu.dot_dimension_numbers<[1], [0], [0], [1], [0, 0, 1, 1], [], []>} : vector<2x32xbf16>, vector<32x128xbf16>, vector<2x128xf32> -> vector<2x128xf32>
    %571 = arith.addf %568, %570 : vector<2x128xf32>
    %572 = vector.extract_strided_slice %571 {offsets = [0, 0], sizes = [2, 32], strides = [1, 1]} : vector<2x128xf32> to vector<2x32xf32>
    %573 = arith.negf %572 : vector<2x32xf32>
    %574 = math.exp %573 : vector<2x32xf32>
    %cst_122 = arith.constant 1.000000e+00 : f32
    %575 = vector.broadcast %cst_122 : f32 to vector<2x32xf32>
    %576 = arith.addf %575, %574 : vector<2x32xf32>
    %577 = arith.divf %575, %576 : vector<2x32xf32>
    %578 = vector.extract_strided_slice %571 {offsets = [0, 32], sizes = [2, 32], strides = [1, 1]} : vector<2x128xf32> to vector<2x32xf32>
    %579 = arith.negf %578 : vector<2x32xf32>
    %580 = math.exp %579 : vector<2x32xf32>
    %cst_123 = arith.constant 1.000000e+00 : f32
    %581 = vector.broadcast %cst_123 : f32 to vector<2x32xf32>
    %582 = arith.addf %581, %580 : vector<2x32xf32>
    %583 = arith.divf %581, %582 : vector<2x32xf32>
    %584 = vector.extract_strided_slice %571 {offsets = [0, 64], sizes = [2, 32], strides = [1, 1]} : vector<2x128xf32> to vector<2x32xf32>
    %585 = math.tanh %584 : vector<2x32xf32>
    %586 = vector.extract_strided_slice %571 {offsets = [0, 96], sizes = [2, 32], strides = [1, 1]} : vector<2x128xf32> to vector<2x32xf32>
    %587 = arith.negf %586 : vector<2x32xf32>
    %588 = math.exp %587 : vector<2x32xf32>
    %cst_124 = arith.constant 1.000000e+00 : f32
    %589 = vector.broadcast %cst_124 : f32 to vector<2x32xf32>
    %590 = arith.addf %589, %588 : vector<2x32xf32>
    %591 = arith.divf %589, %590 : vector<2x32xf32>
    %592 = arith.mulf %583, %505 : vector<2x32xf32>
    %593 = arith.mulf %577, %585 : vector<2x32xf32>
    %594 = arith.addf %592, %593 : vector<2x32xf32>
    %595 = math.tanh %594 : vector<2x32xf32>
    %596 = arith.mulf %591, %595 : vector<2x32xf32>
    %597 = tpu.concatenate %596, %536 in 1 : vector<2x32xf32>, vector<2x32xf32> -> vector<2x64xf32>
    %598 = arith.truncf %597 : vector<2x64xf32> to vector<2x64xbf16>
    %cst_125 = arith.constant dense<0.000000e+00> : vector<2x128xf32>
    %599 = tpu.matmul %598, %12, %cst_125 {dimension_numbers = #tpu.dot_dimension_numbers<[1], [0], [0], [1], [0, 0, 1, 1], [], []>} : vector<2x64xbf16>, vector<64x128xbf16>, vector<2x128xf32> -> vector<2x128xf32>
    %600 = arith.addf %599, %16 : vector<2x128xf32>
    %601 = vector.extract_strided_slice %600 {offsets = [0, 0], sizes = [2, 32], strides = [1, 1]} : vector<2x128xf32> to vector<2x32xf32>
    %602 = arith.negf %601 : vector<2x32xf32>
    %603 = math.exp %602 : vector<2x32xf32>
    %cst_126 = arith.constant 1.000000e+00 : f32
    %604 = vector.broadcast %cst_126 : f32 to vector<2x32xf32>
    %605 = arith.addf %604, %603 : vector<2x32xf32>
    %606 = arith.divf %604, %605 : vector<2x32xf32>
    %607 = vector.extract_strided_slice %600 {offsets = [0, 32], sizes = [2, 32], strides = [1, 1]} : vector<2x128xf32> to vector<2x32xf32>
    %608 = arith.negf %607 : vector<2x32xf32>
    %609 = math.exp %608 : vector<2x32xf32>
    %cst_127 = arith.constant 1.000000e+00 : f32
    %610 = vector.broadcast %cst_127 : f32 to vector<2x32xf32>
    %611 = arith.addf %610, %609 : vector<2x32xf32>
    %612 = arith.divf %610, %611 : vector<2x32xf32>
    %613 = vector.extract_strided_slice %600 {offsets = [0, 64], sizes = [2, 32], strides = [1, 1]} : vector<2x128xf32> to vector<2x32xf32>
    %614 = math.tanh %613 : vector<2x32xf32>
    %615 = vector.extract_strided_slice %600 {offsets = [0, 96], sizes = [2, 32], strides = [1, 1]} : vector<2x128xf32> to vector<2x32xf32>
    %616 = arith.negf %615 : vector<2x32xf32>
    %617 = math.exp %616 : vector<2x32xf32>
    %cst_128 = arith.constant 1.000000e+00 : f32
    %618 = vector.broadcast %cst_128 : f32 to vector<2x32xf32>
    %619 = arith.addf %618, %617 : vector<2x32xf32>
    %620 = arith.divf %618, %619 : vector<2x32xf32>
    %621 = arith.mulf %612, %534 : vector<2x32xf32>
    %622 = arith.mulf %606, %614 : vector<2x32xf32>
    %623 = arith.addf %621, %622 : vector<2x32xf32>
    %624 = math.tanh %623 : vector<2x32xf32>
    %625 = arith.mulf %620, %624 : vector<2x32xf32>
    %626 = tpu.concatenate %625, %565 in 1 : vector<2x32xf32>, vector<2x32xf32> -> vector<2x64xf32>
    %627 = arith.truncf %626 : vector<2x64xf32> to vector<2x64xbf16>
    %cst_129 = arith.constant dense<0.000000e+00> : vector<2x128xf32>
    %628 = tpu.matmul %627, %13, %cst_129 {dimension_numbers = #tpu.dot_dimension_numbers<[1], [0], [0], [1], [0, 0, 1, 1], [], []>} : vector<2x64xbf16>, vector<64x128xbf16>, vector<2x128xf32> -> vector<2x128xf32>
    %629 = arith.addf %628, %19 : vector<2x128xf32>
    %630 = vector.extract_strided_slice %629 {offsets = [0, 0], sizes = [2, 32], strides = [1, 1]} : vector<2x128xf32> to vector<2x32xf32>
    %631 = arith.negf %630 : vector<2x32xf32>
    %632 = math.exp %631 : vector<2x32xf32>
    %cst_130 = arith.constant 1.000000e+00 : f32
    %633 = vector.broadcast %cst_130 : f32 to vector<2x32xf32>
    %634 = arith.addf %633, %632 : vector<2x32xf32>
    %635 = arith.divf %633, %634 : vector<2x32xf32>
    %636 = vector.extract_strided_slice %629 {offsets = [0, 32], sizes = [2, 32], strides = [1, 1]} : vector<2x128xf32> to vector<2x32xf32>
    %637 = arith.negf %636 : vector<2x32xf32>
    %638 = math.exp %637 : vector<2x32xf32>
    %cst_131 = arith.constant 1.000000e+00 : f32
    %639 = vector.broadcast %cst_131 : f32 to vector<2x32xf32>
    %640 = arith.addf %639, %638 : vector<2x32xf32>
    %641 = arith.divf %639, %640 : vector<2x32xf32>
    %642 = vector.extract_strided_slice %629 {offsets = [0, 64], sizes = [2, 32], strides = [1, 1]} : vector<2x128xf32> to vector<2x32xf32>
    %643 = math.tanh %642 : vector<2x32xf32>
    %644 = vector.extract_strided_slice %629 {offsets = [0, 96], sizes = [2, 32], strides = [1, 1]} : vector<2x128xf32> to vector<2x32xf32>
    %645 = arith.negf %644 : vector<2x32xf32>
    %646 = math.exp %645 : vector<2x32xf32>
    %cst_132 = arith.constant 1.000000e+00 : f32
    %647 = vector.broadcast %cst_132 : f32 to vector<2x32xf32>
    %648 = arith.addf %647, %646 : vector<2x32xf32>
    %649 = arith.divf %647, %648 : vector<2x32xf32>
    %650 = arith.mulf %641, %563 : vector<2x32xf32>
    %651 = arith.mulf %635, %643 : vector<2x32xf32>
    %652 = arith.addf %650, %651 : vector<2x32xf32>
    %653 = math.tanh %652 : vector<2x32xf32>
    %654 = arith.mulf %649, %653 : vector<2x32xf32>
    %c7_i32 = arith.constant 7 : i32
    %c2_i32_133 = arith.constant 2 : i32
    %655 = arith.muli %c7_i32, %c2_i32_133 : i32
    %656 = arith.index_cast %655 : i32 to index
    %c0_134 = arith.constant 0 : index
    %657 = vector.load %arg20[%656, %c0_134] : memref<16x128xf32, #tpu.memory_space<vmem>>, vector<2x128xf32>
    %658 = arith.truncf %596 : vector<2x32xf32> to vector<2x32xbf16>
    %cst_135 = arith.constant dense<0.000000e+00> : vector<2x128xf32>
    %659 = tpu.matmul %658, %11, %cst_135 {dimension_numbers = #tpu.dot_dimension_numbers<[1], [0], [0], [1], [0, 0, 1, 1], [], []>} : vector<2x32xbf16>, vector<32x128xbf16>, vector<2x128xf32> -> vector<2x128xf32>
    %660 = arith.addf %657, %659 : vector<2x128xf32>
    %661 = vector.extract_strided_slice %660 {offsets = [0, 0], sizes = [2, 32], strides = [1, 1]} : vector<2x128xf32> to vector<2x32xf32>
    %662 = arith.negf %661 : vector<2x32xf32>
    %663 = math.exp %662 : vector<2x32xf32>
    %cst_136 = arith.constant 1.000000e+00 : f32
    %664 = vector.broadcast %cst_136 : f32 to vector<2x32xf32>
    %665 = arith.addf %664, %663 : vector<2x32xf32>
    %666 = arith.divf %664, %665 : vector<2x32xf32>
    %667 = vector.extract_strided_slice %660 {offsets = [0, 32], sizes = [2, 32], strides = [1, 1]} : vector<2x128xf32> to vector<2x32xf32>
    %668 = arith.negf %667 : vector<2x32xf32>
    %669 = math.exp %668 : vector<2x32xf32>
    %cst_137 = arith.constant 1.000000e+00 : f32
    %670 = vector.broadcast %cst_137 : f32 to vector<2x32xf32>
    %671 = arith.addf %670, %669 : vector<2x32xf32>
    %672 = arith.divf %670, %671 : vector<2x32xf32>
    %673 = vector.extract_strided_slice %660 {offsets = [0, 64], sizes = [2, 32], strides = [1, 1]} : vector<2x128xf32> to vector<2x32xf32>
    %674 = math.tanh %673 : vector<2x32xf32>
    %675 = vector.extract_strided_slice %660 {offsets = [0, 96], sizes = [2, 32], strides = [1, 1]} : vector<2x128xf32> to vector<2x32xf32>
    %676 = arith.negf %675 : vector<2x32xf32>
    %677 = math.exp %676 : vector<2x32xf32>
    %cst_138 = arith.constant 1.000000e+00 : f32
    %678 = vector.broadcast %cst_138 : f32 to vector<2x32xf32>
    %679 = arith.addf %678, %677 : vector<2x32xf32>
    %680 = arith.divf %678, %679 : vector<2x32xf32>
    %681 = arith.mulf %672, %594 : vector<2x32xf32>
    %682 = arith.mulf %666, %674 : vector<2x32xf32>
    %683 = arith.addf %681, %682 : vector<2x32xf32>
    %684 = math.tanh %683 : vector<2x32xf32>
    %685 = arith.mulf %680, %684 : vector<2x32xf32>
    %686 = tpu.concatenate %685, %625 in 1 : vector<2x32xf32>, vector<2x32xf32> -> vector<2x64xf32>
    %687 = arith.truncf %686 : vector<2x64xf32> to vector<2x64xbf16>
    %cst_139 = arith.constant dense<0.000000e+00> : vector<2x128xf32>
    %688 = tpu.matmul %687, %12, %cst_139 {dimension_numbers = #tpu.dot_dimension_numbers<[1], [0], [0], [1], [0, 0, 1, 1], [], []>} : vector<2x64xbf16>, vector<64x128xbf16>, vector<2x128xf32> -> vector<2x128xf32>
    %689 = arith.addf %688, %16 : vector<2x128xf32>
    %690 = vector.extract_strided_slice %689 {offsets = [0, 0], sizes = [2, 32], strides = [1, 1]} : vector<2x128xf32> to vector<2x32xf32>
    %691 = arith.negf %690 : vector<2x32xf32>
    %692 = math.exp %691 : vector<2x32xf32>
    %cst_140 = arith.constant 1.000000e+00 : f32
    %693 = vector.broadcast %cst_140 : f32 to vector<2x32xf32>
    %694 = arith.addf %693, %692 : vector<2x32xf32>
    %695 = arith.divf %693, %694 : vector<2x32xf32>
    %696 = vector.extract_strided_slice %689 {offsets = [0, 32], sizes = [2, 32], strides = [1, 1]} : vector<2x128xf32> to vector<2x32xf32>
    %697 = arith.negf %696 : vector<2x32xf32>
    %698 = math.exp %697 : vector<2x32xf32>
    %cst_141 = arith.constant 1.000000e+00 : f32
    %699 = vector.broadcast %cst_141 : f32 to vector<2x32xf32>
    %700 = arith.addf %699, %698 : vector<2x32xf32>
    %701 = arith.divf %699, %700 : vector<2x32xf32>
    %702 = vector.extract_strided_slice %689 {offsets = [0, 64], sizes = [2, 32], strides = [1, 1]} : vector<2x128xf32> to vector<2x32xf32>
    %703 = math.tanh %702 : vector<2x32xf32>
    %704 = vector.extract_strided_slice %689 {offsets = [0, 96], sizes = [2, 32], strides = [1, 1]} : vector<2x128xf32> to vector<2x32xf32>
    %705 = arith.negf %704 : vector<2x32xf32>
    %706 = math.exp %705 : vector<2x32xf32>
    %cst_142 = arith.constant 1.000000e+00 : f32
    %707 = vector.broadcast %cst_142 : f32 to vector<2x32xf32>
    %708 = arith.addf %707, %706 : vector<2x32xf32>
    %709 = arith.divf %707, %708 : vector<2x32xf32>
    %710 = arith.mulf %701, %623 : vector<2x32xf32>
    %711 = arith.mulf %695, %703 : vector<2x32xf32>
    %712 = arith.addf %710, %711 : vector<2x32xf32>
    %713 = math.tanh %712 : vector<2x32xf32>
    %714 = arith.mulf %709, %713 : vector<2x32xf32>
    %715 = tpu.concatenate %714, %654 in 1 : vector<2x32xf32>, vector<2x32xf32> -> vector<2x64xf32>
    %716 = arith.truncf %715 : vector<2x64xf32> to vector<2x64xbf16>
    %cst_143 = arith.constant dense<0.000000e+00> : vector<2x128xf32>
    %717 = tpu.matmul %716, %13, %cst_143 {dimension_numbers = #tpu.dot_dimension_numbers<[1], [0], [0], [1], [0, 0, 1, 1], [], []>} : vector<2x64xbf16>, vector<64x128xbf16>, vector<2x128xf32> -> vector<2x128xf32>
    %718 = arith.addf %717, %19 : vector<2x128xf32>
    %719 = vector.extract_strided_slice %718 {offsets = [0, 0], sizes = [2, 32], strides = [1, 1]} : vector<2x128xf32> to vector<2x32xf32>
    %720 = arith.negf %719 : vector<2x32xf32>
    %721 = math.exp %720 : vector<2x32xf32>
    %cst_144 = arith.constant 1.000000e+00 : f32
    %722 = vector.broadcast %cst_144 : f32 to vector<2x32xf32>
    %723 = arith.addf %722, %721 : vector<2x32xf32>
    %724 = arith.divf %722, %723 : vector<2x32xf32>
    %725 = vector.extract_strided_slice %718 {offsets = [0, 32], sizes = [2, 32], strides = [1, 1]} : vector<2x128xf32> to vector<2x32xf32>
    %726 = arith.negf %725 : vector<2x32xf32>
    %727 = math.exp %726 : vector<2x32xf32>
    %cst_145 = arith.constant 1.000000e+00 : f32
    %728 = vector.broadcast %cst_145 : f32 to vector<2x32xf32>
    %729 = arith.addf %728, %727 : vector<2x32xf32>
    %730 = arith.divf %728, %729 : vector<2x32xf32>
    %731 = vector.extract_strided_slice %718 {offsets = [0, 64], sizes = [2, 32], strides = [1, 1]} : vector<2x128xf32> to vector<2x32xf32>
    %732 = math.tanh %731 : vector<2x32xf32>
    %733 = vector.extract_strided_slice %718 {offsets = [0, 96], sizes = [2, 32], strides = [1, 1]} : vector<2x128xf32> to vector<2x32xf32>
    %734 = arith.negf %733 : vector<2x32xf32>
    %735 = math.exp %734 : vector<2x32xf32>
    %cst_146 = arith.constant 1.000000e+00 : f32
    %736 = vector.broadcast %cst_146 : f32 to vector<2x32xf32>
    %737 = arith.addf %736, %735 : vector<2x32xf32>
    %738 = arith.divf %736, %737 : vector<2x32xf32>
    %739 = arith.mulf %730, %652 : vector<2x32xf32>
    %740 = arith.mulf %724, %732 : vector<2x32xf32>
    %741 = arith.addf %739, %740 : vector<2x32xf32>
    %742 = math.tanh %741 : vector<2x32xf32>
    %743 = arith.mulf %738, %742 : vector<2x32xf32>
    %c8_i32 = arith.constant 8 : i32
    %c0_147 = arith.constant 0 : index
    %c0_148 = arith.constant 0 : index
    %c0_149 = arith.constant 0 : index
    %744 = vector.load %arg18[%c0_147, %c0_148, %c0_149] : memref<3x2x32xf32, #tpu.memory_space<vmem>>, vector<1x2x32xf32>
    %745 = vector.shape_cast %744 : vector<1x2x32xf32> to vector<2x32xf32>
    %746 = vector.shape_cast %685 : vector<2x32xf32> to vector<1x2x32xf32>
    tpu.vector_store %arg18[%c0_147, %c0_148, %c0_149], %746 {strides = array<i32>} : memref<3x2x32xf32, #tpu.memory_space<vmem>>, vector<1x2x32xf32>,
    %c0_150 = arith.constant 0 : index
    %c0_151 = arith.constant 0 : index
    %c0_152 = arith.constant 0 : index
    %747 = vector.load %arg19[%c0_150, %c0_151, %c0_152] : memref<3x2x32xf32, #tpu.memory_space<vmem>>, vector<1x2x32xf32>
    %748 = vector.shape_cast %747 : vector<1x2x32xf32> to vector<2x32xf32>
    %749 = vector.shape_cast %683 : vector<2x32xf32> to vector<1x2x32xf32>
    tpu.vector_store %arg19[%c0_150, %c0_151, %c0_152], %749 {strides = array<i32>} : memref<3x2x32xf32, #tpu.memory_space<vmem>>, vector<1x2x32xf32>,
    %c1_153 = arith.constant 1 : index
    %c0_154 = arith.constant 0 : index
    %c0_155 = arith.constant 0 : index
    %750 = vector.load %arg18[%c1_153, %c0_154, %c0_155] : memref<3x2x32xf32, #tpu.memory_space<vmem>>, vector<1x2x32xf32>
    %751 = vector.shape_cast %750 : vector<1x2x32xf32> to vector<2x32xf32>
    %752 = vector.shape_cast %714 : vector<2x32xf32> to vector<1x2x32xf32>
    tpu.vector_store %arg18[%c1_153, %c0_154, %c0_155], %752 {strides = array<i32>} : memref<3x2x32xf32, #tpu.memory_space<vmem>>, vector<1x2x32xf32>,
    %c1_156 = arith.constant 1 : index
    %c0_157 = arith.constant 0 : index
    %c0_158 = arith.constant 0 : index
    %753 = vector.load %arg19[%c1_156, %c0_157, %c0_158] : memref<3x2x32xf32, #tpu.memory_space<vmem>>, vector<1x2x32xf32>
    %754 = vector.shape_cast %753 : vector<1x2x32xf32> to vector<2x32xf32>
    %755 = vector.shape_cast %712 : vector<2x32xf32> to vector<1x2x32xf32>
    tpu.vector_store %arg19[%c1_156, %c0_157, %c0_158], %755 {strides = array<i32>} : memref<3x2x32xf32, #tpu.memory_space<vmem>>, vector<1x2x32xf32>,
    %c2_159 = arith.constant 2 : index
    %c0_160 = arith.constant 0 : index
    %c0_161 = arith.constant 0 : index
    %756 = vector.load %arg18[%c2_159, %c0_160, %c0_161] : memref<3x2x32xf32, #tpu.memory_space<vmem>>, vector<1x2x32xf32>
    %757 = vector.shape_cast %756 : vector<1x2x32xf32> to vector<2x32xf32>
    %758 = vector.shape_cast %743 : vector<2x32xf32> to vector<1x2x32xf32>
    tpu.vector_store %arg18[%c2_159, %c0_160, %c0_161], %758 {strides = array<i32>} : memref<3x2x32xf32, #tpu.memory_space<vmem>>, vector<1x2x32xf32>,
    %c2_162 = arith.constant 2 : index
    %c0_163 = arith.constant 0 : index
    %c0_164 = arith.constant 0 : index
    %759 = vector.load %arg19[%c2_162, %c0_163, %c0_164] : memref<3x2x32xf32, #tpu.memory_space<vmem>>, vector<1x2x32xf32>
    %760 = vector.shape_cast %759 : vector<1x2x32xf32> to vector<2x32xf32>
    %761 = vector.shape_cast %741 : vector<2x32xf32> to vector<1x2x32xf32>
    tpu.vector_store %arg19[%c2_162, %c0_163, %c0_164], %761 {strides = array<i32>} : memref<3x2x32xf32, #tpu.memory_space<vmem>>, vector<1x2x32xf32>,
    %c0_i32_165 = arith.constant 0 : i32
    %762 = arith.cmpi eq, %arg0, %c0_i32_165 : i32
    %763 = arith.extui %762 : i1 to i32
    %c0_i32_166 = arith.constant 0 : i32
    %764 = arith.cmpi ne, %763, %c0_i32_166 : i32
    scf.if %764 {
      %765 = arith.truncf %743 : vector<2x32xf32> to vector<2x32xbf16>
      %c0_167 = arith.constant 0 : index
      %c0_168 = arith.constant 0 : index
      %766 = vector.load %arg9[%c0_167, %c0_168] : memref<32x1024xbf16, #tpu.memory_space<vmem>>, vector<32x1024xbf16>
      %cst_169 = arith.constant dense<0.000000e+00> : vector<2x1024xf32>
      %767 = tpu.matmul %765, %766, %cst_169 {dimension_numbers = #tpu.dot_dimension_numbers<[1], [0], [0], [1], [0, 0, 1, 1], [], []>} : vector<2x32xbf16>, vector<32x1024xbf16>, vector<2x1024xf32> -> vector<2x1024xf32>
      %c0_170 = arith.constant 0 : index
      %c0_171 = arith.constant 0 : index
      %768 = vector.load %arg10[%c0_170, %c0_171] : memref<1x1024xf32, #tpu.memory_space<vmem>>, vector<1x1024xf32>
      %769 = vector.broadcast %768 : vector<1x1024xf32> to vector<2x1024xf32>
      %770 = arith.addf %767, %769 : vector<2x1024xf32>
      %771 = math.tanh %770 : vector<2x1024xf32>
      %772 = arith.truncf %771 : vector<2x1024xf32> to vector<2x1024xbf16>
      %c0_172 = arith.constant 0 : index
      %c0_173 = arith.constant 0 : index
      %773 = vector.load %arg11[%c0_172, %c0_173] : memref<1024x1024xbf16, #tpu.memory_space<vmem>>, vector<1024x1024xbf16>
      %cst_174 = arith.constant dense<0.000000e+00> : vector<2x1024xf32>
      %774 = tpu.matmul %772, %773, %cst_174 {dimension_numbers = #tpu.dot_dimension_numbers<[1], [0], [0], [1], [0, 0, 1, 1], [], []>} : vector<2x1024xbf16>, vector<1024x1024xbf16>, vector<2x1024xf32> -> vector<2x1024xf32>
      %c0_175 = arith.constant 0 : index
      %c0_176 = arith.constant 0 : index
      %775 = vector.load %arg12[%c0_175, %c0_176] : memref<1x1024xf32, #tpu.memory_space<vmem>>, vector<1x1024xf32>
      %776 = vector.broadcast %775 : vector<1x1024xf32> to vector<2x1024xf32>
      %777 = arith.addf %774, %776 : vector<2x1024xf32>
      %778 = math.tanh %777 : vector<2x1024xf32>
      %779 = arith.truncf %778 : vector<2x1024xf32> to vector<2x1024xbf16>
      %c0_177 = arith.constant 0 : index
      %c0_178 = arith.constant 0 : index
      %780 = vector.load %arg13[%c0_177, %c0_178] : memref<1024x1024xbf16, #tpu.memory_space<vmem>>, vector<1024x1024xbf16>
      %cst_179 = arith.constant dense<0.000000e+00> : vector<2x1024xf32>
      %781 = tpu.matmul %779, %780, %cst_179 {dimension_numbers = #tpu.dot_dimension_numbers<[1], [0], [0], [1], [0, 0, 1, 1], [], []>} : vector<2x1024xbf16>, vector<1024x1024xbf16>, vector<2x1024xf32> -> vector<2x1024xf32>
      %c0_180 = arith.constant 0 : index
      %c0_181 = arith.constant 0 : index
      %782 = vector.load %arg14[%c0_180, %c0_181] : memref<1x1024xf32, #tpu.memory_space<vmem>>, vector<1x1024xf32>
      %783 = vector.broadcast %782 : vector<1x1024xf32> to vector<2x1024xf32>
      %784 = arith.addf %781, %783 : vector<2x1024xf32>
      %785 = math.tanh %784 : vector<2x1024xf32>
      %786 = arith.truncf %785 : vector<2x1024xf32> to vector<2x1024xbf16>
      %c0_182 = arith.constant 0 : index
      %c0_183 = arith.constant 0 : index
      %787 = vector.load %arg15[%c0_182, %c0_183] : memref<1024x4xbf16, #tpu.memory_space<vmem>>, vector<1024x4xbf16>
      %cst_184 = arith.constant dense<0.000000e+00> : vector<2x4xf32>
      %788 = tpu.matmul %786, %787, %cst_184 {dimension_numbers = #tpu.dot_dimension_numbers<[1], [0], [0], [1], [0, 0, 1, 1], [], []>} : vector<2x1024xbf16>, vector<1024x4xbf16>, vector<2x4xf32> -> vector<2x4xf32>
      %c0_185 = arith.constant 0 : index
      %c0_186 = arith.constant 0 : index
      %789 = vector.load %arg16[%c0_185, %c0_186] : memref<1x4xf32, #tpu.memory_space<vmem>>, vector<1x4xf32>
      %790 = vector.broadcast %789 : vector<1x4xf32> to vector<2x4xf32>
      %791 = arith.addf %788, %790 : vector<2x4xf32>
      %c0_187 = arith.constant 0 : index
      %c0_188 = arith.constant 0 : index
      %792 = vector.load %arg17[%c0_187, %c0_188] : memref<2x4xf32, #tpu.memory_space<vmem>>, vector<2x4xf32>
      tpu.vector_store %arg17[%c0_187, %c0_188], %791 {strides = array<i32>} : memref<2x4xf32, #tpu.memory_space<vmem>>, vector<2x4xf32>,
    } else {
    }
    return
  }
  func.func @transform_0(%arg0: i32) -> (i32, i32) {
    %c0_i32 = arith.constant 0 : i32
    %c0_i32_0 = arith.constant 0 : i32
    return %arg0, %c0_i32 : i32, i32
  }
  func.func @transform_1(%arg0: i32) -> (i32, i32) {
    %c0_i32 = arith.constant 0 : i32
    %c0_i32_0 = arith.constant 0 : i32
    %c0_i32_1 = arith.constant 0 : i32
    return %c0_i32, %c0_i32_0 : i32, i32
  }
  func.func @transform_2(%arg0: i32) -> (i32, i32) {
    %c0_i32 = arith.constant 0 : i32
    %c0_i32_0 = arith.constant 0 : i32
    %c0_i32_1 = arith.constant 0 : i32
    return %c0_i32, %c0_i32_0 : i32, i32
  }
  func.func @transform_3(%arg0: i32) -> (i32, i32) {
    %c0_i32 = arith.constant 0 : i32
    %c0_i32_0 = arith.constant 0 : i32
    %c0_i32_1 = arith.constant 0 : i32
    return %c0_i32, %c0_i32_0 : i32, i32
  }
  func.func @transform_4(%arg0: i32) -> (i32, i32) {
    %c0_i32 = arith.constant 0 : i32
    %c0_i32_0 = arith.constant 0 : i32
    %c0_i32_1 = arith.constant 0 : i32
    return %c0_i32, %c0_i32_0 : i32, i32
  }
  func.func @transform_5(%arg0: i32) -> (i32, i32) {
    %c0_i32 = arith.constant 0 : i32
    %c0_i32_0 = arith.constant 0 : i32
    %c0_i32_1 = arith.constant 0 : i32
    return %c0_i32, %c0_i32_0 : i32, i32
  }
  func.func @transform_6(%arg0: i32) -> (i32, i32) {
    %c0_i32 = arith.constant 0 : i32
    %c0_i32_0 = arith.constant 0 : i32
    %c0_i32_1 = arith.constant 0 : i32
    return %c0_i32, %c0_i32_0 : i32, i32
  }
  func.func @transform_7(%arg0: i32) -> (i32, i32) {
    %c0_i32 = arith.constant 0 : i32
    %c0_i32_0 = arith.constant 0 : i32
    %c0_i32_1 = arith.constant 0 : i32
    return %c0_i32, %c0_i32_0 : i32, i32
  }
  func.func @transform_8(%arg0: i32) -> (i32, i32) {
    %c0_i32 = arith.constant 0 : i32
    %c0_i32_0 = arith.constant 0 : i32
    %c0_i32_1 = arith.constant 0 : i32
    return %c0_i32, %c0_i32_0 : i32, i32
  }
  func.func @transform_9(%arg0: i32) -> (i32, i32) {
    %c0_i32 = arith.constant 0 : i32
    %c0_i32_0 = arith.constant 0 : i32
    %c0_i32_1 = arith.constant 0 : i32
    return %c0_i32, %c0_i32_0 : i32, i32
  }
  func.func @transform_10(%arg0: i32) -> (i32, i32) {
    %c0_i32 = arith.constant 0 : i32
    %c0_i32_0 = arith.constant 0 : i32
    %c0_i32_1 = arith.constant 0 : i32
    return %c0_i32, %c0_i32_0 : i32, i32
  }
  func.func @transform_11(%arg0: i32) -> (i32, i32) {
    %c0_i32 = arith.constant 0 : i32
    %c0_i32_0 = arith.constant 0 : i32
    %c0_i32_1 = arith.constant 0 : i32
    return %c0_i32, %c0_i32_0 : i32, i32
  }
  func.func @transform_12(%arg0: i32) -> (i32, i32) {
    %c0_i32 = arith.constant 0 : i32
    %c0_i32_0 = arith.constant 0 : i32
    %c0_i32_1 = arith.constant 0 : i32
    return %c0_i32, %c0_i32_0 : i32, i32
  }
  func.func @transform_13(%arg0: i32) -> (i32, i32) {
    %c0_i32 = arith.constant 0 : i32
    %c0_i32_0 = arith.constant 0 : i32
    %c0_i32_1 = arith.constant 0 : i32
    return %c0_i32, %c0_i32_0 : i32, i32
  }
  func.func @transform_14(%arg0: i32) -> (i32, i32) {
    %c0_i32 = arith.constant 0 : i32
    %c0_i32_0 = arith.constant 0 : i32
    %c0_i32_1 = arith.constant 0 : i32
    return %c0_i32, %c0_i32_0 : i32, i32
  }
  func.func @transform_15(%arg0: i32) -> (i32, i32) {
    %c0_i32 = arith.constant 0 : i32
    %c0_i32_0 = arith.constant 0 : i32
    %c0_i32_1 = arith.constant 0 : i32
    return %c0_i32, %c0_i32_0 : i32, i32
  }
  func.func @transform_16(%arg0: i32) -> (i32, i32) {
    %c0_i32 = arith.constant 0 : i32
    %c0_i32_0 = arith.constant 0 : i32
    %c0_i32_1 = arith.constant 0 : i32
    return %c0_i32, %c0_i32_0 : i32, i32
  }
}

</mosaic_0001>

<bundles_post_ra>
// kernel: tpu_custom_call.1
= control target key start
LH: loop header
LB: loop body
LE: loop exit
PB: predicated region body
PF: predicated region fallthrough
CT: control target
= control target key end

     0   :  { %s14569_s0 = inlined_call_operand.vmem [shape: f32[16,4], index: 0, kind: input, shape index: {}]   ;;  %s14570_s1 = inlined_call_operand.hbm [shape: bf16[4,128], index: 1, kind: input, shape index: {}]   ;;  %s14571_s2 = inlined_call_operand.hbm [shape: bf16[32,128], index: 2, kind: input, shape index: {}]   ;;  %s14572_s3 = inlined_call_operand.hbm [shape: f32[1,128], index: 3, kind: input, shape index: {}]   ;;  %s14573_s4 = inlined_call_operand.hbm [shape: bf16[64,128], index: 4, kind: input, shape index: {}]   ;;  %s14574_s5 = inlined_call_operand.hbm [shape: f32[1,128], index: 5, kind: input, shape index: {}]   ;;  %s14575_s6 = inlined_call_operand.hbm [shape: bf16[64,128], index: 6, kind: input, shape index: {}]   ;;  %s14576_s7 = inlined_call_operand.hbm [shape: f32[1,128], index: 7, kind: input, shape index: {}]   ;;  %s14577_s8 = inlined_call_operand.hbm [shape: bf16[32,1024], index: 8, kind: input, shape index: {}]   ;;  %s14578_s9 = inlined_call_operand.hbm [shape: f32[1,1024], index: 9, kind: input, shape index: {}]   ;;  %s14579_s10 = inlined_call_operand.hbm [shape: bf16[1024,1024], index: 10, kind: input, shape index: {}]   ;;  %s14580_s11 = inlined_call_operand.hbm [shape: f32[1,1024], index: 11, kind: input, shape index: {}]   ;;  %s14581_s12 = inlined_call_operand.hbm [shape: bf16[1024,1024], index: 12, kind: input, shape index: {}]   ;;  %s14582_s13 = inlined_call_operand.hbm [shape: f32[1,1024], index: 13, kind: input, shape index: {}]   ;;  %s14583_s14 = inlined_call_operand.vmem [shape: bf16[1024,4], index: 14, kind: input, shape index: {}]   ;;  %s14584_s15 = inlined_call_operand.hbm [shape: f32[1,4], index: 15, kind: input, shape index: {}]   ;;  %s14585_s16 = inlined_call_operand.hbm [shape: f32[2,4], index: 16, kind: output, shape index: {}]  }
   0x1   :  { %14588 = sst [smem:[#allocation38_spill]] %s14569_s0 }
   0x2   :  { %14589 = sst [smem:[#allocation39_spill]] %s14585_s16 }
   0x3   :  { %21 = vsyncpa [#allocation6], 0 }
   0x4   :  { %22 = vsyncpa [#allocation9], 0 }
   0x5   :  { %23 = vsyncpa [#allocation12], 0 }
   0x6   :  { %24 = vsyncpa [#allocation15], 0 }
   0x7   :  { %25 = vsyncpa [#allocation18], 0 }
   0x8   :  { %26 = vsyncpa [#allocation21], 0 }
   0x9   :  { %27 = vsyncpa [#allocation24], 0 }
   0xa   :  { %28 = vsyncpa [#allocation27], 0 }
   0xb   :  { %29 = vsyncpa [#allocation7], 0  ;;  %s13300_s21 = smov [#allocation8]   ;;  %s12952_s25 = scalar_lea.hbm %s14571_s2, 256 }
   0xc   :  { %s47_s22 = sshll.u32 %s13300_s21, 4  ;;  %p12953_p0 = scmp.ne.s32.totalorder %s14571_s2, %s12952_s25  ;;  %s48_s22 = int_to_ptr.vmem [resolvable:$true] %s47_s22 }
   0xd   :  { %p12956_p1 = scmp.lt.u32.totalorder %s12952_s25, %s14571_s2 }
   0xf   :  { %p12958_p2 = pnand %p12956_p1, %p12953_p0 }
  0x11   :  { %12961 = shalt.err (!%p12958_p2)
}
  0x12   :  { %s12962_s30 = scalar_lea.vmem %s48_s22, 256  ;;  %p12967_p4 = scmp.lt.s32.totalorder %s48_s22, %s48_s22 }
  0x13   :  { %p12963_p3 = scmp.ne.s32.totalorder %s48_s22, %s12962_s30  ;;  %p12968_p5 = scmp.lt.s32.totalorder %s12962_s30, %s12962_s30 }
  0x15   :  { %p12969_p6 = por %p12968_p5, %p12967_p4 }
  0x17   :  { %p12970_p7 = pnand %p12969_p6, %p12963_p3 }
  0x19   :  { %12973 = shalt.err (!%p12970_p7)
}
  0x1a   :  { %s13301_s0 = smov 64   ;;  %s13302_s17 = smov 4  }
  0x1b   :  { %53 = dma.hbm_to_vmem [thread:$0]  %s14571_s2, 256, %s48_s22, [#allocation9], %s13301_s0, %s13301_s0, %s13302_s17  }
  0x1c   :  { %s13303_s20 = smov [#allocation11]   ;;  %s13304_s23 = smov [#allocation14]  }
  0x1d   :  { %s69_s21 = sshll.u32 %s13303_s20, 4  ;;  %s91_s24 = sshll.u32 %s13304_s23, 4  ;;  %s70_s21 = int_to_ptr.vmem [resolvable:$true] %s69_s21  ;;  %s92_s24 = int_to_ptr.vmem [resolvable:$true] %s91_s24 }
  0x1e   :  { %s12974_s27 = scalar_lea.hbm %s14573_s4, 512 }
  0x1f   :  { %p12975_p8 = scmp.ne.s32.totalorder %s14573_s4, %s12974_s27  ;;  %p12978_p9 = scmp.lt.u32.totalorder %s12974_s27, %s14573_s4 }
  0x21   :  { %p12980_p10 = pnand %p12978_p9, %p12975_p8 }
  0x23   :  { %12983 = shalt.err (!%p12980_p10)
}
  0x24   :  { %s12984_s2 = scalar_lea.vmem %s70_s21, 512  ;;  %p12989_p12 = scmp.lt.s32.totalorder %s70_s21, %s70_s21 }
  0x25   :  { %p12985_p11 = scmp.ne.s32.totalorder %s70_s21, %s12984_s2  ;;  %p12990_p13 = scmp.lt.s32.totalorder %s12984_s2, %s12984_s2 }
  0x27   :  { %p12991_p0 = por %p12990_p13, %p12989_p12 }
  0x29   :  { %p12992_p1 = pnand %p12991_p0, %p12985_p11 }
  0x2b   :  { %12995 = shalt.err (!%p12992_p1)
}
  0x2c   :  { %75 = dma.hbm_to_vmem [thread:$0]  %s14573_s4, 512, %s70_s21, [#allocation12], %s13301_s0, %s13301_s0, %s13302_s17  }
  0x2d   :  { %s12996_s20 = scalar_lea.hbm %s14575_s6, 512 }
  0x2e   :  { %p12997_p2 = scmp.ne.s32.totalorder %s14575_s6, %s12996_s20  ;;  %p13000_p3 = scmp.lt.u32.totalorder %s12996_s20, %s14575_s6 }
  0x30   :  { %p13002_p4 = pnand %p13000_p3, %p12997_p2 }
  0x32   :  { %13005 = shalt.err (!%p13002_p4)
}
  0x33   :  { %s13006_s28 = scalar_lea.vmem %s92_s24, 512  ;;  %p13011_p6 = scmp.lt.s32.totalorder %s92_s24, %s92_s24 }
  0x34   :  { %p13007_p5 = scmp.ne.s32.totalorder %s92_s24, %s13006_s28  ;;  %p13012_p7 = scmp.lt.s32.totalorder %s13006_s28, %s13006_s28 }
  0x36   :  { %p13013_p8 = por %p13012_p7, %p13011_p6 }
  0x38   :  { %p13014_p9 = pnand %p13013_p8, %p13007_p5 }
  0x3a   :  { %13017 = shalt.err (!%p13014_p9)
}
  0x3b   :  { %97 = dma.hbm_to_vmem [thread:$0]  %s14575_s6, 512, %s92_s24, [#allocation15], %s13301_s0, %s13301_s0, %s13302_s17  }
  0x3c   :  { %s13305_s29 = smov [#allocation17]   ;;  %s13018_s18 = scalar_lea.hbm %s14577_s8, 2048 }
  0x3d   :  { %s113_s30 = sshll.u32 %s13305_s29, 4  ;;  %p13019_p10 = scmp.ne.s32.totalorder %s14577_s8, %s13018_s18  ;;  %s114_s30 = int_to_ptr.vmem [resolvable:$true] %s113_s30 }
  0x3e   :  { %p13022_p11 = scmp.lt.u32.totalorder %s13018_s18, %s14577_s8 }
  0x40   :  { %p13024_p12 = pnand %p13022_p11, %p13019_p10 }
  0x42   :  { %13027 = shalt.err (!%p13024_p12)
}
  0x43   :  { %s13028_s25 = scalar_lea.vmem %s114_s30, 2048  ;;  %p13033_p0 = scmp.lt.s32.totalorder %s114_s30, %s114_s30 }
  0x44   :  { %p13029_p13 = scmp.ne.s32.totalorder %s114_s30, %s13028_s25  ;;  %p13034_p1 = scmp.lt.s32.totalorder %s13028_s25, %s13028_s25 }
  0x46   :  { %p13035_p2 = por %p13034_p1, %p13033_p0 }
  0x48   :  { %p13036_p3 = pnand %p13035_p2, %p13029_p13 }
  0x4a   :  { %13039 = shalt.err (!%p13036_p3)
}
  0x4b   :  { %s13306_s6 = smov 512   ;;  %s13307_s17 = smov 32  }
  0x4c   :  { %119 = dma.hbm_to_vmem [thread:$0]  %s14577_s8, 2048, %s114_s30, [#allocation18], %s13306_s6, %s13306_s6, %s13307_s17  }
  0x4d   :  { %s13308_s27 = smov [#allocation20]   ;;  %s13309_s4 = smov [#allocation23]  }
  0x4e   :  { %s135_s28 = sshll.u32 %s13308_s27, 4  ;;  %s157_s21 = sshll.u32 %s13309_s4, 4  ;;  %s136_s28 = int_to_ptr.vmem [resolvable:$true] %s135_s28  ;;  %s13468_s21 = int_to_ptr.vmem [resolvable:$true] %s157_s21 }
  0x4f   :  { %s13040_s22 = scalar_lea.hbm %s14579_s10, 65536 }
  0x50   :  { %p13041_p4 = scmp.ne.s32.totalorder %s14579_s10, %s13040_s22  ;;  %p13044_p5 = scmp.lt.u32.totalorder %s13040_s22, %s14579_s10 }
  0x52   :  { %p13046_p6 = pnand %p13044_p5, %p13041_p4 }
  0x54   :  { %13049 = shalt.err (!%p13046_p6)
}
  0x55   :  { %s13050_s8 = scalar_lea.vmem %s136_s28, 65536  ;;  %p13055_p8 = scmp.lt.s32.totalorder %s136_s28, %s136_s28 }
  0x56   :  { %p13051_p7 = scmp.ne.s32.totalorder %s136_s28, %s13050_s8  ;;  %p13056_p9 = scmp.lt.s32.totalorder %s13050_s8, %s13050_s8 }
  0x58   :  { %p13057_p10 = por %p13056_p9, %p13055_p8 }
  0x5a   :  { %p13058_p11 = pnand %p13057_p10, %p13051_p7 }
  0x5c   :  { %13061 = shalt.err (!%p13058_p11)
}
  0x5d   :  { %141 = dma.hbm_to_vmem [thread:$0]  %s14579_s10, 65536, %s136_s28, [#allocation21], %s13306_s6, %s13306_s6, %s13307_s17  }
  0x5e   :  { %s13062_s26 = scalar_lea.hbm %s14581_s12, 65536 }
  0x5f   :  { %p13063_p12 = scmp.ne.s32.totalorder %s14581_s12, %s13062_s26  ;;  %p13066_p13 = scmp.lt.u32.totalorder %s13062_s26, %s14581_s12 }
  0x61   :  { %p13068_p0 = pnand %p13066_p13, %p13063_p12 }
  0x63   :  { %13071 = shalt.err (!%p13068_p0)
}
  0x64   :  { %s13072_s22 = scalar_lea.vmem %s13468_s21, 65536  ;;  %p13077_p2 = scmp.lt.s32.totalorder %s13468_s21, %s13468_s21 }
  0x65   :  { %p13073_p1 = scmp.ne.s32.totalorder %s13468_s21, %s13072_s22  ;;  %p13078_p3 = scmp.lt.s32.totalorder %s13072_s22, %s13072_s22 }
  0x67   :  { %p13079_p4 = por %p13078_p3, %p13077_p2 }
  0x69   :  { %p13080_p5 = pnand %p13079_p4, %p13073_p1 }
  0x6b   :  { %13083 = shalt.err (!%p13080_p5)
}
  0x6c   :  { %163 = dma.hbm_to_vmem [thread:$0]  %s14581_s12, 65536, %s13468_s21, [#allocation24], %s13306_s6, %s13306_s6, %s13307_s17  }
  0x6d   :  { %s13310_s18 = smov [#allocation5]   ;;  %s13311_s16 = smov [#allocation10]  }
  0x6e   :  { %s38_s19 = sshll.u32 %s13310_s18, 4  ;;  %s60_s20 = sshll.u32 %s13311_s16, 4  ;;  %s39_s19 = int_to_ptr.vmem [resolvable:$true] %s38_s19  ;;  %s61_s20 = int_to_ptr.vmem [resolvable:$true] %s60_s20 }
  0x6f   :  { %s13084_s23 = scalar_lea.hbm %s14570_s1, 32 }
  0x70   :  { %p13085_p6 = scmp.ne.s32.totalorder %s14570_s1, %s13084_s23  ;;  %p13088_p7 = scmp.lt.u32.totalorder %s13084_s23, %s14570_s1 }
  0x72   :  { %p13090_p8 = pnand %p13088_p7, %p13085_p6 }
  0x74   :  { %13093 = shalt.err (!%p13090_p8)
}
  0x75   :  { %s13094_s12 = scalar_lea.vmem %s39_s19, 32  ;;  %p13099_p10 = scmp.lt.s32.totalorder %s39_s19, %s39_s19 }
  0x76   :  { %p13095_p9 = scmp.ne.s32.totalorder %s39_s19, %s13094_s12  ;;  %p13100_p11 = scmp.lt.s32.totalorder %s13094_s12, %s13094_s12 }
  0x78   :  { %p13101_p12 = por %p13100_p11, %p13099_p10 }
  0x7a   :  { %p13102_p13 = pnand %p13101_p12, %p13095_p9 }
  0x7c   :  { %13105 = shalt.err (!%p13102_p13)
}
  0x7d   :  { %41 = dma.hbm_to_vmem [thread:$0]  %s14570_s1, 32, %s39_s19, [#allocation6]  }
  0x7e   :  { %s13106_s2 = scalar_lea.hbm %s14572_s3, 16 }
  0x7f   :  { %p13107_p0 = scmp.ne.s32.totalorder %s14572_s3, %s13106_s2  ;;  %p13110_p1 = scmp.lt.u32.totalorder %s13106_s2, %s14572_s3 }
  0x81   :  { %p13112_p2 = pnand %p13110_p1, %p13107_p0 }
  0x83   :  { %13115 = shalt.err (!%p13112_p2)
}
  0x84   :  { %s13116_s16 = scalar_lea.vmem %s61_s20, 16  ;;  %s13120_s8 = scalar_lea.vmem %s61_s20, 32 }
  0x85   :  { %p13117_p3 = scmp.ne.s32.totalorder %s61_s20, %s13116_s16  ;;  %p13121_p4 = scmp.lt.s32.totalorder %s61_s20, %s61_s20 }
  0x86   :  { %p13122_p5 = scmp.lt.s32.totalorder %s13120_s8, %s13116_s16 }
  0x88   :  { %p13123_p6 = por %p13122_p5, %p13121_p4 }
  0x8a   :  { %p13124_p7 = pnand %p13123_p6, %p13117_p3 }
  0x8c   :  { %13127 = shalt.err (!%p13124_p7)
}
  0x8d   :  { %63 = dma.hbm_to_vmem [thread:$0]  %s14572_s3, 16, %s61_s20, [#allocation9]  }
  0x8e   :  { %s13312_s30 = smov [#allocation13]   ;;  %s13313_s25 = smov [#allocation16]  }
  0x8f   :  { %s82_s23 = sshll.u32 %s13312_s30, 4  ;;  %s104_s24 = sshll.u32 %s13313_s25, 4  ;;  %s83_s23 = int_to_ptr.vmem [resolvable:$true] %s82_s23  ;;  %s105_s24 = int_to_ptr.vmem [resolvable:$true] %s104_s24 }
  0x90   :  { %s13128_s12 = scalar_lea.hbm %s14574_s5, 16 }
  0x91   :  { %p13129_p8 = scmp.ne.s32.totalorder %s14574_s5, %s13128_s12  ;;  %p13132_p9 = scmp.lt.u32.totalorder %s13128_s12, %s14574_s5 }
  0x93   :  { %p13134_p10 = pnand %p13132_p9, %p13129_p8 }
  0x95   :  { %13137 = shalt.err (!%p13134_p10)
}
  0x96   :  { %s13138_s3 = scalar_lea.vmem %s83_s23, 16  ;;  %s13142_s20 = scalar_lea.vmem %s83_s23, 32 }
  0x97   :  { %p13139_p11 = scmp.ne.s32.totalorder %s83_s23, %s13138_s3  ;;  %p13143_p12 = scmp.lt.s32.totalorder %s83_s23, %s83_s23 }
  0x98   :  { %p13144_p13 = scmp.lt.s32.totalorder %s13142_s20, %s13138_s3 }
  0x9a   :  { %p13145_p0 = por %p13144_p13, %p13143_p12 }
  0x9c   :  { %p13146_p1 = pnand %p13145_p0, %p13139_p11 }
  0x9e   :  { %13149 = shalt.err (!%p13146_p1)
}
  0x9f   :  { %85 = dma.hbm_to_vmem [thread:$0]  %s14574_s5, 16, %s83_s23, [#allocation12]  }
  0xa0   :  { %s13150_s18 = scalar_lea.hbm %s14576_s7, 16 }
  0xa1   :  { %p13151_p2 = scmp.ne.s32.totalorder %s14576_s7, %s13150_s18  ;;  %p13154_p3 = scmp.lt.u32.totalorder %s13150_s18, %s14576_s7 }
  0xa3   :  { %p13156_p4 = pnand %p13154_p3, %p13151_p2 }
  0xa5   :  { %13159 = shalt.err (!%p13156_p4)
}
  0xa6   :  { %s13160_s30 = scalar_lea.vmem %s105_s24, 16  ;;  %s13164_s25 = scalar_lea.vmem %s105_s24, 32 }
  0xa7   :  { %p13161_p5 = scmp.ne.s32.totalorder %s105_s24, %s13160_s30  ;;  %p13165_p6 = scmp.lt.s32.totalorder %s105_s24, %s105_s24 }
  0xa8   :  { %p13166_p7 = scmp.lt.s32.totalorder %s13164_s25, %s13160_s30 }
  0xaa   :  { %p13167_p8 = por %p13166_p7, %p13165_p6 }
  0xac   :  { %p13168_p9 = pnand %p13167_p8, %p13161_p5 }
  0xae   :  { %13171 = shalt.err (!%p13168_p9)
}
  0xaf   :  { %107 = dma.hbm_to_vmem [thread:$0]  %s14576_s7, 16, %s105_s24, [#allocation15]  }
  0xb0   :  { %s13314_s26 = smov [#allocation19]   ;;  %s13315_s12 = smov [#allocation22]  }
  0xb1   :  { %s126_s27 = sshll.u32 %s13314_s26, 4  ;;  %s148_s6 = sshll.u32 %s13315_s12, 4  ;;  %s127_s27 = int_to_ptr.vmem [resolvable:$true] %s126_s27  ;;  %s149_s6 = int_to_ptr.vmem [resolvable:$true] %s148_s6 }
  0xb2   :  { %s13172_s29 = scalar_lea.hbm %s14578_s9, 128 }
  0xb3   :  { %p13173_p10 = scmp.ne.s32.totalorder %s14578_s9, %s13172_s29  ;;  %p13176_p11 = scmp.lt.u32.totalorder %s13172_s29, %s14578_s9 }
  0xb5   :  { %p13178_p12 = pnand %p13176_p11, %p13173_p10 }
  0xb7   :  { %13181 = shalt.err (!%p13178_p12)
}
  0xb8   :  { %s13182_s7 = scalar_lea.vmem %s127_s27, 128  ;;  %p13187_p0 = scmp.lt.s32.totalorder %s127_s27, %s127_s27 }
  0xb9   :  { %p13183_p13 = scmp.ne.s32.totalorder %s127_s27, %s13182_s7  ;;  %p13188_p1 = scmp.lt.s32.totalorder %s13182_s7, %s13182_s7 }
  0xbb   :  { %p13189_p2 = por %p13188_p1, %p13187_p0 }
  0xbd   :  { %p13190_p3 = pnand %p13189_p2, %p13183_p13 }
  0xbf   :  { %13193 = shalt.err (!%p13190_p3)
}
  0xc0   :  { %129 = dma.hbm_to_vmem [thread:$0]  %s14578_s9, 128, %s127_s27, [#allocation18]  }
  0xc1   :  { %s13194_s16 = scalar_lea.hbm %s14580_s11, 128 }
  0xc2   :  { %p13195_p4 = scmp.ne.s32.totalorder %s14580_s11, %s13194_s16  ;;  %p13198_p5 = scmp.lt.u32.totalorder %s13194_s16, %s14580_s11 }
  0xc4   :  { %p13200_p6 = pnand %p13198_p5, %p13195_p4 }
  0xc6   :  { %13203 = shalt.err (!%p13200_p6)
}
  0xc7   :  { %s13204_s25 = scalar_lea.vmem %s149_s6, 128  ;;  %p13209_p8 = scmp.lt.s32.totalorder %s149_s6, %s149_s6 }
  0xc8   :  { %p13205_p7 = scmp.ne.s32.totalorder %s149_s6, %s13204_s25  ;;  %p13210_p9 = scmp.lt.s32.totalorder %s13204_s25, %s13204_s25 }
  0xca   :  { %p13211_p10 = por %p13210_p9, %p13209_p8 }
  0xcc   :  { %p13212_p11 = pnand %p13211_p10, %p13205_p7 }
  0xce   :  { %13215 = shalt.err (!%p13212_p11)
}
  0xcf   :  { %151 = dma.hbm_to_vmem [thread:$0]  %s14580_s11, 128, %s149_s6, [#allocation21]  }
  0xd0   :  { %s13316_s23 = smov [#allocation25]   ;;  %s13317_s27 = smov [#allocation26]  }
  0xd1   :  { %s170_s26 = sshll.u32 %s13316_s23, 4  ;;  %s182_s12 = sshll.u32 %s13317_s27, 4  ;;  %s171_s26 = int_to_ptr.vmem [resolvable:$true] %s170_s26  ;;  %s183_s12 = int_to_ptr.vmem [resolvable:$true] %s182_s12 }
  0xd2   :  { %s13216_s29 = scalar_lea.hbm %s14582_s13, 128 }
  0xd3   :  { %p13217_p12 = scmp.ne.s32.totalorder %s14582_s13, %s13216_s29  ;;  %p13220_p13 = scmp.lt.u32.totalorder %s13216_s29, %s14582_s13 }
  0xd5   :  { %p13222_p0 = pnand %p13220_p13, %p13217_p12 }
  0xd7   :  { %13225 = shalt.err (!%p13222_p0)
}
  0xd8   :  { %s13226_s11 = scalar_lea.vmem %s171_s26, 128  ;;  %p13231_p2 = scmp.lt.s32.totalorder %s171_s26, %s171_s26 }
  0xd9   :  { %p13227_p1 = scmp.ne.s32.totalorder %s171_s26, %s13226_s11  ;;  %p13232_p3 = scmp.lt.s32.totalorder %s13226_s11, %s13226_s11 }
  0xdb   :  { %p13233_p4 = por %p13232_p3, %p13231_p2 }
  0xdd   :  { %p13234_p5 = pnand %p13233_p4, %p13227_p1 }
  0xdf   :  { %13237 = shalt.err (!%p13234_p5)
}
  0xe0   :  { %173 = dma.hbm_to_vmem [thread:$0]  %s14582_s13, 128, %s171_s26, [#allocation24]  }
  0xe1   :  { %s13238_s28 = scalar_lea.hbm %s14584_s15, 16 }
  0xe2   :  { %p13239_p6 = scmp.ne.s32.totalorder %s14584_s15, %s13238_s28  ;;  %p13242_p7 = scmp.lt.u32.totalorder %s13238_s28, %s14584_s15 }
  0xe4   :  { %p13244_p8 = pnand %p13242_p7, %p13239_p6 }
  0xe6   :  { %13247 = shalt.err (!%p13244_p8)
}
  0xe7   :  { %s13248_s19 = scalar_lea.vmem %s183_s12, 16  ;;  %s13252_s30 = scalar_lea.vmem %s183_s12, 32 }
  0xe8   :  { %p13249_p9 = scmp.ne.s32.totalorder %s183_s12, %s13248_s19  ;;  %p13253_p10 = scmp.lt.s32.totalorder %s183_s12, %s183_s12 }
  0xe9   :  { %p13254_p11 = scmp.lt.s32.totalorder %s13252_s30, %s13248_s19 }
  0xeb   :  { %p13255_p12 = por %p13254_p11, %p13253_p10 }
  0xed   :  { %p13256_p13 = pnand %p13255_p12, %p13249_p9 }
  0xef   :  { %13259 = shalt.err (!%p13256_p13)
}
  0xf0   :  { %185 = dma.hbm_to_vmem [thread:$0]  %s14584_s15, 16, %s183_s12, [#allocation27]  }
  0xf1   :  { %13282 = dma.done.wait [#allocation6], 32  }
  0xf2   :  { %13283 = vsyncadd [#allocation6], 4294967264 }
  0xf3   :  { %13284 = dma.done.wait [#allocation9], 272  }
  0xf4   :  { %13285 = vsyncadd [#allocation9], 4294967024 }
  0xf5   :  { %13286 = dma.done.wait [#allocation12], 528  }
  0xf6   :  { %13287 = vsyncadd [#allocation12], 4294966768 }
  0xf7   :  { %13288 = dma.done.wait [#allocation15], 528  }
  0xf8   :  { %13289 = vsyncadd [#allocation15], 4294966768 }
  0xf9   :  { %13290 = dma.done.wait [#allocation18], 2176  }
  0xfa   :  { %13291 = vsyncadd [#allocation18], 4294965120 }
  0xfb   :  { %13292 = dma.done.wait [#allocation21], 65664  }
  0xfc   :  { %13293 = vsyncadd [#allocation21], 4294901632 }
  0xfd   :  { %13294 = dma.done.wait [#allocation24], 65664  }
  0xfe   :  { %13295 = vsyncadd [#allocation24], 4294901632 }
  0xff   :  { %13296 = dma.done.wait [#allocation27], 16  }
 0x100   :  { %13297 = vsyncadd [#allocation27], 4294967280  ;;  %v13318_v0 = vmov 0.0   ;;  %vm13319_vm0 = vmmov 0   ;;  %vm233_vm1 = vcmask 254976   ;;  %vm255_vm2 = vcmask 1041408  }
 0x101   :  { %12217 = vmatprep.subr.bf16.mxu0 %v13318_v0  ;;  %12219 = vmatprep.mubr.msk.bf16.mxu0 %vm13319_vm0, %v13318_v0  ;;  %234 = vst.msk [vmem:[#allocation2] sm:$0x3] %vm233_vm1, %v13318_v0  ;;  %235 = vst.msk [vmem:[#allocation2 + $0x2] sm:$0x3] %vm233_vm1, %v13318_v0  ;;  %v243_v1 = vld [vmem:[#allocation5] sm:$0x3] }
 0x102   :  { %12223 = vmatprep.subr.bf16.mxu1 %v13318_v0  ;;  %12227 = vmatprep.mubr.msk.bf16.mxu1 %vm13319_vm0, %v13318_v0  ;;  %236 = vst.msk [vmem:[#allocation2 + $0x4] sm:$0x3] %vm233_vm1, %v13318_v0  ;;  %237 = vst.msk [vmem:[#allocation3] sm:$0x3] %vm233_vm1, %v13318_v0  ;;  %s14590_s5 = sld [smem:[#allocation38_spill]]  ;;  %v257_v4 = vsel %vm255_vm2, %v243_v1, 0 }
 0x103   :  { %238 = vst.msk [vmem:[#allocation3 + $0x2] sm:$0x3] %vm233_vm1, %v13318_v0  ;;  %239 = vst.msk [vmem:[#allocation3 + $0x4] sm:$0x3] %vm233_vm1, %v13318_v0  ;;  %v13625_v6 = vld [vmem:[#allocation8] sm:$0xff]   ;;  %12218 = vmatpush3.bf16.msra.mxu0 %v257_v4  ;;  %vm251_vm3 = vcmask 31744  }
 0x104   :  { %12224 = vmatpush3.bf16.msra.mxu1 %v13625_v6  ;;  %v13628_v7 = vld [vmem:[#allocation8 + $0x8] sm:$0xff]   ;;  %vm360_vm4 = vcmask 261120   ;;  %12231 = vmatprep.subr.bf16.mxu0 %v13318_v0  ;;  %v10852_v10 = vld [vmem:[#allocation10] ss:$0 sm:$0xff]  ;;  %v13645_v35 = vld [vmem:[#allocation11] sm:$0xff]   ;;  %vm467_vm5 = vcmask 523264  }
 0x105   :  { %12225 = vmatprep.subr.bf16.mxu1 %v13318_v0  ;;  %v13648_v36 = vld [vmem:[#allocation11 + $0x8] sm:$0xff]   ;;  %v13652_v37 = vld [vmem:[#allocation11 + $0x10] sm:$0xff]   ;;  %v13658_v39 = vld [vmem:[#allocation11 + $0x18] sm:$0xff]   ;;  %s13320_s27 = smov 96   ;;  %vm10828_vm6 = vcmask 25600  }
 0x106   :  { %v13675_v51 = vld [vmem:[#allocation13] ss:$0 sm:$0xff] }
 0x108   :  { %v240_v2 = vld [vmem:[%s14590_s5] sm:$0xff]  ;;  %v241_v3 = vld [vmem:[%s14590_s5 + $0x8] sm:$0xff]  ;;  %v336_v8 = vld [vmem:[#allocation2] sm:$0x3]  ;;  %12226 = vmatpush3.bf16.msra.mxu1 %v13628_v7 }
 0x109   :  { %v242_v5 = vpack.c.bf16 %v241_v3, %v240_v2  ;;  %v347_v9 = vpack.c.bf16 %v336_v8, %v336_v8  ;;  %12243 = vmatprep.subr.bf16.mxu1 %v13318_v0  ;;  %v337_v24 = vld [vmem:[#allocation3] sm:$0x3]  ;;  %v339_v41 = vld [vmem:[#allocation2 + $0x2] sm:$0x3] }
 0x10a   :  { %v341_v1 = vld [vmem:[#allocation3 + $0x2] sm:$0x3] }
 0x10b   :  { %12220 = vmatmul.mubr.msk.bf16.vlgmr.msra.gmra.mrb[0].mxu0 %vm251_vm3, %v242_v5  ;;  %12228 = vmatmul.mubr.msk.bf16.vlgmr.msra.gmra.mrb[0].mxu1 %vm360_vm4, %v347_v9 }
 0x10c   :  { %12239 = vmatprep.mubr.msk.bf16.mxu0 %vm13319_vm0, %v13318_v0  ;;  %12251 = vmatprep.mubr.msk.bf16.mxu1 %vm13319_vm0, %v13318_v0 }
 0x10d   :  { %12232 = vmatpush3.bf16.msra.mxu0 %v13645_v35 }
 0x10e   :  { %12233 = vmatprep.subr.bf16.mxu0 %v13318_v0 }
 0x111   :  { %12234 = vmatpush3.bf16.msra.mxu0 %v13648_v36 }
 0x112   :  { %12235 = vmatprep.subr.bf16.mxu0 %v13318_v0 }
 0x115   :  { %12236 = vmatpush3.bf16.msra.mxu0 %v13652_v37 }
 0x116   :  { %12237 = vmatprep.subr.bf16.mxu0 %v13318_v0 }
 0x119   :  { %12238 = vmatpush3.bf16.msra.mxu0 %v13658_v39 }
 0x11a   :  { %12255 = vmatprep.subr.bf16.mxu0 %v13318_v0 }
 0x1de   :  { %v293_v11 = vpop.f32.mrb[0].mxu0  ;;  %v398_v17 = vpop.f32.mrb[0].mxu1 }
 0x1df   :  { %v294_v12 = vadd.f32 %v10852_v10, %v293_v11  ;;  %v12221_v13 = vpop.f32.mrb[1].mxu0  ;;  %v12229_v18 = vpop.f32.mrb[1].mxu1 }
 0x1e0   :  { %v296_v14 = vpop.f32.mrb[2].mxu0  ;;  %v401_v19 = vpop.f32.mrb[2].mxu1 }
 0x1e1   :  { %300 = vst [vmem:[#allocation4] sm:$0xff] %v294_v12  ;;  %v297_v15 = vadd.f32 %v10852_v10, %v296_v14  ;;  %v12222_v16 = vpop.f32.mrb[3].mxu0  ;;  %v12230_v20 = vpop.f32.mrb[3].mxu1 }
 0x1e3   :  { %301 = vst [vmem:[#allocation4 + $0x8] sm:$0xff] %v297_v15 }
 0x1e8   :  { %v346_v21 = vld [vmem:[#allocation4] sm:$0x3]  ;;  %v644_v57 = vld [vmem:[#allocation4 + $0x2] sm:$0x3] }
 0x1e9   :  { %v404_v22 = vadd.f32 %v398_v17, %v346_v21 }
 0x1eb   :  { %12698 = vtanh.f32 %v404_v22  ;;  %v10859_v25 = vmul.f32 -1.442695, %v404_v22 }
 0x1ed   :  { %12700 = vpow2.f32 %v10859_v25  ;;  %v13691_v25 = vld [vmem:[#allocation14] sm:$0xff]  }
 0x1ee   :  { %12244 = vmatpush3.bf16.msra.mxu1 %v13691_v25 }
 0x1ef   :  { %12245 = vmatprep.subr.bf16.mxu1 %v13318_v0 }
 0x1f5   :  { %v12699_v23 = vpop.eup %12698 }
 0x1f6   :  { %418 = vrot.lane.b32.xlu0 %v12699_v23, %s13301_s0 }
 0x1f7   :  { %v12701_v26 = vpop.eup %12700 }
 0x1f8   :  { %v408_v27 = vadd.f32 1.0, %v12701_v26  ;;  %v13694_v26 = vld [vmem:[#allocation14 + $0x8] sm:$0xff]  }
 0x1f9   :  { %12246 = vmatpush3.bf16.msra.mxu1 %v13694_v26 }
 0x1fa   :  { %413 = vrot.lane.b32.xlu0 %v337_v24, %s13307_s17  ;;  %12702 = vrcp.f32 %v408_v27  ;;  %12247 = vmatprep.subr.bf16.mxu1 %v13318_v0 }
 0x204   :  { %v12703_v28 = vpop.eup %12702 }
 0x268   :  { %v419_v29 = vpop.permute.xlu0 %418 }
 0x269   :  { %v421_v30 = vmul.f32 %v12703_v28, %v419_v29  ;;  %v13710_v29 = vld [vmem:[#allocation14 + $0x18] sm:$0xff]  }
 0x26b   :  { %423 = vrot.lane.b32.xlu1 %v421_v30, %s13307_s17 }
 0x26c   :  { %v414_v31 = vpop.permute.xlu0 %413 }
 0x26d   :  { %v416_v32 = vmul.f32 %v12703_v28, %v414_v31  ;;  %v343_v31 = vld [vmem:[#allocation2 + $0x4] sm:$0x3] }
 0x2dd   :  { %v424_v33 = vpop.permute.xlu1 %423 }
 0x2de   :  { %v13642_v34 = vadd.f32 %v424_v33, %v416_v32 }
 0x2e0   :  { %12704 = vtanh.f32 %v13642_v34 }
 0x2ea   :  { %v12705_v38 = vpop.eup %12704 }
 0x2eb   :  { %429 = vrot.lane.b32.xlu1 %v12705_v38, %s13301_s0 }
 0x35d   :  { %v430_v40 = vpop.permute.xlu1 %429 }
 0x35e   :  { %v432_v42 = vmul.f32 %v12703_v28, %v430_v40  ;;  %v13700_v28 = vld [vmem:[#allocation14 + $0x10] sm:$0xff]  }
 0x35f   :  { %12248 = vmatpush3.bf16.msra.mxu1 %v13700_v28 }
 0x360   :  { %v12614_v43 = vpack.i.bf16 %v339_v41, %v432_v42  ;;  %v645_v44 = vpack.c.bf16 %v432_v42, %v432_v42  ;;  %12249 = vmatprep.subr.bf16.mxu1 %v13318_v0 }
 0x362   :  { %12615 = vrot.lane.b32.xlu0 %v12614_v43, %s13307_s17  ;;  %647 = vrot.lane.b32.xlu1 %v645_v44, %s13307_s17 }
 0x363   :  { %12250 = vmatpush3.bf16.msra.mxu1 %v13710_v29 }
 0x364   :  { %12263 = vmatprep.subr.bf16.mxu1 %v13318_v0 }
 0x3d4   :  { %v12616_v45 = vpop.permute.xlu0 %12615  ;;  %v648_v50 = vpop.permute.xlu1 %647 }
 0x3d5   :  { %v12618_v46 = vunpack.i.h.bf16 %v12616_v45  ;;  %v12617_v47 = vunpack.i.l.bf16 %v12616_v45 }
 0x3d7   :  { %v441_v48 = vsel %vm360_vm4, %v12617_v47, %v12618_v46 }
 0x3d8   :  { %v442_v49 = vpack.c.bf16 %v441_v48, %v441_v48 }
 0x3da   :  { %12240 = vmatmul.mubr.msk.bf16.vlgmr.msra.gmra.mrb[4].mxu0 %vm467_vm5, %v442_v49 }
 0x3db   :  { %12256 = vmatpush3.bf16.msra.mxu0 %v13625_v6  ;;  %12259 = vmatprep.mubr.msk.bf16.mxu0 %vm13319_vm0, %v13318_v0 }
 0x3dc   :  { %12257 = vmatprep.subr.bf16.mxu0 %v13318_v0 }
 0x3df   :  { %12258 = vmatpush3.bf16.msra.mxu0 %v13628_v7 }
 0x3e0   :  { %12275 = vmatprep.subr.bf16.mxu0 %v13318_v0 }
 0x3e2   :  { %12260 = vmatmul.mubr.msk.bf16.vlgmr.msra.gmra.mrb[8].mxu0 %vm360_vm4, %v648_v50 }
 0x3e3   :  { %12283 = vmatprep.mubr.msk.bf16.mxu0 %vm13319_vm0, %v13318_v0  ;;  %12276 = vmatpush3.bf16.msra.mxu0 %v13691_v25 }
 0x3e4   :  { %12277 = vmatprep.subr.bf16.mxu0 %v13318_v0 }
 0x3e7   :  { %12278 = vmatpush3.bf16.msra.mxu0 %v13694_v26 }
 0x3e8   :  { %12279 = vmatprep.subr.bf16.mxu0 %v13318_v0 }
 0x3eb   :  { %12280 = vmatpush3.bf16.msra.mxu0 %v13700_v28 }
 0x3ec   :  { %12281 = vmatprep.subr.bf16.mxu0 %v13318_v0 }
 0x3ef   :  { %12282 = vmatpush3.bf16.msra.mxu0 %v13710_v29 }
 0x3f0   :  { %12295 = vmatprep.subr.bf16.mxu0 %v13318_v0 }
 0x4ad   :  { %v505_v52 = vpop.f32.mrb[4].mxu0 }
 0x4ae   :  { %v506_v53 = vadd.f32 %v13675_v51, %v505_v52  ;;  %v12241_v54 = vpop.f32.mrb[5].mxu0  ;;  %v13751_v52 = vld [vmem:[#allocation16] ss:$0 sm:$0xff] }
 0x4af   :  { %v508_v55 = vpop.f32.mrb[6].mxu0 }
 0x4b0   :  { %12706 = vtanh.f32 %v506_v53  ;;  %v12242_v56 = vpop.f32.mrb[7].mxu0  ;;  %v10865_v3 = vmul.f32 -1.442695, %v506_v53 }
 0x4b5   :  { %v686_v58 = vpop.f32.mrb[8].mxu0 }
 0x4b6   :  { %v692_v59 = vadd.f32 %v686_v58, %v644_v57  ;;  %v12261_v60 = vpop.f32.mrb[9].mxu0 }
 0x4b7   :  { %v689_v61 = vpop.f32.mrb[10].mxu0 }
 0x4b8   :  { %12708 = vtanh.f32 %v692_v59  ;;  %v12262_v62 = vpop.f32.mrb[11].mxu0  ;;  %v10873_v4 = vmul.f32 -1.442695, %v692_v59 }
 0x4b9   :  { %12710 = vpow2.f32 %v10865_v3 }
 0x4ba   :  { %v12707_v63 = vpop.eup %12706  ;;  %12712 = vpow2.f32 %v10873_v4 }
 0x4bb   :  { %524 = vrot.lane.b32.xlu0 %v12707_v63, %s13301_s0 }
 0x4bf   :  { %519 = vrot.lane.b32.xlu0 %v341_v1, %s13307_s17  ;;  %v870_v1 = vld [vmem:[#allocation4 + $0x4] sm:$0x3] }
 0x4c2   :  { %v12709_v2 = vpop.eup %12708 }
 0x4c3   :  { %702 = vrot.lane.b32.xlu1 %v12709_v2, %s13301_s0  ;;  %v12711_v5 = vpop.eup %12710 }
 0x4c4   :  { %v514_v8 = vadd.f32 1.0, %v12711_v5  ;;  %v12713_v9 = vpop.eup %12712 }
 0x4c5   :  { %v696_v10 = vadd.f32 1.0, %v12713_v9 }
 0x4c6   :  { %12714 = vrcp.f32 %v514_v8 }
 0x4c7   :  { %12716 = vrcp.f32 %v696_v10  ;;  %v345_v10 = vld [vmem:[#allocation3 + $0x4] sm:$0x3] }
 0x4d0   :  { %v12715_v11 = vpop.eup %12714 }
 0x4d1   :  { %v12717_v14 = vpop.eup %12716 }
 0x4d2   :  { %v700_v21 = vmul.f32 %v12717_v14, %v13642_v34 }
 0x52d   :  { %v525_v12 = vpop.permute.xlu0 %524 }
 0x52e   :  { %v527_v13 = vmul.f32 %v12715_v11, %v525_v12 }
 0x530   :  { %529 = vrot.lane.b32.xlu1 %v527_v13, %s13307_s17 }
 0x531   :  { %v520_v17 = vpop.permute.xlu0 %519 }
 0x532   :  { %v522_v18 = vmul.f32 %v12715_v11, %v520_v17 }
 0x535   :  { %v703_v15 = vpop.permute.xlu1 %702 }
 0x536   :  { %v705_v16 = vmul.f32 %v12717_v14, %v703_v15 }
 0x538   :  { %707 = vrot.lane.b32.xlu0 %v705_v16, %s13307_s17 }
 0x5a2   :  { %v530_v19 = vpop.permute.xlu1 %529 }
 0x5a3   :  { %v13683_v20 = vadd.f32 %v530_v19, %v522_v18 }
 0x5a5   :  { %12718 = vtanh.f32 %v13683_v20 }
 0x5aa   :  { %v708_v22 = vpop.permute.xlu0 %707 }
 0x5ab   :  { %v13687_v23 = vadd.f32 %v708_v22, %v700_v21 }
 0x5ad   :  { %12720 = vtanh.f32 %v13687_v23 }
 0x5af   :  { %v12719_v24 = vpop.eup %12718 }
 0x5b0   :  { %535 = vrot.lane.b32.xlu1 %v12719_v24, %s13301_s0 }
 0x5b7   :  { %v12721_v27 = vpop.eup %12720 }
 0x5b8   :  { %713 = vrot.lane.b32.xlu0 %v12721_v27, %s13301_s0 }
 0x622   :  { %v536_v30 = vpop.permute.xlu1 %535 }
 0x623   :  { %v538_v32 = vmul.f32 %v12715_v11, %v536_v30 }
 0x625   :  { %v12619_v33 = vpack.i.bf16 %v343_v31, %v538_v32 }
 0x627   :  { %12620 = vrot.lane.b32.xlu1 %v12619_v33, %s13307_s17 }
 0x62a   :  { %v714_v34 = vpop.permute.xlu0 %713 }
 0x62b   :  { %721 = vrot.lane.b32.xlu1 %v538_v32, %s13301_s0  ;;  %v716_v38 = vmul.f32 %v12717_v14, %v714_v34 }
 0x62d   :  { %718 = vrot.lane.b32.xlu0 %v716_v38, %s13307_s17  ;;  %v871_v40 = vpack.c.bf16 %v716_v38, %v716_v38 }
 0x631   :  { %873 = vrot.lane.b32.xlu0 %v871_v40, %s13307_s17 }
 0x699   :  { %v12621_v41 = vpop.permute.xlu1 %12620 }
 0x69a   :  { %v12623_v42 = vunpack.i.h.bf16 %v12621_v41  ;;  %v12622_v43 = vunpack.i.l.bf16 %v12621_v41 }
 0x69c   :  { %v547_v44 = vsel %vm360_vm4, %v12622_v43, %v12623_v42 }
 0x69d   :  { %v548_v45 = vpack.c.bf16 %v547_v44, %v547_v44  ;;  %v722_v47 = vpop.permute.xlu1 %721 }
 0x69f   :  { %12252 = vmatmul.mubr.msk.bf16.vlgmr.msra.gmra.mrb[4].mxu1 %vm467_vm5, %v548_v45  ;;  %v719_v46 = vpop.permute.xlu0 %718 }
 0x6a0   :  { %12264 = vmatpush3.bf16.msra.mxu1 %v13645_v35  ;;  %12271 = vmatprep.mubr.msk.bf16.mxu1 %vm13319_vm0, %v13318_v0  ;;  %v724_v48 = vsel %vm360_vm4, %v719_v46, %v722_v47 }
 0x6a1   :  { %12265 = vmatprep.subr.bf16.mxu1 %v13318_v0  ;;  %v725_v49 = vpack.c.bf16 %v724_v48, %v724_v48 }
 0x6a3   :  { %v874_v50 = vpop.permute.xlu0 %873 }
 0x6a4   :  { %12266 = vmatpush3.bf16.msra.mxu1 %v13648_v36 }
 0x6a5   :  { %12267 = vmatprep.subr.bf16.mxu1 %v13318_v0 }
 0x6a8   :  { %12268 = vmatpush3.bf16.msra.mxu1 %v13652_v37 }
 0x6a9   :  { %12269 = vmatprep.subr.bf16.mxu1 %v13318_v0 }
 0x6ac   :  { %12270 = vmatpush3.bf16.msra.mxu1 %v13658_v39 }
 0x6ad   :  { %12287 = vmatprep.subr.bf16.mxu1 %v13318_v0 }
 0x6af   :  { %12272 = vmatmul.mubr.msk.bf16.vlgmr.msra.gmra.mrb[8].mxu1 %vm467_vm5, %v725_v49 }
 0x6b0   :  { %12288 = vmatpush3.bf16.msra.mxu1 %v13625_v6  ;;  %12291 = vmatprep.mubr.msk.bf16.mxu1 %vm13319_vm0, %v13318_v0 }
 0x6b1   :  { %12289 = vmatprep.subr.bf16.mxu1 %v13318_v0 }
 0x6b4   :  { %12290 = vmatpush3.bf16.msra.mxu1 %v13628_v7 }
 0x6b5   :  { %12307 = vmatprep.subr.bf16.mxu1 %v13318_v0 }
 0x6b7   :  { %12292 = vmatmul.mubr.msk.bf16.vlgmr.msra.gmra.mrb[12].mxu1 %vm360_vm4, %v874_v50 }
 0x6b8   :  { %12308 = vmatpush3.bf16.msra.mxu1 %v13691_v25  ;;  %12315 = vmatprep.mubr.msk.bf16.mxu1 %vm13319_vm0, %v13318_v0 }
 0x6b9   :  { %12309 = vmatprep.subr.bf16.mxu1 %v13318_v0 }
 0x6bc   :  { %12310 = vmatpush3.bf16.msra.mxu1 %v13694_v26 }
 0x6bd   :  { %12311 = vmatprep.subr.bf16.mxu1 %v13318_v0 }
 0x6c0   :  { %12312 = vmatpush3.bf16.msra.mxu1 %v13700_v28 }
 0x6c1   :  { %12313 = vmatprep.subr.bf16.mxu1 %v13318_v0 }
 0x6c4   :  { %12314 = vmatpush3.bf16.msra.mxu1 %v13710_v29 }
 0x6c5   :  { %12327 = vmatprep.subr.bf16.mxu1 %v13318_v0 }
 0x772   :  { %v610_v53 = vpop.f32.mrb[4].mxu1 }
 0x773   :  { %v611_v54 = vadd.f32 %v13751_v52, %v610_v53  ;;  %v12253_v55 = vpop.f32.mrb[5].mxu1 }
 0x774   :  { %v613_v56 = vpop.f32.mrb[6].mxu1 }
 0x775   :  { %12722 = vtanh.f32 %v611_v54  ;;  %v12254_v57 = vpop.f32.mrb[7].mxu1  ;;  %v10871_v12 = vmul.f32 -1.442695, %v611_v54 }
 0x77f   :  { %v12723_v58 = vpop.eup %12722 }
 0x780   :  { %629 = vrot.lane.b32.xlu1 %v12723_v58, %s13301_s0 }
 0x782   :  { %v763_v59 = vpop.f32.mrb[8].mxu1 }
 0x783   :  { %v764_v60 = vadd.f32 %v13675_v51, %v763_v59  ;;  %v12273_v61 = vpop.f32.mrb[9].mxu1 }
 0x784   :  { %v766_v62 = vpop.f32.mrb[10].mxu1 }
 0x785   :  { %12724 = vtanh.f32 %v764_v60  ;;  %v12274_v63 = vpop.f32.mrb[11].mxu1  ;;  %v10875_v14 = vmul.f32 -1.442695, %v764_v60 }
 0x78a   :  { %v912_v2 = vpop.f32.mrb[12].mxu1 }
 0x78b   :  { %v918_v3 = vadd.f32 %v912_v2, %v870_v1  ;;  %v12293_v4 = vpop.f32.mrb[13].mxu1 }
 0x78c   :  { %v915_v5 = vpop.f32.mrb[14].mxu1 }
 0x78d   :  { %12726 = vtanh.f32 %v918_v3  ;;  %v12294_v8 = vpop.f32.mrb[15].mxu1  ;;  %v10879_v16 = vmul.f32 -1.442695, %v918_v3 }
 0x78e   :  { %12728 = vpow2.f32 %v10871_v12 }
 0x78f   :  { %v12725_v9 = vpop.eup %12724  ;;  %12730 = vpow2.f32 %v10875_v14 }
 0x790   :  { %778 = vrot.lane.b32.xlu0 %v12725_v9, %s13301_s0 }
 0x794   :  { %624 = vrot.lane.b32.xlu0 %v345_v10, %s13307_s17 }
 0x797   :  { %v12727_v11 = vpop.eup %12726 }
 0x798   :  { %928 = vrot.lane.b32.xlu1 %v12727_v11, %s13301_s0  ;;  %v12729_v13 = vpop.eup %12728 }
 0x799   :  { %v619_v15 = vadd.f32 1.0, %v12729_v13  ;;  %v12731_v17 = vpop.eup %12730 }
 0x79a   :  { %v772_v22 = vadd.f32 1.0, %v12731_v17  ;;  %v1096_v17 = vld [vmem:[#allocation4 + $0x6] sm:$0x3] }
 0x79b   :  { %12732 = vrcp.f32 %v619_v15 }
 0x79c   :  { %12734 = vpow2.f32 %v10879_v16 }
 0x79d   :  { %12736 = vrcp.f32 %v772_v22 }
 0x7a5   :  { %v12733_v18 = vpop.eup %12732 }
 0x7a6   :  { %v12735_v24 = vpop.eup %12734 }
 0x7a7   :  { %v922_v27 = vadd.f32 1.0, %v12735_v24  ;;  %v12737_v30 = vpop.eup %12736 }
 0x7a8   :  { %v776_v45 = vmul.f32 %v12737_v30, %v13683_v20 }
 0x7a9   :  { %12738 = vrcp.f32 %v922_v27 }
 0x7b3   :  { %v12739_v33 = vpop.eup %12738 }
 0x7b4   :  { %v926_v48 = vmul.f32 %v12739_v33, %v13687_v23 }
 0x7f2   :  { %v630_v19 = vpop.permute.xlu1 %629 }
 0x7f3   :  { %v632_v21 = vmul.f32 %v12733_v18, %v630_v19 }
 0x7f5   :  { %634 = vrot.lane.b32.xlu1 %v632_v21, %s13307_s17 }
 0x802   :  { %v779_v31 = vpop.permute.xlu0 %778 }
 0x803   :  { %v781_v32 = vmul.f32 %v12737_v30, %v779_v31 }
 0x805   :  { %783 = vrot.lane.b32.xlu0 %v781_v32, %s13307_s17 }
 0x806   :  { %v625_v40 = vpop.permute.xlu0 %624 }
 0x807   :  { %v627_v41 = vmul.f32 %v12733_v18, %v625_v40 }
 0x80a   :  { %v929_v34 = vpop.permute.xlu1 %928 }
 0x80b   :  { %v931_v38 = vmul.f32 %v12739_v33, %v929_v34 }
 0x80d   :  { %933 = vrot.lane.b32.xlu1 %v931_v38, %s13307_s17 }
 0x867   :  { %v635_v42 = vpop.permute.xlu1 %634 }
 0x868   :  { %v13762_v43 = vadd.f32 %v635_v42, %v627_v41 }
 0x86a   :  { %12740 = vtanh.f32 %v13762_v43 }
 0x874   :  { %v12741_v44 = vpop.eup %12740 }
 0x875   :  { %640 = vrot.lane.b32.xlu0 %v12741_v44, %s13301_s0 }
 0x877   :  { %v784_v46 = vpop.permute.xlu0 %783 }
 0x878   :  { %v13767_v47 = vadd.f32 %v784_v46, %v776_v45 }
 0x87a   :  { %12742 = vtanh.f32 %v13767_v47 }
 0x87f   :  { %v934_v49 = vpop.permute.xlu1 %933 }
 0x880   :  { %v13771_v50 = vadd.f32 %v934_v49, %v926_v48 }
 0x882   :  { %12744 = vtanh.f32 %v13771_v50 }
 0x884   :  { %v12743_v53 = vpop.eup %12742 }
 0x885   :  { %789 = vrot.lane.b32.xlu1 %v12743_v53, %s13301_s0 }
 0x88c   :  { %v12745_v54 = vpop.eup %12744 }
 0x88d   :  { %939 = vrot.lane.b32.xlu0 %v12745_v54, %s13301_s0 }
 0x8e7   :  { %v641_v55 = vpop.permute.xlu0 %640 }
 0x8e8   :  { %v643_v20 = vmul.f32 %v12733_v18, %v641_v55 }
 0x8ea   :  { %798 = vrot.lane.b32.xlu0 %v643_v20, %s13301_s0 }
 0x8f7   :  { %v790_v56 = vpop.permute.xlu1 %789 }
 0x8f8   :  { %v792_v57 = vmul.f32 %v12737_v30, %v790_v56 }
 0x8fa   :  { %794 = vrot.lane.b32.xlu1 %v792_v57, %s13307_s17  ;;  %947 = vrot.lane.b32.xlu0 %v792_v57, %s13301_s0 }
 0x8ff   :  { %v940_v23 = vpop.permute.xlu0 %939 }
 0x900   :  { %v942_v58 = vmul.f32 %v12739_v33, %v940_v23 }
 0x902   :  { %944 = vrot.lane.b32.xlu1 %v942_v58, %s13307_s17  ;;  %v1097_v59 = vpack.c.bf16 %v942_v58, %v942_v58 }
 0x906   :  { %1099 = vrot.lane.b32.xlu1 %v1097_v59, %s13307_s17 }
 0x95c   :  { %v799_v60 = vpop.permute.xlu0 %798 }
 0x96c   :  { %v795_v61 = vpop.permute.xlu1 %794  ;;  %v948_v2 = vpop.permute.xlu0 %947 }
 0x96d   :  { %v801_v62 = vsel %vm360_vm4, %v795_v61, %v799_v60 }
 0x96e   :  { %v802_v63 = vpack.c.bf16 %v801_v62, %v801_v62 }
 0x970   :  { %12284 = vmatmul.mubr.msk.bf16.vlgmr.msra.gmra.mrb[12].mxu0 %vm467_vm5, %v802_v63 }
 0x971   :  { %12296 = vmatpush3.bf16.msra.mxu0 %v13645_v35  ;;  %12303 = vmatprep.mubr.msk.bf16.mxu0 %vm13319_vm0, %v13318_v0 }
 0x972   :  { %12297 = vmatprep.subr.bf16.mxu0 %v13318_v0 }
 0x974   :  { %v945_v1 = vpop.permute.xlu1 %944 }
 0x975   :  { %12298 = vmatpush3.bf16.msra.mxu0 %v13648_v36  ;;  %v950_v3 = vsel %vm360_vm4, %v945_v1, %v948_v2 }
 0x976   :  { %12299 = vmatprep.subr.bf16.mxu0 %v13318_v0  ;;  %v951_v4 = vpack.c.bf16 %v950_v3, %v950_v3 }
 0x978   :  { %v1100_v5 = vpop.permute.xlu1 %1099 }
 0x979   :  { %12300 = vmatpush3.bf16.msra.mxu0 %v13652_v37 }
 0x97a   :  { %12301 = vmatprep.subr.bf16.mxu0 %v13318_v0 }
 0x97d   :  { %12302 = vmatpush3.bf16.msra.mxu0 %v13658_v39 }
 0x97e   :  { %12319 = vmatprep.subr.bf16.mxu0 %v13318_v0 }
 0x980   :  { %12304 = vmatmul.mubr.msk.bf16.vlgmr.msra.gmra.mrb[16].mxu0 %vm467_vm5, %v951_v4 }
 0x981   :  { %12320 = vmatpush3.bf16.msra.mxu0 %v13625_v6  ;;  %12323 = vmatprep.mubr.msk.bf16.mxu0 %vm13319_vm0, %v13318_v0 }
 0x982   :  { %12321 = vmatprep.subr.bf16.mxu0 %v13318_v0 }
 0x985   :  { %12322 = vmatpush3.bf16.msra.mxu0 %v13628_v7 }
 0x986   :  { %12339 = vmatprep.subr.bf16.mxu0 %v13318_v0 }
 0x988   :  { %12324 = vmatmul.mubr.msk.bf16.vlgmr.msra.gmra.mrb[20].mxu0 %vm360_vm4, %v1100_v5 }
 0x989   :  { %12340 = vmatpush3.bf16.msra.mxu0 %v13691_v25  ;;  %12347 = vmatprep.mubr.msk.bf16.mxu0 %vm13319_vm0, %v13318_v0 }
 0x98a   :  { %12341 = vmatprep.subr.bf16.mxu0 %v13318_v0 }
 0x98d   :  { %12342 = vmatpush3.bf16.msra.mxu0 %v13694_v26 }
 0x98e   :  { %12343 = vmatprep.subr.bf16.mxu0 %v13318_v0 }
 0x991   :  { %12344 = vmatpush3.bf16.msra.mxu0 %v13700_v28 }
 0x992   :  { %12345 = vmatprep.subr.bf16.mxu0 %v13318_v0 }
 0x995   :  { %12346 = vmatpush3.bf16.msra.mxu0 %v13710_v29 }
 0x996   :  { %12359 = vmatprep.subr.bf16.mxu0 %v13318_v0 }
 0xa43   :  { %v840_v6 = vpop.f32.mrb[12].mxu0 }
 0xa44   :  { %v841_v7 = vadd.f32 %v13751_v52, %v840_v6  ;;  %v12285_v8 = vpop.f32.mrb[13].mxu0 }
 0xa45   :  { %v843_v9 = vpop.f32.mrb[14].mxu0 }
 0xa46   :  { %12746 = vtanh.f32 %v841_v7  ;;  %v12286_v10 = vpop.f32.mrb[15].mxu0  ;;  %v10877_v31 = vmul.f32 -1.442695, %v841_v7 }
 0xa50   :  { %v12747_v11 = vpop.eup %12746 }
 0xa51   :  { %855 = vrot.lane.b32.xlu0 %v12747_v11, %s13301_s0 }
 0xa53   :  { %v989_v12 = vpop.f32.mrb[16].mxu0 }
 0xa54   :  { %v990_v13 = vadd.f32 %v13675_v51, %v989_v12  ;;  %v12305_v14 = vpop.f32.mrb[17].mxu0 }
 0xa55   :  { %v992_v15 = vpop.f32.mrb[18].mxu0 }
 0xa56   :  { %12748 = vtanh.f32 %v990_v13  ;;  %v12306_v16 = vpop.f32.mrb[19].mxu0  ;;  %v10881_v33 = vmul.f32 -1.442695, %v990_v13 }
 0xa5b   :  { %v1138_v18 = vpop.f32.mrb[20].mxu0 }
 0xa5c   :  { %v1144_v19 = vadd.f32 %v1138_v18, %v1096_v17  ;;  %v12325_v21 = vpop.f32.mrb[21].mxu0  ;;  %v13854_v17 = vld [vmem:[#allocation8] sm:$0xff]   ;;  %v13860_v18 = vld [vmem:[#allocation8 + $0x8] sm:$0xff]  }
 0xa5d   :  { %v1141_v22 = vpop.f32.mrb[22].mxu0 }
 0xa5e   :  { %12750 = vtanh.f32 %v1144_v19  ;;  %v12326_v24 = vpop.f32.mrb[23].mxu0  ;;  %v10885_v38 = vmul.f32 -1.442695, %v1144_v19 }
 0xa5f   :  { %12752 = vpow2.f32 %v10877_v31 }
 0xa60   :  { %v12749_v27 = vpop.eup %12748  ;;  %12754 = vpow2.f32 %v10881_v33 }
 0xa61   :  { %1004 = vrot.lane.b32.xlu1 %v12749_v27, %s13301_s0 }
 0xa68   :  { %v12751_v30 = vpop.eup %12750 }
 0xa69   :  { %1154 = vrot.lane.b32.xlu0 %v12751_v30, %s13301_s0  ;;  %v12753_v32 = vpop.eup %12752 }
 0xa6a   :  { %v849_v34 = vadd.f32 1.0, %v12753_v32  ;;  %v12755_v40 = vpop.eup %12754 }
 0xa6b   :  { %v998_v45 = vadd.f32 1.0, %v12755_v40 }
 0xa6c   :  { %12756 = vrcp.f32 %v849_v34 }
 0xa6d   :  { %12758 = vpow2.f32 %v10885_v38 }
 0xa6e   :  { %12760 = vrcp.f32 %v998_v45 }
 0xa76   :  { %v12757_v41 = vpop.eup %12756 }
 0xa77   :  { %v12759_v46 = vpop.eup %12758  ;;  %v853_v57 = vmul.f32 %v12757_v41, %v13762_v43 }
 0xa78   :  { %v1148_v48 = vadd.f32 1.0, %v12759_v46  ;;  %v12761_v49 = vpop.eup %12760 }
 0xa79   :  { %v1002_v60 = vmul.f32 %v12761_v49, %v13767_v47 }
 0xa7a   :  { %12762 = vrcp.f32 %v1148_v48 }
 0xa84   :  { %v12763_v55 = vpop.eup %12762 }
 0xa85   :  { %v1152_v63 = vmul.f32 %v12763_v55, %v13771_v50 }
 0xac3   :  { %v856_v42 = vpop.permute.xlu0 %855 }
 0xac4   :  { %v858_v44 = vmul.f32 %v12757_v41, %v856_v42 }
 0xac6   :  { %860 = vrot.lane.b32.xlu1 %v858_v44, %s13307_s17 }
 0xad3   :  { %v1005_v53 = vpop.permute.xlu1 %1004 }
 0xad4   :  { %v1007_v54 = vmul.f32 %v12761_v49, %v1005_v53 }
 0xad6   :  { %1009 = vrot.lane.b32.xlu0 %v1007_v54, %s13307_s17 }
 0xadb   :  { %v1155_v20 = vpop.permute.xlu0 %1154 }
 0xadc   :  { %v1157_v56 = vmul.f32 %v12763_v55, %v1155_v20 }
 0xade   :  { %1159 = vrot.lane.b32.xlu1 %v1157_v56, %s13307_s17 }
 0xb38   :  { %v861_v23 = vpop.permute.xlu1 %860 }
 0xb39   :  { %v13821_v58 = vadd.f32 %v861_v23, %v853_v57 }
 0xb3b   :  { %12764 = vtanh.f32 %v13821_v58 }
 0xb45   :  { %v12765_v59 = vpop.eup %12764 }
 0xb46   :  { %866 = vrot.lane.b32.xlu0 %v12765_v59, %s13301_s0 }
 0xb48   :  { %v1010_v61 = vpop.permute.xlu0 %1009 }
 0xb49   :  { %v13826_v62 = vadd.f32 %v1010_v61, %v1002_v60 }
 0xb4b   :  { %12766 = vtanh.f32 %v13826_v62 }
 0xb50   :  { %v1160_v1 = vpop.permute.xlu1 %1159 }
 0xb51   :  { %v13830_v2 = vadd.f32 %v1160_v1, %v1152_v63 }
 0xb53   :  { %12768 = vtanh.f32 %v13830_v2 }
 0xb55   :  { %v12767_v43 = vpop.eup %12766 }
 0xb56   :  { %1015 = vrot.lane.b32.xlu1 %v12767_v43, %s13301_s0 }
 0xb5d   :  { %v12769_v3 = vpop.eup %12768 }
 0xb5e   :  { %1165 = vrot.lane.b32.xlu0 %v12769_v3, %s13301_s0 }
 0xbb8   :  { %v867_v4 = vpop.permute.xlu0 %866 }
 0xbb9   :  { %v869_v47 = vmul.f32 %v12757_v41, %v867_v4  ;;  %v1322_v41 = vld [vmem:[#allocation4 + $0x8] sm:$0x3] }
 0xbbb   :  { %1024 = vrot.lane.b32.xlu0 %v869_v47, %s13301_s0 }
 0xbc8   :  { %v1016_v5 = vpop.permute.xlu1 %1015 }
 0xbc9   :  { %v1018_v6 = vmul.f32 %v12761_v49, %v1016_v5 }
 0xbcb   :  { %1020 = vrot.lane.b32.xlu1 %v1018_v6, %s13307_s17  ;;  %1173 = vrot.lane.b32.xlu0 %v1018_v6, %s13301_s0 }
 0xbd0   :  { %v1166_v50 = vpop.permute.xlu0 %1165 }
 0xbd1   :  { %v1168_v7 = vmul.f32 %v12763_v55, %v1166_v50 }
 0xbd3   :  { %1170 = vrot.lane.b32.xlu1 %v1168_v7, %s13307_s17  ;;  %v1323_v8 = vpack.c.bf16 %v1168_v7, %v1168_v7 }
 0xbd7   :  { %1325 = vrot.lane.b32.xlu1 %v1323_v8, %s13307_s17 }
 0xc2d   :  { %v1025_v9 = vpop.permute.xlu0 %1024 }
 0xc3d   :  { %v1021_v10 = vpop.permute.xlu1 %1020  ;;  %v1174_v14 = vpop.permute.xlu0 %1173 }
 0xc3e   :  { %v1027_v11 = vsel %vm360_vm4, %v1021_v10, %v1025_v9 }
 0xc3f   :  { %v1028_v12 = vpack.c.bf16 %v1027_v11, %v1027_v11 }
 0xc41   :  { %12316 = vmatmul.mubr.msk.bf16.vlgmr.msra.gmra.mrb[16].mxu1 %vm467_vm5, %v1028_v12 }
 0xc42   :  { %12328 = vmatpush3.bf16.msra.mxu1 %v13645_v35  ;;  %12335 = vmatprep.mubr.msk.bf16.mxu1 %vm13319_vm0, %v13318_v0 }
 0xc43   :  { %12329 = vmatprep.subr.bf16.mxu1 %v13318_v0 }
 0xc45   :  { %v1171_v13 = vpop.permute.xlu1 %1170 }
 0xc46   :  { %12330 = vmatpush3.bf16.msra.mxu1 %v13648_v36  ;;  %v1176_v15 = vsel %vm360_vm4, %v1171_v13, %v1174_v14 }
 0xc47   :  { %12331 = vmatprep.subr.bf16.mxu1 %v13318_v0  ;;  %v1177_v16 = vpack.c.bf16 %v1176_v15, %v1176_v15 }
 0xc49   :  { %v1326_v19 = vpop.permute.xlu1 %1325 }
 0xc4a   :  { %12332 = vmatpush3.bf16.msra.mxu1 %v13652_v37 }
 0xc4b   :  { %12333 = vmatprep.subr.bf16.mxu1 %v13318_v0 }
 0xc4e   :  { %12334 = vmatpush3.bf16.msra.mxu1 %v13658_v39 }
 0xc4f   :  { %12351 = vmatprep.subr.bf16.mxu1 %v13318_v0 }
 0xc51   :  { %12336 = vmatmul.mubr.msk.bf16.vlgmr.msra.gmra.mrb[20].mxu1 %vm467_vm5, %v1177_v16 }
 0xc52   :  { %12352 = vmatpush3.bf16.msra.mxu1 %v13854_v17  ;;  %12355 = vmatprep.mubr.msk.bf16.mxu1 %vm13319_vm0, %v13318_v0 }
 0xc53   :  { %12353 = vmatprep.subr.bf16.mxu1 %v13318_v0 }
 0xc56   :  { %12354 = vmatpush3.bf16.msra.mxu1 %v13860_v18 }
 0xc57   :  { %12371 = vmatprep.subr.bf16.mxu1 %v13318_v0 }
 0xc59   :  { %12356 = vmatmul.mubr.msk.bf16.vlgmr.msra.gmra.mrb[24].mxu1 %vm360_vm4, %v1326_v19 }
 0xc5a   :  { %12372 = vmatpush3.bf16.msra.mxu1 %v13691_v25  ;;  %12379 = vmatprep.mubr.msk.bf16.mxu1 %vm13319_vm0, %v13318_v0 }
 0xc5b   :  { %12373 = vmatprep.subr.bf16.mxu1 %v13318_v0 }
 0xc5e   :  { %12374 = vmatpush3.bf16.msra.mxu1 %v13694_v26 }
 0xc5f   :  { %12375 = vmatprep.subr.bf16.mxu1 %v13318_v0 }
 0xc62   :  { %12376 = vmatpush3.bf16.msra.mxu1 %v13700_v28 }
 0xc63   :  { %12377 = vmatprep.subr.bf16.mxu1 %v13318_v0 }
 0xc66   :  { %12378 = vmatpush3.bf16.msra.mxu1 %v13710_v29 }
 0xc67   :  { %12391 = vmatprep.subr.bf16.mxu1 %v13318_v0 }
 0xd14   :  { %v1066_v21 = vpop.f32.mrb[16].mxu1 }
 0xd15   :  { %v1067_v22 = vadd.f32 %v13751_v52, %v1066_v21  ;;  %v12317_v24 = vpop.f32.mrb[17].mxu1 }
 0xd16   :  { %v1069_v27 = vpop.f32.mrb[18].mxu1 }
 0xd17   :  { %12770 = vtanh.f32 %v1067_v22  ;;  %v12318_v30 = vpop.f32.mrb[19].mxu1  ;;  %v10883_v54 = vmul.f32 -1.442695, %v1067_v22 }
 0xd21   :  { %v12771_v31 = vpop.eup %12770 }
 0xd22   :  { %1081 = vrot.lane.b32.xlu0 %v12771_v31, %s13301_s0 }
 0xd24   :  { %v1215_v32 = vpop.f32.mrb[20].mxu1 }
 0xd25   :  { %v1216_v33 = vadd.f32 %v13675_v51, %v1215_v32  ;;  %v12337_v34 = vpop.f32.mrb[21].mxu1 }
 0xd26   :  { %v1218_v38 = vpop.f32.mrb[22].mxu1 }
 0xd27   :  { %12772 = vtanh.f32 %v1216_v33  ;;  %v12338_v40 = vpop.f32.mrb[23].mxu1  ;;  %v10887_v20 = vmul.f32 -1.442695, %v1216_v33 }
 0xd2c   :  { %v1364_v42 = vpop.f32.mrb[24].mxu1 }
 0xd2d   :  { %v1370_v44 = vadd.f32 %v1364_v42, %v1322_v41  ;;  %v12357_v45 = vpop.f32.mrb[25].mxu1 }
 0xd2e   :  { %v1367_v46 = vpop.f32.mrb[26].mxu1 }
 0xd2f   :  { %12774 = vtanh.f32 %v1370_v44  ;;  %v12358_v48 = vpop.f32.mrb[27].mxu1  ;;  %v10891_v57 = vmul.f32 -1.442695, %v1370_v44 }
 0xd30   :  { %12776 = vpow2.f32 %v10883_v54 }
 0xd31   :  { %v12773_v49 = vpop.eup %12772  ;;  %12778 = vpow2.f32 %v10887_v20 }
 0xd32   :  { %1230 = vrot.lane.b32.xlu1 %v12773_v49, %s13301_s0 }
 0xd39   :  { %v12775_v53 = vpop.eup %12774 }
 0xd3a   :  { %1380 = vrot.lane.b32.xlu0 %v12775_v53, %s13301_s0  ;;  %v12777_v55 = vpop.eup %12776 }
 0xd3b   :  { %v1075_v56 = vadd.f32 1.0, %v12777_v55  ;;  %v12779_v23 = vpop.eup %12778 }
 0xd3c   :  { %v1224_v63 = vadd.f32 1.0, %v12779_v23 }
 0xd3d   :  { %12780 = vrcp.f32 %v1075_v56 }
 0xd3e   :  { %12782 = vpow2.f32 %v10891_v57 }
 0xd3f   :  { %12784 = vrcp.f32 %v1224_v63 }
 0xd47   :  { %v12781_v59 = vpop.eup %12780 }
 0xd48   :  { %v12783_v1 = vpop.eup %12782  ;;  %v1079_v7 = vmul.f32 %v12781_v59, %v13821_v58 }
 0xd49   :  { %v1374_v43 = vadd.f32 1.0, %v12783_v1  ;;  %v12785_v3 = vpop.eup %12784 }
 0xd4a   :  { %v1228_v11 = vmul.f32 %v12785_v3, %v13826_v62 }
 0xd4b   :  { %12786 = vrcp.f32 %v1374_v43 }
 0xd55   :  { %v12787_v5 = vpop.eup %12786 }
 0xd56   :  { %v1378_v14 = vmul.f32 %v12787_v5, %v13830_v2 }
 0xd94   :  { %v1082_v60 = vpop.permute.xlu0 %1081 }
 0xd95   :  { %v1084_v61 = vmul.f32 %v12781_v59, %v1082_v60 }
 0xd97   :  { %1086 = vrot.lane.b32.xlu1 %v1084_v61, %s13307_s17 }
 0xda4   :  { %v1231_v4 = vpop.permute.xlu1 %1230 }
 0xda5   :  { %v1233_v47 = vmul.f32 %v12785_v3, %v1231_v4 }
 0xda7   :  { %1235 = vrot.lane.b32.xlu0 %v1233_v47, %s13307_s17 }
 0xdac   :  { %v1381_v6 = vpop.permute.xlu0 %1380 }
 0xdad   :  { %v1383_v50 = vmul.f32 %v12787_v5, %v1381_v6 }
 0xdaf   :  { %1385 = vrot.lane.b32.xlu1 %v1383_v50, %s13307_s17 }
 0xe09   :  { %v1087_v8 = vpop.permute.xlu1 %1086 }
 0xe0a   :  { %v13884_v9 = vadd.f32 %v1087_v8, %v1079_v7 }
 0xe0c   :  { %12788 = vtanh.f32 %v13884_v9 }
 0xe16   :  { %v12789_v10 = vpop.eup %12788 }
 0xe17   :  { %1092 = vrot.lane.b32.xlu0 %v12789_v10, %s13301_s0 }
 0xe19   :  { %v1236_v12 = vpop.permute.xlu0 %1235 }
 0xe1a   :  { %v13889_v13 = vadd.f32 %v1236_v12, %v1228_v11 }
 0xe1c   :  { %12790 = vtanh.f32 %v13889_v13 }
 0xe21   :  { %v1386_v15 = vpop.permute.xlu1 %1385 }
 0xe22   :  { %v13893_v16 = vadd.f32 %v1386_v15, %v1378_v14 }
 0xe24   :  { %12792 = vtanh.f32 %v13893_v16 }
 0xe26   :  { %v12791_v58 = vpop.eup %12790 }
 0xe27   :  { %1241 = vrot.lane.b32.xlu1 %v12791_v58, %s13301_s0 }
 0xe2e   :  { %v12793_v19 = vpop.eup %12792 }
 0xe2f   :  { %1391 = vrot.lane.b32.xlu0 %v12793_v19, %s13301_s0 }
 0xe89   :  { %v1093_v21 = vpop.permute.xlu0 %1092 }
 0xe8a   :  { %v1095_v62 = vmul.f32 %v12781_v59, %v1093_v21 }
 0xe8c   :  { %1250 = vrot.lane.b32.xlu0 %v1095_v62, %s13301_s0 }
 0xe99   :  { %v1242_v22 = vpop.permute.xlu1 %1241 }
 0xe9a   :  { %v1244_v24 = vmul.f32 %v12785_v3, %v1242_v22 }
 0xe9c   :  { %1246 = vrot.lane.b32.xlu1 %v1244_v24, %s13307_s17  ;;  %1399 = vrot.lane.b32.xlu0 %v1244_v24, %s13301_s0 }
 0xea1   :  { %v1392_v2 = vpop.permute.xlu0 %1391 }
 0xea2   :  { %v1394_v27 = vmul.f32 %v12787_v5, %v1392_v2 }
 0xea4   :  { %1396 = vrot.lane.b32.xlu1 %v1394_v27, %s13307_s17  ;;  %v1549_v30 = vpack.c.bf16 %v1394_v27, %v1394_v27 }
 0xea8   :  { %1551 = vrot.lane.b32.xlu1 %v1549_v30, %s13307_s17 }
 0xefe   :  { %v1251_v31 = vpop.permute.xlu0 %1250 }
 0xf0e   :  { %v1247_v32 = vpop.permute.xlu1 %1246  ;;  %v1400_v40 = vpop.permute.xlu0 %1399 }
 0xf0f   :  { %v1253_v33 = vsel %vm360_vm4, %v1247_v32, %v1251_v31 }
 0xf10   :  { %v1254_v34 = vpack.c.bf16 %v1253_v33, %v1253_v33 }
 0xf12   :  { %12348 = vmatmul.mubr.msk.bf16.vlgmr.msra.gmra.mrb[24].mxu0 %vm467_vm5, %v1254_v34 }
 0xf13   :  { %12360 = vmatpush3.bf16.msra.mxu0 %v13645_v35  ;;  %12367 = vmatprep.mubr.msk.bf16.mxu0 %vm13319_vm0, %v13318_v0 }
 0xf14   :  { %12361 = vmatprep.subr.bf16.mxu0 %v13318_v0 }
 0xf16   :  { %v1397_v38 = vpop.permute.xlu1 %1396 }
 0xf17   :  { %12362 = vmatpush3.bf16.msra.mxu0 %v13648_v36  ;;  %v1402_v41 = vsel %vm360_vm4, %v1397_v38, %v1400_v40 }
 0xf18   :  { %12363 = vmatprep.subr.bf16.mxu0 %v13318_v0  ;;  %v1403_v35 = vpack.c.bf16 %v1402_v41, %v1402_v41 }
 0xf1a   :  { %v1552_v36 = vpop.permute.xlu1 %1551 }
 0xf1b   :  { %12364 = vmatpush3.bf16.msra.mxu0 %v13652_v37 }
 0xf1c   :  { %12365 = vmatprep.subr.bf16.mxu0 %v13318_v0 }
 0xf1f   :  { %12366 = vmatpush3.bf16.msra.mxu0 %v13658_v39 }
 0xf20   :  { %12383 = vmatprep.subr.bf16.mxu0 %v13318_v0 }
 0xf22   :  { %12368 = vmatmul.mubr.msk.bf16.vlgmr.msra.gmra.mrb[28].mxu0 %vm467_vm5, %v1403_v35 }
 0xf23   :  { %12384 = vmatpush3.bf16.msra.mxu0 %v13854_v17  ;;  %12387 = vmatprep.mubr.msk.bf16.mxu0 %vm13319_vm0, %v13318_v0 }
 0xf24   :  { %12385 = vmatprep.subr.bf16.mxu0 %v13318_v0 }
 0xf27   :  { %12386 = vmatpush3.bf16.msra.mxu0 %v13860_v18 }
 0xf28   :  { %12403 = vmatprep.subr.bf16.mxu0 %v13318_v0 }
 0xf2a   :  { %12388 = vmatmul.mubr.msk.bf16.vlgmr.msra.gmra.mrb[32].mxu0 %vm360_vm4, %v1552_v36 }
 0xf2b   :  { %12404 = vmatpush3.bf16.msra.mxu0 %v13691_v25  ;;  %12411 = vmatprep.mubr.msk.bf16.mxu0 %vm13319_vm0, %v13318_v0 }
 0xf2c   :  { %12405 = vmatprep.subr.bf16.mxu0 %v13318_v0 }
 0xf2f   :  { %12406 = vmatpush3.bf16.msra.mxu0 %v13694_v26 }
 0xf30   :  { %12407 = vmatprep.subr.bf16.mxu0 %v13318_v0 }
 0xf33   :  { %12408 = vmatpush3.bf16.msra.mxu0 %v13700_v28 }
 0xf34   :  { %12409 = vmatprep.subr.bf16.mxu0 %v13318_v0 }
 0xf37   :  { %12410 = vmatpush3.bf16.msra.mxu0 %v13710_v29  ;;  %v1548_v29 = vld [vmem:[#allocation4 + $0xa] sm:$0x3] }
 0xf38   :  { %12423 = vmatprep.subr.bf16.mxu0 %v13318_v0 }
 0xfe5   :  { %v1292_v37 = vpop.f32.mrb[24].mxu0 }
 0xfe6   :  { %v1293_v39 = vadd.f32 %v13751_v52, %v1292_v37  ;;  %v12349_v25 = vpop.f32.mrb[25].mxu0  ;;  %v13964_v37 = vld [vmem:[#allocation11] sm:$0xff]  }
 0xfe7   :  { %v1295_v42 = vpop.f32.mrb[26].mxu0 }
 0xfe8   :  { %12794 = vtanh.f32 %v1293_v39  ;;  %v12350_v44 = vpop.f32.mrb[27].mxu0  ;;  %v10889_v59 = vmul.f32 -1.442695, %v1293_v39  ;;  %v13970_v39 = vld [vmem:[#allocation11 + $0x8] sm:$0xff]   ;;  %v13974_v42 = vld [vmem:[#allocation11 + $0x10] sm:$0xff]  }
 0xff2   :  { %v12795_v45 = vpop.eup %12794 }
 0xff3   :  { %1307 = vrot.lane.b32.xlu0 %v12795_v45, %s13301_s0 }
 0xff5   :  { %v1441_v26 = vpop.f32.mrb[28].mxu0 }
 0xff6   :  { %v1442_v46 = vadd.f32 %v13675_v51, %v1441_v26  ;;  %v12369_v28 = vpop.f32.mrb[29].mxu0  ;;  %v13979_v26 = vld [vmem:[#allocation11 + $0x18] sm:$0xff]  }
 0xff7   :  { %v1444_v48 = vpop.f32.mrb[30].mxu0 }
 0xff8   :  { %12796 = vtanh.f32 %v1442_v46  ;;  %v12370_v49 = vpop.f32.mrb[31].mxu0  ;;  %v10893_v60 = vmul.f32 -1.442695, %v1442_v46  ;;  %v13991_v48 = vld [vmem:[#allocation14] sm:$0xff]  }
 0xff9   :  { %v13997_v49 = vld [vmem:[#allocation14 + $0x8] sm:$0xff]  }
 0xffd   :  { %v1590_v53 = vpop.f32.mrb[32].mxu0 }
 0xffe   :  { %v1596_v54 = vadd.f32 %v1590_v53, %v1548_v29  ;;  %v12389_v55 = vpop.f32.mrb[33].mxu0  ;;  %v14001_v29 = vld [vmem:[#allocation14 + $0x10] sm:$0xff]   ;;  %v14005_v53 = vld [vmem:[#allocation14 + $0x18] sm:$0xff]  }
 0xfff   :  { %v1593_v20 = vpop.f32.mrb[34].mxu0 }
0x1000   :  { %12798 = vtanh.f32 %v1596_v54  ;;  %v12390_v56 = vpop.f32.mrb[35].mxu0  ;;  %v10897_v63 = vmul.f32 -1.442695, %v1596_v54 }
0x1001   :  { %12800 = vpow2.f32 %v10889_v59 }
0x1002   :  { %v12797_v57 = vpop.eup %12796  ;;  %12802 = vpow2.f32 %v10893_v60 }
0x1003   :  { %1456 = vrot.lane.b32.xlu1 %v12797_v57, %s13301_s0 }
0x100a   :  { %v12799_v23 = vpop.eup %12798 }
0x100b   :  { %1606 = vrot.lane.b32.xlu0 %v12799_v23, %s13301_s0  ;;  %v12801_v51 = vpop.eup %12800 }
0x100c   :  { %v1301_v61 = vadd.f32 1.0, %v12801_v51  ;;  %v12803_v1 = vpop.eup %12802  ;;  %v14011_v51 = vld [vmem:[#allocation13] ss:$0 sm:$0xff] }
0x100d   :  { %v1450_v47 = vadd.f32 1.0, %v12803_v1 }
0x100e   :  { %12804 = vrcp.f32 %v1301_v61 }
0x100f   :  { %12806 = vpow2.f32 %v10897_v63 }
0x1010   :  { %12808 = vrcp.f32 %v1450_v47 }
0x1018   :  { %v12805_v43 = vpop.eup %12804 }
0x1019   :  { %v12807_v5 = vpop.eup %12806  ;;  %v1305_v14 = vmul.f32 %v12805_v43, %v13884_v9 }
0x101a   :  { %v1600_v6 = vadd.f32 1.0, %v12807_v5  ;;  %v12809_v50 = vpop.eup %12808 }
0x101b   :  { %v1454_v21 = vmul.f32 %v12809_v50, %v13889_v13 }
0x101c   :  { %12810 = vrcp.f32 %v1600_v6 }
0x1026   :  { %v12811_v10 = vpop.eup %12810 }
0x1027   :  { %v1604_v24 = vmul.f32 %v12811_v10, %v13893_v16 }
0x1065   :  { %v1308_v3 = vpop.permute.xlu0 %1307 }
0x1066   :  { %v1310_v4 = vmul.f32 %v12805_v43, %v1308_v3 }
0x1068   :  { %1312 = vrot.lane.b32.xlu1 %v1310_v4, %s13307_s17 }
0x1075   :  { %v1457_v7 = vpop.permute.xlu1 %1456 }
0x1076   :  { %v1459_v8 = vmul.f32 %v12809_v50, %v1457_v7 }
0x1078   :  { %1461 = vrot.lane.b32.xlu0 %v1459_v8, %s13307_s17 }
0x107d   :  { %v1607_v11 = vpop.permute.xlu0 %1606 }
0x107e   :  { %v1609_v12 = vmul.f32 %v12811_v10, %v1607_v11 }
0x1080   :  { %1611 = vrot.lane.b32.xlu1 %v1609_v12, %s13307_s17 }
0x10da   :  { %v1313_v15 = vpop.permute.xlu1 %1312 }
0x10db   :  { %v13943_v58 = vadd.f32 %v1313_v15, %v1305_v14 }
0x10dd   :  { %12812 = vtanh.f32 %v13943_v58 }
0x10e7   :  { %v12813_v19 = vpop.eup %12812 }
0x10e8   :  { %1318 = vrot.lane.b32.xlu0 %v12813_v19, %s13301_s0 }
0x10ea   :  { %v1462_v62 = vpop.permute.xlu0 %1461 }
0x10eb   :  { %v13948_v22 = vadd.f32 %v1462_v62, %v1454_v21 }
0x10ed   :  { %12814 = vtanh.f32 %v13948_v22 }
0x10f2   :  { %v1612_v2 = vpop.permute.xlu1 %1611 }
0x10f3   :  { %v13952_v27 = vadd.f32 %v1612_v2, %v1604_v24 }
0x10f5   :  { %12816 = vtanh.f32 %v13952_v27 }
0x10f7   :  { %v12815_v9 = vpop.eup %12814 }
0x10f8   :  { %1467 = vrot.lane.b32.xlu1 %v12815_v9, %s13301_s0 }
0x10ff   :  { %v12817_v30 = vpop.eup %12816 }
0x1100   :  { %1617 = vrot.lane.b32.xlu0 %v12817_v30, %s13301_s0 }
0x115a   :  { %v1319_v31 = vpop.permute.xlu0 %1318 }
0x115b   :  { %v1321_v13 = vmul.f32 %v12805_v43, %v1319_v31  ;;  %v1774_v43 = vld [vmem:[#allocation4 + $0xc] sm:$0x3] }
0x115d   :  { %1476 = vrot.lane.b32.xlu0 %v1321_v13, %s13301_s0 }
0x116a   :  { %v1468_v32 = vpop.permute.xlu1 %1467 }
0x116b   :  { %v1470_v33 = vmul.f32 %v12809_v50, %v1468_v32 }
0x116d   :  { %1472 = vrot.lane.b32.xlu1 %v1470_v33, %s13307_s17  ;;  %1625 = vrot.lane.b32.xlu0 %v1470_v33, %s13301_s0 }
0x1172   :  { %v1618_v16 = vpop.permute.xlu0 %1617 }
0x1173   :  { %v1620_v34 = vmul.f32 %v12811_v10, %v1618_v16 }
0x1175   :  { %1622 = vrot.lane.b32.xlu1 %v1620_v34, %s13307_s17  ;;  %v1775_v38 = vpack.c.bf16 %v1620_v34, %v1620_v34 }
0x1179   :  { %1777 = vrot.lane.b32.xlu1 %v1775_v38, %s13307_s17 }
0x11cf   :  { %v1477_v40 = vpop.permute.xlu0 %1476 }
0x11df   :  { %v1473_v41 = vpop.permute.xlu1 %1472  ;;  %v1626_v44 = vpop.permute.xlu0 %1625 }
0x11e0   :  { %v1479_v35 = vsel %vm360_vm4, %v1473_v41, %v1477_v40 }
0x11e1   :  { %v1480_v36 = vpack.c.bf16 %v1479_v35, %v1479_v35 }
0x11e3   :  { %12380 = vmatmul.mubr.msk.bf16.vlgmr.msra.gmra.mrb[28].mxu1 %vm467_vm5, %v1480_v36 }
0x11e4   :  { %12392 = vmatpush3.bf16.msra.mxu1 %v13964_v37  ;;  %12399 = vmatprep.mubr.msk.bf16.mxu1 %vm13319_vm0, %v13318_v0 }
0x11e5   :  { %12393 = vmatprep.subr.bf16.mxu1 %v13318_v0 }
0x11e7   :  { %v1623_v25 = vpop.permute.xlu1 %1622 }
0x11e8   :  { %12394 = vmatpush3.bf16.msra.mxu1 %v13970_v39  ;;  %v1628_v45 = vsel %vm360_vm4, %v1623_v25, %v1626_v44 }
0x11e9   :  { %12395 = vmatprep.subr.bf16.mxu1 %v13318_v0  ;;  %v1629_v46 = vpack.c.bf16 %v1628_v45, %v1628_v45 }
0x11eb   :  { %v1778_v28 = vpop.permute.xlu1 %1777 }
0x11ec   :  { %12396 = vmatpush3.bf16.msra.mxu1 %v13974_v42 }
0x11ed   :  { %12397 = vmatprep.subr.bf16.mxu1 %v13318_v0 }
0x11f0   :  { %12398 = vmatpush3.bf16.msra.mxu1 %v13979_v26 }
0x11f1   :  { %12415 = vmatprep.subr.bf16.mxu1 %v13318_v0 }
0x11f3   :  { %12400 = vmatmul.mubr.msk.bf16.vlgmr.msra.gmra.mrb[32].mxu1 %vm467_vm5, %v1629_v46 }
0x11f4   :  { %12416 = vmatpush3.bf16.msra.mxu1 %v13854_v17  ;;  %12419 = vmatprep.mubr.msk.bf16.mxu1 %vm13319_vm0, %v13318_v0 }
0x11f5   :  { %12417 = vmatprep.subr.bf16.mxu1 %v13318_v0 }
0x11f8   :  { %12418 = vmatpush3.bf16.msra.mxu1 %v13860_v18 }
0x11f9   :  { %12435 = vmatprep.subr.bf16.mxu1 %v13318_v0 }
0x11fb   :  { %12420 = vmatmul.mubr.msk.bf16.vlgmr.msra.gmra.mrb[36].mxu1 %vm360_vm4, %v1778_v28 }
0x11fc   :  { %12436 = vmatpush3.bf16.msra.mxu1 %v13991_v48  ;;  %12443 = vmatprep.mubr.msk.bf16.mxu1 %vm13319_vm0, %v13318_v0 }
0x11fd   :  { %12437 = vmatprep.subr.bf16.mxu1 %v13318_v0 }
0x1200   :  { %12438 = vmatpush3.bf16.msra.mxu1 %v13997_v49 }
0x1201   :  { %12439 = vmatprep.subr.bf16.mxu1 %v13318_v0 }
0x1204   :  { %12440 = vmatpush3.bf16.msra.mxu1 %v14001_v29 }
0x1205   :  { %12441 = vmatprep.subr.bf16.mxu1 %v13318_v0 }
0x1208   :  { %12442 = vmatpush3.bf16.msra.mxu1 %v14005_v53 }
0x1209   :  { %12455 = vmatprep.subr.bf16.mxu1 %v13318_v0 }
0x12b6   :  { %v1518_v54 = vpop.f32.mrb[28].mxu1 }
0x12b7   :  { %v1519_v55 = vadd.f32 %v13751_v52, %v1518_v54  ;;  %v12381_v20 = vpop.f32.mrb[29].mxu1 }
0x12b8   :  { %v1521_v56 = vpop.f32.mrb[30].mxu1 }
0x12b9   :  { %12818 = vtanh.f32 %v1519_v55  ;;  %v12382_v57 = vpop.f32.mrb[31].mxu1  ;;  %v10895_v7 = vmul.f32 -1.442695, %v1519_v55 }
0x12c3   :  { %v12819_v23 = vpop.eup %12818 }
0x12c4   :  { %1533 = vrot.lane.b32.xlu0 %v12819_v23, %s13301_s0 }
0x12c6   :  { %v1667_v59 = vpop.f32.mrb[32].mxu1 }
0x12c7   :  { %v1668_v60 = vadd.f32 %v14011_v51, %v1667_v59  ;;  %v12401_v61 = vpop.f32.mrb[33].mxu1 }
0x12c8   :  { %v1670_v63 = vpop.f32.mrb[34].mxu1 }
0x12c9   :  { %12820 = vtanh.f32 %v1668_v60  ;;  %v12402_v1 = vpop.f32.mrb[35].mxu1  ;;  %v10899_v10 = vmul.f32 -1.442695, %v1668_v60 }
0x12ce   :  { %v1816_v3 = vpop.f32.mrb[36].mxu1 }
0x12cf   :  { %v1822_v4 = vadd.f32 %v1816_v3, %v1774_v43  ;;  %v12421_v52 = vpop.f32.mrb[37].mxu1 }
0x12d0   :  { %v1819_v47 = vpop.f32.mrb[38].mxu1 }
0x12d1   :  { %12822 = vtanh.f32 %v1822_v4  ;;  %v12422_v5 = vpop.f32.mrb[39].mxu1  ;;  %v10903_v12 = vmul.f32 -1.442695, %v1822_v4 }
0x12d2   :  { %12824 = vpow2.f32 %v10895_v7 }
0x12d3   :  { %v12821_v6 = vpop.eup %12820  ;;  %12826 = vpow2.f32 %v10899_v10 }
0x12d4   :  { %1682 = vrot.lane.b32.xlu1 %v12821_v6, %s13301_s0 }
0x12db   :  { %v12823_v50 = vpop.eup %12822 }
0x12dc   :  { %1832 = vrot.lane.b32.xlu0 %v12823_v50, %s13301_s0  ;;  %v12825_v8 = vpop.eup %12824 }
0x12dd   :  { %v1527_v11 = vadd.f32 1.0, %v12825_v8  ;;  %v12827_v14 = vpop.eup %12826 }
0x12de   :  { %v1676_v62 = vadd.f32 1.0, %v12827_v14 }
0x12df   :  { %12828 = vrcp.f32 %v1527_v11 }
0x12e0   :  { %12830 = vpow2.f32 %v10903_v12 }
0x12e1   :  { %12832 = vrcp.f32 %v1676_v62 }
0x12e9   :  { %v12829_v15 = vpop.eup %12828 }
0x12ea   :  { %v12831_v24 = vpop.eup %12830  ;;  %v1531_v16 = vmul.f32 %v12829_v15, %v13943_v58 }
0x12eb   :  { %v1826_v2 = vadd.f32 1.0, %v12831_v24  ;;  %v12833_v9 = vpop.eup %12832 }
0x12ec   :  { %v1680_v41 = vmul.f32 %v12833_v9, %v13948_v22 }
0x12ed   :  { %12834 = vrcp.f32 %v1826_v2 }
0x12f7   :  { %v12835_v13 = vpop.eup %12834 }
0x12f8   :  { %v1830_v25 = vmul.f32 %v12835_v13, %v13952_v27 }
0x1336   :  { %v1534_v19 = vpop.permute.xlu0 %1533 }
0x1337   :  { %v1536_v21 = vmul.f32 %v12829_v15, %v1534_v19 }
0x1339   :  { %1538 = vrot.lane.b32.xlu1 %v1536_v21, %s13307_s17 }
0x1346   :  { %v1683_v30 = vpop.permute.xlu1 %1682 }
0x1347   :  { %v1685_v31 = vmul.f32 %v12833_v9, %v1683_v30 }
0x1349   :  { %1687 = vrot.lane.b32.xlu0 %v1685_v31, %s13307_s17 }
0x134e   :  { %v1833_v32 = vpop.permute.xlu0 %1832 }
0x134f   :  { %v1835_v33 = vmul.f32 %v12835_v13, %v1833_v32 }
0x1351   :  { %1837 = vrot.lane.b32.xlu1 %v1835_v33, %s13307_s17 }
0x13ab   :  { %v1539_v34 = vpop.permute.xlu1 %1538 }
0x13ac   :  { %v14020_v38 = vadd.f32 %v1539_v34, %v1531_v16 }
0x13ae   :  { %12836 = vtanh.f32 %v14020_v38 }
0x13b8   :  { %v12837_v40 = vpop.eup %12836 }
0x13b9   :  { %1544 = vrot.lane.b32.xlu0 %v12837_v40, %s13301_s0 }
0x13bb   :  { %v1688_v35 = vpop.permute.xlu0 %1687 }
0x13bc   :  { %v14025_v36 = vadd.f32 %v1688_v35, %v1680_v41 }
0x13be   :  { %12838 = vtanh.f32 %v14025_v36 }
0x13c3   :  { %v1838_v44 = vpop.permute.xlu1 %1837 }
0x13c4   :  { %v14029_v45 = vadd.f32 %v1838_v44, %v1830_v25 }
0x13c6   :  { %12840 = vtanh.f32 %v14029_v45 }
0x13c8   :  { %v12839_v58 = vpop.eup %12838 }
0x13c9   :  { %1693 = vrot.lane.b32.xlu1 %v12839_v58, %s13301_s0 }
0x13d0   :  { %v12841_v46 = vpop.eup %12840 }
0x13d1   :  { %1843 = vrot.lane.b32.xlu0 %v12841_v46, %s13301_s0 }
0x142b   :  { %v1545_v28 = vpop.permute.xlu0 %1544 }
0x142c   :  { %v1547_v22 = vmul.f32 %v12829_v15, %v1545_v28 }
0x142e   :  { %1702 = vrot.lane.b32.xlu0 %v1547_v22, %s13301_s0 }
0x143b   :  { %v1694_v54 = vpop.permute.xlu1 %1693 }
0x143c   :  { %v1696_v55 = vmul.f32 %v12833_v9, %v1694_v54 }
0x143e   :  { %1698 = vrot.lane.b32.xlu1 %v1696_v55, %s13307_s17  ;;  %1851 = vrot.lane.b32.xlu0 %v1696_v55, %s13301_s0 }
0x1443   :  { %v1844_v27 = vpop.permute.xlu0 %1843 }
0x1444   :  { %v1846_v20 = vmul.f32 %v12835_v13, %v1844_v27 }
0x1446   :  { %1848 = vrot.lane.b32.xlu1 %v1846_v20, %s13307_s17  ;;  %v2001_v56 = vpack.c.bf16 %v1846_v20, %v1846_v20 }
0x144a   :  { %2003 = vrot.lane.b32.xlu1 %v2001_v56, %s13307_s17 }
0x14a0   :  { %v1703_v57 = vpop.permute.xlu0 %1702 }
0x14b0   :  { %v1699_v23 = vpop.permute.xlu1 %1698  ;;  %v1852_v63 = vpop.permute.xlu0 %1851 }
0x14b1   :  { %v1705_v59 = vsel %vm360_vm4, %v1699_v23, %v1703_v57 }
0x14b2   :  { %v1706_v60 = vpack.c.bf16 %v1705_v59, %v1705_v59 }
0x14b4   :  { %12412 = vmatmul.mubr.msk.bf16.vlgmr.msra.gmra.mrb[36].mxu0 %vm467_vm5, %v1706_v60 }
0x14b5   :  { %12424 = vmatpush3.bf16.msra.mxu0 %v13964_v37  ;;  %12431 = vmatprep.mubr.msk.bf16.mxu0 %vm13319_vm0, %v13318_v0 }
0x14b6   :  { %12425 = vmatprep.subr.bf16.mxu0 %v13318_v0 }
0x14b8   :  { %v1849_v61 = vpop.permute.xlu1 %1848 }
0x14b9   :  { %12426 = vmatpush3.bf16.msra.mxu0 %v13970_v39  ;;  %v1854_v1 = vsel %vm360_vm4, %v1849_v61, %v1852_v63 }
0x14ba   :  { %12427 = vmatprep.subr.bf16.mxu0 %v13318_v0  ;;  %v1855_v43 = vpack.c.bf16 %v1854_v1, %v1854_v1 }
0x14bc   :  { %v2004_v3 = vpop.permute.xlu1 %2003 }
0x14bd   :  { %12428 = vmatpush3.bf16.msra.mxu0 %v13974_v42 }
0x14be   :  { %12429 = vmatprep.subr.bf16.mxu0 %v13318_v0 }
0x14c1   :  { %12430 = vmatpush3.bf16.msra.mxu0 %v13979_v26 }
0x14c2   :  { %12447 = vmatprep.subr.bf16.mxu0 %v13318_v0 }
0x14c4   :  { %12432 = vmatmul.mubr.msk.bf16.vlgmr.msra.gmra.mrb[40].mxu0 %vm467_vm5, %v1855_v43 }
0x14c5   :  { %12448 = vmatpush3.bf16.msra.mxu0 %v13854_v17  ;;  %12451 = vmatprep.mubr.msk.bf16.mxu0 %vm13319_vm0, %v13318_v0 }
0x14c6   :  { %12449 = vmatprep.subr.bf16.mxu0 %v13318_v0 }
0x14c9   :  { %12450 = vmatpush3.bf16.msra.mxu0 %v13860_v18  ;;  %v14069_v18 = vld [vmem:[#allocation16] ss:$0 sm:$0xff] }
0x14ca   :  { %12467 = vmatprep.subr.bf16.mxu0 %v13318_v0 }
0x14cc   :  { %12452 = vmatmul.mubr.msk.bf16.vlgmr.msra.gmra.mrb[44].mxu0 %vm360_vm4, %v2004_v3 }
0x14cd   :  { %12468 = vmatpush3.bf16.msra.mxu0 %v13991_v48  ;;  %12475 = vmatprep.mubr.msk.bf16.mxu0 %vm13319_vm0, %v13318_v0 }
0x14ce   :  { %12469 = vmatprep.subr.bf16.mxu0 %v13318_v0 }
0x14d1   :  { %12470 = vmatpush3.bf16.msra.mxu0 %v13997_v49 }
0x14d2   :  { %12471 = vmatprep.subr.bf16.mxu0 %v13318_v0 }
0x14d5   :  { %12472 = vmatpush3.bf16.msra.mxu0 %v14001_v29 }
0x14d6   :  { %12473 = vmatprep.subr.bf16.mxu0 %v13318_v0 }
0x14d9   :  { %12474 = vmatpush3.bf16.msra.mxu0 %v14005_v53  ;;  %v2000_v53 = vld [vmem:[#allocation4 + $0xe] sm:$0x3] }
0x1587   :  { %v1744_v17 = vpop.f32.mrb[36].mxu0 }
0x1588   :  { %v1745_v48 = vadd.f32 %v14069_v18, %v1744_v17  ;;  %v12413_v4 = vpop.f32.mrb[37].mxu0 }
0x1589   :  { %v1747_v52 = vpop.f32.mrb[38].mxu0 }
0x158a   :  { %12842 = vtanh.f32 %v1745_v48  ;;  %v12414_v47 = vpop.f32.mrb[39].mxu0  ;;  %v10901_v21 = vmul.f32 -1.442695, %v1745_v48 }
0x1594   :  { %v12843_v5 = vpop.eup %12842 }
0x1595   :  { %1759 = vrot.lane.b32.xlu0 %v12843_v5, %s13301_s0 }
0x1597   :  { %v1893_v49 = vpop.f32.mrb[40].mxu0 }
0x1598   :  { %v1894_v6 = vadd.f32 %v14011_v51, %v1893_v49  ;;  %v12433_v29 = vpop.f32.mrb[41].mxu0 }
0x1599   :  { %v1896_v50 = vpop.f32.mrb[42].mxu0 }
0x159a   :  { %12844 = vtanh.f32 %v1894_v6  ;;  %v12434_v7 = vpop.f32.mrb[43].mxu0  ;;  %v10905_v24 = vmul.f32 -1.442695, %v1894_v6 }
0x159f   :  { %v2042_v8 = vpop.f32.mrb[44].mxu0 }
0x15a0   :  { %v2048_v10 = vadd.f32 %v2042_v8, %v2000_v53  ;;  %v12453_v11 = vpop.f32.mrb[45].mxu0 }
0x15a1   :  { %v2045_v12 = vpop.f32.mrb[46].mxu0 }
0x15a2   :  { %12846 = vtanh.f32 %v2048_v10  ;;  %v12454_v14 = vpop.f32.mrb[47].mxu0  ;;  %v10909_v9 = vmul.f32 -1.442695, %v2048_v10 }
0x15a3   :  { %12848 = vpow2.f32 %v10901_v21 }
0x15a4   :  { %v12845_v15 = vpop.eup %12844  ;;  %12850 = vpow2.f32 %v10905_v24 }
0x15a5   :  { %1908 = vrot.lane.b32.xlu1 %v12845_v15, %s13301_s0 }
0x15ac   :  { %v12847_v19 = vpop.eup %12846 }
0x15ad   :  { %2058 = vrot.lane.b32.xlu0 %v12847_v19, %s13301_s0  ;;  %v12849_v62 = vpop.eup %12848 }
0x15ae   :  { %v1753_v2 = vadd.f32 1.0, %v12849_v62  ;;  %v12851_v30 = vpop.eup %12850 }
0x15af   :  { %v1902_v33 = vadd.f32 1.0, %v12851_v30 }
0x15b0   :  { %12852 = vrcp.f32 %v1753_v2 }
0x15b1   :  { %12854 = vpow2.f32 %v10909_v9 }
0x15b2   :  { %12856 = vrcp.f32 %v1902_v33 }
0x15ba   :  { %v12853_v31 = vpop.eup %12852 }
0x15bb   :  { %v12855_v16 = vpop.eup %12854  ;;  %v1757_v46 = vmul.f32 %v12853_v31, %v14020_v38 }
0x15bc   :  { %v2052_v34 = vadd.f32 1.0, %v12855_v16  ;;  %v12857_v40 = vpop.eup %12856 }
0x15bd   :  { %v1906_v55 = vmul.f32 %v12857_v40, %v14025_v36 }
0x15be   :  { %12858 = vrcp.f32 %v2052_v34 }
0x15c8   :  { %v12859_v25 = vpop.eup %12858 }
0x15c9   :  { %v2056_v56 = vmul.f32 %v12859_v25, %v14029_v45 }
0x1607   :  { %v1760_v13 = vpop.permute.xlu0 %1759 }
0x1608   :  { %v1762_v32 = vmul.f32 %v12853_v31, %v1760_v13 }
0x160a   :  { %1764 = vrot.lane.b32.xlu1 %v1762_v32, %s13307_s17 }
0x1617   :  { %v1909_v41 = vpop.permute.xlu1 %1908 }
0x1618   :  { %v1911_v35 = vmul.f32 %v12857_v40, %v1909_v41 }
0x161a   :  { %1913 = vrot.lane.b32.xlu0 %v1911_v35, %s13307_s17 }
0x161f   :  { %v2059_v44 = vpop.permute.xlu0 %2058 }
0x1620   :  { %v2061_v58 = vmul.f32 %v12859_v25, %v2059_v44 }
0x1622   :  { %2063 = vrot.lane.b32.xlu1 %v2061_v58, %s13307_s17 }
0x167c   :  { %v1765_v28 = vpop.permute.xlu1 %1764 }
0x167d   :  { %v14080_v22 = vadd.f32 %v1765_v28, %v1757_v46 }
0x167f   :  { %12860 = vtanh.f32 %v14080_v22 }
0x1689   :  { %v12861_v54 = vpop.eup %12860 }
0x168a   :  { %1770 = vrot.lane.b32.xlu0 %v12861_v54, %s13301_s0 }
0x168c   :  { %v1914_v27 = vpop.permute.xlu0 %1913 }
0x168d   :  { %v14085_v20 = vadd.f32 %v1914_v27, %v1906_v55 }
0x168f   :  { %12862 = vtanh.f32 %v14085_v20 }
0x1694   :  { %v2064_v57 = vpop.permute.xlu1 %2063 }
0x1695   :  { %v14089_v23 = vadd.f32 %v2064_v57, %v2056_v56 }
0x1697   :  { %12864 = vtanh.f32 %v14089_v23 }
0x1699   :  { %v12863_v38 = vpop.eup %12862 }
0x169a   :  { %1919 = vrot.lane.b32.xlu1 %v12863_v38, %s13301_s0 }
0x16a1   :  { %v12865_v59 = vpop.eup %12864 }
0x16a2   :  { %2069 = vrot.lane.b32.xlu0 %v12865_v59, %s13301_s0 }
0x16fc   :  { %v1771_v60 = vpop.permute.xlu0 %1770 }
0x16fd   :  { %v1773_v36 = vmul.f32 %v12853_v31, %v1771_v60 }
0x16ff   :  { %1928 = vrot.lane.b32.xlu0 %v1773_v36, %s13301_s0 }
0x170c   :  { %v1920_v61 = vpop.permute.xlu1 %1919 }
0x170d   :  { %v1922_v63 = vmul.f32 %v12857_v40, %v1920_v61 }
0x170f   :  { %1924 = vrot.lane.b32.xlu1 %v1922_v63, %s13307_s17  ;;  %2077 = vrot.lane.b32.xlu0 %v1922_v63, %s13301_s0 }
0x1714   :  { %v2070_v45 = vpop.permute.xlu0 %2069 }
0x1715   :  { %v2072_v1 = vmul.f32 %v12859_v25, %v2070_v45 }
0x1717   :  { %2074 = vrot.lane.b32.xlu1 %v2072_v1, %s13307_s17 }
0x1771   :  { %v1929_v43 = vpop.permute.xlu0 %1928 }
0x1781   :  { %v1925_v3 = vpop.permute.xlu1 %1924  ;;  %v2078_v52 = vpop.permute.xlu0 %2077 }
0x1782   :  { %v1931_v17 = vsel %vm360_vm4, %v1925_v3, %v1929_v43  ;;  %v2253_v3 = vld [vmem:[#allocation17] sm:$0xff] }
0x1783   :  { %v1932_v48 = vpack.c.bf16 %v1931_v17, %v1931_v17  ;;  %v2257_v17 = vld [vmem:[#allocation17 + $0x20] sm:$0xff] }
0x1785   :  { %12444 = vmatmul.mubr.msk.bf16.vlgmr.msra.gmra.mrb[40].mxu1 %vm467_vm5, %v1932_v48  ;;  %v2254_v48 = vld [vmem:[#allocation17 + $0x8] sm:$0xff] }
0x1786   :  { %12456 = vmatpush3.bf16.msra.mxu1 %v13964_v37  ;;  %12463 = vmatprep.mubr.msk.bf16.mxu1 %vm13319_vm0, %v13318_v0 }
0x1787   :  { %12457 = vmatprep.subr.bf16.mxu1 %v13318_v0 }
0x1789   :  { %v2075_v4 = vpop.permute.xlu1 %2074 }
0x178a   :  { %2227 = vst.msk [vmem:[#allocation2] sm:$0x3] %vm233_vm1, %v2075_v4  ;;  %12458 = vmatpush3.bf16.msra.mxu1 %v13970_v39  ;;  %v2080_v47 = vsel %vm360_vm4, %v2075_v4, %v2078_v52  ;;  %v10914_v4 = vcombine.low %v2253_v3, %v2257_v17  ;;  %v10915_v52 = vcombine.high %v2253_v3, %v2257_v17  ;;  %v2605_v3 = vld [vmem:[#allocation20 + $0xe0] sm:$0xff]  ;;  %v2602_v17 = vld [vmem:[#allocation20 + $0xc8] sm:$0xff] }
0x178b   :  { %12459 = vmatprep.subr.bf16.mxu1 %v13318_v0  ;;  %v2081_v37 = vpack.c.bf16 %v2080_v47, %v2080_v47  ;;  %v2258_v47 = vld [vmem:[#allocation17 + $0x28] sm:$0xff] }
0x178e   :  { %12460 = vmatpush3.bf16.msra.mxu1 %v13974_v42 }
0x178f   :  { %12461 = vmatprep.subr.bf16.mxu1 %v13318_v0 }
0x1792   :  { %12462 = vmatpush3.bf16.msra.mxu1 %v13979_v26 }
0x1793   :  { %2397 = vmatprep.subr.bf16.mxu1 %v10915_v52 }
0x1795   :  { %12464 = vmatmul.mubr.msk.bf16.vlgmr.msra.gmra.mrb[44].mxu1 %vm467_vm5, %v2081_v37  ;;  %v2261_v37 = vld [vmem:[#allocation17 + $0x40] sm:$0xff] }
0x1796   :  { %2398 = vmatpush1.bf16.msra.mxu1 %v10914_v4 }
0x1858   :  { %v1970_v5 = vpop.f32.mrb[40].mxu1 }
0x1859   :  { %v1971_v49 = vadd.f32 %v14069_v18, %v1970_v5  ;;  %v12445_v6 = vpop.f32.mrb[41].mxu1  ;;  %v2265_v5 = vld [vmem:[#allocation17 + $0x60] sm:$0xff] }
0x185a   :  { %v1973_v29 = vpop.f32.mrb[42].mxu1  ;;  %v10917_v6 = vcombine.high %v2254_v48, %v2258_v47 }
0x185b   :  { %12866 = vtanh.f32 %v1971_v49  ;;  %v12446_v39 = vpop.f32.mrb[43].mxu1  ;;  %v10907_v10 = vmul.f32 -1.442695, %v1971_v49  ;;  %v10916_v49 = vcombine.low %v2254_v48, %v2258_v47  ;;  %v10923_v29 = vcombine.high %v2261_v37, %v2265_v5  ;;  %v2606_v48 = vld [vmem:[#allocation20 + $0xe8] sm:$0xff] }
0x185c   :  { %v2262_v39 = vld [vmem:[#allocation17 + $0x48] sm:$0xff]  ;;  %2438 = vmatprep.subr.bf16.mxu0 %v10917_v6  ;;  %v2610_v6 = vld [vmem:[#allocation20 + $0x108] sm:$0xff] }
0x185d   :  { %2399 = vmatprep.subr.bf16.mxu1 %v10923_v29  ;;  %v2614_v29 = vld [vmem:[#allocation20 + $0x128] sm:$0xff] }
0x1865   :  { %v12867_v50 = vpop.eup %12866 }
0x1866   :  { %1985 = vrot.lane.b32.xlu1 %v12867_v50, %s13301_s0  ;;  %v2266_v50 = vld [vmem:[#allocation17 + $0x68] sm:$0xff] }
0x1868   :  { %v2119_v42 = vpop.f32.mrb[44].mxu1 }
0x1869   :  { %v2120_v0 = vadd.f32 %v14011_v51, %v2119_v42  ;;  %v12465_v7 = vpop.f32.mrb[45].mxu1  ;;  %v10925_v42 = vcombine.high %v2262_v39, %v2266_v50 }
0x186a   :  { %v2122_v53 = vpop.f32.mrb[46].mxu1  ;;  %v10924_v7 = vcombine.low %v2262_v39, %v2266_v50  ;;  %v10960_v50 = vcombine.low %v2602_v17, %v2606_v48 }
0x186b   :  { %12868 = vtanh.f32 %v2120_v0  ;;  %v12466_v26 = vpop.f32.mrb[47].mxu1  ;;  %v10911_v12 = vmul.f32 -1.442695, %v2120_v0  ;;  %v10922_v0 = vcombine.low %v2261_v37, %v2265_v5  ;;  %v2255_v53 = vld [vmem:[#allocation17 + $0x10] sm:$0xff]  ;;  %v10961_v37 = vcombine.high %v2602_v17, %v2606_v48  ;;  %v2609_v5 = vld [vmem:[#allocation20 + $0x100] sm:$0xff] }
0x186c   :  { %12870 = vpow2.f32 %v10907_v10  ;;  %v2259_v26 = vld [vmem:[#allocation17 + $0x30] sm:$0xff] }
0x186d   :  { %12872 = vpow2.f32 %v10911_v12  ;;  %2400 = vmatpush1.bf16.msra.mxu1 %v10922_v0  ;;  %v10919_v10 = vcombine.high %v2255_v53, %v2259_v26  ;;  %v13321_v12 = vmov 0   ;;  %v10969_v0 = vcombine.high %v2610_v6, %v2614_v29  ;;  %v2666_v17 = vld [vmem:[#allocation20 + $0x2c8] sm:$0xff] }
0x186e   :  { %2429 = vmatprep.mubr.bf16.mxu1 %v13321_v12  ;;  %v2670_v48 = vld [vmem:[#allocation20 + $0x2e8] sm:$0xff] }
0x186f   :  { %2479 = vmatprep.subr.bf16.mxu1 %v10919_v10 }
0x1875   :  { %v12869_v8 = vpop.eup %12868 }
0x1876   :  { %2134 = vrot.lane.b32.xlu0 %v12869_v8, %s13301_s0  ;;  %v12871_v11 = vpop.eup %12870  ;;  %v2256_v8 = vld [vmem:[#allocation17 + $0x18] sm:$0xff] }
0x1877   :  { %v1979_v14 = vadd.f32 1.0, %v12871_v11  ;;  %v12873_v15 = vpop.eup %12872  ;;  %v2260_v11 = vld [vmem:[#allocation17 + $0x38] sm:$0xff] }
0x1878   :  { %v2128_v24 = vadd.f32 1.0, %v12873_v15  ;;  %v10920_v15 = vcombine.low %v2256_v8, %v2260_v11 }
0x1879   :  { %12874 = vrcp.f32 %v1979_v14  ;;  %v10918_v14 = vcombine.low %v2255_v53, %v2259_v26  ;;  %v2621_v53 = vld [vmem:[#allocation20 + $0x160] sm:$0xff]  ;;  %v2618_v26 = vld [vmem:[#allocation20 + $0x148] sm:$0xff] }
0x187a   :  { %12876 = vrcp.f32 %v2128_v24 }
0x1883   :  { %v12875_v19 = vpop.eup %12874 }
0x1884   :  { %v12877_v51 = vpop.eup %12876  ;;  %v1983_v30 = vmul.f32 %v12875_v19, %v14080_v22 }
0x1885   :  { %v2132_v33 = vmul.f32 %v12877_v51, %v14085_v20 }
0x18d8   :  { %v1986_v21 = vpop.permute.xlu1 %1985 }
0x18d9   :  { %v1988_v62 = vmul.f32 %v12875_v19, %v1986_v21 }
0x18db   :  { %1990 = vrot.lane.b32.xlu1 %v1988_v62, %s13307_s17 }
0x18e8   :  { %v2135_v2 = vpop.permute.xlu0 %2134 }
0x18e9   :  { %v2137_v9 = vmul.f32 %v12877_v51, %v2135_v2  ;;  %v2267_v2 = vld [vmem:[#allocation17 + $0x70] sm:$0xff] }
0x18eb   :  { %2139 = vrot.lane.b32.xlu0 %v2137_v9, %s13307_s17  ;;  %v2264_v9 = vld [vmem:[#allocation17 + $0x58] sm:$0xff] }
0x194d   :  { %v1991_v31 = vpop.permute.xlu1 %1990 }
0x194e   :  { %v1993_v13 = vadd.f32 %v1991_v31, %v1983_v30  ;;  %v2268_v30 = vld [vmem:[#allocation17 + $0x78] sm:$0xff] }
0x1950   :  { %12878 = vtanh.f32 %v1993_v13 }
0x195a   :  { %v12879_v32 = vpop.eup %12878 }
0x195b   :  { %1996 = vrot.lane.b32.xlu1 %v12879_v32, %s13301_s0  ;;  %v10929_v32 = vcombine.high %v2264_v9, %v2268_v30 }
0x195d   :  { %v2140_v16 = vpop.permute.xlu0 %2139 }
0x195e   :  { %v14121_v34 = vadd.f32 %v2140_v16, %v2132_v33  ;;  %v2577_v33 = vld [vmem:[#allocation20] sm:$0xff] }
0x1960   :  { %12880 = vtanh.f32 %v14121_v34 }
0x196a   :  { %v12881_v40 = vpop.eup %12880 }
0x196b   :  { %2145 = vrot.lane.b32.xlu0 %v12881_v40, %s13301_s0  ;;  %v2581_v40 = vld [vmem:[#allocation20 + $0x20] sm:$0xff] }
0x19cd   :  { %v1997_v41 = vpop.permute.xlu1 %1996 }
0x19ce   :  { %v1999_v35 = vmul.f32 %v12875_v19, %v1997_v41  ;;  %v10921_v19 = vcombine.high %v2256_v8, %v2260_v11  ;;  %v2578_v41 = vld [vmem:[#allocation20 + $0x8] sm:$0xff]  ;;  %v10968_v11 = vcombine.low %v2610_v6, %v2614_v29  ;;  %v2673_v6 = vld [vmem:[#allocation20 + $0x300] sm:$0xff] }
0x19cf   :  { %v2622_v8 = vld [vmem:[#allocation20 + $0x168] sm:$0xff]  ;;  %v2677_v29 = vld [vmem:[#allocation20 + $0x320] sm:$0xff] }
0x19d0   :  { %2154 = vrot.lane.b32.xlu0 %v1999_v35, %s13301_s0  ;;  %v2582_v35 = vld [vmem:[#allocation20 + $0x28] sm:$0xff] }
0x19dd   :  { %v2146_v25 = vpop.permute.xlu0 %2145 }
0x19de   :  { %v2148_v44 = vmul.f32 %v12877_v51, %v2146_v25  ;;  %v2263_v51 = vld [vmem:[#allocation17 + $0x50] sm:$0xff]  ;;  %v10928_v25 = vcombine.low %v2264_v9, %v2268_v30  ;;  %v2633_v9 = vld [vmem:[#allocation20 + $0x1c0] sm:$0xff] }
0x19df   :  { %v2637_v30 = vld [vmem:[#allocation20 + $0x1e0] sm:$0xff] }
0x19e0   :  { %2150 = vrot.lane.b32.xlu1 %v2148_v44, %s13307_s17  ;;  %v10935_v44 = vcombine.high %v2577_v33, %v2581_v40 }
0x1a42   :  { %v2155_v58 = vpop.permute.xlu0 %2154 }
0x1a52   :  { %v2151_v46 = vpop.permute.xlu1 %2150 }
0x1a53   :  { %v2157_v28 = vsel %vm360_vm4, %v2151_v46, %v2155_v58  ;;  %2233 = vst.msk [vmem:[#allocation2 + $0x2] sm:$0x3] %vm233_vm1, %v2151_v46  ;;  %v10937_v58 = vcombine.high %v2578_v41, %v2582_v35  ;;  %v2585_v46 = vld [vmem:[#allocation20 + $0x40] sm:$0xff] }
0x1a54   :  { %v2158_v22 = vpack.c.bf16 %v2157_v28, %v2157_v28 }
0x1a56   :  { %12476 = vmatmul.mubr.msk.bf16.vlgmr.msra.gmra.mrb[48].mxu0 %vm467_vm5, %v2158_v22  ;;  %v2589_v22 = vld [vmem:[#allocation20 + $0x60] sm:$0xff] }
0x1a57   :  { %2439 = vmatpush1.bf16.msra.mxu0 %v10916_v49  ;;  %2470 = vmatprep.mubr.bf16.mxu0 %v13321_v12  ;;  %v2613_v49 = vld [vmem:[#allocation20 + $0x120] sm:$0xff] }
0x1a58   :  { %2440 = vmatprep.subr.bf16.mxu0 %v10925_v42  ;;  %v10967_v42 = vcombine.high %v2609_v5, %v2613_v49  ;;  %v10966_v10 = vcombine.low %v2609_v5, %v2613_v49  ;;  %v11024_v49 = vcombine.low %v2666_v17, %v2670_v48 }
0x1a5b   :  { %2441 = vmatpush1.bf16.msra.mxu0 %v10924_v7  ;;  %v2617_v7 = vld [vmem:[#allocation20 + $0x140] sm:$0xff] }
0x1a5c   :  { %2520 = vmatprep.subr.bf16.mxu0 %v10921_v19  ;;  %v2629_v19 = vld [vmem:[#allocation20 + $0x1a0] sm:$0xff] }
0x1b29   :  { %v2196_v54 = vpop.f32.mrb[48].mxu0 }
0x1b2a   :  { %v2197_v55 = vadd.f32 %v14069_v18, %v2196_v54  ;;  %v12477_v27 = vpop.f32.mrb[49].mxu0  ;;  %v2586_v54 = vld [vmem:[#allocation20 + $0x48] sm:$0xff] }
0x1b2b   :  { %v2199_v20 = vpop.f32.mrb[50].mxu0  ;;  %v10934_v27 = vcombine.low %v2577_v33, %v2581_v40 }
0x1b2c   :  { %12882 = vtanh.f32 %v2197_v55  ;;  %v12478_v56 = vpop.f32.mrb[51].mxu0  ;;  %v10913_v38 = vmul.f32 -1.442695, %v2197_v55  ;;  %v2590_v55 = vld [vmem:[#allocation20 + $0x68] sm:$0xff]  ;;  %v10936_v20 = vcombine.low %v2578_v41, %v2582_v35  ;;  %v2641_v41 = vld [vmem:[#allocation20 + $0x200] sm:$0xff] }
0x1b2d   :  { %v10943_v56 = vcombine.high %v2585_v46, %v2589_v22  ;;  %v2645_v35 = vld [vmem:[#allocation20 + $0x220] sm:$0xff] }
0x1b2e   :  { %12884 = vpow2.f32 %v10913_v38  ;;  %v2593_v38 = vld [vmem:[#allocation20 + $0x80] sm:$0xff] }
0x1b36   :  { %v12883_v57 = vpop.eup %12882 }
0x1b37   :  { %2211 = vrot.lane.b32.xlu1 %v12883_v57, %s13301_s0  ;;  %v10945_v57 = vcombine.high %v2586_v54, %v2590_v55 }
0x1b38   :  { %v12885_v59 = vpop.eup %12884 }
0x1b39   :  { %v2205_v60 = vadd.f32 1.0, %v12885_v59 }
0x1b3b   :  { %12886 = vrcp.f32 %v2205_v60  ;;  %v2597_v60 = vld [vmem:[#allocation20 + $0xa0] sm:$0xff] }
0x1b3c   :  { %v10950_v4 = vcombine.low %v2593_v38, %v2597_v60 }
0x1b45   :  { %v12887_v36 = vpop.eup %12886 }
0x1b46   :  { %v2209_v45 = vmul.f32 %v12887_v36, %v1993_v13  ;;  %v10927_v13 = vcombine.high %v2263_v51, %v2267_v2 }
0x1ba9   :  { %v2212_v61 = vpop.permute.xlu1 %2211 }
0x1baa   :  { %v2214_v63 = vmul.f32 %v12887_v36, %v2212_v61  ;;  %v2598_v61 = vld [vmem:[#allocation20 + $0xa8] sm:$0xff] }
0x1bac   :  { %2216 = vrot.lane.b32.xlu0 %v2214_v63, %s13307_s17  ;;  %v10942_v63 = vcombine.low %v2585_v46, %v2589_v22  ;;  %v10999_v46 = vcombine.high %v2641_v41, %v2645_v35  ;;  %v2649_v22 = vld [vmem:[#allocation20 + $0x240] sm:$0xff] }
0x1c1e   :  { %v2217_v1 = vpop.permute.xlu0 %2216 }
0x1c1f   :  { %v2219_v18 = vadd.f32 %v2217_v1, %v2209_v45  ;;  %v10944_v45 = vcombine.low %v2586_v54, %v2590_v55  ;;  %v10951_v1 = vcombine.high %v2593_v38, %v2597_v60  ;;  %v2653_v54 = vld [vmem:[#allocation20 + $0x260] sm:$0xff]  ;;  %v2650_v55 = vld [vmem:[#allocation20 + $0x248] sm:$0xff] }
0x1c20   :  { %v2661_v60 = vld [vmem:[#allocation20 + $0x2a0] sm:$0xff] }
0x1c21   :  { %12888 = vtanh.f32 %v2219_v18 }
0x1c2b   :  { %v12889_v43 = vpop.eup %12888 }
0x1c2c   :  { %2222 = vrot.lane.b32.xlu1 %v12889_v43, %s13301_s0  ;;  %v2601_v43 = vld [vmem:[#allocation20 + $0xc0] sm:$0xff] }
0x1c2d   :  { %v10959_v47 = vcombine.high %v2601_v43, %v2605_v3  ;;  %v10958_v39 = vcombine.low %v2601_v43, %v2605_v3  ;;  %v2665_v43 = vld [vmem:[#allocation20 + $0x2c0] sm:$0xff] }
0x1c2e   :  { %v2669_v3 = vld [vmem:[#allocation20 + $0x2e0] sm:$0xff] }
0x1c2f   :  { %v11022_v5 = vcombine.low %v2665_v43, %v2669_v3 }
0x1c30   :  { %2229 = vrot.lane.b32.xlu1 %v14089_v23, %s13320_s27 }
0x1c9e   :  { %v2223_v23 = vpop.permute.xlu1 %2222 }
0x1c9f   :  { %v2225_v21 = vmul.f32 %v12887_v36, %v2223_v23  ;;  %v2594_v36 = vld [vmem:[#allocation20 + $0x88] sm:$0xff] }
0x1ca0   :  { %v10952_v52 = vcombine.low %v2594_v36, %v2598_v61  ;;  %v2626_v23 = vld [vmem:[#allocation20 + $0x188] sm:$0xff] }
0x1ca1   :  { %v2252_v62 = vpack.c.bf16 %v2225_v21, %v2225_v21  ;;  %2240 = vrot.lane.b32.xlu1 %v2225_v21, %s13307_s17  ;;  %v2630_v21 = vld [vmem:[#allocation20 + $0x1a8] sm:$0xff] }
0x1ca2   :  { %v2230_v24 = vpop.permute.xlu1 %2229  ;;  %v10984_v33 = vcombine.low %v2626_v23, %v2630_v21 }
0x1ca3   :  { %2232 = vst.msk [vmem:[#allocation3] sm:$0x3] %vm233_vm1, %v2230_v24  ;;  %2312 = vrot.lane.b32.xlu0 %v2252_v62, %s13307_s17  ;;  %v10974_v62 = vcombine.low %v2617_v7, %v2621_v53  ;;  %v10976_v24 = vcombine.low %v2618_v26, %v2622_v8 }
0x1ca7   :  { %2235 = vrot.lane.b32.xlu0 %v14121_v34, %s13320_s27  ;;  %v10926_v34 = vcombine.low %v2263_v51, %v2267_v2  ;;  %v10985_v2 = vcombine.high %v2626_v23, %v2630_v21  ;;  %v2689_v23 = vld [vmem:[#allocation20 + $0x380] sm:$0xff] }
0x1ca8   :  { %v2693_v21 = vld [vmem:[#allocation20 + $0x3a0] sm:$0xff] }
0x1cab   :  { %2245 = vrot.lane.b32.xlu0 %v2219_v18, %s13320_s27  ;;  %v10953_v18 = vcombine.high %v2594_v36, %v2598_v61  ;;  %v2658_v36 = vld [vmem:[#allocation20 + $0x288] sm:$0xff] }
0x1cac   :  { %v2662_v61 = vld [vmem:[#allocation20 + $0x2a8] sm:$0xff] }
0x1d13   :  { %v2241_v31 = vpop.permute.xlu1 %2240 }
0x1d14   :  { %2243 = vst.msk [vmem:[#allocation2 + $0x4] sm:$0x3] %vm233_vm1, %v2241_v31  ;;  %v2634_v31 = vld [vmem:[#allocation20 + $0x1c8] sm:$0xff] }
0x1d15   :  { %v2313_v16 = vpop.permute.xlu0 %2312 }
0x1d16   :  { %10930 = vmatmul.mubr.msk.bf16.vlgmr.msra.gmra.mrb[48].mxu1 %vm360_vm4, %v2313_v16  ;;  %10931 = vmatmul.mubr.msk.bf16.vlgmr.msra.gmra.mrb[52].mxu0 %vm360_vm4, %v2313_v16 }
0x1d17   :  { %2480 = vmatpush1.bf16.msra.mxu1 %v10918_v14  ;;  %2521 = vmatpush1.bf16.msra.mxu0 %v10920_v15  ;;  %v10977_v14 = vcombine.high %v2618_v26, %v2622_v8  ;;  %v2625_v15 = vld [vmem:[#allocation20 + $0x180] sm:$0xff] }
0x1d18   :  { %2481 = vmatprep.subr.bf16.mxu1 %v10927_v13  ;;  %2522 = vmatprep.subr.bf16.mxu0 %v10929_v32  ;;  %v10983_v51 = vcombine.high %v2625_v15, %v2629_v19  ;;  %v2638_v13 = vld [vmem:[#allocation20 + $0x1e8] sm:$0xff]  ;;  %v10982_v32 = vcombine.low %v2625_v15, %v2629_v19  ;;  %v2681_v26 = vld [vmem:[#allocation20 + $0x340] sm:$0xff] }
0x1d19   :  { %v2236_v28 = vpop.permute.xlu0 %2235  ;;  %2511 = vmatprep.mubr.bf16.mxu1 %v13321_v12  ;;  %2552 = vmatprep.mubr.bf16.mxu0 %v13321_v12  ;;  %v10975_v12 = vcombine.high %v2617_v7, %v2621_v53  ;;  %v10993_v40 = vcombine.high %v2634_v31, %v2638_v13  ;;  %v2685_v8 = vld [vmem:[#allocation20 + $0x360] sm:$0xff] }
0x1d1a   :  { %2238 = vst.msk [vmem:[#allocation3 + $0x2] sm:$0x3] %vm233_vm1, %v2236_v28 }
0x1d1b   :  { %2482 = vmatpush1.bf16.msra.mxu1 %v10926_v34  ;;  %2523 = vmatpush1.bf16.msra.mxu0 %v10928_v25  ;;  %v2642_v34 = vld [vmem:[#allocation20 + $0x208] sm:$0xff] }
0x1d1c   :  { %5691 = vmatprep.subr.bf16.mxu1 %v10935_v44  ;;  %5855 = vmatprep.subr.bf16.mxu0 %v10937_v58  ;;  %v2646_v25 = vld [vmem:[#allocation20 + $0x228] sm:$0xff]  ;;  %v10990_v44 = vcombine.low %v2633_v9, %v2637_v30  ;;  %v10992_v58 = vcombine.low %v2634_v31, %v2638_v13  ;;  %v2697_v31 = vld [vmem:[#allocation20 + $0x3c0] sm:$0xff] }
0x1d1d   :  { %v2246_v59 = vpop.permute.xlu0 %2245  ;;  %v11001_v28 = vcombine.high %v2642_v34, %v2646_v25  ;;  %v2701_v13 = vld [vmem:[#allocation20 + $0x3e0] sm:$0xff] }
0x1d1e   :  { %2248 = vst.msk [vmem:[#allocation3 + $0x4] sm:$0x3] %vm233_vm1, %v2246_v59  ;;  %10932 = vmatmul.mubr.msk.bf16.vlgmr.msra.gmra.mrb[52].mxu1 %vm360_vm4, %v2313_v16  ;;  %10933 = vmatmul.mubr.msk.bf16.vlgmr.msra.gmra.mrb[56].mxu0 %vm360_vm4, %v2313_v16  ;;  %v10991_v16 = vcombine.high %v2633_v9, %v2637_v30  ;;  %v2657_v59 = vld [vmem:[#allocation20 + $0x280] sm:$0xff] }
0x1d1f   :  { %5692 = vmatpush1.bf16.msra.mxu1 %v10934_v27  ;;  %5856 = vmatpush1.bf16.msra.mxu0 %v10936_v20  ;;  %v2654_v27 = vld [vmem:[#allocation20 + $0x268] sm:$0xff]  ;;  %v10998_v20 = vcombine.low %v2641_v41, %v2645_v35 }
0x1d20   :  { %5693 = vmatprep.subr.bf16.mxu1 %v10943_v56  ;;  %5857 = vmatprep.subr.bf16.mxu0 %v10945_v57  ;;  %v11000_v56 = vcombine.low %v2642_v34, %v2646_v25  ;;  %v11007_v57 = vcombine.high %v2649_v22, %v2653_v54  ;;  %v11009_v38 = vcombine.high %v2650_v55, %v2654_v27  ;;  %v2705_v34 = vld [vmem:[#allocation20 + $0x400] sm:$0xff] }
0x1d21   :  { %v2709_v25 = vld [vmem:[#allocation20 + $0x420] sm:$0xff] }
0x1d23   :  { %5694 = vmatpush1.bf16.msra.mxu1 %v10942_v63  ;;  %5858 = vmatpush1.bf16.msra.mxu0 %v10944_v45  ;;  %v11006_v63 = vcombine.low %v2649_v22, %v2653_v54  ;;  %v11008_v45 = vcombine.low %v2650_v55, %v2654_v27  ;;  %v2271_v55 = vlaneseq }
0x1d24   :  { %5695 = vmatprep.subr.bf16.mxu1 %v10951_v1  ;;  %5859 = vmatprep.subr.bf16.mxu0 %v10953_v18  ;;  %v11015_v1 = vcombine.high %v2657_v59, %v2661_v60  ;;  %v11017_v18 = vcombine.high %v2658_v36, %v2662_v61 }
0x1d25   :  { %v14146_v27 = vshrl.u32 %v2271_v55, 7  ;;  %v2745_v55 = vld [vmem:[#allocation20 + $0x540] sm:$0xff] }
0x1d27   :  { %5696 = vmatpush1.bf16.msra.mxu1 %v10950_v4  ;;  %5860 = vmatpush1.bf16.msra.mxu0 %v10952_v52  ;;  %v11014_v4 = vcombine.low %v2657_v59, %v2661_v60  ;;  %v11016_v52 = vcombine.low %v2658_v36, %v2662_v61 }
0x1d28   :  { %5697 = vmatprep.subr.bf16.mxu1 %v10959_v47  ;;  %5861 = vmatprep.subr.bf16.mxu0 %v10961_v37  ;;  %v11023_v47 = vcombine.high %v2665_v43, %v2669_v3  ;;  %v11025_v37 = vcombine.high %v2666_v17, %v2670_v48 }
0x1d2b   :  { %5698 = vmatpush1.bf16.msra.mxu1 %v10958_v39  ;;  %5862 = vmatpush1.bf16.msra.mxu0 %v10960_v50  ;;  %v2674_v39 = vld [vmem:[#allocation20 + $0x308] sm:$0xff]  ;;  %v11031_v50 = vcombine.high %v2673_v6, %v2677_v29 }
0x1d2c   :  { %5699 = vmatprep.subr.bf16.mxu1 %v10967_v42  ;;  %5863 = vmatprep.subr.bf16.mxu0 %v10969_v0  ;;  %v2678_v42 = vld [vmem:[#allocation20 + $0x328] sm:$0xff]  ;;  %v11030_v0 = vcombine.low %v2673_v6, %v2677_v29 }
0x1d2d   :  { %v11032_v7 = vcombine.low %v2674_v39, %v2678_v42  ;;  %v11033_v53 = vcombine.high %v2674_v39, %v2678_v42 }
0x1d2f   :  { %5700 = vmatpush1.bf16.msra.mxu1 %v10966_v10  ;;  %5864 = vmatpush1.bf16.msra.mxu0 %v10968_v11  ;;  %v2682_v10 = vld [vmem:[#allocation20 + $0x348] sm:$0xff]  ;;  %v11039_v11 = vcombine.high %v2681_v26, %v2685_v8 }
0x1d30   :  { %5701 = vmatprep.subr.bf16.mxu1 %v10975_v12  ;;  %5865 = vmatprep.subr.bf16.mxu0 %v10977_v14  ;;  %v2686_v12 = vld [vmem:[#allocation20 + $0x368] sm:$0xff]  ;;  %v11038_v14 = vcombine.low %v2681_v26, %v2685_v8 }
0x1d31   :  { %v11040_v15 = vcombine.low %v2682_v10, %v2686_v12  ;;  %v11041_v19 = vcombine.high %v2682_v10, %v2686_v12  ;;  %v2714_v26 = vld [vmem:[#allocation20 + $0x448] sm:$0xff] }
0x1d32   :  { %v2718_v8 = vld [vmem:[#allocation20 + $0x468] sm:$0xff] }
0x1d33   :  { %5702 = vmatpush1.bf16.msra.mxu1 %v10974_v62  ;;  %5866 = vmatpush1.bf16.msra.mxu0 %v10976_v24  ;;  %v2690_v62 = vld [vmem:[#allocation20 + $0x388] sm:$0xff]  ;;  %v11047_v24 = vcombine.high %v2689_v23, %v2693_v21 }
0x1d34   :  { %5703 = vmatprep.subr.bf16.mxu1 %v10983_v51  ;;  %5867 = vmatprep.subr.bf16.mxu0 %v10985_v2  ;;  %v2694_v51 = vld [vmem:[#allocation20 + $0x3a8] sm:$0xff]  ;;  %v11046_v2 = vcombine.low %v2689_v23, %v2693_v21  ;;  %v2725_v23 = vld [vmem:[#allocation20 + $0x4a0] sm:$0xff] }
0x1d35   :  { %v11048_v9 = vcombine.low %v2690_v62, %v2694_v51  ;;  %v11049_v30 = vcombine.high %v2690_v62, %v2694_v51  ;;  %v2722_v21 = vld [vmem:[#allocation20 + $0x488] sm:$0xff] }
0x1d36   :  { %v2726_v62 = vld [vmem:[#allocation20 + $0x4a8] sm:$0xff] }
0x1d37   :  { %5704 = vmatpush1.bf16.msra.mxu1 %v10982_v32  ;;  %5868 = vmatpush1.bf16.msra.mxu0 %v10984_v33  ;;  %v2698_v32 = vld [vmem:[#allocation20 + $0x3c8] sm:$0xff]  ;;  %v11055_v33 = vcombine.high %v2697_v31, %v2701_v13 }
0x1d38   :  { %5705 = vmatprep.subr.bf16.mxu1 %v10991_v16  ;;  %5869 = vmatprep.subr.bf16.mxu0 %v10993_v40  ;;  %v2702_v16 = vld [vmem:[#allocation20 + $0x3e8] sm:$0xff]  ;;  %v11054_v40 = vcombine.low %v2697_v31, %v2701_v13  ;;  %v2729_v31 = vld [vmem:[#allocation20 + $0x4c0] sm:$0xff] }
0x1d39   :  { %v11056_v41 = vcombine.low %v2698_v32, %v2702_v16  ;;  %v11057_v35 = vcombine.high %v2698_v32, %v2702_v16  ;;  %v2733_v13 = vld [vmem:[#allocation20 + $0x4e0] sm:$0xff]  ;;  %v2730_v32 = vld [vmem:[#allocation20 + $0x4c8] sm:$0xff] }
0x1d3b   :  { %5706 = vmatpush1.bf16.msra.mxu1 %v10990_v44  ;;  %5870 = vmatpush1.bf16.msra.mxu0 %v10992_v58  ;;  %v2706_v44 = vld [vmem:[#allocation20 + $0x408] sm:$0xff]  ;;  %v11063_v58 = vcombine.high %v2705_v34, %v2709_v25 }
0x1d3c   :  { %5707 = vmatprep.subr.bf16.mxu1 %v10999_v46  ;;  %5871 = vmatprep.subr.bf16.mxu0 %v11001_v28  ;;  %v2710_v46 = vld [vmem:[#allocation20 + $0x428] sm:$0xff]  ;;  %v11062_v28 = vcombine.low %v2705_v34, %v2709_v25  ;;  %v2737_v34 = vld [vmem:[#allocation20 + $0x500] sm:$0xff] }
0x1d3d   :  { %v11064_v22 = vcombine.low %v2706_v44, %v2710_v46  ;;  %v11065_v54 = vcombine.high %v2706_v44, %v2710_v46  ;;  %v2741_v25 = vld [vmem:[#allocation20 + $0x520] sm:$0xff]  ;;  %v2738_v44 = vld [vmem:[#allocation20 + $0x508] sm:$0xff]  ;;  %v11086_v46 = vcombine.low %v2729_v31, %v2733_v13 }
0x1d3f   :  { %5708 = vmatpush1.bf16.msra.mxu1 %v10998_v20  ;;  %5872 = vmatpush1.bf16.msra.mxu0 %v11000_v56  ;;  %v14149_v20 = vsub.s32 0, %v14146_v27  ;;  %v14151_v56 = vld [vmem:[#allocation19] sm:$0xff] }
0x1d40   :  { %5709 = vmatprep.subr.bf16.mxu1 %v11007_v57  ;;  %5873 = vmatprep.subr.bf16.mxu0 %v11009_v38  ;;  %v14154_v57 = vsub.s32 1, %v14146_v27  ;;  %v14157_v38 = vsub.s32 3, %v14146_v27 }
0x1d41   :  { %v2274_v59 = vrot.slane %v14151_v56, %v14149_v20 }
0x1d42   :  { %v2278_v60 = vrot.slane %v14151_v56, %v14154_v57  ;;  %v2286_v36 = vrot.slane %v14151_v56, %v14157_v38 }
0x1d43   :  { %5710 = vmatpush1.bf16.msra.mxu1 %v11006_v63  ;;  %5874 = vmatpush1.bf16.msra.mxu0 %v11008_v45 }
0x1d44   :  { %5711 = vmatprep.subr.bf16.mxu1 %v11015_v1  ;;  %5875 = vmatprep.subr.bf16.mxu0 %v11017_v18 }
0x1d47   :  { %5712 = vmatpush1.bf16.msra.mxu1 %v11014_v4  ;;  %5876 = vmatpush1.bf16.msra.mxu0 %v11016_v52 }
0x1d48   :  { %5713 = vmatprep.subr.bf16.mxu1 %v11023_v47  ;;  %5877 = vmatprep.subr.bf16.mxu0 %v11025_v37 }
0x1d4b   :  { %5714 = vmatpush1.bf16.msra.mxu1 %v11022_v5  ;;  %5878 = vmatpush1.bf16.msra.mxu0 %v11024_v49 }
0x1d4c   :  { %5715 = vmatprep.subr.bf16.mxu1 %v11031_v50  ;;  %5879 = vmatprep.subr.bf16.mxu0 %v11033_v53  ;;  %v2717_v53 = vld [vmem:[#allocation20 + $0x460] sm:$0xff] }
0x1d4f   :  { %5716 = vmatpush1.bf16.msra.mxu1 %v11030_v0  ;;  %5880 = vmatpush1.bf16.msra.mxu0 %v11032_v7  ;;  %v2713_v0 = vld [vmem:[#allocation20 + $0x440] sm:$0xff] }
0x1d50   :  { %5717 = vmatprep.subr.bf16.mxu1 %v11039_v11  ;;  %5881 = vmatprep.subr.bf16.mxu0 %v11041_v19  ;;  %v11073_v19 = vcombine.high %v2714_v26, %v2718_v8  ;;  %v11070_v51 = vcombine.low %v2713_v0, %v2717_v53 }
0x1d53   :  { %5718 = vmatpush1.bf16.msra.mxu1 %v11038_v14  ;;  %5882 = vmatpush1.bf16.msra.mxu0 %v11040_v15  ;;  %v2721_v14 = vld [vmem:[#allocation20 + $0x480] sm:$0xff]  ;;  %v11071_v15 = vcombine.high %v2713_v0, %v2717_v53  ;;  %v2766_v0 = vld [vmem:[#allocation20 + $0x5e8] sm:$0xff] }
0x1d54   :  { %5719 = vmatprep.subr.bf16.mxu1 %v11047_v24  ;;  %5883 = vmatprep.subr.bf16.mxu0 %v11049_v30  ;;  %v11081_v30 = vcombine.high %v2722_v21, %v2726_v62  ;;  %v11078_v16 = vcombine.low %v2721_v14, %v2725_v23 }
0x1d57   :  { %5720 = vmatpush1.bf16.msra.mxu1 %v11046_v2  ;;  %5884 = vmatpush1.bf16.msra.mxu0 %v11048_v9  ;;  %v11072_v2 = vcombine.low %v2714_v26, %v2718_v8  ;;  %v11079_v9 = vcombine.high %v2721_v14, %v2725_v23  ;;  %v2773_v14 = vld [vmem:[#allocation20 + $0x620] sm:$0xff] }
0x1d58   :  { %5721 = vmatprep.subr.bf16.mxu1 %v11055_v33  ;;  %5885 = vmatprep.subr.bf16.mxu0 %v11057_v35  ;;  %v2734_v33 = vld [vmem:[#allocation20 + $0x4e8] sm:$0xff] }
0x1d59   :  { %v11089_v35 = vcombine.high %v2730_v32, %v2734_v33 }
0x1d5b   :  { %5722 = vmatpush1.bf16.msra.mxu1 %v11054_v40  ;;  %5886 = vmatpush1.bf16.msra.mxu0 %v11056_v41  ;;  %v11080_v40 = vcombine.low %v2722_v21, %v2726_v62  ;;  %v11087_v41 = vcombine.high %v2729_v31, %v2733_v13  ;;  %v2782_v31 = vld [vmem:[#allocation20 + $0x668] sm:$0xff] }
0x1d5c   :  { %5732 = vmatprep.subr.bf16.mxu1 %v11063_v58  ;;  %5896 = vmatprep.subr.bf16.mxu0 %v11065_v54  ;;  %v2742_v58 = vld [vmem:[#allocation20 + $0x528] sm:$0xff] }
0x1d5d   :  { %v11097_v54 = vcombine.high %v2738_v44, %v2742_v58 }
0x1de9   :  { %v2431_v61 = vpop.f32.mrb[48].mxu1  ;;  %v14165_v63 = vpop.f32.mrb[52].mxu0 }
0x1dea   :  { %v2432_v45 = vadd.f32 %v2431_v61, %v2274_v59  ;;  %v2433_v1 = vpop.f32.mrb[49].mxu1  ;;  %v2474_v18 = vpop.f32.mrb[53].mxu0  ;;  %v2749_v59 = vld [vmem:[#allocation20 + $0x560] sm:$0xff]  ;;  %v11094_v61 = vcombine.low %v2737_v34, %v2741_v25 }
0x1deb   :  { %v2434_v43 = vadd.f32 %v2433_v1, %v2278_v60  ;;  %v2475_v3 = vadd.f32 %v2474_v18, %v2286_v36  ;;  %v2435_v17 = vpop.f32.mrb[50].mxu1  ;;  %v2476_v48 = vpop.f32.mrb[54].mxu0  ;;  %v2746_v60 = vld [vmem:[#allocation20 + $0x548] sm:$0xff]  ;;  %v11103_v1 = vcombine.high %v2745_v55, %v2749_v59 }
0x1dec   :  { %v2436_v4 = vpop.f32.mrb[51].mxu1  ;;  %v2477_v52 = vpop.f32.mrb[55].mxu0  ;;  %12890 = vtanh.f32 %v2432_v45  ;;  %v2750_v36 = vld [vmem:[#allocation20 + $0x568] sm:$0xff]  ;;  %v11096_v45 = vcombine.low %v2738_v44, %v2742_v58 }
0x1ded   :  { %12892 = vtanh.f32 %v2434_v43  ;;  %v11105_v18 = vcombine.high %v2746_v60, %v2750_v36  ;;  %v2753_v43 = vld [vmem:[#allocation20 + $0x580] sm:$0xff]  ;;  %v2754_v17 = vld [vmem:[#allocation20 + $0x588] sm:$0xff]  ;;  %v11102_v4 = vcombine.low %v2745_v55, %v2749_v59  ;;  %v11104_v52 = vcombine.low %v2746_v60, %v2750_v36 }
0x1dee   :  { %12894 = vtanh.f32 %v2475_v3  ;;  %v2757_v3 = vld [vmem:[#allocation20 + $0x5a0] sm:$0xff]  ;;  %v2758_v48 = vld [vmem:[#allocation20 + $0x5a8] sm:$0xff]  ;;  %v14188_v59 = vsub.s32 2, %v14146_v27 }
0x1def   :  { %v11112_v53 = vcombine.low %v2754_v17, %v2758_v48  ;;  %v2798_v55 = vld [vmem:[#allocation20 + $0x6e8] sm:$0xff] }
0x1df1   :  { %v14167_v47 = vpop.f32.mrb[52].mxu1  ;;  %v14169_v37 = vpop.f32.mrb[56].mxu0 }
0x1df2   :  { %v14171_v5 = vpop.f32.mrb[53].mxu1  ;;  %v14173_v49 = vpop.f32.mrb[57].mxu0 }
0x1df3   :  { %v2517_v6 = vpop.f32.mrb[54].mxu1  ;;  %v2558_v29 = vpop.f32.mrb[58].mxu0 }
0x1df4   :  { %v2518_v39 = vpop.f32.mrb[55].mxu1  ;;  %v2559_v50 = vpop.f32.mrb[59].mxu0  ;;  %v11111_v6 = vcombine.high %v2753_v43, %v2757_v3  ;;  %v11113_v29 = vcombine.high %v2754_v17, %v2758_v48  ;;  %v2806_v17 = vld [vmem:[#allocation20 + $0x728] sm:$0xff]  ;;  %v2282_v48 = vrot.slane %v14151_v56, %v14188_v59 }
0x1df5   :  { %v2761_v39 = vld [vmem:[#allocation20 + $0x5c0] sm:$0xff] }
0x1df6   :  { %v12891_v42 = vpop.eup %12890  ;;  %v2765_v50 = vld [vmem:[#allocation20 + $0x5e0] sm:$0xff] }
0x1df7   :  { %v12893_v7 = vpop.eup %12892  ;;  %v14177_v12 = vpack.c.bf16 %v12891_v42, %v12891_v42  ;;  %v2762_v42 = vld [vmem:[#allocation20 + $0x5c8] sm:$0xff]  ;;  %v11119_v26 = vcombine.high %v2761_v39, %v2765_v50  ;;  %v11118_v23 = vcombine.low %v2761_v39, %v2765_v50  ;;  %v2809_v50 = vld [vmem:[#allocation20 + $0x740] sm:$0xff] }
0x1df8   :  { %v12895_v10 = vpop.eup %12894  ;;  %v14175_v11 = vpack.c.bf16 %v12893_v7, %v12893_v7  ;;  %v11110_v7 = vcombine.low %v2753_v43, %v2757_v3  ;;  %v11121_v8 = vcombine.high %v2762_v42, %v2766_v0  ;;  %v11120_v21 = vcombine.low %v2762_v42, %v2766_v0  ;;  %v2805_v43 = vld [vmem:[#allocation20 + $0x720] sm:$0xff]  ;;  %v2802_v3 = vld [vmem:[#allocation20 + $0x708] sm:$0xff] }
0x1df9   :  { %v14181_v24 = vpack.c.bf16 %v12895_v10, %v12895_v10  ;;  %v2769_v10 = vld [vmem:[#allocation20 + $0x600] sm:$0xff]  ;;  %v11161_v39 = vcombine.high %v2802_v3, %v2806_v17  ;;  %v2810_v0 = vld [vmem:[#allocation20 + $0x748] sm:$0xff] }
0x1dfa   :  { %5723 = vmatprep.mubr.bf16.mxu1 %v14175_v11  ;;  %5887 = vmatprep.mubr.bf16.mxu0 %v14175_v11  ;;  %v11127_v62 = vcombine.high %v2769_v10, %v2773_v14  ;;  %v11126_v13 = vcombine.low %v2769_v10, %v2773_v14  ;;  %v2813_v42 = vld [vmem:[#allocation20 + $0x760] sm:$0xff] }
0x1dfb   :  { %5724 = vmatmul.mubr.bf16.vlgmr.msra.gmra.mrb[56].mxu1 %v14177_v12  ;;  %5888 = vmatmul.mubr.bf16.vlgmr.msra.gmra.mrb[60].mxu0 %v14177_v12  ;;  %v11167_v14 = vcombine.high %v2809_v50, %v2813_v42 }
0x1dfc   :  { %5733 = vmatpush1.bf16.msra.mxu1 %v11062_v28  ;;  %5897 = vmatpush1.bf16.msra.mxu0 %v11064_v22  ;;  %v11088_v28 = vcombine.low %v2730_v32, %v2734_v33  ;;  %v11095_v22 = vcombine.high %v2737_v34, %v2741_v25  ;;  %v2790_v34 = vld [vmem:[#allocation20 + $0x6a8] sm:$0xff] }
0x1dfd   :  { %5764 = vmatprep.mubr.bf16.mxu1 %v14181_v24  ;;  %5928 = vmatprep.mubr.bf16.mxu0 %v14181_v24 }
0x1dfe   :  { %5734 = vmatprep.subr.bf16.mxu1 %v11071_v15  ;;  %5898 = vmatprep.subr.bf16.mxu0 %v11073_v19  ;;  %v2770_v15 = vld [vmem:[#allocation20 + $0x608] sm:$0xff] }
0x1dff   :  { %v2774_v19 = vld [vmem:[#allocation20 + $0x628] sm:$0xff] }
0x1e00   :  { %5735 = vmatpush1.bf16.msra.mxu1 %v11070_v51  ;;  %5899 = vmatpush1.bf16.msra.mxu0 %v11072_v2  ;;  %v11129_v51 = vcombine.high %v2770_v15, %v2774_v19  ;;  %v2777_v2 = vld [vmem:[#allocation20 + $0x640] sm:$0xff]  ;;  %v11128_v32 = vcombine.low %v2770_v15, %v2774_v19 }
0x1e01   :  { %5736 = vmatprep.subr.bf16.mxu1 %v11079_v9  ;;  %5900 = vmatprep.subr.bf16.mxu0 %v11081_v30  ;;  %v2781_v9 = vld [vmem:[#allocation20 + $0x660] sm:$0xff]  ;;  %v2778_v30 = vld [vmem:[#allocation20 + $0x648] sm:$0xff] }
0x1e02   :  { %v11135_v33 = vcombine.high %v2777_v2, %v2781_v9  ;;  %v11134_v25 = vcombine.low %v2777_v2, %v2781_v9  ;;  %v11136_v44 = vcombine.low %v2778_v30, %v2782_v31  ;;  %v2817_v19 = vld [vmem:[#allocation20 + $0x780] sm:$0xff] }
0x1e04   :  { %5737 = vmatpush1.bf16.msra.mxu1 %v11078_v16  ;;  %5901 = vmatpush1.bf16.msra.mxu0 %v11080_v40  ;;  %v11137_v16 = vcombine.high %v2778_v30, %v2782_v31  ;;  %v2785_v40 = vld [vmem:[#allocation20 + $0x680] sm:$0xff]  ;;  %v2826_v31 = vld [vmem:[#allocation20 + $0x7c8] sm:$0xff] }
0x1e05   :  { %5738 = vmatprep.subr.bf16.mxu1 %v11087_v41  ;;  %5902 = vmatprep.subr.bf16.mxu0 %v11089_v35  ;;  %v2789_v41 = vld [vmem:[#allocation20 + $0x6a0] sm:$0xff]  ;;  %v2786_v35 = vld [vmem:[#allocation20 + $0x688] sm:$0xff] }
0x1e06   :  { %v11143_v58 = vcombine.high %v2785_v40, %v2789_v41  ;;  %v11142_v60 = vcombine.low %v2785_v40, %v2789_v41  ;;  %v11144_v36 = vcombine.low %v2786_v35, %v2790_v34  ;;  %v2825_v30 = vld [vmem:[#allocation20 + $0x7c0] sm:$0xff] }
0x1e07   :  { %v2833_v41 = vld [vmem:[#allocation20 + $0x800] sm:$0xff] }
0x1e08   :  { %5739 = vmatpush1.bf16.msra.mxu1 %v11086_v46  ;;  %5903 = vmatpush1.bf16.msra.mxu0 %v11088_v28  ;;  %v11145_v46 = vcombine.high %v2786_v35, %v2790_v34  ;;  %v2793_v28 = vld [vmem:[#allocation20 + $0x6c0] sm:$0xff]  ;;  %v2834_v34 = vld [vmem:[#allocation20 + $0x808] sm:$0xff] }
0x1e09   :  { %5740 = vmatprep.subr.bf16.mxu1 %v11095_v22  ;;  %5904 = vmatprep.subr.bf16.mxu0 %v11097_v54  ;;  %v2797_v22 = vld [vmem:[#allocation20 + $0x6e0] sm:$0xff]  ;;  %v2794_v54 = vld [vmem:[#allocation20 + $0x6c8] sm:$0xff] }
0x1e0a   :  { %v2837_v35 = vld [vmem:[#allocation20 + $0x820] sm:$0xff] }
0x1e0c   :  { %5741 = vmatpush1.bf16.msra.mxu1 %v11094_v61  ;;  %5905 = vmatpush1.bf16.msra.mxu0 %v11096_v45  ;;  %v14191_v61 = vsub.s32 5, %v14146_v27  ;;  %v11151_v45 = vcombine.high %v2793_v28, %v2797_v22 }
0x1e0d   :  { %5742 = vmatprep.subr.bf16.mxu1 %v11103_v1  ;;  %5906 = vmatprep.subr.bf16.mxu0 %v11105_v18  ;;  %v11153_v1 = vcombine.high %v2794_v54, %v2798_v55  ;;  %v2801_v18 = vld [vmem:[#allocation20 + $0x700] sm:$0xff] }
0x1e10   :  { %5743 = vmatpush1.bf16.msra.mxu1 %v11102_v4  ;;  %5907 = vmatpush1.bf16.msra.mxu0 %v11104_v52  ;;  %v11150_v4 = vcombine.low %v2793_v28, %v2797_v22  ;;  %v11152_v52 = vcombine.low %v2794_v54, %v2798_v55  ;;  %v2841_v54 = vld [vmem:[#allocation20 + $0x840] sm:$0xff] }
0x1e11   :  { %5744 = vmatprep.subr.bf16.mxu1 %v11111_v6  ;;  %5908 = vmatprep.subr.bf16.mxu0 %v11113_v29  ;;  %v2294_v6 = vrot.slane %v14151_v56, %v14191_v61  ;;  %v11159_v29 = vcombine.high %v2801_v18, %v2805_v43 }
0x1e13   :  { %v2516_v10 = vadd.f32 %v14171_v5, %v2294_v6  ;;  %v2829_v5 = vld [vmem:[#allocation20 + $0x7e0] sm:$0xff]  ;;  %v2850_v6 = vld [vmem:[#allocation20 + $0x888] sm:$0xff] }
0x1e14   :  { %5745 = vmatpush1.bf16.msra.mxu1 %v11110_v7  ;;  %5909 = vmatpush1.bf16.msra.mxu0 %v11112_v53  ;;  %v2814_v7 = vld [vmem:[#allocation20 + $0x768] sm:$0xff]  ;;  %v2473_v53 = vadd.f32 %v14165_v63, %v2282_v48 }
0x1e15   :  { %5746 = vmatprep.subr.bf16.mxu1 %v11119_v26  ;;  %5910 = vmatprep.subr.bf16.mxu0 %v11121_v8  ;;  %v11158_v26 = vcombine.low %v2801_v18, %v2805_v43  ;;  %v11160_v8 = vcombine.low %v2802_v3, %v2806_v17  ;;  %v11169_v15 = vcombine.high %v2810_v0, %v2814_v7 }
0x1e16   :  { %12896 = vtanh.f32 %v2473_v53  ;;  %v11168_v2 = vcombine.low %v2810_v0, %v2814_v7  ;;  %v2857_v7 = vld [vmem:[#allocation20 + $0x8c0] sm:$0xff] }
0x1e17   :  { %12898 = vtanh.f32 %v2516_v10  ;;  %v2861_v53 = vld [vmem:[#allocation20 + $0x8e0] sm:$0xff] }
0x1e18   :  { %5747 = vmatpush1.bf16.msra.mxu1 %v11118_v23  ;;  %5911 = vmatpush1.bf16.msra.mxu0 %v11120_v21  ;;  %v2821_v23 = vld [vmem:[#allocation20 + $0x7a0] sm:$0xff]  ;;  %v2818_v21 = vld [vmem:[#allocation20 + $0x788] sm:$0xff] }
0x1e19   :  { %5748 = vmatprep.subr.bf16.mxu1 %v11127_v62  ;;  %5912 = vmatprep.subr.bf16.mxu0 %v11129_v51  ;;  %v2822_v62 = vld [vmem:[#allocation20 + $0x7a8] sm:$0xff]  ;;  %v11166_v51 = vcombine.low %v2809_v50, %v2813_v42  ;;  %v11175_v63 = vcombine.high %v2817_v19, %v2821_v23 }
0x1e1a   :  { %v11177_v9 = vcombine.high %v2818_v21, %v2822_v62 }
0x1e1c   :  { %5749 = vmatpush1.bf16.msra.mxu1 %v11126_v13  ;;  %5913 = vmatpush1.bf16.msra.mxu0 %v11128_v32  ;;  %v2830_v13 = vld [vmem:[#allocation20 + $0x7e8] sm:$0xff]  ;;  %v11174_v32 = vcombine.low %v2817_v19, %v2821_v23  ;;  %v2865_v23 = vld [vmem:[#allocation20 + $0x900] sm:$0xff] }
0x1e1d   :  { %5750 = vmatprep.subr.bf16.mxu1 %v11135_v33  ;;  %5914 = vmatprep.subr.bf16.mxu0 %v11137_v16  ;;  %v11176_v33 = vcombine.low %v2818_v21, %v2822_v62  ;;  %v11183_v16 = vcombine.high %v2825_v30, %v2829_v5  ;;  %v11185_v40 = vcombine.high %v2826_v31, %v2830_v13  ;;  %v2869_v21 = vld [vmem:[#allocation20 + $0x920] sm:$0xff]  ;;  %v2866_v62 = vld [vmem:[#allocation20 + $0x908] sm:$0xff] }
0x1e20   :  { %5751 = vmatpush1.bf16.msra.mxu1 %v11134_v25  ;;  %5915 = vmatpush1.bf16.msra.mxu0 %v11136_v44  ;;  %v2838_v25 = vld [vmem:[#allocation20 + $0x828] sm:$0xff]  ;;  %v11182_v44 = vcombine.low %v2825_v30, %v2829_v5  ;;  %v12897_v22 = vpop.eup %12896  ;;  %v2873_v5 = vld [vmem:[#allocation20 + $0x940] sm:$0xff] }
0x1e21   :  { %5752 = vmatprep.subr.bf16.mxu1 %v11143_v58  ;;  %5916 = vmatprep.subr.bf16.mxu0 %v11145_v46  ;;  %v11184_v58 = vcombine.low %v2826_v31, %v2830_v13  ;;  %v11191_v46 = vcombine.high %v2833_v41, %v2837_v35  ;;  %v11193_v28 = vcombine.high %v2834_v34, %v2838_v25  ;;  %v12899_v55 = vpop.eup %12898  ;;  %v2877_v31 = vld [vmem:[#allocation20 + $0x960] sm:$0xff]  ;;  %v2874_v13 = vld [vmem:[#allocation20 + $0x948] sm:$0xff] }
0x1e22   :  { %v14199_v18 = vpack.c.bf16 %v12897_v22, %v12897_v22  ;;  %v11192_v43 = vcombine.low %v2834_v34, %v2838_v25  ;;  %v14201_v3 = vpack.c.bf16 %v12899_v55, %v12899_v55  ;;  %v2885_v34 = vld [vmem:[#allocation20 + $0x9a0] sm:$0xff]  ;;  %v2882_v25 = vld [vmem:[#allocation20 + $0x988] sm:$0xff] }
0x1e23   :  { %v2893_v55 = vld [vmem:[#allocation20 + $0x9e0] sm:$0xff] }
0x1e24   :  { %5753 = vmatpush1.bf16.msra.mxu1 %v11142_v60  ;;  %5917 = vmatpush1.bf16.msra.mxu0 %v11144_v36  ;;  %v2845_v60 = vld [vmem:[#allocation20 + $0x860] sm:$0xff]  ;;  %v2842_v36 = vld [vmem:[#allocation20 + $0x848] sm:$0xff] }
0x1e25   :  { %5754 = vmatprep.subr.bf16.mxu1 %v11151_v45  ;;  %5918 = vmatprep.subr.bf16.mxu0 %v11153_v1  ;;  %v2846_v45 = vld [vmem:[#allocation20 + $0x868] sm:$0xff]  ;;  %v11190_v1 = vcombine.low %v2833_v41, %v2837_v35  ;;  %v11199_v17 = vcombine.high %v2841_v54, %v2845_v60  ;;  %v2881_v35 = vld [vmem:[#allocation20 + $0x980] sm:$0xff] }
0x1e26   :  { %v11201_v48 = vcombine.high %v2842_v36, %v2846_v45  ;;  %v11200_v50 = vcombine.low %v2842_v36, %v2846_v45  ;;  %v2894_v36 = vld [vmem:[#allocation20 + $0x9e8] sm:$0xff]  ;;  %v11238_v45 = vcombine.low %v2881_v35, %v2885_v34 }
0x1e28   :  { %5755 = vmatpush1.bf16.msra.mxu1 %v11150_v4  ;;  %5919 = vmatpush1.bf16.msra.mxu0 %v11152_v52  ;;  %v2849_v4 = vld [vmem:[#allocation20 + $0x880] sm:$0xff] }
0x1e29   :  { %5756 = vmatprep.subr.bf16.mxu1 %v11159_v29  ;;  %5920 = vmatprep.subr.bf16.mxu0 %v11161_v39  ;;  %v2853_v52 = vld [vmem:[#allocation20 + $0x8a0] sm:$0xff]  ;;  %v2854_v29 = vld [vmem:[#allocation20 + $0x8a8] sm:$0xff]  ;;  %v11198_v39 = vcombine.low %v2841_v54, %v2845_v60 }
0x1e2a   :  { %v11207_v42 = vcombine.high %v2849_v4, %v2853_v52  ;;  %v11209_v0 = vcombine.high %v2850_v6, %v2854_v29  ;;  %v11206_v10 = vcombine.low %v2849_v4, %v2853_v52  ;;  %v2889_v54 = vld [vmem:[#allocation20 + $0x9c0] sm:$0xff]  ;;  %v2890_v60 = vld [vmem:[#allocation20 + $0x9c8] sm:$0xff] }
0x1e2b   :  { %v2901_v4 = vld [vmem:[#allocation20 + $0xa20] sm:$0xff]  ;;  %v2898_v52 = vld [vmem:[#allocation20 + $0xa08] sm:$0xff] }
0x1e2c   :  { %5757 = vmatpush1.bf16.msra.mxu1 %v11158_v26  ;;  %5921 = vmatpush1.bf16.msra.mxu0 %v11160_v8  ;;  %v2858_v26 = vld [vmem:[#allocation20 + $0x8c8] sm:$0xff] }
0x1e2d   :  { %5758 = vmatprep.subr.bf16.mxu1 %v11167_v14  ;;  %5922 = vmatprep.subr.bf16.mxu0 %v11169_v15  ;;  %v2862_v8 = vld [vmem:[#allocation20 + $0x8e8] sm:$0xff]  ;;  %v11208_v14 = vcombine.low %v2850_v6, %v2854_v29  ;;  %v11215_v15 = vcombine.high %v2857_v7, %v2861_v53  ;;  %v11246_v29 = vcombine.low %v2889_v54, %v2893_v55 }
0x1e2e   :  { %v11217_v19 = vcombine.high %v2858_v26, %v2862_v8  ;;  %v2902_v6 = vld [vmem:[#allocation20 + $0xa28] sm:$0xff] }
0x1e30   :  { %5759 = vmatpush1.bf16.msra.mxu1 %v11166_v51  ;;  %5923 = vmatpush1.bf16.msra.mxu0 %v11168_v2  ;;  %v2870_v51 = vld [vmem:[#allocation20 + $0x928] sm:$0xff]  ;;  %v11214_v2 = vcombine.low %v2857_v7, %v2861_v53  ;;  %v2909_v7 = vld [vmem:[#allocation20 + $0xa60] sm:$0xff] }
0x1e31   :  { %5760 = vmatprep.subr.bf16.mxu1 %v11175_v63  ;;  %5924 = vmatprep.subr.bf16.mxu0 %v11177_v9  ;;  %v11216_v63 = vcombine.low %v2858_v26, %v2862_v8  ;;  %v11223_v9 = vcombine.high %v2865_v23, %v2869_v21  ;;  %v11225_v30 = vcombine.high %v2866_v62, %v2870_v51  ;;  %v2906_v53 = vld [vmem:[#allocation20 + $0xa48] sm:$0xff] }
0x1e32   :  { %v2910_v26 = vld [vmem:[#allocation20 + $0xa68] sm:$0xff] }
0x1e34   :  { %5761 = vmatpush1.bf16.msra.mxu1 %v11174_v32  ;;  %5925 = vmatpush1.bf16.msra.mxu0 %v11176_v33  ;;  %v2878_v32 = vld [vmem:[#allocation20 + $0x968] sm:$0xff]  ;;  %v11222_v33 = vcombine.low %v2865_v23, %v2869_v21  ;;  %v2917_v23 = vld [vmem:[#allocation20 + $0xaa0] sm:$0xff] }
0x1e35   :  { %5762 = vmatprep.subr.bf16.mxu1 %v11183_v16  ;;  %5926 = vmatprep.subr.bf16.mxu0 %v11185_v40  ;;  %v11224_v16 = vcombine.low %v2866_v62, %v2870_v51  ;;  %v11231_v40 = vcombine.high %v2873_v5, %v2877_v31  ;;  %v11233_v41 = vcombine.high %v2874_v13, %v2878_v32  ;;  %v2914_v21 = vld [vmem:[#allocation20 + $0xa88] sm:$0xff] }
0x1e36   :  { %v2918_v62 = vld [vmem:[#allocation20 + $0xaa8] sm:$0xff] }
0x1e38   :  { %5763 = vmatpush1.bf16.msra.mxu1 %v11182_v44  ;;  %5927 = vmatpush1.bf16.msra.mxu0 %v11184_v58  ;;  %v2886_v44 = vld [vmem:[#allocation20 + $0x9a8] sm:$0xff]  ;;  %v11230_v58 = vcombine.low %v2873_v5, %v2877_v31  ;;  %v2925_v5 = vld [vmem:[#allocation20 + $0xae0] sm:$0xff] }
0x1e39   :  { %5773 = vmatprep.subr.bf16.mxu1 %v11191_v46  ;;  %5937 = vmatprep.subr.bf16.mxu0 %v11193_v28  ;;  %v11232_v46 = vcombine.low %v2874_v13, %v2878_v32  ;;  %v11239_v28 = vcombine.high %v2881_v35, %v2885_v34  ;;  %v11241_v22 = vcombine.high %v2882_v25, %v2886_v44  ;;  %v2922_v31 = vld [vmem:[#allocation20 + $0xac8] sm:$0xff]  ;;  %v14208_v32 = vsub.s32 4, %v14146_v27  ;;  %v2929_v34 = vld [vmem:[#allocation20 + $0xb00] sm:$0xff] }
0x1e3a   :  { %v2926_v13 = vld [vmem:[#allocation20 + $0xae8] sm:$0xff] }
0x1e3b   :  { %5765 = vmatmul.mubr.bf16.vlgmr.msra.gmra.mrb[56].mxu1 %v14199_v18  ;;  %5929 = vmatmul.mubr.bf16.vlgmr.msra.gmra.mrb[60].mxu0 %v14199_v18  ;;  %v11281_v35 = vcombine.high %v2922_v31, %v2926_v13 }
0x1e3c   :  { %5774 = vmatpush1.bf16.msra.mxu1 %v11190_v1  ;;  %5805 = vmatprep.mubr.bf16.mxu1 %v14201_v3  ;;  %v11240_v1 = vcombine.low %v2882_v25, %v2886_v44  ;;  %v2933_v25 = vld [vmem:[#allocation20 + $0xb20] sm:$0xff]  ;;  %v2930_v44 = vld [vmem:[#allocation20 + $0xb08] sm:$0xff] }
0x1e3d   :  { %5938 = vmatpush1.bf16.msra.mxu0 %v11192_v43  ;;  %5969 = vmatprep.mubr.bf16.mxu0 %v14201_v3  ;;  %v11247_v43 = vcombine.high %v2889_v54, %v2893_v55  ;;  %v11287_v54 = vcombine.high %v2929_v34, %v2933_v25 }
0x1e3e   :  { %5775 = vmatprep.subr.bf16.mxu1 %v11199_v17  ;;  %5939 = vmatprep.subr.bf16.mxu0 %v11201_v48  ;;  %v11249_v17 = vcombine.high %v2890_v60, %v2894_v36  ;;  %v2897_v48 = vld [vmem:[#allocation20 + $0xa00] sm:$0xff] }
0x1e3f   :  { %v11254_v8 = vcombine.low %v2897_v48, %v2901_v4 }
0x1e40   :  { %5776 = vmatpush1.bf16.msra.mxu1 %v11198_v39  ;;  %v11248_v39 = vcombine.low %v2890_v60, %v2894_v36  ;;  %v2937_v36 = vld [vmem:[#allocation20 + $0xb40] sm:$0xff] }
0x1e41   :  { %5940 = vmatpush1.bf16.msra.mxu0 %v11200_v50  ;;  %5777 = vmatprep.subr.bf16.mxu1 %v11207_v42  ;;  %v11255_v50 = vcombine.high %v2897_v48, %v2901_v4  ;;  %v11257_v42 = vcombine.high %v2898_v52, %v2902_v6  ;;  %v11286_v48 = vcombine.low %v2929_v34, %v2933_v25  ;;  %v2974_v34 = vld [vmem:[#allocation20 + $0xc68] sm:$0xff] }
0x1e42   :  { %5941 = vmatprep.subr.bf16.mxu0 %v11209_v0  ;;  %v2905_v0 = vld [vmem:[#allocation20 + $0xa40] sm:$0xff] }
0x1e43   :  { %v11262_v51 = vcombine.low %v2905_v0, %v2909_v7 }
0x1e44   :  { %5778 = vmatpush1.bf16.msra.mxu1 %v11206_v10  ;;  %v11256_v10 = vcombine.low %v2898_v52, %v2902_v6 }
0x1e45   :  { %5942 = vmatpush1.bf16.msra.mxu0 %v11208_v14  ;;  %5779 = vmatprep.subr.bf16.mxu1 %v11215_v15  ;;  %v11263_v14 = vcombine.high %v2905_v0, %v2909_v7  ;;  %v11265_v15 = vcombine.high %v2906_v53, %v2910_v26 }
0x1e46   :  { %5943 = vmatprep.subr.bf16.mxu0 %v11217_v19  ;;  %v2913_v19 = vld [vmem:[#allocation20 + $0xa80] sm:$0xff] }
0x1e48   :  { %5780 = vmatpush1.bf16.msra.mxu1 %v11214_v2  ;;  %v11264_v2 = vcombine.low %v2906_v53, %v2910_v26  ;;  %v2953_v26 = vld [vmem:[#allocation20 + $0xbc0] sm:$0xff] }
0x1e49   :  { %5944 = vmatpush1.bf16.msra.mxu0 %v11216_v63  ;;  %5781 = vmatprep.subr.bf16.mxu1 %v11223_v9  ;;  %v11271_v63 = vcombine.high %v2913_v19, %v2917_v23  ;;  %v11273_v9 = vcombine.high %v2914_v21, %v2918_v62 }
0x1e4a   :  { %5945 = vmatprep.subr.bf16.mxu0 %v11225_v30  ;;  %v2921_v30 = vld [vmem:[#allocation20 + $0xac0] sm:$0xff] }
0x1e4c   :  { %5782 = vmatpush1.bf16.msra.mxu1 %v11222_v33  ;;  %v11270_v33 = vcombine.low %v2913_v19, %v2917_v23 }
0x1e4d   :  { %5946 = vmatpush1.bf16.msra.mxu0 %v11224_v16  ;;  %5783 = vmatprep.subr.bf16.mxu1 %v11231_v40  ;;  %v11272_v16 = vcombine.low %v2914_v21, %v2918_v62  ;;  %v11279_v40 = vcombine.high %v2921_v30, %v2925_v5  ;;  %v2961_v21 = vld [vmem:[#allocation20 + $0xc00] sm:$0xff] }
0x1e4e   :  { %5947 = vmatprep.subr.bf16.mxu0 %v11233_v41  ;;  %v14211_v41 = vsub.s32 7, %v14146_v27  ;;  %v2965_v62 = vld [vmem:[#allocation20 + $0xc20] sm:$0xff] }
0x1e50   :  { %5784 = vmatpush1.bf16.msra.mxu1 %v11230_v58  ;;  %v2934_v58 = vld [vmem:[#allocation20 + $0xb28] sm:$0xff]  ;;  %v2302_v55 = vrot.slane %v14151_v56, %v14211_v41 }
0x1e51   :  { %5948 = vmatpush1.bf16.msra.mxu0 %v11232_v46  ;;  %5785 = vmatprep.subr.bf16.mxu1 %v11239_v28  ;;  %v2290_v46 = vrot.slane %v14151_v56, %v14208_v32  ;;  %v11278_v28 = vcombine.low %v2921_v30, %v2925_v5  ;;  %v11289_v60 = vcombine.high %v2930_v44, %v2934_v58  ;;  %v2949_v56 = vld [vmem:[#allocation20 + $0xba0] sm:$0xff] }
0x1e52   :  { %5949 = vmatprep.subr.bf16.mxu0 %v11241_v22  ;;  %v11280_v22 = vcombine.low %v2922_v31, %v2926_v13  ;;  %v11288_v4 = vcombine.low %v2930_v44, %v2934_v58  ;;  %v2557_v6 = vadd.f32 %v14173_v49, %v2302_v55  ;;  %v2958_v49 = vld [vmem:[#allocation20 + $0xbe8] sm:$0xff]  ;;  %v11319_v30 = vcombine.high %v2961_v21, %v2965_v62  ;;  %v2969_v13 = vld [vmem:[#allocation20 + $0xc40] sm:$0xff] }
0x1e53   :  { %v2978_v55 = vld [vmem:[#allocation20 + $0xc88] sm:$0xff] }
0x1e54   :  { %5786 = vmatpush1.bf16.msra.mxu1 %v11238_v45  ;;  %v2941_v45 = vld [vmem:[#allocation20 + $0xb60] sm:$0xff] }
0x1e55   :  { %5950 = vmatpush1.bf16.msra.mxu0 %v11240_v1  ;;  %5787 = vmatprep.subr.bf16.mxu1 %v11247_v43  ;;  %v2938_v1 = vld [vmem:[#allocation20 + $0xb48] sm:$0xff]  ;;  %v11295_v52 = vcombine.high %v2937_v36, %v2941_v45  ;;  %v11294_v0 = vcombine.low %v2937_v36, %v2941_v45 }
0x1e56   :  { %5951 = vmatprep.subr.bf16.mxu0 %v11249_v17  ;;  %v2942_v43 = vld [vmem:[#allocation20 + $0xb68] sm:$0xff]  ;;  %v2514_v17 = vadd.f32 %v14167_v47, %v2290_v46  ;;  %v2977_v46 = vld [vmem:[#allocation20 + $0xc80] sm:$0xff] }
0x1e57   :  { %v11296_v47 = vcombine.low %v2938_v1, %v2942_v43 }
0x1e58   :  { %5788 = vmatpush1.bf16.msra.mxu1 %v11246_v29  ;;  %v11297_v29 = vcombine.high %v2938_v1, %v2942_v43  ;;  %12900 = vtanh.f32 %v2514_v17  ;;  %v2985_v17 = vld [vmem:[#allocation20 + $0xcc0] sm:$0xff] }
0x1e59   :  { %5952 = vmatpush1.bf16.msra.mxu0 %v11248_v39  ;;  %5789 = vmatprep.subr.bf16.mxu1 %v11255_v50  ;;  %v2945_v39 = vld [vmem:[#allocation20 + $0xb80] sm:$0xff]  ;;  %v2946_v50 = vld [vmem:[#allocation20 + $0xb88] sm:$0xff]  ;;  %12902 = vtanh.f32 %v2557_v6 }
0x1e5a   :  { %5953 = vmatprep.subr.bf16.mxu0 %v11257_v42  ;;  %v2950_v42 = vld [vmem:[#allocation20 + $0xba8] sm:$0xff]  ;;  %v11303_v7 = vcombine.high %v2945_v39, %v2949_v56 }
0x1e5b   :  { %v11305_v53 = vcombine.high %v2946_v50, %v2950_v42 }
0x1e5c   :  { %5790 = vmatpush1.bf16.msra.mxu1 %v11254_v8  ;;  %v2957_v8 = vld [vmem:[#allocation20 + $0xbe0] sm:$0xff] }
0x1e5d   :  { %5954 = vmatpush1.bf16.msra.mxu0 %v11256_v10  ;;  %5791 = vmatprep.subr.bf16.mxu1 %v11263_v14  ;;  %v2954_v10 = vld [vmem:[#allocation20 + $0xbc8] sm:$0xff]  ;;  %v11302_v14 = vcombine.low %v2945_v39, %v2949_v56  ;;  %v11311_v19 = vcombine.high %v2953_v26, %v2957_v8 }
0x1e5e   :  { %5955 = vmatprep.subr.bf16.mxu0 %v11265_v15  ;;  %v11304_v15 = vcombine.low %v2946_v50, %v2950_v42  ;;  %v11313_v23 = vcombine.high %v2954_v10, %v2958_v49  ;;  %v2993_v50 = vld [vmem:[#allocation20 + $0xd00] sm:$0xff] }
0x1e5f   :  { %v2997_v42 = vld [vmem:[#allocation20 + $0xd20] sm:$0xff] }
0x1e60   :  { %5792 = vmatpush1.bf16.msra.mxu1 %v11262_v51  ;;  %v2962_v51 = vld [vmem:[#allocation20 + $0xc08] sm:$0xff] }
0x1e61   :  { %5956 = vmatpush1.bf16.msra.mxu0 %v11264_v2  ;;  %5793 = vmatprep.subr.bf16.mxu1 %v11271_v63  ;;  %v2966_v2 = vld [vmem:[#allocation20 + $0xc28] sm:$0xff]  ;;  %v11310_v63 = vcombine.low %v2953_v26, %v2957_v8  ;;  %v11351_v26 = vcombine.high %v2993_v50, %v2997_v42 }
0x1e62   :  { %5957 = vmatprep.subr.bf16.mxu0 %v11273_v9  ;;  %v11312_v9 = vcombine.low %v2954_v10, %v2958_v49  ;;  %v12901_v5 = vpop.eup %12900  ;;  %v11321_v31 = vcombine.high %v2962_v51, %v2966_v2  ;;  %v11320_v44 = vcombine.low %v2962_v51, %v2966_v2  ;;  %v3001_v10 = vld [vmem:[#allocation20 + $0xd40] sm:$0xff] }
0x1e63   :  { %v14219_v25 = vpack.c.bf16 %v12901_v5, %v12901_v5  ;;  %v3005_v49 = vld [vmem:[#allocation20 + $0xd60] sm:$0xff] }
0x1e64   :  { %5794 = vmatpush1.bf16.msra.mxu1 %v11270_v33  ;;  %v2973_v33 = vld [vmem:[#allocation20 + $0xc60] sm:$0xff] }
0x1e65   :  { %5958 = vmatpush1.bf16.msra.mxu0 %v11272_v16  ;;  %5795 = vmatprep.subr.bf16.mxu1 %v11279_v40  ;;  %v12903_v16 = vpop.eup %12902  ;;  %v11318_v40 = vcombine.low %v2961_v21, %v2965_v62  ;;  %v11327_v58 = vcombine.high %v2969_v13, %v2973_v33  ;;  %v11326_v36 = vcombine.low %v2969_v13, %v2973_v33  ;;  %v3009_v51 = vld [vmem:[#allocation20 + $0xd80] sm:$0xff] }
0x1e66   :  { %5959 = vmatprep.subr.bf16.mxu0 %v11281_v35  ;;  %v2970_v35 = vld [vmem:[#allocation20 + $0xc48] sm:$0xff]  ;;  %v11359_v21 = vcombine.high %v3001_v10, %v3005_v49  ;;  %v3013_v2 = vld [vmem:[#allocation20 + $0xda0] sm:$0xff] }
0x1e67   :  { %v11328_v45 = vcombine.low %v2970_v35, %v2974_v34  ;;  %v3017_v33 = vld [vmem:[#allocation20 + $0xdc0] sm:$0xff] }
0x1e68   :  { %5796 = vmatpush1.bf16.msra.mxu1 %v11278_v28  ;;  %v2981_v28 = vld [vmem:[#allocation20 + $0xca0] sm:$0xff] }
0x1e69   :  { %5960 = vmatpush1.bf16.msra.mxu0 %v11280_v22  ;;  %5797 = vmatprep.subr.bf16.mxu1 %v11287_v54  ;;  %v14221_v22 = vpack.c.bf16 %v12903_v16, %v12903_v16  ;;  %v11329_v54 = vcombine.high %v2970_v35, %v2974_v34  ;;  %v11335_v1 = vcombine.high %v2977_v46, %v2981_v28  ;;  %v3021_v16 = vld [vmem:[#allocation20 + $0xde0] sm:$0xff]  ;;  %v3022_v35 = vld [vmem:[#allocation20 + $0xde8] sm:$0xff] }
0x1e6a   :  { %5961 = vmatprep.subr.bf16.mxu0 %v11289_v60  ;;  %v2982_v60 = vld [vmem:[#allocation20 + $0xca8] sm:$0xff]  ;;  %v11334_v6 = vcombine.low %v2977_v46, %v2981_v28  ;;  %v11366_v34 = vcombine.low %v3009_v51, %v3013_v2  ;;  %v3025_v28 = vld [vmem:[#allocation20 + $0xe00] sm:$0xff] }
0x1e6b   :  { %v11337_v43 = vcombine.high %v2978_v55, %v2982_v60 }
0x1e6c   :  { %5798 = vmatpush1.bf16.msra.mxu1 %v11286_v48  ;;  %v2989_v48 = vld [vmem:[#allocation20 + $0xce0] sm:$0xff] }
0x1e6d   :  { %5962 = vmatpush1.bf16.msra.mxu0 %v11288_v4  ;;  %5799 = vmatprep.subr.bf16.mxu1 %v11295_v52  ;;  %v2986_v4 = vld [vmem:[#allocation20 + $0xcc8] sm:$0xff]  ;;  %v11343_v39 = vcombine.high %v2985_v17, %v2989_v48 }
0x1e6e   :  { %5963 = vmatprep.subr.bf16.mxu0 %v11297_v29  ;;  %v2990_v52 = vld [vmem:[#allocation20 + $0xce8] sm:$0xff]  ;;  %v11336_v29 = vcombine.low %v2978_v55, %v2982_v60 }
0x1e6f   :  { %v11345_v56 = vcombine.high %v2986_v4, %v2990_v52  ;;  %v3026_v55 = vld [vmem:[#allocation20 + $0xe08] sm:$0xff] }
0x1e70   :  { %5800 = vmatpush1.bf16.msra.mxu1 %v11294_v0  ;;  %v2994_v0 = vld [vmem:[#allocation20 + $0xd08] sm:$0xff] }
0x1e71   :  { %5964 = vmatpush1.bf16.msra.mxu0 %v11296_v47  ;;  %5801 = vmatprep.subr.bf16.mxu1 %v11303_v7  ;;  %v2998_v47 = vld [vmem:[#allocation20 + $0xd28] sm:$0xff]  ;;  %v11342_v7 = vcombine.low %v2985_v17, %v2989_v48  ;;  %v3033_v17 = vld [vmem:[#allocation20 + $0xe40] sm:$0xff] }
0x1e72   :  { %5965 = vmatprep.subr.bf16.mxu0 %v11305_v53  ;;  %v11344_v53 = vcombine.low %v2986_v4, %v2990_v52  ;;  %v11353_v8 = vcombine.high %v2994_v0, %v2998_v47  ;;  %v3030_v60 = vld [vmem:[#allocation20 + $0xe28] sm:$0xff]  ;;  %v3037_v48 = vld [vmem:[#allocation20 + $0xe60] sm:$0xff] }
0x1e73   :  { %v3034_v4 = vld [vmem:[#allocation20 + $0xe48] sm:$0xff] }
0x1e74   :  { %5802 = vmatpush1.bf16.msra.mxu1 %v11302_v14  ;;  %v3002_v14 = vld [vmem:[#allocation20 + $0xd48] sm:$0xff] }
0x1e75   :  { %5966 = vmatpush1.bf16.msra.mxu0 %v11304_v15  ;;  %5803 = vmatprep.subr.bf16.mxu1 %v11311_v19  ;;  %v3006_v15 = vld [vmem:[#allocation20 + $0xd68] sm:$0xff]  ;;  %v11350_v19 = vcombine.low %v2993_v50, %v2997_v42  ;;  %v3041_v50 = vld [vmem:[#allocation20 + $0xe80] sm:$0xff] }
0x1e76   :  { %5967 = vmatprep.subr.bf16.mxu0 %v11313_v23  ;;  %v11352_v23 = vcombine.low %v2994_v0, %v2998_v47  ;;  %v11361_v62 = vcombine.high %v3002_v14, %v3006_v15  ;;  %v11360_v5 = vcombine.low %v3002_v14, %v3006_v15  ;;  %v3038_v52 = vld [vmem:[#allocation20 + $0xe68] sm:$0xff]  ;;  %v3045_v42 = vld [vmem:[#allocation20 + $0xea0] sm:$0xff] }
0x1e77   :  { %v3042_v0 = vld [vmem:[#allocation20 + $0xe88] sm:$0xff] }
0x1e78   :  { %5804 = vmatpush1.bf16.msra.mxu1 %v11310_v63  ;;  %v3010_v63 = vld [vmem:[#allocation20 + $0xd88] sm:$0xff] }
0x1e79   :  { %5968 = vmatpush1.bf16.msra.mxu0 %v11312_v9  ;;  %5814 = vmatprep.subr.bf16.mxu1 %v11319_v30  ;;  %v3014_v9 = vld [vmem:[#allocation20 + $0xda8] sm:$0xff]  ;;  %v11358_v30 = vcombine.low %v3001_v10, %v3005_v49  ;;  %v3049_v10 = vld [vmem:[#allocation20 + $0xec0] sm:$0xff] }
0x1e7a   :  { %5978 = vmatprep.subr.bf16.mxu0 %v11321_v31  ;;  %v11367_v31 = vcombine.high %v3009_v51, %v3013_v2  ;;  %v11369_v13 = vcombine.high %v3010_v63, %v3014_v9  ;;  %v3046_v47 = vld [vmem:[#allocation20 + $0xea8] sm:$0xff]  ;;  %v3053_v49 = vld [vmem:[#allocation20 + $0xee0] sm:$0xff] }
0x1e7b   :  { %5806 = vmatmul.mubr.bf16.vlgmr.msra.gmra.mrb[56].mxu1 %v14219_v25  ;;  %v3050_v14 = vld [vmem:[#allocation20 + $0xec8] sm:$0xff]  ;;  %v3057_v2 = vld [vmem:[#allocation20 + $0xf00] sm:$0xff] }
0x1e7c   :  { %5970 = vmatmul.mubr.bf16.vlgmr.msra.gmra.mrb[60].mxu0 %v14219_v25  ;;  %5815 = vmatpush1.bf16.msra.mxu1 %v11318_v40  ;;  %v3018_v40 = vld [vmem:[#allocation20 + $0xdc8] sm:$0xff] }
0x1e7d   :  { %5846 = vmatprep.mubr.bf16.mxu1 %v14221_v22  ;;  %5979 = vmatpush1.bf16.msra.mxu0 %v11320_v44  ;;  %v11368_v44 = vcombine.low %v3010_v63, %v3014_v9  ;;  %v11377_v46 = vcombine.high %v3018_v40, %v3022_v35  ;;  %v3054_v15 = vld [vmem:[#allocation20 + $0xee8] sm:$0xff]  ;;  %v3061_v63 = vld [vmem:[#allocation20 + $0xf20] sm:$0xff] }
0x1e7e   :  { %6010 = vmatprep.mubr.bf16.mxu0 %v14221_v22  ;;  %5816 = vmatprep.subr.bf16.mxu1 %v11327_v58  ;;  %v11375_v58 = vcombine.high %v3017_v33, %v3021_v16  ;;  %v11409_v51 = vcombine.high %v3050_v14, %v3054_v15  ;;  %v3058_v9 = vld [vmem:[#allocation20 + $0xf08] sm:$0xff] }
0x1e7f   :  { %5980 = vmatprep.subr.bf16.mxu0 %v11329_v54  ;;  %v3029_v54 = vld [vmem:[#allocation20 + $0xe20] sm:$0xff] }
0x1e80   :  { %5817 = vmatpush1.bf16.msra.mxu1 %v11326_v36  ;;  %v11374_v36 = vcombine.low %v3017_v33, %v3021_v16  ;;  %v11415_v33 = vcombine.high %v3057_v2, %v3061_v63 }
0x1e81   :  { %5981 = vmatpush1.bf16.msra.mxu0 %v11328_v45  ;;  %5818 = vmatprep.subr.bf16.mxu1 %v11335_v1  ;;  %v11376_v45 = vcombine.low %v3018_v40, %v3022_v35  ;;  %v11383_v1 = vcombine.high %v3025_v28, %v3029_v54  ;;  %v3065_v40 = vld [vmem:[#allocation20 + $0xf40] sm:$0xff] }
0x1e82   :  { %5982 = vmatprep.subr.bf16.mxu0 %v11337_v43  ;;  %v11385_v43 = vcombine.high %v3026_v55, %v3030_v60  ;;  %v3069_v35 = vld [vmem:[#allocation20 + $0xf60] sm:$0xff] }
0x1e84   :  { %5819 = vmatpush1.bf16.msra.mxu1 %v11334_v6  ;;  %v11382_v6 = vcombine.low %v3025_v28, %v3029_v54  ;;  %v11423_v54 = vcombine.high %v3065_v40, %v3069_v35 }
0x1e85   :  { %5983 = vmatpush1.bf16.msra.mxu0 %v11336_v29  ;;  %5820 = vmatprep.subr.bf16.mxu1 %v11343_v39  ;;  %v11384_v29 = vcombine.low %v3026_v55, %v3030_v60  ;;  %v11391_v39 = vcombine.high %v3033_v17, %v3037_v48  ;;  %v3073_v60 = vld [vmem:[#allocation20 + $0xf80] sm:$0xff] }
0x1e86   :  { %5984 = vmatprep.subr.bf16.mxu0 %v11345_v56  ;;  %v11393_v56 = vcombine.high %v3034_v4, %v3038_v52 }
0x1e88   :  { %5821 = vmatpush1.bf16.msra.mxu1 %v11342_v7  ;;  %v11390_v7 = vcombine.low %v3033_v17, %v3037_v48 }
0x1e89   :  { %5985 = vmatpush1.bf16.msra.mxu0 %v11344_v53  ;;  %5822 = vmatprep.subr.bf16.mxu1 %v11351_v26  ;;  %v11392_v53 = vcombine.low %v3034_v4, %v3038_v52  ;;  %v11399_v26 = vcombine.high %v3041_v50, %v3045_v42  ;;  %v3081_v4 = vld [vmem:[#allocation20 + $0xfc0] sm:$0xff] }
0x1e8a   :  { %5986 = vmatprep.subr.bf16.mxu0 %v11353_v8  ;;  %v11401_v8 = vcombine.high %v3042_v0, %v3046_v47  ;;  %v3085_v52 = vld [vmem:[#allocation20 + $0xfe0] sm:$0xff] }
0x1e8c   :  { %5823 = vmatpush1.bf16.msra.mxu1 %v11350_v19  ;;  %v14228_v19 = vsub.s32 6, %v14146_v27  ;;  %v11408_v27 = vcombine.low %v3050_v14, %v3054_v15  ;;  %v2587_v15 = vld [vmem:[#allocation20 + $0x50] sm:$0xff] }
0x1e8d   :  { %5987 = vmatpush1.bf16.msra.mxu0 %v11352_v23  ;;  %5824 = vmatprep.subr.bf16.mxu1 %v11359_v21  ;;  %v11398_v23 = vcombine.low %v3041_v50, %v3045_v42  ;;  %v11400_v21 = vcombine.low %v3042_v0, %v3046_v47  ;;  %v11439_v50 = vcombine.high %v3081_v4, %v3085_v52  ;;  %v2579_v0 = vld [vmem:[#allocation20 + $0x10] sm:$0xff] }
0x1e8e   :  { %5988 = vmatprep.subr.bf16.mxu0 %v11361_v62  ;;  %v11407_v62 = vcombine.high %v3049_v10, %v3053_v49  ;;  %v2583_v47 = vld [vmem:[#allocation20 + $0x30] sm:$0xff] }
0x1e90   :  { %5825 = vmatpush1.bf16.msra.mxu1 %v11358_v30  ;;  %v3062_v30 = vld [vmem:[#allocation20 + $0xf28] sm:$0xff] }
0x1e91   :  { %5989 = vmatpush1.bf16.msra.mxu0 %v11360_v5  ;;  %5826 = vmatprep.subr.bf16.mxu1 %v11367_v31  ;;  %v12950_v5 = vld [vmem:[#allocation19] sm:$0xff]  ;;  %v11417_v16 = vcombine.high %v3058_v9, %v3062_v30  ;;  %v11416_v28 = vcombine.low %v3058_v9, %v3062_v30  ;;  %v2595_v30 = vld [vmem:[#allocation20 + $0x90] sm:$0xff] }
0x1e92   :  { %5990 = vmatprep.subr.bf16.mxu0 %v11369_v13  ;;  %v2298_v31 = vrot.slane %v12950_v5, %v14228_v19  ;;  %v11406_v13 = vcombine.low %v3049_v10, %v3053_v49  ;;  %v10939_v10 = vcombine.high %v2579_v0, %v2583_v47  ;;  %v2599_v5 = vld [vmem:[#allocation20 + $0xb0] sm:$0xff] }
0x1e94   :  { %5827 = vmatpush1.bf16.msra.mxu1 %v11366_v34  ;;  %v3066_v34 = vld [vmem:[#allocation20 + $0xf48] sm:$0xff] }
0x1e95   :  { %5991 = vmatpush1.bf16.msra.mxu0 %v11368_v44  ;;  %5828 = vmatprep.subr.bf16.mxu1 %v11375_v58  ;;  %v3070_v44 = vld [vmem:[#allocation20 + $0xf68] sm:$0xff]  ;;  %v2555_v58 = vadd.f32 %v14169_v37, %v2298_v31 }
0x1e96   :  { %5992 = vmatprep.subr.bf16.mxu0 %v11377_v46  ;;  %v11414_v46 = vcombine.low %v3057_v2, %v3061_v63  ;;  %v11425_v55 = vcombine.high %v3066_v34, %v3070_v44  ;;  %v11424_v17 = vcombine.low %v3066_v34, %v3070_v44  ;;  %v2603_v34 = vld [vmem:[#allocation20 + $0xd0] sm:$0xff] }
0x1e97   :  { %12904 = vtanh.f32 %v2555_v58  ;;  %v2607_v44 = vld [vmem:[#allocation20 + $0xf0] sm:$0xff]  ;;  %v2604_v58 = vld [vmem:[#allocation20 + $0xd8] sm:$0xff] }
0x1e98   :  { %5829 = vmatpush1.bf16.msra.mxu1 %v11374_v36  ;;  %v3077_v36 = vld [vmem:[#allocation20 + $0xfa0] sm:$0xff] }
0x1e99   :  { %5993 = vmatpush1.bf16.msra.mxu0 %v11376_v45  ;;  %5830 = vmatprep.subr.bf16.mxu1 %v11383_v1  ;;  %v3074_v45 = vld [vmem:[#allocation20 + $0xf88] sm:$0xff]  ;;  %v11431_v48 = vcombine.high %v3073_v60, %v3077_v36 }
0x1e9a   :  { %5994 = vmatprep.subr.bf16.mxu0 %v11385_v43  ;;  %v3078_v1 = vld [vmem:[#allocation20 + $0xfa8] sm:$0xff]  ;;  %v11422_v43 = vcombine.low %v3065_v40, %v3069_v35  ;;  %v10955_v40 = vcombine.high %v2595_v30, %v2599_v5 }
0x1e9b   :  { %v11433_v37 = vcombine.high %v3074_v45, %v3078_v1 }
0x1e9c   :  { %5831 = vmatpush1.bf16.msra.mxu1 %v11382_v6  ;;  %v3082_v6 = vld [vmem:[#allocation20 + $0xfc8] sm:$0xff] }
0x1e9d   :  { %5995 = vmatpush1.bf16.msra.mxu0 %v11384_v29  ;;  %5832 = vmatprep.subr.bf16.mxu1 %v11391_v39  ;;  %v3086_v29 = vld [vmem:[#allocation20 + $0xfe8] sm:$0xff]  ;;  %v11430_v39 = vcombine.low %v3073_v60, %v3077_v36  ;;  %v2611_v36 = vld [vmem:[#allocation20 + $0x110] sm:$0xff] }
0x1e9e   :  { %5996 = vmatprep.subr.bf16.mxu0 %v11393_v56  ;;  %v11432_v56 = vcombine.low %v3074_v45, %v3078_v1  ;;  %v11441_v42 = vcombine.high %v3082_v6, %v3086_v29  ;;  %v2615_v45 = vld [vmem:[#allocation20 + $0x130] sm:$0xff]  ;;  %v2612_v1 = vld [vmem:[#allocation20 + $0x118] sm:$0xff] }
0x1ea0   :  { %5833 = vmatpush1.bf16.msra.mxu1 %v11390_v7  ;;  %v2580_v7 = vld [vmem:[#allocation20 + $0x18] sm:$0xff] }
0x1ea1   :  { %5997 = vmatpush1.bf16.msra.mxu0 %v11392_v53  ;;  %5834 = vmatprep.subr.bf16.mxu1 %v11399_v26  ;;  %v2584_v53 = vld [vmem:[#allocation20 + $0x38] sm:$0xff]  ;;  %v11438_v26 = vcombine.low %v3081_v4, %v3085_v52  ;;  %v12905_v49 = vpop.eup %12904  ;;  %v2619_v4 = vld [vmem:[#allocation20 + $0x150] sm:$0xff] }
0x1ea2   :  { %5998 = vmatprep.subr.bf16.mxu0 %v11401_v8  ;;  %v11440_v8 = vcombine.low %v3082_v6, %v3086_v29  ;;  %v10941_v14 = vcombine.high %v2580_v7, %v2584_v53  ;;  %v14232_v2 = vpack.c.bf16 %v12905_v49, %v12905_v49  ;;  %v10940_v63 = vcombine.low %v2580_v7, %v2584_v53  ;;  %v2623_v52 = vld [vmem:[#allocation20 + $0x170] sm:$0xff]  ;;  %v2620_v6 = vld [vmem:[#allocation20 + $0x158] sm:$0xff] }
0x1ea3   :  { %v2624_v29 = vld [vmem:[#allocation20 + $0x178] sm:$0xff] }
0x1ea4   :  { %5835 = vmatpush1.bf16.msra.mxu1 %v11398_v23  ;;  %v2591_v23 = vld [vmem:[#allocation20 + $0x70] sm:$0xff]  ;;  %v2628_v7 = vld [vmem:[#allocation20 + $0x198] sm:$0xff] }
0x1ea5   :  { %5999 = vmatpush1.bf16.msra.mxu0 %v11400_v21  ;;  %5836 = vmatprep.subr.bf16.mxu1 %v11407_v62  ;;  %v10938_v21 = vcombine.low %v2579_v0, %v2583_v47  ;;  %v2588_v62 = vld [vmem:[#allocation20 + $0x58] sm:$0xff]  ;;  %v10947_v9 = vcombine.high %v2587_v15, %v2591_v23  ;;  %v2627_v0 = vld [vmem:[#allocation20 + $0x190] sm:$0xff] }
0x1ea6   :  { %6000 = vmatprep.subr.bf16.mxu0 %v11409_v51  ;;  %v2592_v51 = vld [vmem:[#allocation20 + $0x78] sm:$0xff]  ;;  %v2631_v47 = vld [vmem:[#allocation20 + $0x1b0] sm:$0xff] }
0x1ea7   :  { %v10949_v31 = vcombine.high %v2588_v62, %v2592_v51  ;;  %v2632_v53 = vld [vmem:[#allocation20 + $0x1b8] sm:$0xff] }
0x1ea8   :  { %5837 = vmatpush1.bf16.msra.mxu1 %v11406_v13  ;;  %v2596_v13 = vld [vmem:[#allocation20 + $0x98] sm:$0xff]  ;;  %v10989_v49 = vcombine.high %v2628_v7, %v2632_v53 }
0x1ea9   :  { %6001 = vmatpush1.bf16.msra.mxu0 %v11408_v27  ;;  %5838 = vmatprep.subr.bf16.mxu1 %v11415_v33  ;;  %v2600_v27 = vld [vmem:[#allocation20 + $0xb8] sm:$0xff]  ;;  %v10946_v33 = vcombine.low %v2587_v15, %v2591_v23  ;;  %v2639_v15 = vld [vmem:[#allocation20 + $0x1f0] sm:$0xff] }
0x1eaa   :  { %6002 = vmatprep.subr.bf16.mxu0 %v11417_v16  ;;  %v10948_v16 = vcombine.low %v2588_v62, %v2592_v51  ;;  %v10957_v35 = vcombine.high %v2596_v13, %v2600_v27  ;;  %v2636_v23 = vld [vmem:[#allocation20 + $0x1d8] sm:$0xff]  ;;  %v10986_v62 = vcombine.low %v2627_v0, %v2631_v47  ;;  %v10988_v51 = vcombine.low %v2628_v7, %v2632_v53 }
0x1eab   :  { %v2680_v7 = vld [vmem:[#allocation20 + $0x338] sm:$0xff] }
0x1eac   :  { %5839 = vmatpush1.bf16.msra.mxu1 %v11414_v46  ;;  %v2608_v46 = vld [vmem:[#allocation20 + $0xf8] sm:$0xff] }
0x1ead   :  { %6003 = vmatpush1.bf16.msra.mxu0 %v11416_v28  ;;  %5840 = vmatprep.subr.bf16.mxu1 %v11423_v54  ;;  %v10954_v28 = vcombine.low %v2595_v30, %v2599_v5  ;;  %v10956_v54 = vcombine.low %v2596_v13, %v2600_v27  ;;  %v10965_v60 = vcombine.high %v2604_v58, %v2608_v46  ;;  %v2643_v30 = vld [vmem:[#allocation20 + $0x210] sm:$0xff]  ;;  %v2648_v13 = vld [vmem:[#allocation20 + $0x238] sm:$0xff] }
0x1eae   :  { %6004 = vmatprep.subr.bf16.mxu0 %v11425_v55  ;;  %v10963_v55 = vcombine.high %v2603_v34, %v2607_v44  ;;  %v2647_v5 = vld [vmem:[#allocation20 + $0x230] sm:$0xff] }
0x1eb0   :  { %5841 = vmatpush1.bf16.msra.mxu1 %v11422_v43  ;;  %v2616_v43 = vld [vmem:[#allocation20 + $0x138] sm:$0xff] }
0x1eb1   :  { %6005 = vmatpush1.bf16.msra.mxu0 %v11424_v17  ;;  %5842 = vmatprep.subr.bf16.mxu1 %v11431_v48  ;;  %v10964_v17 = vcombine.low %v2604_v58, %v2608_v46  ;;  %v10971_v48 = vcombine.high %v2611_v36, %v2615_v45  ;;  %v2656_v58 = vld [vmem:[#allocation20 + $0x278] sm:$0xff]  ;;  %v11002_v46 = vcombine.low %v2643_v30, %v2647_v5 }
0x1eb2   :  { %6006 = vmatprep.subr.bf16.mxu0 %v11433_v37  ;;  %v10973_v37 = vcombine.high %v2612_v1, %v2616_v43 }
0x1eb4   :  { %5843 = vmatpush1.bf16.msra.mxu1 %v11430_v39  ;;  %v10970_v39 = vcombine.low %v2611_v36, %v2615_v45  ;;  %v2663_v36 = vld [vmem:[#allocation20 + $0x2b0] sm:$0xff]  ;;  %v2660_v45 = vld [vmem:[#allocation20 + $0x298] sm:$0xff] }
0x1eb5   :  { %6007 = vmatpush1.bf16.msra.mxu0 %v11432_v56  ;;  %5844 = vmatprep.subr.bf16.mxu1 %v11439_v50  ;;  %v10972_v56 = vcombine.low %v2612_v1, %v2616_v43  ;;  %v10979_v50 = vcombine.high %v2619_v4, %v2623_v52  ;;  %v2664_v1 = vld [vmem:[#allocation20 + $0x2b8] sm:$0xff] }
0x1eb6   :  { %6008 = vmatprep.subr.bf16.mxu0 %v11441_v42  ;;  %v10981_v42 = vcombine.high %v2620_v6, %v2624_v29 }
0x1eb8   :  { %5845 = vmatpush1.bf16.msra.mxu1 %v11438_v26  ;;  %v10978_v26 = vcombine.low %v2619_v4, %v2623_v52  ;;  %v2671_v4 = vld [vmem:[#allocation20 + $0x2f0] sm:$0xff]  ;;  %v2668_v52 = vld [vmem:[#allocation20 + $0x2d8] sm:$0xff] }
0x1eb9   :  { %6009 = vmatpush1.bf16.msra.mxu0 %v11440_v8  ;;  %6019 = vmatprep.subr.bf16.mxu1 %v10939_v10  ;;  %v10980_v8 = vcombine.low %v2620_v6, %v2624_v29  ;;  %v10987_v10 = vcombine.high %v2627_v0, %v2631_v47  ;;  %v2672_v6 = vld [vmem:[#allocation20 + $0x2f8] sm:$0xff]  ;;  %v2679_v0 = vld [vmem:[#allocation20 + $0x330] sm:$0xff] }
0x1eba   :  { %6183 = vmatprep.subr.bf16.mxu0 %v10941_v14  ;;  %v2635_v14 = vld [vmem:[#allocation20 + $0x1d0] sm:$0xff]  ;;  %v2676_v47 = vld [vmem:[#allocation20 + $0x318] sm:$0xff] }
0x1ebb   :  { %5847 = vmatmul.mubr.bf16.vlgmr.msra.gmra.mrb[56].mxu1 %v14232_v2  ;;  %v10994_v27 = vcombine.low %v2635_v14, %v2639_v15 }
0x1ebc   :  { %6011 = vmatmul.mubr.bf16.vlgmr.msra.gmra.mrb[60].mxu0 %v14232_v2  ;;  %6020 = vmatpush1.bf16.msra.mxu1 %v10938_v21  ;;  %v2640_v21 = vld [vmem:[#allocation20 + $0x1f8] sm:$0xff] }
0x1ebd   :  { %6051 = vmatprep.mubr.bf16.mxu1 %v14175_v11  ;;  %6184 = vmatpush1.bf16.msra.mxu0 %v10940_v63  ;;  %v10995_v63 = vcombine.high %v2635_v14, %v2639_v15  ;;  %v2687_v14 = vld [vmem:[#allocation20 + $0x370] sm:$0xff]  ;;  %v2684_v15 = vld [vmem:[#allocation20 + $0x358] sm:$0xff] }
0x1ebe   :  { %6215 = vmatprep.mubr.bf16.mxu0 %v14175_v11  ;;  %6021 = vmatprep.subr.bf16.mxu1 %v10947_v9  ;;  %v10962_v11 = vcombine.low %v2603_v34, %v2607_v44  ;;  %v10997_v9 = vcombine.high %v2636_v23, %v2640_v21  ;;  %v2655_v34 = vld [vmem:[#allocation20 + $0x270] sm:$0xff]  ;;  %v2652_v44 = vld [vmem:[#allocation20 + $0x258] sm:$0xff] }
0x1ebf   :  { %6185 = vmatprep.subr.bf16.mxu0 %v10949_v31  ;;  %v2644_v31 = vld [vmem:[#allocation20 + $0x218] sm:$0xff] }
0x1ec0   :  { %6022 = vmatpush1.bf16.msra.mxu1 %v10946_v33  ;;  %v10996_v33 = vcombine.low %v2636_v23, %v2640_v21  ;;  %v2688_v23 = vld [vmem:[#allocation20 + $0x378] sm:$0xff] }
0x1ec1   :  { %6186 = vmatpush1.bf16.msra.mxu0 %v10948_v16  ;;  %6023 = vmatprep.subr.bf16.mxu1 %v10955_v40  ;;  %v11003_v16 = vcombine.high %v2643_v30, %v2647_v5  ;;  %v11005_v40 = vcombine.high %v2644_v31, %v2648_v13  ;;  %v2695_v30 = vld [vmem:[#allocation20 + $0x3b0] sm:$0xff]  ;;  %v2692_v5 = vld [vmem:[#allocation20 + $0x398] sm:$0xff] }
0x1ec2   :  { %6187 = vmatprep.subr.bf16.mxu0 %v10957_v35  ;;  %v2651_v35 = vld [vmem:[#allocation20 + $0x250] sm:$0xff] }
0x1ec3   :  { %v11010_v43 = vcombine.low %v2651_v35, %v2655_v34 }
0x1ec4   :  { %6024 = vmatpush1.bf16.msra.mxu1 %v10954_v28  ;;  %v11004_v28 = vcombine.low %v2644_v31, %v2648_v13  ;;  %v2696_v31 = vld [vmem:[#allocation20 + $0x3b8] sm:$0xff] }
0x1ec5   :  { %6188 = vmatpush1.bf16.msra.mxu0 %v10956_v54  ;;  %6025 = vmatprep.subr.bf16.mxu1 %v10963_v55  ;;  %v11011_v54 = vcombine.high %v2651_v35, %v2655_v34  ;;  %v11013_v55 = vcombine.high %v2652_v44, %v2656_v58  ;;  %v2703_v35 = vld [vmem:[#allocation20 + $0x3f0] sm:$0xff]  ;;  %v2700_v34 = vld [vmem:[#allocation20 + $0x3d8] sm:$0xff] }
0x1ec6   :  { %6189 = vmatprep.subr.bf16.mxu0 %v10965_v60  ;;  %v2659_v60 = vld [vmem:[#allocation20 + $0x290] sm:$0xff] }
0x1ec7   :  { %v11018_v29 = vcombine.low %v2659_v60, %v2663_v36 }
0x1ec8   :  { %6026 = vmatpush1.bf16.msra.mxu1 %v10962_v11  ;;  %v11012_v11 = vcombine.low %v2652_v44, %v2656_v58  ;;  %v2704_v44 = vld [vmem:[#allocation20 + $0x3f8] sm:$0xff] }
0x1ec9   :  { %6190 = vmatpush1.bf16.msra.mxu0 %v10964_v17  ;;  %6027 = vmatprep.subr.bf16.mxu1 %v10971_v48  ;;  %v11019_v17 = vcombine.high %v2659_v60, %v2663_v36  ;;  %v11021_v48 = vcombine.high %v2660_v45, %v2664_v1  ;;  %v2711_v60 = vld [vmem:[#allocation20 + $0x430] sm:$0xff]  ;;  %v2708_v36 = vld [vmem:[#allocation20 + $0x418] sm:$0xff] }
0x1eca   :  { %6191 = vmatprep.subr.bf16.mxu0 %v10973_v37  ;;  %v2667_v37 = vld [vmem:[#allocation20 + $0x2d0] sm:$0xff] }
0x1ecb   :  { %v11026_v53 = vcombine.low %v2667_v37, %v2671_v4 }
0x1ecc   :  { %6028 = vmatpush1.bf16.msra.mxu1 %v10970_v39  ;;  %v11020_v39 = vcombine.low %v2660_v45, %v2664_v1  ;;  %v2712_v45 = vld [vmem:[#allocation20 + $0x438] sm:$0xff] }
0x1ecd   :  { %6192 = vmatpush1.bf16.msra.mxu0 %v10972_v56  ;;  %6029 = vmatprep.subr.bf16.mxu1 %v10979_v50  ;;  %v11027_v56 = vcombine.high %v2667_v37, %v2671_v4  ;;  %v11029_v50 = vcombine.high %v2668_v52, %v2672_v6  ;;  %v2719_v37 = vld [vmem:[#allocation20 + $0x470] sm:$0xff] }
0x1ece   :  { %6193 = vmatprep.subr.bf16.mxu0 %v10981_v42  ;;  %v2675_v42 = vld [vmem:[#allocation20 + $0x310] sm:$0xff] }
0x1ecf   :  { %v11034_v21 = vcombine.low %v2675_v42, %v2679_v0 }
0x1ed0   :  { %6030 = vmatpush1.bf16.msra.mxu1 %v10978_v26  ;;  %v11028_v26 = vcombine.low %v2668_v52, %v2672_v6  ;;  %v2716_v52 = vld [vmem:[#allocation20 + $0x458] sm:$0xff] }
0x1ed1   :  { %6194 = vmatpush1.bf16.msra.mxu0 %v10980_v8  ;;  %6031 = vmatprep.subr.bf16.mxu1 %v10987_v10  ;;  %v11035_v8 = vcombine.high %v2675_v42, %v2679_v0  ;;  %v11037_v10 = vcombine.high %v2676_v47, %v2680_v7  ;;  %v2720_v6 = vld [vmem:[#allocation20 + $0x478] sm:$0xff] }
0x1ed2   :  { %6195 = vmatprep.subr.bf16.mxu0 %v10989_v49  ;;  %v2683_v49 = vld [vmem:[#allocation20 + $0x350] sm:$0xff]  ;;  %v11077_v42 = vcombine.high %v2716_v52, %v2720_v6  ;;  %v2724_v0 = vld [vmem:[#allocation20 + $0x498] sm:$0xff] }
0x1ed3   :  { %v11042_v13 = vcombine.low %v2683_v49, %v2687_v14 }
0x1ed4   :  { %6032 = vmatpush1.bf16.msra.mxu1 %v10986_v62  ;;  %v11036_v62 = vcombine.low %v2676_v47, %v2680_v7  ;;  %v2728_v47 = vld [vmem:[#allocation20 + $0x4b8] sm:$0xff] }
0x1ed5   :  { %6196 = vmatpush1.bf16.msra.mxu0 %v10988_v51  ;;  %6033 = vmatprep.subr.bf16.mxu1 %v10995_v63  ;;  %v11043_v51 = vcombine.high %v2683_v49, %v2687_v14  ;;  %v11045_v63 = vcombine.high %v2684_v15, %v2688_v23  ;;  %v2735_v49 = vld [vmem:[#allocation20 + $0x4f0] sm:$0xff]  ;;  %v2732_v14 = vld [vmem:[#allocation20 + $0x4d8] sm:$0xff] }
0x1ed6   :  { %6197 = vmatprep.subr.bf16.mxu0 %v10997_v9  ;;  %v2691_v9 = vld [vmem:[#allocation20 + $0x390] sm:$0xff] }
0x1ed7   :  { %v11050_v58 = vcombine.low %v2691_v9, %v2695_v30 }
0x1ed8   :  { %6034 = vmatpush1.bf16.msra.mxu1 %v10994_v27  ;;  %v11044_v27 = vcombine.low %v2684_v15, %v2688_v23  ;;  %v2736_v15 = vld [vmem:[#allocation20 + $0x4f8] sm:$0xff] }
0x1ed9   :  { %6198 = vmatpush1.bf16.msra.mxu0 %v10996_v33  ;;  %6035 = vmatprep.subr.bf16.mxu1 %v11003_v16  ;;  %v11051_v33 = vcombine.high %v2691_v9, %v2695_v30  ;;  %v11053_v16 = vcombine.high %v2692_v5, %v2696_v31  ;;  %v2740_v9 = vld [vmem:[#allocation20 + $0x518] sm:$0xff] }
0x1eda   :  { %6199 = vmatprep.subr.bf16.mxu0 %v11005_v40  ;;  %v2699_v40 = vld [vmem:[#allocation20 + $0x3d0] sm:$0xff]  ;;  %v2744_v30 = vld [vmem:[#allocation20 + $0x538] sm:$0xff] }
0x1edb   :  { %v11058_v1 = vcombine.low %v2699_v40, %v2703_v35 }
0x1edc   :  { %6036 = vmatpush1.bf16.msra.mxu1 %v11002_v46  ;;  %v11052_v46 = vcombine.low %v2692_v5, %v2696_v31  ;;  %v11092_v5 = vcombine.low %v2732_v14, %v2736_v15 }
0x1edd   :  { %6200 = vmatpush1.bf16.msra.mxu0 %v11004_v28  ;;  %6037 = vmatprep.subr.bf16.mxu1 %v11011_v54  ;;  %v11059_v28 = vcombine.high %v2699_v40, %v2703_v35  ;;  %v11061_v54 = vcombine.high %v2700_v34, %v2704_v44  ;;  %v2752_v40 = vld [vmem:[#allocation20 + $0x578] sm:$0xff] }
0x1ede   :  { %6201 = vmatprep.subr.bf16.mxu0 %v11013_v55  ;;  %v2707_v55 = vld [vmem:[#allocation20 + $0x410] sm:$0xff] }
0x1edf   :  { %v11066_v4 = vcombine.low %v2707_v55, %v2711_v60 }
0x1ee0   :  { %6038 = vmatpush1.bf16.msra.mxu1 %v11010_v43  ;;  %v11060_v43 = vcombine.low %v2700_v34, %v2704_v44  ;;  %v11100_v34 = vcombine.low %v2740_v9, %v2744_v30 }
0x1ee1   :  { %6202 = vmatpush1.bf16.msra.mxu0 %v11012_v11  ;;  %6039 = vmatprep.subr.bf16.mxu1 %v11019_v17  ;;  %v11067_v11 = vcombine.high %v2707_v55, %v2711_v60  ;;  %v11069_v17 = vcombine.high %v2708_v36, %v2712_v45  ;;  %v2760_v55 = vld [vmem:[#allocation20 + $0x5b8] sm:$0xff] }
0x1ee2   :  { %6203 = vmatprep.subr.bf16.mxu0 %v11021_v48  ;;  %v2715_v48 = vld [vmem:[#allocation20 + $0x450] sm:$0xff] }
0x1ee3   :  { %v11074_v7 = vcombine.low %v2715_v48, %v2719_v37 }
0x1ee4   :  { %6040 = vmatpush1.bf16.msra.mxu1 %v11018_v29  ;;  %v11068_v29 = vcombine.low %v2708_v36, %v2712_v45 }
0x1ee5   :  { %6204 = vmatpush1.bf16.msra.mxu0 %v11020_v39  ;;  %6041 = vmatprep.subr.bf16.mxu1 %v11027_v56  ;;  %v11075_v39 = vcombine.high %v2715_v48, %v2719_v37  ;;  %v2723_v56 = vld [vmem:[#allocation20 + $0x490] sm:$0xff]  ;;  %v2768_v48 = vld [vmem:[#allocation20 + $0x5f8] sm:$0xff] }
0x1ee6   :  { %6205 = vmatprep.subr.bf16.mxu0 %v11029_v50  ;;  %v2727_v50 = vld [vmem:[#allocation20 + $0x4b0] sm:$0xff] }
0x1ee7   :  { %v11082_v23 = vcombine.low %v2723_v56, %v2727_v50 }
0x1ee8   :  { %6042 = vmatpush1.bf16.msra.mxu1 %v11026_v53  ;;  %v11076_v53 = vcombine.low %v2716_v52, %v2720_v6 }
0x1ee9   :  { %6206 = vmatpush1.bf16.msra.mxu0 %v11028_v26  ;;  %6043 = vmatprep.subr.bf16.mxu1 %v11035_v8  ;;  %v11083_v26 = vcombine.high %v2723_v56, %v2727_v50  ;;  %v11085_v8 = vcombine.high %v2724_v0, %v2728_v47  ;;  %v2772_v56 = vld [vmem:[#allocation20 + $0x618] sm:$0xff] }
0x1eea   :  { %6207 = vmatprep.subr.bf16.mxu0 %v11037_v10  ;;  %v2731_v10 = vld [vmem:[#allocation20 + $0x4d0] sm:$0xff]  ;;  %v2776_v50 = vld [vmem:[#allocation20 + $0x638] sm:$0xff] }
0x1eec   :  { %6044 = vmatpush1.bf16.msra.mxu1 %v11034_v21  ;;  %v11091_v21 = vcombine.high %v2731_v10, %v2735_v49 }
0x1eed   :  { %6208 = vmatpush1.bf16.msra.mxu0 %v11036_v62  ;;  %6045 = vmatprep.subr.bf16.mxu1 %v11043_v51  ;;  %v11093_v62 = vcombine.high %v2732_v14, %v2736_v15  ;;  %v2739_v51 = vld [vmem:[#allocation20 + $0x510] sm:$0xff]  ;;  %v11132_v14 = vcombine.low %v2772_v56, %v2776_v50 }
0x1eee   :  { %6209 = vmatprep.subr.bf16.mxu0 %v11045_v63  ;;  %v2743_v63 = vld [vmem:[#allocation20 + $0x530] sm:$0xff] }
0x1eef   :  { %v11099_v31 = vcombine.high %v2739_v51, %v2743_v63  ;;  %v11098_v35 = vcombine.low %v2739_v51, %v2743_v63  ;;  %v2792_v51 = vld [vmem:[#allocation20 + $0x6b8] sm:$0xff] }
0x1ef0   :  { %6046 = vmatpush1.bf16.msra.mxu1 %v11042_v13  ;;  %v11101_v13 = vcombine.high %v2740_v9, %v2744_v30 }
0x1ef1   :  { %6210 = vmatpush1.bf16.msra.mxu0 %v11044_v27  ;;  %6047 = vmatprep.subr.bf16.mxu1 %v11051_v33  ;;  %v2747_v27 = vld [vmem:[#allocation20 + $0x550] sm:$0xff] }
0x1ef2   :  { %6211 = vmatprep.subr.bf16.mxu0 %v11053_v16  ;;  %v2751_v33 = vld [vmem:[#allocation20 + $0x570] sm:$0xff]  ;;  %v2748_v16 = vld [vmem:[#allocation20 + $0x558] sm:$0xff] }
0x1ef3   :  { %v11107_v44 = vcombine.high %v2747_v27, %v2751_v33  ;;  %v11106_v60 = vcombine.low %v2747_v27, %v2751_v33  ;;  %v11108_v36 = vcombine.low %v2748_v16, %v2752_v40  ;;  %v2800_v27 = vld [vmem:[#allocation20 + $0x6f8] sm:$0xff] }
0x1ef4   :  { %6048 = vmatpush1.bf16.msra.mxu1 %v11050_v58  ;;  %v11109_v58 = vcombine.high %v2748_v16, %v2752_v40 }
0x1ef5   :  { %6212 = vmatpush1.bf16.msra.mxu0 %v11052_v46  ;;  %6049 = vmatprep.subr.bf16.mxu1 %v11059_v28  ;;  %v2755_v46 = vld [vmem:[#allocation20 + $0x590] sm:$0xff] }
0x1ef6   :  { %6213 = vmatprep.subr.bf16.mxu0 %v11061_v54  ;;  %v2759_v28 = vld [vmem:[#allocation20 + $0x5b0] sm:$0xff]  ;;  %v2756_v54 = vld [vmem:[#allocation20 + $0x598] sm:$0xff] }
0x1ef7   :  { %v11115_v45 = vcombine.high %v2755_v46, %v2759_v28  ;;  %v11114_v37 = vcombine.low %v2755_v46, %v2759_v28  ;;  %v2808_v46 = vld [vmem:[#allocation20 + $0x738] sm:$0xff] }
0x1ef8   :  { %6050 = vmatpush1.bf16.msra.mxu1 %v11058_v1  ;;  %v11117_v1 = vcombine.high %v2756_v54, %v2760_v55 }
0x1ef9   :  { %6214 = vmatpush1.bf16.msra.mxu0 %v11060_v43  ;;  %6060 = vmatprep.subr.bf16.mxu1 %v11067_v11  ;;  %v2763_v43 = vld [vmem:[#allocation20 + $0x5d0] sm:$0xff] }
0x1efa   :  { %6224 = vmatprep.subr.bf16.mxu0 %v11069_v17  ;;  %v2767_v11 = vld [vmem:[#allocation20 + $0x5f0] sm:$0xff]  ;;  %v2764_v17 = vld [vmem:[#allocation20 + $0x5d8] sm:$0xff] }
0x1efb   :  { %6052 = vmatmul.mubr.bf16.vlgmr.msra.gmra.mrb[60].mxu1 %v14177_v12  ;;  %v11123_v52 = vcombine.high %v2763_v43, %v2767_v11  ;;  %v11125_v6 = vcombine.high %v2764_v17, %v2768_v48 }
0x1efc   :  { %6216 = vmatmul.mubr.bf16.vlgmr.msra.gmra.mrb[64].mxu0 %v14177_v12  ;;  %6061 = vmatpush1.bf16.msra.mxu1 %v11066_v4  ;;  %v11084_v12 = vcombine.low %v2724_v0, %v2728_v47  ;;  %v11116_v4 = vcombine.low %v2756_v54, %v2760_v55  ;;  %v11124_v0 = vcombine.low %v2764_v17, %v2768_v48 }
0x1efd   :  { %6092 = vmatprep.mubr.bf16.mxu1 %v14181_v24  ;;  %6225 = vmatpush1.bf16.msra.mxu0 %v11068_v29  ;;  %v2771_v29 = vld [vmem:[#allocation20 + $0x610] sm:$0xff] }
0x1efe   :  { %6256 = vmatprep.mubr.bf16.mxu0 %v14181_v24  ;;  %6062 = vmatprep.subr.bf16.mxu1 %v11075_v39  ;;  %v11090_v24 = vcombine.low %v2731_v10, %v2735_v49  ;;  %v2775_v39 = vld [vmem:[#allocation20 + $0x630] sm:$0xff]  ;;  %v2784_v10 = vld [vmem:[#allocation20 + $0x678] sm:$0xff] }
0x1eff   :  { %6226 = vmatprep.subr.bf16.mxu0 %v11077_v42  ;;  %v11122_v42 = vcombine.low %v2763_v43, %v2767_v11  ;;  %v11131_v47 = vcombine.high %v2771_v29, %v2775_v39  ;;  %v11130_v49 = vcombine.low %v2771_v29, %v2775_v39  ;;  %v2816_v43 = vld [vmem:[#allocation20 + $0x778] sm:$0xff] }
0x1f00   :  { %6063 = vmatpush1.bf16.msra.mxu1 %v11074_v7  ;;  %v11133_v7 = vcombine.high %v2772_v56, %v2776_v50  ;;  %v2824_v29 = vld [vmem:[#allocation20 + $0x7b8] sm:$0xff] }
0x1f01   :  { %6227 = vmatpush1.bf16.msra.mxu0 %v11076_v53  ;;  %6064 = vmatprep.subr.bf16.mxu1 %v11083_v26  ;;  %v2779_v53 = vld [vmem:[#allocation20 + $0x650] sm:$0xff] }
0x1f02   :  { %6228 = vmatprep.subr.bf16.mxu0 %v11085_v8  ;;  %v2783_v26 = vld [vmem:[#allocation20 + $0x670] sm:$0xff]  ;;  %v2780_v8 = vld [vmem:[#allocation20 + $0x658] sm:$0xff] }
0x1f03   :  { %v11139_v15 = vcombine.high %v2779_v53, %v2783_v26  ;;  %v11138_v63 = vcombine.low %v2779_v53, %v2783_v26  ;;  %v11140_v9 = vcombine.low %v2780_v8, %v2784_v10  ;;  %v2832_v53 = vld [vmem:[#allocation20 + $0x7f8] sm:$0xff] }
0x1f04   :  { %6065 = vmatpush1.bf16.msra.mxu1 %v11082_v23  ;;  %v11141_v23 = vcombine.high %v2780_v8, %v2784_v10 }
0x1f05   :  { %6229 = vmatpush1.bf16.msra.mxu0 %v11084_v12  ;;  %6066 = vmatprep.subr.bf16.mxu1 %v11091_v21  ;;  %v2787_v12 = vld [vmem:[#allocation20 + $0x690] sm:$0xff] }
0x1f06   :  { %6230 = vmatprep.subr.bf16.mxu0 %v11093_v62  ;;  %v2791_v21 = vld [vmem:[#allocation20 + $0x6b0] sm:$0xff]  ;;  %v2788_v62 = vld [vmem:[#allocation20 + $0x698] sm:$0xff] }
0x1f07   :  { %v11147_v30 = vcombine.high %v2787_v12, %v2791_v21  ;;  %v11146_v33 = vcombine.low %v2787_v12, %v2791_v21  ;;  %v11148_v16 = vcombine.low %v2788_v62, %v2792_v51  ;;  %v2840_v12 = vld [vmem:[#allocation20 + $0x838] sm:$0xff] }
0x1f08   :  { %6067 = vmatpush1.bf16.msra.mxu1 %v11090_v24  ;;  %v11149_v24 = vcombine.high %v2788_v62, %v2792_v51 }
0x1f09   :  { %6231 = vmatpush1.bf16.msra.mxu0 %v11092_v5  ;;  %6068 = vmatprep.subr.bf16.mxu1 %v11099_v31  ;;  %v2795_v5 = vld [vmem:[#allocation20 + $0x6d0] sm:$0xff] }
0x1f0a   :  { %6232 = vmatprep.subr.bf16.mxu0 %v11101_v13  ;;  %v2799_v31 = vld [vmem:[#allocation20 + $0x6f0] sm:$0xff]  ;;  %v2796_v13 = vld [vmem:[#allocation20 + $0x6d8] sm:$0xff] }
0x1f0b   :  { %v11155_v40 = vcombine.high %v2795_v5, %v2799_v31  ;;  %v11154_v28 = vcombine.low %v2795_v5, %v2799_v31  ;;  %v11156_v54 = vcombine.low %v2796_v13, %v2800_v27  ;;  %v2844_v5 = vld [vmem:[#allocation20 + $0x858] sm:$0xff] }
0x1f0c   :  { %6069 = vmatpush1.bf16.msra.mxu1 %v11098_v35  ;;  %v11157_v35 = vcombine.high %v2796_v13, %v2800_v27  ;;  %v2848_v31 = vld [vmem:[#allocation20 + $0x878] sm:$0xff] }
0x1f0d   :  { %6233 = vmatpush1.bf16.msra.mxu0 %v11100_v34  ;;  %6070 = vmatprep.subr.bf16.mxu1 %v11107_v44  ;;  %v2803_v34 = vld [vmem:[#allocation20 + $0x710] sm:$0xff] }
0x1f0e   :  { %6234 = vmatprep.subr.bf16.mxu0 %v11109_v58  ;;  %v2807_v44 = vld [vmem:[#allocation20 + $0x730] sm:$0xff]  ;;  %v2804_v58 = vld [vmem:[#allocation20 + $0x718] sm:$0xff] }
0x1f0f   :  { %v11163_v55 = vcombine.high %v2803_v34, %v2807_v44  ;;  %v11162_v11 = vcombine.low %v2803_v34, %v2807_v44  ;;  %v11164_v17 = vcombine.low %v2804_v58, %v2808_v46  ;;  %v2856_v34 = vld [vmem:[#allocation20 + $0x8b8] sm:$0xff] }
0x1f10   :  { %6071 = vmatpush1.bf16.msra.mxu1 %v11106_v60  ;;  %v11165_v60 = vcombine.high %v2804_v58, %v2808_v46  ;;  %v11204_v58 = vcombine.low %v2844_v5, %v2848_v31 }
0x1f11   :  { %6235 = vmatpush1.bf16.msra.mxu0 %v11108_v36  ;;  %6072 = vmatprep.subr.bf16.mxu1 %v11115_v45  ;;  %v2811_v36 = vld [vmem:[#allocation20 + $0x750] sm:$0xff] }
0x1f12   :  { %6236 = vmatprep.subr.bf16.mxu0 %v11117_v1  ;;  %v2815_v45 = vld [vmem:[#allocation20 + $0x770] sm:$0xff]  ;;  %v2812_v1 = vld [vmem:[#allocation20 + $0x758] sm:$0xff] }
0x1f13   :  { %v11171_v48 = vcombine.high %v2811_v36, %v2815_v45  ;;  %v11170_v39 = vcombine.low %v2811_v36, %v2815_v45  ;;  %v11172_v56 = vcombine.low %v2812_v1, %v2816_v43  ;;  %v2864_v36 = vld [vmem:[#allocation20 + $0x8f8] sm:$0xff] }
0x1f14   :  { %6073 = vmatpush1.bf16.msra.mxu1 %v11114_v37  ;;  %v11173_v37 = vcombine.high %v2812_v1, %v2816_v43 }
0x1f15   :  { %6237 = vmatpush1.bf16.msra.mxu0 %v11116_v4  ;;  %6074 = vmatprep.subr.bf16.mxu1 %v11123_v52  ;;  %v2819_v4 = vld [vmem:[#allocation20 + $0x790] sm:$0xff] }
0x1f16   :  { %6238 = vmatprep.subr.bf16.mxu0 %v11125_v6  ;;  %v2823_v52 = vld [vmem:[#allocation20 + $0x7b0] sm:$0xff]  ;;  %v2820_v6 = vld [vmem:[#allocation20 + $0x798] sm:$0xff] }
0x1f17   :  { %v11179_v50 = vcombine.high %v2819_v4, %v2823_v52  ;;  %v11178_v26 = vcombine.low %v2819_v4, %v2823_v52  ;;  %v11180_v8 = vcombine.low %v2820_v6, %v2824_v29 }
0x1f18   :  { %6075 = vmatpush1.bf16.msra.mxu1 %v11122_v42  ;;  %v11181_v42 = vcombine.high %v2820_v6, %v2824_v29  ;;  %v2875_v29 = vld [vmem:[#allocation20 + $0x950] sm:$0xff] }
0x1f19   :  { %6239 = vmatpush1.bf16.msra.mxu0 %v11124_v0  ;;  %6076 = vmatprep.subr.bf16.mxu1 %v11131_v47  ;;  %v2827_v0 = vld [vmem:[#allocation20 + $0x7d0] sm:$0xff] }
0x1f1a   :  { %6240 = vmatprep.subr.bf16.mxu0 %v11133_v7  ;;  %v2831_v47 = vld [vmem:[#allocation20 + $0x7f0] sm:$0xff]  ;;  %v2828_v7 = vld [vmem:[#allocation20 + $0x7d8] sm:$0xff] }
0x1f1b   :  { %v11187_v10 = vcombine.high %v2827_v0, %v2831_v47  ;;  %v11186_v21 = vcombine.low %v2827_v0, %v2831_v47  ;;  %v11188_v62 = vcombine.low %v2828_v7, %v2832_v53 }
0x1f1c   :  { %6077 = vmatpush1.bf16.msra.mxu1 %v11130_v49  ;;  %v11189_v49 = vcombine.high %v2828_v7, %v2832_v53  ;;  %v2883_v53 = vld [vmem:[#allocation20 + $0x990] sm:$0xff] }
0x1f1d   :  { %6241 = vmatpush1.bf16.msra.mxu0 %v11132_v14  ;;  %6078 = vmatprep.subr.bf16.mxu1 %v11139_v15  ;;  %v2835_v14 = vld [vmem:[#allocation20 + $0x810] sm:$0xff] }
0x1f1e   :  { %6242 = vmatprep.subr.bf16.mxu0 %v11141_v23  ;;  %v2839_v15 = vld [vmem:[#allocation20 + $0x830] sm:$0xff]  ;;  %v2836_v23 = vld [vmem:[#allocation20 + $0x818] sm:$0xff] }
0x1f1f   :  { %v11195_v51 = vcombine.high %v2835_v14, %v2839_v15  ;;  %v11196_v13 = vcombine.low %v2836_v23, %v2840_v12 }
0x1f20   :  { %6079 = vmatpush1.bf16.msra.mxu1 %v11138_v63  ;;  %v11197_v63 = vcombine.high %v2836_v23, %v2840_v12  ;;  %v2891_v12 = vld [vmem:[#allocation20 + $0x9d0] sm:$0xff] }
0x1f21   :  { %6243 = vmatpush1.bf16.msra.mxu0 %v11140_v9  ;;  %6080 = vmatprep.subr.bf16.mxu1 %v11147_v30  ;;  %v2843_v9 = vld [vmem:[#allocation20 + $0x850] sm:$0xff] }
0x1f22   :  { %6244 = vmatprep.subr.bf16.mxu0 %v11149_v24  ;;  %v2847_v30 = vld [vmem:[#allocation20 + $0x870] sm:$0xff]  ;;  %v11194_v24 = vcombine.low %v2835_v14, %v2839_v15 }
0x1f23   :  { %v11203_v27 = vcombine.high %v2843_v9, %v2847_v30  ;;  %v11202_v44 = vcombine.low %v2843_v9, %v2847_v30 }
0x1f24   :  { %6081 = vmatpush1.bf16.msra.mxu1 %v11146_v33  ;;  %v2851_v33 = vld [vmem:[#allocation20 + $0x890] sm:$0xff] }
0x1f25   :  { %6245 = vmatpush1.bf16.msra.mxu0 %v11148_v16  ;;  %6082 = vmatprep.subr.bf16.mxu1 %v11155_v40  ;;  %v2855_v16 = vld [vmem:[#allocation20 + $0x8b0] sm:$0xff]  ;;  %v11205_v40 = vcombine.high %v2844_v5, %v2848_v31 }
0x1f26   :  { %6246 = vmatprep.subr.bf16.mxu0 %v11157_v35  ;;  %v2852_v35 = vld [vmem:[#allocation20 + $0x898] sm:$0xff]  ;;  %v11211_v46 = vcombine.high %v2851_v33, %v2855_v16  ;;  %v11210_v45 = vcombine.low %v2851_v33, %v2855_v16  ;;  %v2899_v5 = vld [vmem:[#allocation20 + $0xa10] sm:$0xff] }
0x1f27   :  { %v2903_v31 = vld [vmem:[#allocation20 + $0xa30] sm:$0xff] }
0x1f28   :  { %6083 = vmatpush1.bf16.msra.mxu1 %v11154_v28  ;;  %v11213_v28 = vcombine.high %v2852_v35, %v2856_v34 }
0x1f29   :  { %6247 = vmatpush1.bf16.msra.mxu0 %v11156_v54  ;;  %6084 = vmatprep.subr.bf16.mxu1 %v11163_v55  ;;  %v2859_v54 = vld [vmem:[#allocation20 + $0x8d0] sm:$0xff] }
0x1f2a   :  { %6248 = vmatprep.subr.bf16.mxu0 %v11165_v60  ;;  %v2863_v55 = vld [vmem:[#allocation20 + $0x8f0] sm:$0xff]  ;;  %v2860_v60 = vld [vmem:[#allocation20 + $0x8d8] sm:$0xff] }
0x1f2b   :  { %v11219_v1 = vcombine.high %v2859_v54, %v2863_v55  ;;  %v11221_v43 = vcombine.high %v2860_v60, %v2864_v36  ;;  %v11220_v4 = vcombine.low %v2860_v60, %v2864_v36  ;;  %v2915_v36 = vld [vmem:[#allocation20 + $0xa90] sm:$0xff] }
0x1f2c   :  { %6085 = vmatpush1.bf16.msra.mxu1 %v11162_v11  ;;  %v2867_v11 = vld [vmem:[#allocation20 + $0x910] sm:$0xff] }
0x1f2d   :  { %6249 = vmatpush1.bf16.msra.mxu0 %v11164_v17  ;;  %6086 = vmatprep.subr.bf16.mxu1 %v11171_v48  ;;  %v2871_v17 = vld [vmem:[#allocation20 + $0x930] sm:$0xff]  ;;  %v2868_v48 = vld [vmem:[#allocation20 + $0x918] sm:$0xff] }
0x1f2e   :  { %6250 = vmatprep.subr.bf16.mxu0 %v11173_v37  ;;  %v2872_v37 = vld [vmem:[#allocation20 + $0x938] sm:$0xff]  ;;  %v11227_v52 = vcombine.high %v2867_v11, %v2871_v17 }
0x1f2f   :  { %v11229_v6 = vcombine.high %v2868_v48, %v2872_v37  ;;  %v11228_v0 = vcombine.low %v2868_v48, %v2872_v37  ;;  %v2923_v37 = vld [vmem:[#allocation20 + $0xad0] sm:$0xff] }
0x1f30   :  { %6087 = vmatpush1.bf16.msra.mxu1 %v11170_v39  ;;  %v2879_v39 = vld [vmem:[#allocation20 + $0x970] sm:$0xff] }
0x1f31   :  { %6251 = vmatpush1.bf16.msra.mxu0 %v11172_v56  ;;  %6088 = vmatprep.subr.bf16.mxu1 %v11179_v50  ;;  %v2876_v56 = vld [vmem:[#allocation20 + $0x958] sm:$0xff]  ;;  %v11235_v47 = vcombine.high %v2875_v29, %v2879_v39 }
0x1f32   :  { %6252 = vmatprep.subr.bf16.mxu0 %v11181_v42  ;;  %v2880_v50 = vld [vmem:[#allocation20 + $0x978] sm:$0xff]  ;;  %v11226_v42 = vcombine.low %v2867_v11, %v2871_v17 }
0x1f33   :  { %v11237_v7 = vcombine.high %v2876_v56, %v2880_v50  ;;  %v11236_v14 = vcombine.low %v2876_v56, %v2880_v50  ;;  %v2931_v50 = vld [vmem:[#allocation20 + $0xb10] sm:$0xff] }
0x1f34   :  { %6089 = vmatpush1.bf16.msra.mxu1 %v11178_v26  ;;  %v2887_v26 = vld [vmem:[#allocation20 + $0x9b0] sm:$0xff] }
0x1f35   :  { %6253 = vmatpush1.bf16.msra.mxu0 %v11180_v8  ;;  %6090 = vmatprep.subr.bf16.mxu1 %v11187_v10  ;;  %v2884_v8 = vld [vmem:[#allocation20 + $0x998] sm:$0xff]  ;;  %v11243_v15 = vcombine.high %v2883_v53, %v2887_v26 }
0x1f36   :  { %6254 = vmatprep.subr.bf16.mxu0 %v11189_v49  ;;  %v2888_v10 = vld [vmem:[#allocation20 + $0x9b8] sm:$0xff]  ;;  %v11234_v49 = vcombine.low %v2875_v29, %v2879_v39 }
0x1f37   :  { %v11245_v23 = vcombine.high %v2884_v8, %v2888_v10  ;;  %v11244_v9 = vcombine.low %v2884_v8, %v2888_v10  ;;  %v2939_v10 = vld [vmem:[#allocation20 + $0xb50] sm:$0xff] }
0x1f38   :  { %6091 = vmatpush1.bf16.msra.mxu1 %v11186_v21  ;;  %v2895_v21 = vld [vmem:[#allocation20 + $0x9f0] sm:$0xff] }
0x1f39   :  { %6255 = vmatpush1.bf16.msra.mxu0 %v11188_v62  ;;  %6101 = vmatprep.subr.bf16.mxu1 %v11195_v51  ;;  %v2892_v62 = vld [vmem:[#allocation20 + $0x9d8] sm:$0xff]  ;;  %v11251_v30 = vcombine.high %v2891_v12, %v2895_v21  ;;  %v11250_v33 = vcombine.low %v2891_v12, %v2895_v21 }
0x1f3a   :  { %6265 = vmatprep.subr.bf16.mxu0 %v11197_v63  ;;  %v2896_v51 = vld [vmem:[#allocation20 + $0x9f8] sm:$0xff]  ;;  %v11242_v63 = vcombine.low %v2883_v53, %v2887_v26 }
0x1f3b   :  { %6093 = vmatmul.mubr.bf16.vlgmr.msra.gmra.mrb[60].mxu1 %v14199_v18  ;;  %v11252_v16 = vcombine.low %v2892_v62, %v2896_v51 }
0x1f3c   :  { %6257 = vmatmul.mubr.bf16.vlgmr.msra.gmra.mrb[64].mxu0 %v14199_v18  ;;  %6102 = vmatpush1.bf16.msra.mxu1 %v11194_v24  ;;  %v11212_v18 = vcombine.low %v2852_v35, %v2856_v34  ;;  %v11253_v24 = vcombine.high %v2892_v62, %v2896_v51  ;;  %v2907_v34 = vld [vmem:[#allocation20 + $0xa50] sm:$0xff] }
0x1f3d   :  { %6133 = vmatprep.mubr.bf16.mxu1 %v14201_v3  ;;  %6266 = vmatpush1.bf16.msra.mxu0 %v11196_v13  ;;  %v2900_v13 = vld [vmem:[#allocation20 + $0xa18] sm:$0xff]  ;;  %v2947_v51 = vld [vmem:[#allocation20 + $0xb90] sm:$0xff] }
0x1f3e   :  { %6297 = vmatprep.mubr.bf16.mxu0 %v14201_v3  ;;  %6103 = vmatprep.subr.bf16.mxu1 %v11203_v27  ;;  %v11218_v3 = vcombine.low %v2859_v54, %v2863_v55  ;;  %v2904_v27 = vld [vmem:[#allocation20 + $0xa38] sm:$0xff] }
0x1f3f   :  { %6267 = vmatprep.subr.bf16.mxu0 %v11205_v40  ;;  %v11259_v40 = vcombine.high %v2899_v5, %v2903_v31  ;;  %v11261_v35 = vcombine.high %v2900_v13, %v2904_v27  ;;  %v11260_v54 = vcombine.low %v2900_v13, %v2904_v27  ;;  %v2955_v27 = vld [vmem:[#allocation20 + $0xbd0] sm:$0xff] }
0x1f40   :  { %6104 = vmatpush1.bf16.msra.mxu1 %v11202_v44  ;;  %v2911_v44 = vld [vmem:[#allocation20 + $0xa70] sm:$0xff] }
0x1f41   :  { %6268 = vmatpush1.bf16.msra.mxu0 %v11204_v58  ;;  %6105 = vmatprep.subr.bf16.mxu1 %v11211_v46  ;;  %v2908_v58 = vld [vmem:[#allocation20 + $0xa58] sm:$0xff]  ;;  %v11267_v55 = vcombine.high %v2907_v34, %v2911_v44 }
0x1f42   :  { %6269 = vmatprep.subr.bf16.mxu0 %v11213_v28  ;;  %v2912_v46 = vld [vmem:[#allocation20 + $0xa78] sm:$0xff]  ;;  %v11258_v28 = vcombine.low %v2899_v5, %v2903_v31 }
0x1f43   :  { %v11269_v60 = vcombine.high %v2908_v58, %v2912_v46  ;;  %v11268_v11 = vcombine.low %v2908_v58, %v2912_v46  ;;  %v2963_v46 = vld [vmem:[#allocation20 + $0xc10] sm:$0xff] }
0x1f44   :  { %6106 = vmatpush1.bf16.msra.mxu1 %v11210_v45  ;;  %v2919_v45 = vld [vmem:[#allocation20 + $0xab0] sm:$0xff] }
0x1f45   :  { %6270 = vmatpush1.bf16.msra.mxu0 %v11212_v18  ;;  %6107 = vmatprep.subr.bf16.mxu1 %v11219_v1  ;;  %v2916_v18 = vld [vmem:[#allocation20 + $0xa98] sm:$0xff]  ;;  %v11275_v17 = vcombine.high %v2915_v36, %v2919_v45 }
0x1f46   :  { %6271 = vmatprep.subr.bf16.mxu0 %v11221_v43  ;;  %v2920_v1 = vld [vmem:[#allocation20 + $0xab8] sm:$0xff]  ;;  %v11266_v43 = vcombine.low %v2907_v34, %v2911_v44 }
0x1f47   :  { %v11277_v48 = vcombine.high %v2916_v18, %v2920_v1  ;;  %v11276_v29 = vcombine.low %v2916_v18, %v2920_v1  ;;  %v2971_v1 = vld [vmem:[#allocation20 + $0xc50] sm:$0xff] }
0x1f48   :  { %6108 = vmatpush1.bf16.msra.mxu1 %v11218_v3  ;;  %v2927_v3 = vld [vmem:[#allocation20 + $0xaf0] sm:$0xff] }
0x1f49   :  { %6272 = vmatpush1.bf16.msra.mxu0 %v11220_v4  ;;  %6109 = vmatprep.subr.bf16.mxu1 %v11227_v52  ;;  %v2924_v4 = vld [vmem:[#allocation20 + $0xad8] sm:$0xff]  ;;  %v11283_v39 = vcombine.high %v2923_v37, %v2927_v3 }
0x1f4a   :  { %6273 = vmatprep.subr.bf16.mxu0 %v11229_v6  ;;  %v2928_v52 = vld [vmem:[#allocation20 + $0xaf8] sm:$0xff]  ;;  %v11274_v6 = vcombine.low %v2915_v36, %v2919_v45 }
0x1f4b   :  { %v11285_v56 = vcombine.high %v2924_v4, %v2928_v52  ;;  %v11284_v53 = vcombine.low %v2924_v4, %v2928_v52  ;;  %v2979_v4 = vld [vmem:[#allocation20 + $0xc90] sm:$0xff] }
0x1f4c   :  { %6110 = vmatpush1.bf16.msra.mxu1 %v11226_v42  ;;  %v2935_v42 = vld [vmem:[#allocation20 + $0xb30] sm:$0xff] }
0x1f4d   :  { %6274 = vmatpush1.bf16.msra.mxu0 %v11228_v0  ;;  %6111 = vmatprep.subr.bf16.mxu1 %v11235_v47  ;;  %v2932_v0 = vld [vmem:[#allocation20 + $0xb18] sm:$0xff]  ;;  %v11291_v26 = vcombine.high %v2931_v50, %v2935_v42  ;;  %v2983_v52 = vld [vmem:[#allocation20 + $0xcb0] sm:$0xff] }
0x1f4e   :  { %6275 = vmatprep.subr.bf16.mxu0 %v11237_v7  ;;  %v2936_v47 = vld [vmem:[#allocation20 + $0xb38] sm:$0xff]  ;;  %v11282_v7 = vcombine.low %v2923_v37, %v2927_v3 }
0x1f4f   :  { %v11293_v8 = vcombine.high %v2932_v0, %v2936_v47  ;;  %v11292_v12 = vcombine.low %v2932_v0, %v2936_v47  ;;  %v2987_v47 = vld [vmem:[#allocation20 + $0xcd0] sm:$0xff] }
0x1f50   :  { %6112 = vmatpush1.bf16.msra.mxu1 %v11234_v49  ;;  %v2943_v49 = vld [vmem:[#allocation20 + $0xb70] sm:$0xff] }
0x1f51   :  { %6276 = vmatpush1.bf16.msra.mxu0 %v11236_v14  ;;  %6113 = vmatprep.subr.bf16.mxu1 %v11243_v15  ;;  %v2940_v14 = vld [vmem:[#allocation20 + $0xb58] sm:$0xff]  ;;  %v11299_v21 = vcombine.high %v2939_v10, %v2943_v49 }
0x1f52   :  { %6277 = vmatprep.subr.bf16.mxu0 %v11245_v23  ;;  %v2944_v15 = vld [vmem:[#allocation20 + $0xb78] sm:$0xff]  ;;  %v11290_v23 = vcombine.low %v2931_v50, %v2935_v42  ;;  %v11339_v42 = vcombine.high %v2979_v4, %v2983_v52 }
0x1f53   :  { %v11301_v62 = vcombine.high %v2940_v14, %v2944_v15  ;;  %v11300_v5 = vcombine.low %v2940_v14, %v2944_v15  ;;  %v2995_v14 = vld [vmem:[#allocation20 + $0xd10] sm:$0xff] }
0x1f54   :  { %6114 = vmatpush1.bf16.msra.mxu1 %v11242_v63  ;;  %v2951_v63 = vld [vmem:[#allocation20 + $0xbb0] sm:$0xff] }
0x1f55   :  { %6278 = vmatpush1.bf16.msra.mxu0 %v11244_v9  ;;  %6115 = vmatprep.subr.bf16.mxu1 %v11251_v30  ;;  %v2948_v9 = vld [vmem:[#allocation20 + $0xb98] sm:$0xff]  ;;  %v11307_v31 = vcombine.high %v2947_v51, %v2951_v63  ;;  %v2999_v15 = vld [vmem:[#allocation20 + $0xd30] sm:$0xff] }
0x1f56   :  { %6279 = vmatprep.subr.bf16.mxu0 %v11253_v24  ;;  %v2952_v30 = vld [vmem:[#allocation20 + $0xbb8] sm:$0xff]  ;;  %v11298_v24 = vcombine.low %v2939_v10, %v2943_v49 }
0x1f57   :  { %v11309_v13 = vcombine.high %v2948_v9, %v2952_v30  ;;  %v11308_v34 = vcombine.low %v2948_v9, %v2952_v30  ;;  %v3007_v9 = vld [vmem:[#allocation20 + $0xd70] sm:$0xff]  ;;  %v3004_v30 = vld [vmem:[#allocation20 + $0xd58] sm:$0xff] }
0x1f58   :  { %6116 = vmatpush1.bf16.msra.mxu1 %v11250_v33  ;;  %v2959_v33 = vld [vmem:[#allocation20 + $0xbf0] sm:$0xff] }
0x1f59   :  { %6280 = vmatpush1.bf16.msra.mxu0 %v11252_v16  ;;  %6117 = vmatprep.subr.bf16.mxu1 %v11259_v40  ;;  %v2956_v16 = vld [vmem:[#allocation20 + $0xbd8] sm:$0xff]  ;;  %v11315_v44 = vcombine.high %v2955_v27, %v2959_v33 }
0x1f5a   :  { %6281 = vmatprep.subr.bf16.mxu0 %v11261_v35  ;;  %v2960_v40 = vld [vmem:[#allocation20 + $0xbf8] sm:$0xff]  ;;  %v11306_v35 = vcombine.low %v2947_v51, %v2951_v63  ;;  %v3003_v63 = vld [vmem:[#allocation20 + $0xd50] sm:$0xff] }
0x1f5b   :  { %v11317_v58 = vcombine.high %v2956_v16, %v2960_v40  ;;  %v11316_v36 = vcombine.low %v2956_v16, %v2960_v40  ;;  %v3015_v16 = vld [vmem:[#allocation20 + $0xdb0] sm:$0xff]  ;;  %v3012_v40 = vld [vmem:[#allocation20 + $0xd98] sm:$0xff] }
0x1f5c   :  { %6118 = vmatpush1.bf16.msra.mxu1 %v11258_v28  ;;  %v2967_v28 = vld [vmem:[#allocation20 + $0xc30] sm:$0xff] }
0x1f5d   :  { %6282 = vmatpush1.bf16.msra.mxu0 %v11260_v54  ;;  %6119 = vmatprep.subr.bf16.mxu1 %v11267_v55  ;;  %v2964_v54 = vld [vmem:[#allocation20 + $0xc18] sm:$0xff]  ;;  %v11323_v45 = vcombine.high %v2963_v46, %v2967_v28 }
0x1f5e   :  { %6283 = vmatprep.subr.bf16.mxu0 %v11269_v60  ;;  %v2968_v55 = vld [vmem:[#allocation20 + $0xc38] sm:$0xff]  ;;  %v11314_v60 = vcombine.low %v2955_v27, %v2959_v33  ;;  %v3011_v33 = vld [vmem:[#allocation20 + $0xd90] sm:$0xff] }
0x1f5f   :  { %v11325_v18 = vcombine.high %v2964_v54, %v2968_v55  ;;  %v11324_v37 = vcombine.low %v2964_v54, %v2968_v55  ;;  %v3019_v54 = vld [vmem:[#allocation20 + $0xdd0] sm:$0xff] }
0x1f60   :  { %6120 = vmatpush1.bf16.msra.mxu1 %v11266_v43  ;;  %v2975_v43 = vld [vmem:[#allocation20 + $0xc70] sm:$0xff] }
0x1f61   :  { %6284 = vmatpush1.bf16.msra.mxu0 %v11268_v11  ;;  %6121 = vmatprep.subr.bf16.mxu1 %v11275_v17  ;;  %v11322_v11 = vcombine.low %v2963_v46, %v2967_v28  ;;  %v2972_v17 = vld [vmem:[#allocation20 + $0xc58] sm:$0xff]  ;;  %v11331_v3 = vcombine.high %v2971_v1, %v2975_v43  ;;  %v3023_v55 = vld [vmem:[#allocation20 + $0xdf0] sm:$0xff] }
0x1f62   :  { %6285 = vmatprep.subr.bf16.mxu0 %v11277_v48  ;;  %v2976_v48 = vld [vmem:[#allocation20 + $0xc78] sm:$0xff] }
0x1f63   :  { %v11332_v50 = vcombine.low %v2972_v17, %v2976_v48 }
0x1f64   :  { %6122 = vmatpush1.bf16.msra.mxu1 %v11274_v6  ;;  %v11333_v6 = vcombine.high %v2972_v17, %v2976_v48 }
0x1f65   :  { %6286 = vmatpush1.bf16.msra.mxu0 %v11276_v29  ;;  %6123 = vmatprep.subr.bf16.mxu1 %v11283_v39  ;;  %v2980_v29 = vld [vmem:[#allocation20 + $0xc98] sm:$0xff] }
0x1f66   :  { %6287 = vmatprep.subr.bf16.mxu0 %v11285_v56  ;;  %v2984_v39 = vld [vmem:[#allocation20 + $0xcb8] sm:$0xff]  ;;  %v11330_v56 = vcombine.low %v2971_v1, %v2975_v43 }
0x1f67   :  { %v11341_v0 = vcombine.high %v2980_v29, %v2984_v39 }
0x1f68   :  { %6124 = vmatpush1.bf16.msra.mxu1 %v11282_v7  ;;  %v2991_v7 = vld [vmem:[#allocation20 + $0xcf0] sm:$0xff] }
0x1f69   :  { %6288 = vmatpush1.bf16.msra.mxu0 %v11284_v53  ;;  %6125 = vmatprep.subr.bf16.mxu1 %v11291_v26  ;;  %v2988_v53 = vld [vmem:[#allocation20 + $0xcd8] sm:$0xff]  ;;  %v11347_v10 = vcombine.high %v2987_v47, %v2991_v7 }
0x1f6a   :  { %6289 = vmatprep.subr.bf16.mxu0 %v11293_v8  ;;  %v2992_v26 = vld [vmem:[#allocation20 + $0xcf8] sm:$0xff]  ;;  %v11338_v8 = vcombine.low %v2979_v4, %v2983_v52 }
0x1f6b   :  { %v11349_v49 = vcombine.high %v2988_v53, %v2992_v26 }
0x1f6c   :  { %6126 = vmatpush1.bf16.msra.mxu1 %v11290_v23  ;;  %v2996_v23 = vld [vmem:[#allocation20 + $0xd18] sm:$0xff] }
0x1f6d   :  { %6290 = vmatpush1.bf16.msra.mxu0 %v11292_v12  ;;  %6127 = vmatprep.subr.bf16.mxu1 %v11299_v21  ;;  %v3000_v12 = vld [vmem:[#allocation20 + $0xd38] sm:$0xff]  ;;  %v11348_v21 = vcombine.low %v2988_v53, %v2992_v26  ;;  %v3039_v53 = vld [vmem:[#allocation20 + $0xe70] sm:$0xff] }
0x1f6e   :  { %6291 = vmatprep.subr.bf16.mxu0 %v11301_v62  ;;  %v11355_v62 = vcombine.high %v2995_v14, %v2999_v15  ;;  %v11357_v51 = vcombine.high %v2996_v23, %v3000_v12  ;;  %v3036_v26 = vld [vmem:[#allocation20 + $0xe58] sm:$0xff] }
0x1f70   :  { %6128 = vmatpush1.bf16.msra.mxu1 %v11298_v24  ;;  %v3008_v24 = vld [vmem:[#allocation20 + $0xd78] sm:$0xff] }
0x1f71   :  { %6292 = vmatpush1.bf16.msra.mxu0 %v11300_v5  ;;  %6129 = vmatprep.subr.bf16.mxu1 %v11307_v31  ;;  %v11354_v5 = vcombine.low %v2995_v14, %v2999_v15  ;;  %v11356_v31 = vcombine.low %v2996_v23, %v3000_v12  ;;  %v11365_v27 = vcombine.high %v3004_v30, %v3008_v24  ;;  %v3043_v15 = vld [vmem:[#allocation20 + $0xe90] sm:$0xff]  ;;  %v3044_v12 = vld [vmem:[#allocation20 + $0xe98] sm:$0xff] }
0x1f72   :  { %6293 = vmatprep.subr.bf16.mxu0 %v11309_v13  ;;  %v11363_v13 = vcombine.high %v3003_v63, %v3007_v9  ;;  %v3047_v23 = vld [vmem:[#allocation20 + $0xeb0] sm:$0xff] }
0x1f74   :  { %6130 = vmatpush1.bf16.msra.mxu1 %v11306_v35  ;;  %v3016_v35 = vld [vmem:[#allocation20 + $0xdb8] sm:$0xff] }
0x1f75   :  { %6294 = vmatpush1.bf16.msra.mxu0 %v11308_v34  ;;  %6131 = vmatprep.subr.bf16.mxu1 %v11315_v44  ;;  %v11362_v34 = vcombine.low %v3003_v63, %v3007_v9  ;;  %v11364_v44 = vcombine.low %v3004_v30, %v3008_v24  ;;  %v11373_v28 = vcombine.high %v3012_v40, %v3016_v35  ;;  %v3051_v9 = vld [vmem:[#allocation20 + $0xed0] sm:$0xff]  ;;  %v3052_v24 = vld [vmem:[#allocation20 + $0xed8] sm:$0xff] }
0x1f76   :  { %6295 = vmatprep.subr.bf16.mxu0 %v11317_v58  ;;  %v11371_v58 = vcombine.high %v3011_v33, %v3015_v16  ;;  %v3055_v30 = vld [vmem:[#allocation20 + $0xef0] sm:$0xff] }
0x1f78   :  { %6132 = vmatpush1.bf16.msra.mxu1 %v11314_v60 }
0x1f79   :  { %6296 = vmatpush1.bf16.msra.mxu0 %v11316_v36  ;;  %6142 = vmatprep.subr.bf16.mxu1 %v11323_v45  ;;  %v3020_v45 = vld [vmem:[#allocation20 + $0xdd8] sm:$0xff] }
0x1f7a   :  { %6306 = vmatprep.subr.bf16.mxu0 %v11325_v18  ;;  %v3024_v18 = vld [vmem:[#allocation20 + $0xdf8] sm:$0xff] }
0x1f7b   :  { %6134 = vmatmul.mubr.bf16.vlgmr.msra.gmra.mrb[60].mxu1 %v14219_v25  ;;  %v11381_v52 = vcombine.high %v3020_v45, %v3024_v18 }
0x1f7c   :  { %6298 = vmatmul.mubr.bf16.vlgmr.msra.gmra.mrb[64].mxu0 %v14219_v25  ;;  %6143 = vmatpush1.bf16.msra.mxu1 %v11322_v11  ;;  %v11340_v25 = vcombine.low %v2980_v29, %v2984_v39  ;;  %v11370_v11 = vcombine.low %v3011_v33, %v3015_v16  ;;  %v3031_v29 = vld [vmem:[#allocation20 + $0xe30] sm:$0xff]  ;;  %v3028_v39 = vld [vmem:[#allocation20 + $0xe18] sm:$0xff] }
0x1f7d   :  { %6174 = vmatprep.mubr.bf16.mxu1 %v14221_v22  ;;  %6307 = vmatpush1.bf16.msra.mxu0 %v11324_v37  ;;  %v11372_v37 = vcombine.low %v3012_v40, %v3016_v35  ;;  %v3059_v16 = vld [vmem:[#allocation20 + $0xf10] sm:$0xff]  ;;  %v14258_v35 = vld [vmem:[#allocation22] sm:$0xff] }
0x1f7e   :  { %6338 = vmatprep.mubr.bf16.mxu0 %v14221_v22  ;;  %6144 = vmatprep.subr.bf16.mxu1 %v11331_v3  ;;  %v11346_v22 = vcombine.low %v2987_v47, %v2991_v7  ;;  %v11379_v3 = vcombine.high %v3019_v54, %v3023_v55  ;;  %v3035_v7 = vld [vmem:[#allocation20 + $0xe50] sm:$0xff] }
0x1f7f   :  { %6308 = vmatprep.subr.bf16.mxu0 %v11333_v6  ;;  %v3027_v6 = vld [vmem:[#allocation20 + $0xe10] sm:$0xff] }
0x1f80   :  { %6145 = vmatpush1.bf16.msra.mxu1 %v11330_v56  ;;  %v3032_v56 = vld [vmem:[#allocation20 + $0xe38] sm:$0xff]  ;;  %v3063_v40 = vld [vmem:[#allocation20 + $0xf30] sm:$0xff] }
0x1f81   :  { %6309 = vmatpush1.bf16.msra.mxu0 %v11332_v50  ;;  %6146 = vmatprep.subr.bf16.mxu1 %v11339_v42  ;;  %v11378_v50 = vcombine.low %v3019_v54, %v3023_v55  ;;  %v11380_v42 = vcombine.low %v3020_v45, %v3024_v18  ;;  %v11389_v47 = vcombine.high %v3028_v39, %v3032_v56  ;;  %v3067_v18 = vld [vmem:[#allocation20 + $0xf50] sm:$0xff] }
0x1f82   :  { %6310 = vmatprep.subr.bf16.mxu0 %v11341_v0  ;;  %v11387_v0 = vcombine.high %v3027_v6, %v3031_v29  ;;  %v11419_v54 = vcombine.high %v3059_v16, %v3063_v40  ;;  %v3098_v55 = vrot.slane %v14258_v35, %v14154_v57 }
0x1f84   :  { %6147 = vmatpush1.bf16.msra.mxu1 %v11338_v8  ;;  %v3040_v8 = vld [vmem:[#allocation20 + $0xe78] sm:$0xff] }
0x1f85   :  { %6311 = vmatpush1.bf16.msra.mxu0 %v11340_v25  ;;  %6148 = vmatprep.subr.bf16.mxu1 %v11347_v10  ;;  %v11386_v25 = vcombine.low %v3027_v6, %v3031_v29  ;;  %v11388_v10 = vcombine.low %v3028_v39, %v3032_v56  ;;  %v11397_v14 = vcombine.high %v3036_v26, %v3040_v8  ;;  %v3075_v6 = vld [vmem:[#allocation20 + $0xf90] sm:$0xff]  ;;  %v3076_v39 = vld [vmem:[#allocation20 + $0xf98] sm:$0xff] }
0x1f86   :  { %6312 = vmatprep.subr.bf16.mxu0 %v11349_v49  ;;  %v11395_v49 = vcombine.high %v3035_v7, %v3039_v53  ;;  %v3079_v29 = vld [vmem:[#allocation20 + $0xfb0] sm:$0xff]  ;;  %v3080_v56 = vld [vmem:[#allocation20 + $0xfb8] sm:$0xff] }
0x1f88   :  { %6149 = vmatpush1.bf16.msra.mxu1 %v11346_v22  ;;  %v3048_v22 = vld [vmem:[#allocation20 + $0xeb8] sm:$0xff] }
0x1f89   :  { %6313 = vmatpush1.bf16.msra.mxu0 %v11348_v21  ;;  %6150 = vmatprep.subr.bf16.mxu1 %v11355_v62  ;;  %v11394_v21 = vcombine.low %v3035_v7, %v3039_v53  ;;  %v11396_v62 = vcombine.low %v3036_v26, %v3040_v8  ;;  %v11405_v63 = vcombine.high %v3044_v12, %v3048_v22  ;;  %v3083_v7 = vld [vmem:[#allocation20 + $0xfd0] sm:$0xff]  ;;  %v3084_v26 = vld [vmem:[#allocation20 + $0xfd8] sm:$0xff] }
0x1f8a   :  { %6314 = vmatprep.subr.bf16.mxu0 %v11357_v51  ;;  %v11403_v51 = vcombine.high %v3043_v15, %v3047_v23  ;;  %v3087_v53 = vld [vmem:[#allocation20 + $0xff0] sm:$0xff]  ;;  %v3088_v8 = vld [vmem:[#allocation20 + $0xff8] sm:$0xff] }
0x1f8c   :  { %6151 = vmatpush1.bf16.msra.mxu1 %v11354_v5  ;;  %v3056_v5 = vld [vmem:[#allocation20 + $0xef8] sm:$0xff] }
0x1f8d   :  { %6315 = vmatpush1.bf16.msra.mxu0 %v11356_v31  ;;  %6152 = vmatprep.subr.bf16.mxu1 %v11363_v13  ;;  %v11402_v31 = vcombine.low %v3043_v15, %v3047_v23  ;;  %v11404_v13 = vcombine.low %v3044_v12, %v3048_v22  ;;  %v11413_v33 = vcombine.high %v3052_v24, %v3056_v5  ;;  %v6367_v15 = vld [vmem:[#allocation23 + $0x20] sm:$0xff]  ;;  %v6364_v23 = vld [vmem:[#allocation23 + $0x8] sm:$0xff] }
0x1f8e   :  { %v14250_v46 = vpop.f32.mrb[56].mxu1  ;;  %6316 = vmatprep.subr.bf16.mxu0 %v11365_v27  ;;  %v11411_v27 = vcombine.high %v3051_v9, %v3055_v30  ;;  %v6368_v12 = vld [vmem:[#allocation23 + $0x28] sm:$0xff]  ;;  %v11442_v22 = vcombine.low %v3083_v7, %v3087_v53 }
0x1f8f   :  { %v14252_v60 = vpop.f32.mrb[60].mxu0  ;;  %v14254_v36 = vpop.f32.mrb[57].mxu1 }
0x1f90   :  { %v14256_v1 = vpop.f32.mrb[61].mxu0  ;;  %v5852_v43 = vpop.f32.mrb[58].mxu1  ;;  %6153 = vmatpush1.bf16.msra.mxu1 %v11362_v34  ;;  %v3060_v34 = vld [vmem:[#allocation20 + $0xf18] sm:$0xff] }
0x1f91   :  { %v6016_v17 = vpop.f32.mrb[62].mxu0  ;;  %6317 = vmatpush1.bf16.msra.mxu0 %v11364_v44  ;;  %v5853_v48 = vpop.f32.mrb[59].mxu1  ;;  %6154 = vmatprep.subr.bf16.mxu1 %v11371_v58  ;;  %v3064_v44 = vld [vmem:[#allocation20 + $0xf38] sm:$0xff]  ;;  %v11410_v58 = vcombine.low %v3051_v9, %v3055_v30  ;;  %v3071_v43 = vld [vmem:[#allocation20 + $0xf70] sm:$0xff]  ;;  %v6375_v9 = vld [vmem:[#allocation23 + $0x60] sm:$0xff] }
0x1f92   :  { %v6017_v4 = vpop.f32.mrb[63].mxu0  ;;  %6318 = vmatprep.subr.bf16.mxu0 %v11373_v28  ;;  %v11412_v28 = vcombine.low %v3052_v24, %v3056_v5  ;;  %v11421_v45 = vcombine.high %v3060_v34, %v3064_v44  ;;  %v3072_v17 = vld [vmem:[#allocation20 + $0xf78] sm:$0xff]  ;;  %v11418_v48 = vcombine.low %v3059_v16, %v3063_v40  ;;  %v6372_v5 = vld [vmem:[#allocation23 + $0x48] sm:$0xff]  ;;  %v6383_v16 = vld [vmem:[#allocation23 + $0xa0] sm:$0xff] }
0x1f93   :  { %v12480_v4 = vadd.f32 %v14254_v36, %v3098_v55  ;;  %v11434_v36 = vcombine.low %v3075_v6, %v3079_v29 }
0x1f94   :  { %6155 = vmatpush1.bf16.msra.mxu1 %v11370_v11  ;;  %v3068_v11 = vld [vmem:[#allocation20 + $0xf58] sm:$0xff] }
0x1f95   :  { %6319 = vmatpush1.bf16.msra.mxu0 %v11372_v37  ;;  %6156 = vmatprep.subr.bf16.mxu1 %v11379_v3  ;;  %v11420_v37 = vcombine.low %v3060_v34, %v3064_v44  ;;  %v11427_v3 = vcombine.high %v3067_v18, %v3071_v43  ;;  %12906 = vtanh.f32 %v12480_v4  ;;  %v6380_v44 = vld [vmem:[#allocation23 + $0x88] sm:$0xff]  ;;  %v6395_v4 = vld [vmem:[#allocation23 + $0x100] sm:$0xff] }
0x1f96   :  { %6320 = vmatprep.subr.bf16.mxu0 %v11381_v52  ;;  %v11429_v52 = vcombine.high %v3068_v11, %v3072_v17 }
0x1f98   :  { %6157 = vmatpush1.bf16.msra.mxu1 %v11378_v50  ;;  %v11426_v50 = vcombine.low %v3067_v18, %v3071_v43  ;;  %v6387_v18 = vld [vmem:[#allocation23 + $0xc0] sm:$0xff] }
0x1f99   :  { %6321 = vmatpush1.bf16.msra.mxu0 %v11380_v42  ;;  %6158 = vmatprep.subr.bf16.mxu1 %v11387_v0  ;;  %v11428_v42 = vcombine.low %v3068_v11, %v3072_v17  ;;  %v11435_v0 = vcombine.high %v3075_v6, %v3079_v29  ;;  %v6391_v43 = vld [vmem:[#allocation23 + $0xe0] sm:$0xff]  ;;  %v6388_v11 = vld [vmem:[#allocation23 + $0xc8] sm:$0xff] }
0x1f9a   :  { %6322 = vmatprep.subr.bf16.mxu0 %v11389_v47  ;;  %v11437_v47 = vcombine.high %v3076_v39, %v3080_v56  ;;  %v6392_v17 = vld [vmem:[#allocation23 + $0xe8] sm:$0xff] }
0x1f9b   :  { %v6396_v6 = vld [vmem:[#allocation23 + $0x108] sm:$0xff] }
0x1f9c   :  { %6159 = vmatpush1.bf16.msra.mxu1 %v11386_v25  ;;  %v11436_v25 = vcombine.low %v3076_v39, %v3080_v56  ;;  %v6400_v29 = vld [vmem:[#allocation23 + $0x128] sm:$0xff]  ;;  %v11470_v39 = vcombine.low %v6387_v18, %v6391_v43  ;;  %v11472_v56 = vcombine.low %v6388_v11, %v6392_v17 }
0x1f9d   :  { %6323 = vmatpush1.bf16.msra.mxu0 %v11388_v10  ;;  %6160 = vmatprep.subr.bf16.mxu1 %v11395_v49  ;;  %v11443_v10 = vcombine.high %v3083_v7, %v3087_v53  ;;  %v11445_v49 = vcombine.high %v3084_v26, %v3088_v8  ;;  %v6404_v7 = vld [vmem:[#allocation23 + $0x148] sm:$0xff] }
0x1f9e   :  { %6324 = vmatprep.subr.bf16.mxu0 %v11397_v14  ;;  %v6363_v14 = vld [vmem:[#allocation23] sm:$0xff]  ;;  %v6408_v53 = vld [vmem:[#allocation23 + $0x168] sm:$0xff] }
0x1f9f   :  { %v12907_v30 = vpop.eup %12906  ;;  %v11446_v24 = vcombine.low %v6363_v14, %v6367_v15 }
0x1fa0   :  { %6161 = vmatpush1.bf16.msra.mxu1 %v11394_v21  ;;  %v11444_v21 = vcombine.low %v3084_v26, %v3088_v8  ;;  %v14263_v40 = vpack.c.bf16 %v12907_v30, %v12907_v30  ;;  %v11480_v8 = vcombine.low %v6396_v6, %v6400_v29 }
0x1fa1   :  { %6325 = vmatpush1.bf16.msra.mxu0 %v11396_v62  ;;  %6162 = vmatprep.subr.bf16.mxu1 %v11403_v51  ;;  %v11447_v62 = vcombine.high %v6363_v14, %v6367_v15  ;;  %v11449_v51 = vcombine.high %v6364_v23, %v6368_v12  ;;  %v6412_v14 = vld [vmem:[#allocation23 + $0x188] sm:$0xff] }
0x1fa2   :  { %6326 = vmatprep.subr.bf16.mxu0 %v11405_v63  ;;  %v6371_v63 = vld [vmem:[#allocation23 + $0x40] sm:$0xff]  ;;  %v6416_v15 = vld [vmem:[#allocation23 + $0x1a8] sm:$0xff] }
0x1fa4   :  { %6163 = vmatpush1.bf16.msra.mxu1 %v11402_v31  ;;  %v6376_v31 = vld [vmem:[#allocation23 + $0x68] sm:$0xff] }
0x1fa5   :  { %6327 = vmatpush1.bf16.msra.mxu0 %v11404_v13  ;;  %6164 = vmatprep.subr.bf16.mxu1 %v11411_v27  ;;  %v11448_v13 = vcombine.low %v6364_v23, %v6368_v12  ;;  %v11455_v27 = vcombine.high %v6371_v63, %v6375_v9  ;;  %v11457_v34 = vcombine.high %v6372_v5, %v6376_v31 }
0x1fa6   :  { %6328 = vmatprep.subr.bf16.mxu0 %v11413_v33  ;;  %v6379_v33 = vld [vmem:[#allocation23 + $0x80] sm:$0xff]  ;;  %v11488_v12 = vcombine.low %v6404_v7, %v6408_v53 }
0x1fa7   :  { %v11463_v55 = vcombine.high %v6379_v33, %v6383_v16 }
0x1fa8   :  { %6165 = vmatpush1.bf16.msra.mxu1 %v11410_v58  ;;  %v6384_v58 = vld [vmem:[#allocation23 + $0xa8] sm:$0xff] }
0x1fa9   :  { %6329 = vmatpush1.bf16.msra.mxu0 %v11412_v28  ;;  %6166 = vmatprep.subr.bf16.mxu1 %v11419_v54  ;;  %v11454_v28 = vcombine.low %v6371_v63, %v6375_v9  ;;  %v11456_v54 = vcombine.low %v6372_v5, %v6376_v31  ;;  %v6420_v63 = vld [vmem:[#allocation23 + $0x1c8] sm:$0xff] }
0x1faa   :  { %6330 = vmatprep.subr.bf16.mxu0 %v11421_v45  ;;  %v11465_v45 = vcombine.high %v6380_v44, %v6384_v58  ;;  %v6424_v9 = vld [vmem:[#allocation23 + $0x1e8] sm:$0xff] }
0x1fab   :  { %v11505_v31 = vcombine.high %v6420_v63, %v6424_v9 }
0x1fac   :  { %6167 = vmatpush1.bf16.msra.mxu1 %v11418_v48  ;;  %v11462_v48 = vcombine.low %v6379_v33, %v6383_v16  ;;  %v6428_v33 = vld [vmem:[#allocation23 + $0x208] sm:$0xff] }
0x1fad   :  { %6331 = vmatpush1.bf16.msra.mxu0 %v11420_v37  ;;  %6168 = vmatprep.subr.bf16.mxu1 %v11427_v3  ;;  %v11471_v37 = vcombine.high %v6387_v18, %v6391_v43  ;;  %v11473_v3 = vcombine.high %v6388_v11, %v6392_v17  ;;  %v6432_v16 = vld [vmem:[#allocation23 + $0x228] sm:$0xff] }
0x1fae   :  { %6332 = vmatprep.subr.bf16.mxu0 %v11429_v52  ;;  %v6399_v52 = vld [vmem:[#allocation23 + $0x120] sm:$0xff]  ;;  %v6440_v18 = vld [vmem:[#allocation23 + $0x268] sm:$0xff]  ;;  %v11512_v11 = vcombine.low %v6428_v33, %v6432_v16 }
0x1faf   :  { %v11478_v26 = vcombine.low %v6395_v4, %v6399_v52 }
0x1fb0   :  { %6169 = vmatpush1.bf16.msra.mxu1 %v11426_v50  ;;  %v11479_v50 = vcombine.high %v6395_v4, %v6399_v52  ;;  %v6448_v4 = vld [vmem:[#allocation23 + $0x2a8] sm:$0xff] }
0x1fb1   :  { %6333 = vmatpush1.bf16.msra.mxu0 %v11428_v42  ;;  %6170 = vmatprep.subr.bf16.mxu1 %v11435_v0  ;;  %v11481_v42 = vcombine.high %v6396_v6, %v6400_v29  ;;  %v6403_v0 = vld [vmem:[#allocation23 + $0x140] sm:$0xff] }
0x1fb2   :  { %6334 = vmatprep.subr.bf16.mxu0 %v11437_v47  ;;  %v6407_v47 = vld [vmem:[#allocation23 + $0x160] sm:$0xff] }
0x1fb3   :  { %v11486_v23 = vcombine.low %v6403_v0, %v6407_v47 }
0x1fb4   :  { %6171 = vmatpush1.bf16.msra.mxu1 %v11434_v36  ;;  %v11487_v36 = vcombine.high %v6403_v0, %v6407_v47  ;;  %v6456_v0 = vld [vmem:[#allocation23 + $0x2e8] sm:$0xff] }
0x1fb5   :  { %6335 = vmatpush1.bf16.msra.mxu0 %v11436_v25  ;;  %6172 = vmatprep.subr.bf16.mxu1 %v11443_v10  ;;  %v11489_v25 = vcombine.high %v6404_v7, %v6408_v53  ;;  %v6411_v10 = vld [vmem:[#allocation23 + $0x180] sm:$0xff] }
0x1fb6   :  { %6336 = vmatprep.subr.bf16.mxu0 %v11445_v49  ;;  %v6415_v49 = vld [vmem:[#allocation23 + $0x1a0] sm:$0xff] }
0x1fb7   :  { %v11494_v30 = vcombine.low %v6411_v10, %v6415_v49 }
0x1fb8   :  { %6173 = vmatpush1.bf16.msra.mxu1 %v11442_v22  ;;  %v11495_v22 = vcombine.high %v6411_v10, %v6415_v49  ;;  %v6464_v10 = vld [vmem:[#allocation23 + $0x328] sm:$0xff]  ;;  %v3094_v49 = vrot.slane %v14258_v35, %v14149_v20 }
0x1fb9   :  { %6337 = vmatpush1.bf16.msra.mxu0 %v11444_v21  ;;  %9477 = vmatprep.subr.bf16.mxu1 %v11447_v62  ;;  %v11497_v21 = vcombine.high %v6412_v14, %v6416_v15  ;;  %v6419_v62 = vld [vmem:[#allocation23 + $0x1c0] sm:$0xff] }
0x1fba   :  { %9641 = vmatprep.subr.bf16.mxu0 %v11449_v51  ;;  %v6423_v51 = vld [vmem:[#allocation23 + $0x1e0] sm:$0xff] }
0x1fbb   :  { %6175 = vmatmul.mubr.bf16.vlgmr.msra.gmra.mrb[60].mxu1 %v14232_v2  ;;  %v11503_v5 = vcombine.high %v6419_v62, %v6423_v51 }
0x1fbc   :  { %6339 = vmatmul.mubr.bf16.vlgmr.msra.gmra.mrb[64].mxu0 %v14232_v2  ;;  %9478 = vmatpush1.bf16.msra.mxu1 %v11446_v24  ;;  %v11464_v2 = vcombine.low %v6380_v44, %v6384_v58  ;;  %v11496_v24 = vcombine.low %v6412_v14, %v6416_v15  ;;  %v11504_v44 = vcombine.low %v6420_v63, %v6424_v9  ;;  %v6472_v63 = vld [vmem:[#allocation23 + $0x368] sm:$0xff] }
0x1fbd   :  { %9509 = vmatprep.mubr.bf16.mxu1 %v14263_v40  ;;  %9642 = vmatpush1.bf16.msra.mxu0 %v11448_v13  ;;  %v6427_v13 = vld [vmem:[#allocation23 + $0x200] sm:$0xff]  ;;  %v12479_v9 = vadd.f32 %v14250_v46, %v3094_v49 }
0x1fbe   :  { %9673 = vmatprep.mubr.bf16.mxu0 %v14263_v40  ;;  %9479 = vmatprep.subr.bf16.mxu1 %v11455_v27  ;;  %v6431_v27 = vld [vmem:[#allocation23 + $0x220] sm:$0xff] }
0x1fbf   :  { %9643 = vmatprep.subr.bf16.mxu0 %v11457_v34  ;;  %v11502_v34 = vcombine.low %v6419_v62, %v6423_v51  ;;  %v11511_v58 = vcombine.high %v6427_v13, %v6431_v27  ;;  %v11510_v43 = vcombine.low %v6427_v13, %v6431_v27  ;;  %v6471_v62 = vld [vmem:[#allocation23 + $0x360] sm:$0xff]  ;;  %v6468_v51 = vld [vmem:[#allocation23 + $0x348] sm:$0xff]  ;;  %12908 = vtanh.f32 %v12479_v9 }
0x1fc0   :  { %9480 = vmatpush1.bf16.msra.mxu1 %v11454_v28  ;;  %v11513_v28 = vcombine.high %v6428_v33, %v6432_v16  ;;  %v11553_v13 = vcombine.high %v6468_v51, %v6472_v63  ;;  %v6475_v27 = vld [vmem:[#allocation23 + $0x380] sm:$0xff]  ;;  %v6476_v16 = vld [vmem:[#allocation23 + $0x388] sm:$0xff]  ;;  %v11552_v46 = vcombine.low %v6468_v51, %v6472_v63 }
0x1fc1   :  { %9644 = vmatpush1.bf16.msra.mxu0 %v11456_v54  ;;  %9481 = vmatprep.subr.bf16.mxu1 %v11463_v55  ;;  %v6435_v54 = vld [vmem:[#allocation23 + $0x240] sm:$0xff]  ;;  %v6516_v63 = vld [vmem:[#allocation23 + $0x4c8] sm:$0xff] }
0x1fc2   :  { %9645 = vmatprep.subr.bf16.mxu0 %v11465_v45  ;;  %v6439_v55 = vld [vmem:[#allocation23 + $0x260] sm:$0xff]  ;;  %v6436_v45 = vld [vmem:[#allocation23 + $0x248] sm:$0xff] }
0x1fc3   :  { %v11519_v17 = vcombine.high %v6435_v54, %v6439_v55  ;;  %v11518_v52 = vcombine.low %v6435_v54, %v6439_v55  ;;  %v11520_v6 = vcombine.low %v6436_v45, %v6440_v18  ;;  %v6479_v33 = vld [vmem:[#allocation23 + $0x3a0] sm:$0xff]  ;;  %v6520_v9 = vld [vmem:[#allocation23 + $0x4e8] sm:$0xff] }
0x1fc4   :  { %9482 = vmatpush1.bf16.msra.mxu1 %v11462_v48  ;;  %v11521_v48 = vcombine.high %v6436_v45, %v6440_v18  ;;  %v6483_v54 = vld [vmem:[#allocation23 + $0x3c0] sm:$0xff]  ;;  %v6484_v45 = vld [vmem:[#allocation23 + $0x3c8] sm:$0xff]  ;;  %v11558_v18 = vcombine.low %v6475_v27, %v6479_v33 }
0x1fc5   :  { %9646 = vmatpush1.bf16.msra.mxu0 %v11464_v2  ;;  %9483 = vmatprep.subr.bf16.mxu1 %v11471_v37  ;;  %v6443_v2 = vld [vmem:[#allocation23 + $0x280] sm:$0xff] }
0x1fc6   :  { %9647 = vmatprep.subr.bf16.mxu0 %v11473_v3  ;;  %v6447_v37 = vld [vmem:[#allocation23 + $0x2a0] sm:$0xff]  ;;  %v6444_v3 = vld [vmem:[#allocation23 + $0x288] sm:$0xff] }
0x1fc7   :  { %v11527_v29 = vcombine.high %v6443_v2, %v6447_v37  ;;  %v11526_v47 = vcombine.low %v6443_v2, %v6447_v37  ;;  %v11528_v7 = vcombine.low %v6444_v3, %v6448_v4  ;;  %v6487_v55 = vld [vmem:[#allocation23 + $0x3e0] sm:$0xff]  ;;  %v6492_v37 = vld [vmem:[#allocation23 + $0x408] sm:$0xff] }
0x1fc8   :  { %9484 = vmatpush1.bf16.msra.mxu1 %v11470_v39  ;;  %v11529_v39 = vcombine.high %v6444_v3, %v6448_v4  ;;  %v6495_v2 = vld [vmem:[#allocation23 + $0x420] sm:$0xff]  ;;  %v6496_v3 = vld [vmem:[#allocation23 + $0x428] sm:$0xff]  ;;  %v11566_v4 = vcombine.low %v6483_v54, %v6487_v55 }
0x1fc9   :  { %9648 = vmatpush1.bf16.msra.mxu0 %v11472_v56  ;;  %9485 = vmatprep.subr.bf16.mxu1 %v11479_v50  ;;  %v6451_v56 = vld [vmem:[#allocation23 + $0x2c0] sm:$0xff] }
0x1fca   :  { %9649 = vmatprep.subr.bf16.mxu0 %v11481_v42  ;;  %v6455_v50 = vld [vmem:[#allocation23 + $0x2e0] sm:$0xff]  ;;  %v6452_v42 = vld [vmem:[#allocation23 + $0x2c8] sm:$0xff] }
0x1fcb   :  { %v11535_v53 = vcombine.high %v6451_v56, %v6455_v50  ;;  %v11534_v14 = vcombine.low %v6451_v56, %v6455_v50  ;;  %v11536_v15 = vcombine.low %v6452_v42, %v6456_v0  ;;  %v6499_v56 = vld [vmem:[#allocation23 + $0x440] sm:$0xff] }
0x1fcc   :  { %9486 = vmatpush1.bf16.msra.mxu1 %v11478_v26  ;;  %v11537_v26 = vcombine.high %v6452_v42, %v6456_v0  ;;  %v6503_v50 = vld [vmem:[#allocation23 + $0x460] sm:$0xff] }
0x1fcd   :  { %9650 = vmatpush1.bf16.msra.mxu0 %v11480_v8  ;;  %9487 = vmatprep.subr.bf16.mxu1 %v11487_v36  ;;  %v6459_v8 = vld [vmem:[#allocation23 + $0x300] sm:$0xff] }
0x1fce   :  { %9651 = vmatprep.subr.bf16.mxu0 %v11489_v25  ;;  %v6463_v36 = vld [vmem:[#allocation23 + $0x320] sm:$0xff]  ;;  %v6460_v25 = vld [vmem:[#allocation23 + $0x308] sm:$0xff] }
0x1fcf   :  { %v6519_v51 = vld [vmem:[#allocation23 + $0x4e0] sm:$0xff] }
0x1fd0   :  { %9488 = vmatpush1.bf16.msra.mxu1 %v11486_v23  ;;  %v11543_v23 = vcombine.high %v6459_v8, %v6463_v36 }
0x1fd1   :  { %9652 = vmatpush1.bf16.msra.mxu0 %v11488_v12  ;;  %9489 = vmatprep.subr.bf16.mxu1 %v11495_v22  ;;  %v3106_v12 = vrot.slane %v14258_v35, %v14157_v38  ;;  %v11545_v22 = vcombine.high %v6460_v25, %v6464_v10 }
0x1fd2   :  { %9653 = vmatprep.subr.bf16.mxu0 %v11497_v21  ;;  %v6467_v21 = vld [vmem:[#allocation23 + $0x340] sm:$0xff] }
0x1fd4   :  { %9490 = vmatpush1.bf16.msra.mxu1 %v11494_v30  ;;  %v11542_v30 = vcombine.low %v6459_v8, %v6463_v36  ;;  %v11583_v8 = vcombine.high %v6499_v56, %v6503_v50  ;;  %v6507_v36 = vld [vmem:[#allocation23 + $0x480] sm:$0xff] }
0x1fd5   :  { %9654 = vmatpush1.bf16.msra.mxu0 %v11496_v24  ;;  %9491 = vmatprep.subr.bf16.mxu1 %v11503_v5  ;;  %v11544_v24 = vcombine.low %v6460_v25, %v6464_v10  ;;  %v11551_v5 = vcombine.high %v6467_v21, %v6471_v62  ;;  %v6511_v25 = vld [vmem:[#allocation23 + $0x4a0] sm:$0xff] }
0x1fd6   :  { %9655 = vmatprep.subr.bf16.mxu0 %v11505_v31  ;;  %v12482_v31 = vadd.f32 %v14256_v1, %v3106_v12  ;;  %v6488_v1 = vld [vmem:[#allocation23 + $0x3e8] sm:$0xff] }
0x1fd8   :  { %9492 = vmatpush1.bf16.msra.mxu1 %v11502_v34  ;;  %v6480_v34 = vld [vmem:[#allocation23 + $0x3a8] sm:$0xff]  ;;  %12910 = vtanh.f32 %v12482_v31  ;;  %v11601_v31 = vcombine.high %v6516_v63, %v6520_v9 }
0x1fd9   :  { %9656 = vmatpush1.bf16.msra.mxu0 %v11504_v44  ;;  %9493 = vmatprep.subr.bf16.mxu1 %v11511_v58  ;;  %v11550_v44 = vcombine.low %v6467_v21, %v6471_v62  ;;  %v11559_v58 = vcombine.high %v6475_v27, %v6479_v33  ;;  %v6515_v62 = vld [vmem:[#allocation23 + $0x4c0] sm:$0xff]  ;;  %v6524_v33 = vld [vmem:[#allocation23 + $0x508] sm:$0xff] }
0x1fda   :  { %9657 = vmatprep.subr.bf16.mxu0 %v11513_v28  ;;  %v11561_v28 = vcombine.high %v6476_v16, %v6480_v34  ;;  %v6527_v27 = vld [vmem:[#allocation23 + $0x520] sm:$0xff] }
0x1fdc   :  { %9494 = vmatpush1.bf16.msra.mxu1 %v11510_v43  ;;  %v11560_v43 = vcombine.low %v6476_v16, %v6480_v34  ;;  %v6528_v16 = vld [vmem:[#allocation23 + $0x528] sm:$0xff]  ;;  %v11598_v34 = vcombine.low %v6515_v62, %v6519_v51 }
0x1fdd   :  { %9658 = vmatpush1.bf16.msra.mxu0 %v11512_v11  ;;  %9495 = vmatprep.subr.bf16.mxu1 %v11519_v17  ;;  %v11567_v11 = vcombine.high %v6483_v54, %v6487_v55  ;;  %v11569_v17 = vcombine.high %v6484_v45, %v6488_v1  ;;  %v6535_v54 = vld [vmem:[#allocation23 + $0x560] sm:$0xff]  ;;  %v6532_v55 = vld [vmem:[#allocation23 + $0x548] sm:$0xff] }
0x1fde   :  { %9659 = vmatprep.subr.bf16.mxu0 %v11521_v48  ;;  %v6491_v48 = vld [vmem:[#allocation23 + $0x400] sm:$0xff] }
0x1fdf   :  { %v11574_v0 = vcombine.low %v6491_v48, %v6495_v2 }
0x1fe0   :  { %9496 = vmatpush1.bf16.msra.mxu1 %v11518_v52  ;;  %v11568_v52 = vcombine.low %v6484_v45, %v6488_v1  ;;  %v6536_v45 = vld [vmem:[#allocation23 + $0x568] sm:$0xff] }
0x1fe1   :  { %9660 = vmatpush1.bf16.msra.mxu0 %v11520_v6  ;;  %9497 = vmatprep.subr.bf16.mxu1 %v11527_v29  ;;  %v11575_v6 = vcombine.high %v6491_v48, %v6495_v2  ;;  %v12909_v29 = vpop.eup %12908  ;;  %v6543_v48 = vld [vmem:[#allocation23 + $0x5a0] sm:$0xff]  ;;  %v6540_v2 = vld [vmem:[#allocation23 + $0x588] sm:$0xff] }
0x1fe2   :  { %9661 = vmatprep.subr.bf16.mxu0 %v11529_v39  ;;  %v11577_v39 = vcombine.high %v6492_v37, %v6496_v3  ;;  %v12911_v42 = vpop.eup %12910 }
0x1fe3   :  { %v14277_v10 = vpack.c.bf16 %v12911_v42, %v12911_v42 }
0x1fe4   :  { %9498 = vmatpush1.bf16.msra.mxu1 %v11526_v47  ;;  %v6500_v47 = vld [vmem:[#allocation23 + $0x448] sm:$0xff] }
0x1fe5   :  { %9662 = vmatpush1.bf16.msra.mxu0 %v11528_v7  ;;  %9499 = vmatprep.subr.bf16.mxu1 %v11535_v53  ;;  %v6504_v7 = vld [vmem:[#allocation23 + $0x468] sm:$0xff]  ;;  %v14275_v53 = vpack.c.bf16 %v12909_v29, %v12909_v29  ;;  %v6547_v29 = vld [vmem:[#allocation23 + $0x5c0] sm:$0xff] }
0x1fe6   :  { %9663 = vmatprep.subr.bf16.mxu0 %v11537_v26  ;;  %v11576_v26 = vcombine.low %v6492_v37, %v6496_v3  ;;  %v11585_v49 = vcombine.high %v6500_v47, %v6504_v7  ;;  %v11584_v12 = vcombine.low %v6500_v47, %v6504_v7  ;;  %v6544_v37 = vld [vmem:[#allocation23 + $0x5a8] sm:$0xff] }
0x1fe8   :  { %9500 = vmatpush1.bf16.msra.mxu1 %v11534_v14  ;;  %v6508_v14 = vld [vmem:[#allocation23 + $0x488] sm:$0xff] }
0x1fe9   :  { %9664 = vmatpush1.bf16.msra.mxu0 %v11536_v15  ;;  %9501 = vmatprep.subr.bf16.mxu1 %v11543_v23  ;;  %v6512_v15 = vld [vmem:[#allocation23 + $0x4a8] sm:$0xff]  ;;  %v11582_v23 = vcombine.low %v6499_v56, %v6503_v50 }
0x1fea   :  { %9665 = vmatprep.subr.bf16.mxu0 %v11545_v22  ;;  %v11591_v22 = vcombine.high %v6507_v36, %v6511_v25  ;;  %v11593_v21 = vcombine.high %v6508_v14, %v6512_v15  ;;  %v6548_v56 = vld [vmem:[#allocation23 + $0x5c8] sm:$0xff] }
0x1feb   :  { %v6552_v50 = vld [vmem:[#allocation23 + $0x5e8] sm:$0xff] }
0x1fec   :  { %9502 = vmatpush1.bf16.msra.mxu1 %v11542_v30  ;;  %v11590_v30 = vcombine.low %v6507_v36, %v6511_v25  ;;  %v11633_v7 = vcombine.high %v6548_v56, %v6552_v50  ;;  %v6556_v36 = vld [vmem:[#allocation23 + $0x608] sm:$0xff] }
0x1fed   :  { %9666 = vmatpush1.bf16.msra.mxu0 %v11544_v24  ;;  %9503 = vmatprep.subr.bf16.mxu1 %v11551_v5  ;;  %v11592_v24 = vcombine.low %v6508_v14, %v6512_v15  ;;  %v11599_v5 = vcombine.high %v6515_v62, %v6519_v51  ;;  %v6560_v25 = vld [vmem:[#allocation23 + $0x628] sm:$0xff]  ;;  %v11632_v14 = vcombine.low %v6548_v56, %v6552_v50 }
0x1fee   :  { %9667 = vmatprep.subr.bf16.mxu0 %v11553_v13  ;;  %v6523_v13 = vld [vmem:[#allocation23 + $0x500] sm:$0xff]  ;;  %v6568_v62 = vld [vmem:[#allocation23 + $0x668] sm:$0xff] }
0x1fef   :  { %v11606_v1 = vcombine.low %v6523_v13, %v6527_v27 }
0x1ff0   :  { %9504 = vmatpush1.bf16.msra.mxu1 %v11550_v44  ;;  %v11600_v44 = vcombine.low %v6516_v63, %v6520_v9  ;;  %v11640_v63 = vcombine.low %v6556_v36, %v6560_v25 }
0x1ff1   :  { %9668 = vmatpush1.bf16.msra.mxu0 %v11552_v46  ;;  %9505 = vmatprep.subr.bf16.mxu1 %v11559_v58  ;;  %v11607_v46 = vcombine.high %v6523_v13, %v6527_v27  ;;  %v11609_v58 = vcombine.high %v6524_v33, %v6528_v16  ;;  %v6576_v13 = vld [vmem:[#allocation23 + $0x6a8] sm:$0xff] }
0x1ff2   :  { %9669 = vmatprep.subr.bf16.mxu0 %v11561_v28  ;;  %v6531_v28 = vld [vmem:[#allocation23 + $0x540] sm:$0xff] }
0x1ff3   :  { %v11614_v3 = vcombine.low %v6531_v28, %v6535_v54 }
0x1ff4   :  { %9506 = vmatpush1.bf16.msra.mxu1 %v11558_v18  ;;  %v11608_v18 = vcombine.low %v6524_v33, %v6528_v16 }
0x1ff5   :  { %9670 = vmatpush1.bf16.msra.mxu0 %v11560_v43  ;;  %9507 = vmatprep.subr.bf16.mxu1 %v11567_v11  ;;  %v11615_v43 = vcombine.high %v6531_v28, %v6535_v54  ;;  %v11617_v11 = vcombine.high %v6532_v55, %v6536_v45  ;;  %v6584_v28 = vld [vmem:[#allocation23 + $0x6e8] sm:$0xff] }
0x1ff6   :  { %9671 = vmatprep.subr.bf16.mxu0 %v11569_v17  ;;  %v6539_v17 = vld [vmem:[#allocation23 + $0x580] sm:$0xff] }
0x1ff7   :  { %v11622_v42 = vcombine.low %v6539_v17, %v6543_v48 }
0x1ff8   :  { %9508 = vmatpush1.bf16.msra.mxu1 %v11566_v4  ;;  %v11616_v4 = vcombine.low %v6532_v55, %v6536_v45 }
0x1ff9   :  { %9672 = vmatpush1.bf16.msra.mxu0 %v11568_v52  ;;  %9518 = vmatprep.subr.bf16.mxu1 %v11575_v6  ;;  %v11623_v52 = vcombine.high %v6539_v17, %v6543_v48  ;;  %v11625_v6 = vcombine.high %v6540_v2, %v6544_v37  ;;  %v6592_v17 = vld [vmem:[#allocation23 + $0x728] sm:$0xff]  ;;  %v3102_v48 = vrot.slane %v14258_v35, %v14188_v59 }
0x1ffa   :  { %9682 = vmatprep.subr.bf16.mxu0 %v11577_v39  ;;  %v6551_v39 = vld [vmem:[#allocation23 + $0x5e0] sm:$0xff] }
0x1ffb   :  { %9510 = vmatmul.mubr.bf16.vlgmr.msra.gmra.mrb[64].mxu1 %v14275_v53  ;;  %v11631_v47 = vcombine.high %v6547_v29, %v6551_v39  ;;  %v12481_v56 = vadd.f32 %v14252_v60, %v3102_v48 }
0x1ffc   :  { %9674 = vmatmul.mubr.bf16.vlgmr.msra.gmra.mrb[68].mxu0 %v14275_v53  ;;  %9519 = vmatpush1.bf16.msra.mxu1 %v11574_v0  ;;  %v11624_v0 = vcombine.low %v6540_v2, %v6544_v37 }
0x1ffd   :  { %9550 = vmatprep.mubr.bf16.mxu1 %v14277_v10  ;;  %9683 = vmatpush1.bf16.msra.mxu0 %v11576_v26  ;;  %v6555_v26 = vld [vmem:[#allocation23 + $0x600] sm:$0xff]  ;;  %12912 = vtanh.f32 %v12481_v56 }
0x1ffe   :  { %9714 = vmatprep.mubr.bf16.mxu0 %v14277_v10  ;;  %9520 = vmatprep.subr.bf16.mxu1 %v11583_v8  ;;  %v6559_v8 = vld [vmem:[#allocation23 + $0x620] sm:$0xff] }
0x1fff   :  { %9684 = vmatprep.subr.bf16.mxu0 %v11585_v49  ;;  %v11630_v49 = vcombine.low %v6547_v29, %v6551_v39  ;;  %v11639_v15 = vcombine.high %v6555_v26, %v6559_v8  ;;  %v11638_v51 = vcombine.low %v6555_v26, %v6559_v8  ;;  %v6596_v29 = vld [vmem:[#allocation23 + $0x748] sm:$0xff] }
0x2000   :  { %9521 = vmatpush1.bf16.msra.mxu1 %v11582_v23  ;;  %v11641_v23 = vcombine.high %v6556_v36, %v6560_v25  ;;  %v6600_v39 = vld [vmem:[#allocation23 + $0x768] sm:$0xff] }
0x2001   :  { %9685 = vmatpush1.bf16.msra.mxu0 %v11584_v12  ;;  %9522 = vmatprep.subr.bf16.mxu1 %v11591_v22  ;;  %v6563_v12 = vld [vmem:[#allocation23 + $0x640] sm:$0xff]  ;;  %v6604_v26 = vld [vmem:[#allocation23 + $0x788] sm:$0xff]  ;;  %v11680_v25 = vcombine.low %v6596_v29, %v6600_v39 }
0x2002   :  { %9686 = vmatprep.subr.bf16.mxu0 %v11593_v21  ;;  %v6567_v22 = vld [vmem:[#allocation23 + $0x660] sm:$0xff]  ;;  %v6564_v21 = vld [vmem:[#allocation23 + $0x648] sm:$0xff] }
0x2003   :  { %v11647_v9 = vcombine.high %v6563_v12, %v6567_v22  ;;  %v11646_v27 = vcombine.low %v6563_v12, %v6567_v22  ;;  %v11648_v33 = vcombine.low %v6564_v21, %v6568_v62  ;;  %v6608_v8 = vld [vmem:[#allocation23 + $0x7a8] sm:$0xff] }
0x2004   :  { %9523 = vmatpush1.bf16.msra.mxu1 %v11590_v30  ;;  %v11649_v30 = vcombine.high %v6564_v21, %v6568_v62  ;;  %v11689_v60 = vcombine.high %v6604_v26, %v6608_v8  ;;  %v6616_v12 = vld [vmem:[#allocation23 + $0x7e8] sm:$0xff]  ;;  %v11688_v21 = vcombine.low %v6604_v26, %v6608_v8 }
0x2005   :  { %9687 = vmatpush1.bf16.msra.mxu0 %v11592_v24  ;;  %9524 = vmatprep.subr.bf16.mxu1 %v11599_v5  ;;  %v6571_v24 = vld [vmem:[#allocation23 + $0x680] sm:$0xff] }
0x2006   :  { %9688 = vmatprep.subr.bf16.mxu0 %v11601_v31  ;;  %v6575_v5 = vld [vmem:[#allocation23 + $0x6a0] sm:$0xff]  ;;  %v6572_v31 = vld [vmem:[#allocation23 + $0x688] sm:$0xff] }
0x2007   :  { %v11655_v16 = vcombine.high %v6571_v24, %v6575_v5  ;;  %v11654_v54 = vcombine.low %v6571_v24, %v6575_v5  ;;  %v11656_v55 = vcombine.low %v6572_v31, %v6576_v13  ;;  %v6624_v24 = vld [vmem:[#allocation23 + $0x828] sm:$0xff] }
0x2008   :  { %9525 = vmatpush1.bf16.msra.mxu1 %v11598_v34  ;;  %v11657_v34 = vcombine.high %v6572_v31, %v6576_v13 }
0x2009   :  { %9689 = vmatpush1.bf16.msra.mxu0 %v11600_v44  ;;  %9526 = vmatprep.subr.bf16.mxu1 %v11607_v46  ;;  %v6579_v44 = vld [vmem:[#allocation23 + $0x6c0] sm:$0xff] }
0x200a   :  { %9690 = vmatprep.subr.bf16.mxu0 %v11609_v58  ;;  %v6583_v46 = vld [vmem:[#allocation23 + $0x6e0] sm:$0xff]  ;;  %v6580_v58 = vld [vmem:[#allocation23 + $0x6c8] sm:$0xff] }
0x200b   :  { %v11663_v45 = vcombine.high %v6579_v44, %v6583_v46  ;;  %v11662_v2 = vcombine.low %v6579_v44, %v6583_v46  ;;  %v11664_v37 = vcombine.low %v6580_v58, %v6584_v28  ;;  %v6628_v44 = vld [vmem:[#allocation23 + $0x848] sm:$0xff] }
0x200c   :  { %9527 = vmatpush1.bf16.msra.mxu1 %v11606_v1  ;;  %v11665_v1 = vcombine.high %v6580_v58, %v6584_v28  ;;  %v6632_v46 = vld [vmem:[#allocation23 + $0x868] sm:$0xff] }
0x200d   :  { %9691 = vmatpush1.bf16.msra.mxu0 %v11608_v18  ;;  %9528 = vmatprep.subr.bf16.mxu1 %v11615_v43  ;;  %v6587_v18 = vld [vmem:[#allocation23 + $0x700] sm:$0xff]  ;;  %v11712_v48 = vcombine.low %v6628_v44, %v6632_v46 }
0x200e   :  { %9692 = vmatprep.subr.bf16.mxu0 %v11617_v11  ;;  %v6591_v43 = vld [vmem:[#allocation23 + $0x720] sm:$0xff]  ;;  %v6588_v11 = vld [vmem:[#allocation23 + $0x708] sm:$0xff] }
0x200f   :  { %v11670_v50 = vcombine.low %v6587_v18, %v6591_v43 }
0x2010   :  { %9529 = vmatpush1.bf16.msra.mxu1 %v11614_v3  ;;  %v11671_v3 = vcombine.high %v6587_v18, %v6591_v43  ;;  %v6639_v18 = vld [vmem:[#allocation23 + $0x8a0] sm:$0xff]  ;;  %v6636_v43 = vld [vmem:[#allocation23 + $0x888] sm:$0xff] }
0x2011   :  { %9693 = vmatpush1.bf16.msra.mxu0 %v11616_v4  ;;  %9530 = vmatprep.subr.bf16.mxu1 %v11623_v52  ;;  %v11673_v4 = vcombine.high %v6588_v11, %v6592_v17  ;;  %v6595_v52 = vld [vmem:[#allocation23 + $0x740] sm:$0xff] }
0x2012   :  { %9694 = vmatprep.subr.bf16.mxu0 %v11625_v6  ;;  %v6599_v6 = vld [vmem:[#allocation23 + $0x760] sm:$0xff] }
0x2013   :  { %v11679_v35 = vcombine.high %v6595_v52, %v6599_v6  ;;  %v11678_v36 = vcombine.low %v6595_v52, %v6599_v6  ;;  %v6644_v52 = vld [vmem:[#allocation23 + $0x8c8] sm:$0xff] }
0x2014   :  { %9531 = vmatpush1.bf16.msra.mxu1 %v11622_v42  ;;  %v11672_v42 = vcombine.low %v6588_v11, %v6592_v17  ;;  %v6640_v11 = vld [vmem:[#allocation23 + $0x8a8] sm:$0xff] }
0x2015   :  { %9695 = vmatpush1.bf16.msra.mxu0 %v11624_v0  ;;  %9532 = vmatprep.subr.bf16.mxu1 %v11631_v47  ;;  %v11681_v0 = vcombine.high %v6596_v29, %v6600_v39  ;;  %v6603_v47 = vld [vmem:[#allocation23 + $0x780] sm:$0xff]  ;;  %v6648_v6 = vld [vmem:[#allocation23 + $0x8e8] sm:$0xff]  ;;  %v11720_v39 = vcombine.low %v6636_v43, %v6640_v11 }
0x2016   :  { %9696 = vmatprep.subr.bf16.mxu0 %v11633_v7  ;;  %v6607_v7 = vld [vmem:[#allocation23 + $0x7a0] sm:$0xff]  ;;  %v11728_v26 = vcombine.low %v6644_v52, %v6648_v6 }
0x2017   :  { %v11686_v22 = vcombine.low %v6603_v47, %v6607_v7 }
0x2018   :  { %9533 = vmatpush1.bf16.msra.mxu1 %v11630_v49  ;;  %v11687_v49 = vcombine.high %v6603_v47, %v6607_v7  ;;  %v6656_v47 = vld [vmem:[#allocation23 + $0x928] sm:$0xff] }
0x2019   :  { %9697 = vmatpush1.bf16.msra.mxu0 %v11632_v14  ;;  %9534 = vmatprep.subr.bf16.mxu1 %v11639_v15  ;;  %v6611_v14 = vld [vmem:[#allocation23 + $0x7c0] sm:$0xff] }
0x201a   :  { %9698 = vmatprep.subr.bf16.mxu0 %v11641_v23  ;;  %v6615_v15 = vld [vmem:[#allocation23 + $0x7e0] sm:$0xff]  ;;  %v6612_v23 = vld [vmem:[#allocation23 + $0x7c8] sm:$0xff] }
0x201b   :  { %v11695_v62 = vcombine.high %v6611_v14, %v6615_v15  ;;  %v11694_v5 = vcombine.low %v6611_v14, %v6615_v15  ;;  %v11696_v31 = vcombine.low %v6612_v23, %v6616_v12  ;;  %v6664_v14 = vld [vmem:[#allocation23 + $0x968] sm:$0xff] }
0x201c   :  { %9535 = vmatpush1.bf16.msra.mxu1 %v11638_v51  ;;  %v11697_v51 = vcombine.high %v6612_v23, %v6616_v12 }
0x201d   :  { %9699 = vmatpush1.bf16.msra.mxu0 %v11640_v63  ;;  %9536 = vmatprep.subr.bf16.mxu1 %v11647_v9  ;;  %v6619_v63 = vld [vmem:[#allocation23 + $0x800] sm:$0xff] }
0x201e   :  { %9700 = vmatprep.subr.bf16.mxu0 %v11649_v30  ;;  %v6623_v9 = vld [vmem:[#allocation23 + $0x820] sm:$0xff]  ;;  %v6620_v30 = vld [vmem:[#allocation23 + $0x808] sm:$0xff] }
0x201f   :  { %v11703_v13 = vcombine.high %v6619_v63, %v6623_v9  ;;  %v11702_v58 = vcombine.low %v6619_v63, %v6623_v9  ;;  %v6672_v63 = vld [vmem:[#allocation23 + $0x9a8] sm:$0xff] }
0x2020   :  { %9537 = vmatpush1.bf16.msra.mxu1 %v11646_v27  ;;  %v12913_v27 = vpop.eup %12912 }
0x2021   :  { %9701 = vmatpush1.bf16.msra.mxu0 %v11648_v33  ;;  %9538 = vmatprep.subr.bf16.mxu1 %v11655_v16  ;;  %v11705_v33 = vcombine.high %v6620_v30, %v6624_v24  ;;  %v6627_v16 = vld [vmem:[#allocation23 + $0x840] sm:$0xff]  ;;  %v14286_v28 = vpack.c.bf16 %v12913_v27, %v12913_v27  ;;  %v6676_v27 = vld [vmem:[#allocation23 + $0x9c8] sm:$0xff] }
0x2022   :  { %9702 = vmatprep.subr.bf16.mxu0 %v11657_v34  ;;  %v6631_v34 = vld [vmem:[#allocation23 + $0x860] sm:$0xff] }
0x2023   :  { %v11710_v17 = vcombine.low %v6627_v16, %v6631_v34 }
0x2024   :  { %9539 = vmatpush1.bf16.msra.mxu1 %v11654_v54  ;;  %v11704_v54 = vcombine.low %v6620_v30, %v6624_v24 }
0x2025   :  { %9703 = vmatpush1.bf16.msra.mxu0 %v11656_v55  ;;  %9540 = vmatprep.subr.bf16.mxu1 %v11663_v45  ;;  %v11711_v55 = vcombine.high %v6627_v16, %v6631_v34  ;;  %v11713_v45 = vcombine.high %v6628_v44, %v6632_v46 }
0x2026   :  { %9704 = vmatprep.subr.bf16.mxu0 %v11665_v1  ;;  %v6635_v1 = vld [vmem:[#allocation23 + $0x880] sm:$0xff] }
0x2027   :  { %v11718_v29 = vcombine.low %v6635_v1, %v6639_v18 }
0x2028   :  { %9541 = vmatpush1.bf16.msra.mxu1 %v11662_v2  ;;  %v11719_v2 = vcombine.high %v6635_v1, %v6639_v18 }
0x2029   :  { %9705 = vmatpush1.bf16.msra.mxu0 %v11664_v37  ;;  %9542 = vmatprep.subr.bf16.mxu1 %v11671_v3  ;;  %v11721_v37 = vcombine.high %v6636_v43, %v6640_v11  ;;  %v6643_v3 = vld [vmem:[#allocation23 + $0x8c0] sm:$0xff] }
0x202a   :  { %9706 = vmatprep.subr.bf16.mxu0 %v11673_v4  ;;  %v6647_v4 = vld [vmem:[#allocation23 + $0x8e0] sm:$0xff] }
0x202b   :  { %v11727_v56 = vcombine.high %v6643_v3, %v6647_v4  ;;  %v11726_v7 = vcombine.low %v6643_v3, %v6647_v4 }
0x202c   :  { %9543 = vmatpush1.bf16.msra.mxu1 %v11670_v50  ;;  %v11729_v50 = vcombine.high %v6644_v52, %v6648_v6 }
0x202d   :  { %9707 = vmatpush1.bf16.msra.mxu0 %v11672_v42  ;;  %9544 = vmatprep.subr.bf16.mxu1 %v11679_v35  ;;  %v6651_v42 = vld [vmem:[#allocation23 + $0x900] sm:$0xff] }
0x202e   :  { %9708 = vmatprep.subr.bf16.mxu0 %v11681_v0  ;;  %v6655_v35 = vld [vmem:[#allocation23 + $0x920] sm:$0xff]  ;;  %v6652_v0 = vld [vmem:[#allocation23 + $0x908] sm:$0xff] }
0x202f   :  { %v11735_v8 = vcombine.high %v6651_v42, %v6655_v35  ;;  %v11734_v15 = vcombine.low %v6651_v42, %v6655_v35  ;;  %v11736_v23 = vcombine.low %v6652_v0, %v6656_v47 }
0x2030   :  { %9545 = vmatpush1.bf16.msra.mxu1 %v11678_v36  ;;  %v11737_v36 = vcombine.high %v6652_v0, %v6656_v47 }
0x2031   :  { %9709 = vmatpush1.bf16.msra.mxu0 %v11680_v25  ;;  %9546 = vmatprep.subr.bf16.mxu1 %v11687_v49  ;;  %v6659_v25 = vld [vmem:[#allocation23 + $0x940] sm:$0xff] }
0x2032   :  { %9710 = vmatprep.subr.bf16.mxu0 %v11689_v60  ;;  %v6663_v49 = vld [vmem:[#allocation23 + $0x960] sm:$0xff]  ;;  %v6660_v60 = vld [vmem:[#allocation23 + $0x948] sm:$0xff] }
0x2033   :  { %v11743_v12 = vcombine.high %v6659_v25, %v6663_v49  ;;  %v11742_v9 = vcombine.low %v6659_v25, %v6663_v49  ;;  %v11744_v30 = vcombine.low %v6660_v60, %v6664_v14 }
0x2034   :  { %9547 = vmatpush1.bf16.msra.mxu1 %v11686_v22  ;;  %v11745_v22 = vcombine.high %v6660_v60, %v6664_v14 }
0x2035   :  { %9711 = vmatpush1.bf16.msra.mxu0 %v11688_v21  ;;  %9548 = vmatprep.subr.bf16.mxu1 %v11695_v62  ;;  %v6667_v21 = vld [vmem:[#allocation23 + $0x980] sm:$0xff] }
0x2036   :  { %9712 = vmatprep.subr.bf16.mxu0 %v11697_v51  ;;  %v6671_v62 = vld [vmem:[#allocation23 + $0x9a0] sm:$0xff]  ;;  %v6668_v51 = vld [vmem:[#allocation23 + $0x988] sm:$0xff] }
0x2037   :  { %v11751_v24 = vcombine.high %v6667_v21, %v6671_v62  ;;  %v11750_v16 = vcombine.low %v6667_v21, %v6671_v62  ;;  %v11752_v34 = vcombine.low %v6668_v51, %v6672_v63 }
0x2038   :  { %9549 = vmatpush1.bf16.msra.mxu1 %v11694_v5  ;;  %v11753_v5 = vcombine.high %v6668_v51, %v6672_v63 }
0x2039   :  { %9713 = vmatpush1.bf16.msra.mxu0 %v11696_v31  ;;  %9559 = vmatprep.subr.bf16.mxu1 %v11703_v13  ;;  %v6675_v31 = vld [vmem:[#allocation23 + $0x9c0] sm:$0xff] }
0x203a   :  { %9723 = vmatprep.subr.bf16.mxu0 %v11705_v33  ;;  %v6679_v13 = vld [vmem:[#allocation23 + $0x9e0] sm:$0xff]  ;;  %v6680_v33 = vld [vmem:[#allocation23 + $0x9e8] sm:$0xff] }
0x203b   :  { %9551 = vmatmul.mubr.bf16.vlgmr.msra.gmra.mrb[64].mxu1 %v14286_v28  ;;  %v11759_v44 = vcombine.high %v6675_v31, %v6679_v13  ;;  %v11761_v46 = vcombine.high %v6676_v27, %v6680_v33  ;;  %v11758_v1 = vcombine.low %v6675_v31, %v6679_v13  ;;  %v11760_v18 = vcombine.low %v6676_v27, %v6680_v33 }
0x203c   :  { %9715 = vmatmul.mubr.bf16.vlgmr.msra.gmra.mrb[68].mxu0 %v14286_v28  ;;  %9560 = vmatpush1.bf16.msra.mxu1 %v11702_v58  ;;  %v6683_v58 = vld [vmem:[#allocation23 + $0xa00] sm:$0xff] }
0x203d   :  { %9724 = vmatpush1.bf16.msra.mxu0 %v11704_v54  ;;  %9561 = vmatprep.subr.bf16.mxu1 %v11711_v55  ;;  %v6687_v54 = vld [vmem:[#allocation23 + $0xa20] sm:$0xff]  ;;  %v6684_v55 = vld [vmem:[#allocation23 + $0xa08] sm:$0xff] }
0x203e   :  { %9725 = vmatprep.subr.bf16.mxu0 %v11713_v45  ;;  %v6688_v45 = vld [vmem:[#allocation23 + $0xa28] sm:$0xff]  ;;  %v11767_v43 = vcombine.high %v6683_v58, %v6687_v54  ;;  %v11766_v3 = vcombine.low %v6683_v58, %v6687_v54 }
0x203f   :  { %v11769_v11 = vcombine.high %v6684_v55, %v6688_v45  ;;  %v11768_v4 = vcombine.low %v6684_v55, %v6688_v45 }
0x2040   :  { %9562 = vmatpush1.bf16.msra.mxu1 %v11710_v17  ;;  %v6691_v17 = vld [vmem:[#allocation23 + $0xa40] sm:$0xff] }
0x2041   :  { %9726 = vmatpush1.bf16.msra.mxu0 %v11712_v48  ;;  %9563 = vmatprep.subr.bf16.mxu1 %v11719_v2  ;;  %v6695_v48 = vld [vmem:[#allocation23 + $0xa60] sm:$0xff]  ;;  %v6692_v2 = vld [vmem:[#allocation23 + $0xa48] sm:$0xff] }
0x2042   :  { %9727 = vmatprep.subr.bf16.mxu0 %v11721_v37  ;;  %v6696_v37 = vld [vmem:[#allocation23 + $0xa68] sm:$0xff]  ;;  %v11775_v52 = vcombine.high %v6691_v17, %v6695_v48  ;;  %v11774_v42 = vcombine.low %v6691_v17, %v6695_v48 }
0x2043   :  { %v11777_v6 = vcombine.high %v6692_v2, %v6696_v37  ;;  %v11776_v35 = vcombine.low %v6692_v2, %v6696_v37 }
0x2044   :  { %9564 = vmatpush1.bf16.msra.mxu1 %v11718_v29  ;;  %v6699_v29 = vld [vmem:[#allocation23 + $0xa80] sm:$0xff] }
0x2045   :  { %9728 = vmatpush1.bf16.msra.mxu0 %v11720_v39  ;;  %9565 = vmatprep.subr.bf16.mxu1 %v11727_v56  ;;  %v6703_v39 = vld [vmem:[#allocation23 + $0xaa0] sm:$0xff]  ;;  %v6700_v56 = vld [vmem:[#allocation23 + $0xa88] sm:$0xff] }
0x2046   :  { %9729 = vmatprep.subr.bf16.mxu0 %v11729_v50  ;;  %v6704_v50 = vld [vmem:[#allocation23 + $0xaa8] sm:$0xff]  ;;  %v11783_v0 = vcombine.high %v6699_v29, %v6703_v39  ;;  %v11782_v25 = vcombine.low %v6699_v29, %v6703_v39 }
0x2047   :  { %v11785_v47 = vcombine.high %v6700_v56, %v6704_v50  ;;  %v11784_v49 = vcombine.low %v6700_v56, %v6704_v50 }
0x2048   :  { %9566 = vmatpush1.bf16.msra.mxu1 %v11726_v7  ;;  %v6707_v7 = vld [vmem:[#allocation23 + $0xac0] sm:$0xff] }
0x2049   :  { %9730 = vmatpush1.bf16.msra.mxu0 %v11728_v26  ;;  %9567 = vmatprep.subr.bf16.mxu1 %v11735_v8  ;;  %v6711_v26 = vld [vmem:[#allocation23 + $0xae0] sm:$0xff]  ;;  %v6708_v8 = vld [vmem:[#allocation23 + $0xac8] sm:$0xff] }
0x204a   :  { %9731 = vmatprep.subr.bf16.mxu0 %v11737_v36  ;;  %v6712_v36 = vld [vmem:[#allocation23 + $0xae8] sm:$0xff]  ;;  %v11791_v60 = vcombine.high %v6707_v7, %v6711_v26  ;;  %v11790_v21 = vcombine.low %v6707_v7, %v6711_v26 }
0x204b   :  { %v11793_v14 = vcombine.high %v6708_v8, %v6712_v36  ;;  %v11792_v62 = vcombine.low %v6708_v8, %v6712_v36 }
0x204c   :  { %9568 = vmatpush1.bf16.msra.mxu1 %v11734_v15  ;;  %v6715_v15 = vld [vmem:[#allocation23 + $0xb00] sm:$0xff] }
0x204d   :  { %9732 = vmatpush1.bf16.msra.mxu0 %v11736_v23  ;;  %9569 = vmatprep.subr.bf16.mxu1 %v11743_v12  ;;  %v6719_v23 = vld [vmem:[#allocation23 + $0xb20] sm:$0xff]  ;;  %v6716_v12 = vld [vmem:[#allocation23 + $0xb08] sm:$0xff] }
0x204e   :  { %9733 = vmatprep.subr.bf16.mxu0 %v11745_v22  ;;  %v6720_v22 = vld [vmem:[#allocation23 + $0xb28] sm:$0xff]  ;;  %v11799_v51 = vcombine.high %v6715_v15, %v6719_v23  ;;  %v11798_v31 = vcombine.low %v6715_v15, %v6719_v23 }
0x204f   :  { %v11801_v63 = vcombine.high %v6716_v12, %v6720_v22  ;;  %v11800_v13 = vcombine.low %v6716_v12, %v6720_v22 }
0x2050   :  { %9570 = vmatpush1.bf16.msra.mxu1 %v11742_v9  ;;  %v6723_v9 = vld [vmem:[#allocation23 + $0xb40] sm:$0xff] }
0x2051   :  { %9734 = vmatpush1.bf16.msra.mxu0 %v11744_v30  ;;  %9571 = vmatprep.subr.bf16.mxu1 %v11751_v24  ;;  %v6727_v30 = vld [vmem:[#allocation23 + $0xb60] sm:$0xff]  ;;  %v6724_v24 = vld [vmem:[#allocation23 + $0xb48] sm:$0xff] }
0x2052   :  { %9735 = vmatprep.subr.bf16.mxu0 %v11753_v5  ;;  %v6728_v5 = vld [vmem:[#allocation23 + $0xb68] sm:$0xff]  ;;  %v11807_v27 = vcombine.high %v6723_v9, %v6727_v30  ;;  %v11806_v58 = vcombine.low %v6723_v9, %v6727_v30 }
0x2053   :  { %v11809_v33 = vcombine.high %v6724_v24, %v6728_v5  ;;  %v11808_v54 = vcombine.low %v6724_v24, %v6728_v5  ;;  %v6760_v9 = vld [vmem:[#allocation23 + $0xc68] sm:$0xff] }
0x2054   :  { %9572 = vmatpush1.bf16.msra.mxu1 %v11750_v16  ;;  %v6731_v16 = vld [vmem:[#allocation23 + $0xb80] sm:$0xff] }
0x2055   :  { %9736 = vmatpush1.bf16.msra.mxu0 %v11752_v34  ;;  %9573 = vmatprep.subr.bf16.mxu1 %v11759_v44  ;;  %v6735_v34 = vld [vmem:[#allocation23 + $0xba0] sm:$0xff]  ;;  %v6732_v44 = vld [vmem:[#allocation23 + $0xb88] sm:$0xff] }
0x2056   :  { %9737 = vmatprep.subr.bf16.mxu0 %v11761_v46  ;;  %v6736_v46 = vld [vmem:[#allocation23 + $0xba8] sm:$0xff]  ;;  %v11815_v55 = vcombine.high %v6731_v16, %v6735_v34  ;;  %v11814_v17 = vcombine.low %v6731_v16, %v6735_v34  ;;  %v6767_v34 = vld [vmem:[#allocation23 + $0xca0] sm:$0xff] }
0x2057   :  { %v11817_v45 = vcombine.high %v6732_v44, %v6736_v46  ;;  %v11816_v48 = vcombine.low %v6732_v44, %v6736_v46  ;;  %v6764_v44 = vld [vmem:[#allocation23 + $0xc88] sm:$0xff] }
0x2058   :  { %9574 = vmatpush1.bf16.msra.mxu1 %v11758_v1  ;;  %v6739_v1 = vld [vmem:[#allocation23 + $0xbc0] sm:$0xff]  ;;  %v6768_v46 = vld [vmem:[#allocation23 + $0xca8] sm:$0xff] }
0x2059   :  { %9738 = vmatpush1.bf16.msra.mxu0 %v11760_v18  ;;  %9575 = vmatprep.subr.bf16.mxu1 %v11767_v43  ;;  %v6743_v18 = vld [vmem:[#allocation23 + $0xbe0] sm:$0xff]  ;;  %v6740_v43 = vld [vmem:[#allocation23 + $0xbc8] sm:$0xff] }
0x205a   :  { %9739 = vmatprep.subr.bf16.mxu0 %v11769_v11  ;;  %v6744_v11 = vld [vmem:[#allocation23 + $0xbe8] sm:$0xff]  ;;  %v11823_v2 = vcombine.high %v6739_v1, %v6743_v18  ;;  %v11822_v29 = vcombine.low %v6739_v1, %v6743_v18  ;;  %v11849_v1 = vcombine.high %v6764_v44, %v6768_v46  ;;  %v6771_v18 = vld [vmem:[#allocation23 + $0xcc0] sm:$0xff] }
0x205b   :  { %v11825_v37 = vcombine.high %v6740_v43, %v6744_v11  ;;  %v11824_v39 = vcombine.low %v6740_v43, %v6744_v11  ;;  %v6775_v43 = vld [vmem:[#allocation23 + $0xce0] sm:$0xff]  ;;  %v6772_v11 = vld [vmem:[#allocation23 + $0xcc8] sm:$0xff] }
0x205c   :  { %9576 = vmatpush1.bf16.msra.mxu1 %v11766_v3  ;;  %v6747_v3 = vld [vmem:[#allocation23 + $0xc00] sm:$0xff] }
0x205d   :  { %9740 = vmatpush1.bf16.msra.mxu0 %v11768_v4  ;;  %9577 = vmatprep.subr.bf16.mxu1 %v11775_v52  ;;  %v6751_v4 = vld [vmem:[#allocation23 + $0xc20] sm:$0xff]  ;;  %v6748_v52 = vld [vmem:[#allocation23 + $0xc08] sm:$0xff] }
0x205e   :  { %9741 = vmatprep.subr.bf16.mxu0 %v11777_v6  ;;  %v6752_v6 = vld [vmem:[#allocation23 + $0xc28] sm:$0xff]  ;;  %v11831_v56 = vcombine.high %v6747_v3, %v6751_v4  ;;  %v11830_v5 = vcombine.low %v6747_v3, %v6751_v4  ;;  %v6779_v4 = vld [vmem:[#allocation23 + $0xd00] sm:$0xff] }
0x205f   :  { %v11833_v50 = vcombine.high %v6748_v52, %v6752_v6 }
0x2060   :  { %9578 = vmatpush1.bf16.msra.mxu1 %v11774_v42  ;;  %v14290_v42 = vld [vmem:[#allocation22] sm:$0xff] }
0x2061   :  { %9742 = vmatpush1.bf16.msra.mxu0 %v11776_v35  ;;  %9579 = vmatprep.subr.bf16.mxu1 %v11783_v0  ;;  %v3110_v35 = vrot.slane %v14290_v42, %v14208_v32  ;;  %v3114_v0 = vrot.slane %v14290_v42, %v14191_v61 }
0x2062   :  { %9743 = vmatprep.subr.bf16.mxu0 %v11785_v47  ;;  %v3122_v47 = vrot.slane %v14290_v42, %v14211_v41 }
0x2064   :  { %9580 = vmatpush1.bf16.msra.mxu1 %v11782_v25 }
0x2065   :  { %9744 = vmatpush1.bf16.msra.mxu0 %v11784_v49  ;;  %9581 = vmatprep.subr.bf16.mxu1 %v11791_v60 }
0x2066   :  { %9745 = vmatprep.subr.bf16.mxu0 %v11793_v14 }
0x2068   :  { %9582 = vmatpush1.bf16.msra.mxu1 %v11790_v21  ;;  %v6755_v21 = vld [vmem:[#allocation23 + $0xc40] sm:$0xff] }
0x2069   :  { %9746 = vmatpush1.bf16.msra.mxu0 %v11792_v62  ;;  %9583 = vmatprep.subr.bf16.mxu1 %v11799_v51  ;;  %v6759_v51 = vld [vmem:[#allocation23 + $0xc60] sm:$0xff] }
0x206a   :  { %9747 = vmatprep.subr.bf16.mxu0 %v11801_v63  ;;  %v6756_v63 = vld [vmem:[#allocation23 + $0xc48] sm:$0xff] }
0x206b   :  { %v11841_v16 = vcombine.high %v6756_v63, %v6760_v9 }
0x206c   :  { %9584 = vmatpush1.bf16.msra.mxu1 %v11798_v31  ;;  %v11832_v31 = vcombine.low %v6748_v52, %v6752_v6  ;;  %v6783_v52 = vld [vmem:[#allocation23 + $0xd20] sm:$0xff]  ;;  %v6780_v6 = vld [vmem:[#allocation23 + $0xd08] sm:$0xff] }
0x206d   :  { %9748 = vmatpush1.bf16.msra.mxu0 %v11800_v13  ;;  %9585 = vmatprep.subr.bf16.mxu1 %v11807_v27  ;;  %v6763_v27 = vld [vmem:[#allocation23 + $0xc80] sm:$0xff] }
0x206e   :  { %9749 = vmatprep.subr.bf16.mxu0 %v11809_v33  ;;  %v11839_v33 = vcombine.high %v6755_v21, %v6759_v51 }
0x2070   :  { %9586 = vmatpush1.bf16.msra.mxu1 %v11806_v58 }
0x2071   :  { %9750 = vmatpush1.bf16.msra.mxu0 %v11808_v54  ;;  %9587 = vmatprep.subr.bf16.mxu1 %v11815_v55  ;;  %v11838_v54 = vcombine.low %v6755_v21, %v6759_v51  ;;  %v11840_v55 = vcombine.low %v6756_v63, %v6760_v9  ;;  %v6803_v63 = vld [vmem:[#allocation23 + $0xdc0] sm:$0xff] }
0x2072   :  { %9751 = vmatprep.subr.bf16.mxu0 %v11817_v45  ;;  %v11847_v45 = vcombine.high %v6763_v27, %v6767_v34  ;;  %v6807_v9 = vld [vmem:[#allocation23 + $0xde0] sm:$0xff] }
0x2074   :  { %9588 = vmatpush1.bf16.msra.mxu1 %v11814_v17  ;;  %v6776_v17 = vld [vmem:[#allocation23 + $0xce8] sm:$0xff] }
0x2075   :  { %9752 = vmatpush1.bf16.msra.mxu0 %v11816_v48  ;;  %9589 = vmatprep.subr.bf16.mxu1 %v11823_v2  ;;  %v11846_v48 = vcombine.low %v6763_v27, %v6767_v34  ;;  %v11848_v2 = vcombine.low %v6764_v44, %v6768_v46  ;;  %v11857_v3 = vcombine.high %v6772_v11, %v6776_v17  ;;  %v6811_v34 = vld [vmem:[#allocation23 + $0xe00] sm:$0xff]  ;;  %v6812_v46 = vld [vmem:[#allocation23 + $0xe08] sm:$0xff] }
0x2076   :  { %9753 = vmatprep.subr.bf16.mxu0 %v11825_v37  ;;  %v11855_v37 = vcombine.high %v6771_v18, %v6775_v43  ;;  %v6815_v44 = vld [vmem:[#allocation23 + $0xe20] sm:$0xff] }
0x2078   :  { %9590 = vmatpush1.bf16.msra.mxu1 %v11822_v29  ;;  %v6784_v29 = vld [vmem:[#allocation23 + $0xd28] sm:$0xff] }
0x2079   :  { %9754 = vmatpush1.bf16.msra.mxu0 %v11824_v39  ;;  %9600 = vmatprep.subr.bf16.mxu1 %v11831_v56  ;;  %v11854_v39 = vcombine.low %v6771_v18, %v6775_v43  ;;  %v11856_v56 = vcombine.low %v6772_v11, %v6776_v17  ;;  %v6819_v43 = vld [vmem:[#allocation23 + $0xe40] sm:$0xff]  ;;  %v6820_v17 = vld [vmem:[#allocation23 + $0xe48] sm:$0xff] }
0x207a   :  { %9764 = vmatprep.subr.bf16.mxu0 %v11833_v50  ;;  %v11863_v50 = vcombine.high %v6779_v4, %v6783_v52  ;;  %v6823_v11 = vld [vmem:[#allocation23 + $0xe60] sm:$0xff] }
0x208e   :  { %v6176_v7 = vpop.f32.mrb[60].mxu1 }
0x208f   :  { %v12483_v26 = vadd.f32 %v6176_v7, %v3110_v35  ;;  %v14298_v8 = vpop.f32.mrb[64].mxu0  ;;  %v6178_v36 = vpop.f32.mrb[61].mxu1  ;;  %v11865_v35 = vcombine.high %v6780_v6, %v6784_v29  ;;  %v6788_v7 = vld [vmem:[#allocation23 + $0xd48] sm:$0xff] }
0x2090   :  { %v12484_v25 = vadd.f32 %v6178_v36, %v3114_v0  ;;  %v6342_v49 = vpop.f32.mrb[65].mxu0  ;;  %v6180_v60 = vpop.f32.mrb[62].mxu1  ;;  %v6787_v0 = vld [vmem:[#allocation23 + $0xd40] sm:$0xff]  ;;  %v11862_v36 = vcombine.low %v6779_v4, %v6783_v52 }
0x2091   :  { %v12486_v14 = vadd.f32 %v6342_v49, %v3122_v47  ;;  %v6344_v15 = vpop.f32.mrb[66].mxu0  ;;  %v6181_v23 = vpop.f32.mrb[63].mxu1  ;;  %12914 = vtanh.f32 %v12483_v26  ;;  %v6791_v47 = vld [vmem:[#allocation23 + $0xd60] sm:$0xff]  ;;  %v6792_v26 = vld [vmem:[#allocation23 + $0xd68] sm:$0xff] }
0x2092   :  { %v6345_v12 = vpop.f32.mrb[67].mxu0  ;;  %12916 = vtanh.f32 %v12484_v25  ;;  %v11864_v25 = vcombine.low %v6780_v6, %v6784_v29  ;;  %v11871_v49 = vcombine.high %v6787_v0, %v6791_v47  ;;  %v11873_v60 = vcombine.high %v6788_v7, %v6792_v26  ;;  %v6799_v15 = vld [vmem:[#allocation23 + $0xda0] sm:$0xff]  ;;  %v6796_v23 = vld [vmem:[#allocation23 + $0xd88] sm:$0xff] }
0x2093   :  { %12918 = vtanh.f32 %v12486_v14  ;;  %v6795_v14 = vld [vmem:[#allocation23 + $0xd80] sm:$0xff]  ;;  %v6800_v12 = vld [vmem:[#allocation23 + $0xda8] sm:$0xff]  ;;  %v11872_v21 = vcombine.low %v6788_v7, %v6792_v26 }
0x2094   :  { %v11881_v51 = vcombine.high %v6796_v23, %v6800_v12  ;;  %v11880_v27 = vcombine.low %v6796_v23, %v6800_v12  ;;  %v6827_v52 = vld [vmem:[#allocation23 + $0xe80] sm:$0xff]  ;;  %v6828_v29 = vld [vmem:[#allocation23 + $0xe88] sm:$0xff] }
0x2095   :  { %v6831_v6 = vld [vmem:[#allocation23 + $0xea0] sm:$0xff]  ;;  %v6836_v26 = vld [vmem:[#allocation23 + $0xec8] sm:$0xff] }
0x2096   :  { %v6839_v7 = vld [vmem:[#allocation23 + $0xee0] sm:$0xff]  ;;  %v6844_v12 = vld [vmem:[#allocation23 + $0xf08] sm:$0xff] }
0x2097   :  { %v6847_v23 = vld [vmem:[#allocation23 + $0xf20] sm:$0xff] }
0x209b   :  { %v12915_v22 = vpop.eup %12914 }
0x209c   :  { %v12917_v62 = vpop.eup %12916  ;;  %v14302_v13 = vpack.c.bf16 %v12915_v22, %v12915_v22  ;;  %v11870_v22 = vcombine.low %v6787_v0, %v6791_v47  ;;  %v6835_v47 = vld [vmem:[#allocation23 + $0xec0] sm:$0xff] }
0x209d   :  { %v12919_v30 = vpop.eup %12918  ;;  %v14300_v24 = vpack.c.bf16 %v12917_v62, %v12917_v62  ;;  %v11879_v62 = vcombine.high %v6795_v14, %v6799_v15 }
0x209e   :  { %v14306_v58 = vpack.c.bf16 %v12919_v30, %v12919_v30  ;;  %v6804_v30 = vld [vmem:[#allocation23 + $0xdc8] sm:$0xff] }
0x209f   :  { %9591 = vmatprep.mubr.bf16.mxu1 %v14300_v24  ;;  %9755 = vmatprep.mubr.bf16.mxu0 %v14300_v24 }
0x20a0   :  { %9592 = vmatmul.mubr.bf16.vlgmr.msra.gmra.mrb[64].mxu1 %v14302_v13  ;;  %9756 = vmatmul.mubr.bf16.vlgmr.msra.gmra.mrb[68].mxu0 %v14302_v13 }
0x20a1   :  { %9601 = vmatpush1.bf16.msra.mxu1 %v11830_v5  ;;  %9765 = vmatpush1.bf16.msra.mxu0 %v11832_v31  ;;  %v6808_v5 = vld [vmem:[#allocation23 + $0xde8] sm:$0xff]  ;;  %v11878_v31 = vcombine.low %v6795_v14, %v6799_v15  ;;  %v6843_v15 = vld [vmem:[#allocation23 + $0xf00] sm:$0xff] }
0x20a2   :  { %9632 = vmatprep.mubr.bf16.mxu1 %v14306_v58  ;;  %9796 = vmatprep.mubr.bf16.mxu0 %v14306_v58 }
0x20a3   :  { %9602 = vmatprep.subr.bf16.mxu1 %v11839_v33  ;;  %9766 = vmatprep.subr.bf16.mxu0 %v11841_v16  ;;  %v11887_v33 = vcombine.high %v6803_v63, %v6807_v9  ;;  %v11889_v16 = vcombine.high %v6804_v30, %v6808_v5 }
0x20a5   :  { %9603 = vmatpush1.bf16.msra.mxu1 %v11838_v54  ;;  %9767 = vmatpush1.bf16.msra.mxu0 %v11840_v55  ;;  %v6816_v54 = vld [vmem:[#allocation23 + $0xe28] sm:$0xff]  ;;  %v11886_v55 = vcombine.low %v6803_v63, %v6807_v9  ;;  %v11927_v63 = vcombine.high %v6843_v15, %v6847_v23 }
0x20a6   :  { %9604 = vmatprep.subr.bf16.mxu1 %v11847_v45  ;;  %9768 = vmatprep.subr.bf16.mxu0 %v11849_v1  ;;  %v11888_v45 = vcombine.low %v6804_v30, %v6808_v5  ;;  %v11895_v1 = vcombine.high %v6811_v34, %v6815_v44  ;;  %v11897_v18 = vcombine.high %v6812_v46, %v6816_v54  ;;  %v6851_v30 = vld [vmem:[#allocation23 + $0xf40] sm:$0xff] }
0x20a7   :  { %v6855_v5 = vld [vmem:[#allocation23 + $0xf60] sm:$0xff] }
0x20a9   :  { %9605 = vmatpush1.bf16.msra.mxu1 %v11846_v48  ;;  %9769 = vmatpush1.bf16.msra.mxu0 %v11848_v2  ;;  %v6824_v48 = vld [vmem:[#allocation23 + $0xe68] sm:$0xff]  ;;  %v11894_v2 = vcombine.low %v6811_v34, %v6815_v44 }
0x20aa   :  { %9606 = vmatprep.subr.bf16.mxu1 %v11855_v37  ;;  %9770 = vmatprep.subr.bf16.mxu0 %v11857_v3  ;;  %v11896_v37 = vcombine.low %v6812_v46, %v6816_v54  ;;  %v11903_v3 = vcombine.high %v6819_v43, %v6823_v11  ;;  %v11905_v4 = vcombine.high %v6820_v17, %v6824_v48  ;;  %v6859_v46 = vld [vmem:[#allocation23 + $0xf80] sm:$0xff] }
0x20ab   :  { %v6863_v54 = vld [vmem:[#allocation23 + $0xfa0] sm:$0xff] }
0x20ad   :  { %9607 = vmatpush1.bf16.msra.mxu1 %v11854_v39  ;;  %9771 = vmatpush1.bf16.msra.mxu0 %v11856_v56  ;;  %v6832_v39 = vld [vmem:[#allocation23 + $0xea8] sm:$0xff]  ;;  %v11902_v56 = vcombine.low %v6819_v43, %v6823_v11  ;;  %v6867_v11 = vld [vmem:[#allocation23 + $0xfc0] sm:$0xff] }
0x20ae   :  { %9608 = vmatprep.subr.bf16.mxu1 %v11863_v50  ;;  %9772 = vmatprep.subr.bf16.mxu0 %v11865_v35  ;;  %v11904_v50 = vcombine.low %v6820_v17, %v6824_v48  ;;  %v11911_v35 = vcombine.high %v6827_v52, %v6831_v6  ;;  %v11913_v0 = vcombine.high %v6828_v29, %v6832_v39  ;;  %v6871_v17 = vld [vmem:[#allocation23 + $0xfe0] sm:$0xff]  ;;  %v6868_v48 = vld [vmem:[#allocation23 + $0xfc8] sm:$0xff] }
0x20b1   :  { %9609 = vmatpush1.bf16.msra.mxu1 %v11862_v36  ;;  %9773 = vmatpush1.bf16.msra.mxu0 %v11864_v25  ;;  %v6840_v36 = vld [vmem:[#allocation23 + $0xee8] sm:$0xff]  ;;  %v11910_v25 = vcombine.low %v6827_v52, %v6831_v6  ;;  %v6365_v6 = vld [vmem:[#allocation23 + $0x10] sm:$0xff] }
0x20b2   :  { %9610 = vmatprep.subr.bf16.mxu1 %v11871_v49  ;;  %9774 = vmatprep.subr.bf16.mxu0 %v11873_v60  ;;  %v11912_v49 = vcombine.low %v6828_v29, %v6832_v39  ;;  %v11919_v60 = vcombine.high %v6835_v47, %v6839_v7  ;;  %v11921_v14 = vcombine.high %v6836_v26, %v6840_v36  ;;  %v6369_v29 = vld [vmem:[#allocation23 + $0x30] sm:$0xff]  ;;  %v6366_v39 = vld [vmem:[#allocation23 + $0x18] sm:$0xff] }
0x20b5   :  { %9611 = vmatpush1.bf16.msra.mxu1 %v11870_v22  ;;  %9775 = vmatpush1.bf16.msra.mxu0 %v11872_v21  ;;  %v6848_v22 = vld [vmem:[#allocation23 + $0xf28] sm:$0xff]  ;;  %v3118_v21 = vrot.slane %v14290_v42, %v14228_v19  ;;  %v11935_v42 = vcombine.high %v6851_v30, %v6855_v5 }
0x20b6   :  { %9612 = vmatprep.subr.bf16.mxu1 %v11879_v62  ;;  %9776 = vmatprep.subr.bf16.mxu0 %v11881_v51  ;;  %v11918_v62 = vcombine.low %v6835_v47, %v6839_v7  ;;  %v11920_v51 = vcombine.low %v6836_v26, %v6840_v36  ;;  %v11929_v9 = vcombine.high %v6844_v12, %v6848_v22  ;;  %v6373_v26 = vld [vmem:[#allocation23 + $0x50] sm:$0xff] }
0x20b7   :  { %v11928_v34 = vcombine.low %v6844_v12, %v6848_v22  ;;  %v6377_v36 = vld [vmem:[#allocation23 + $0x70] sm:$0xff] }
0x20b8   :  { %v6381_v22 = vld [vmem:[#allocation23 + $0x90] sm:$0xff] }
0x20b9   :  { %9613 = vmatpush1.bf16.msra.mxu1 %v11878_v31  ;;  %9777 = vmatpush1.bf16.msra.mxu0 %v11880_v27  ;;  %v6852_v31 = vld [vmem:[#allocation23 + $0xf48] sm:$0xff] }
0x20ba   :  { %9614 = vmatprep.subr.bf16.mxu1 %v11887_v33  ;;  %9778 = vmatprep.subr.bf16.mxu0 %v11889_v16  ;;  %v6856_v27 = vld [vmem:[#allocation23 + $0xf68] sm:$0xff]  ;;  %v12485_v33 = vadd.f32 %v14298_v8, %v3118_v21  ;;  %v11926_v16 = vcombine.low %v6843_v15, %v6847_v23  ;;  %v11943_v8 = vcombine.high %v6859_v46, %v6863_v54  ;;  %v6385_v21 = vld [vmem:[#allocation23 + $0xb0] sm:$0xff] }
0x20bb   :  { %v11937_v44 = vcombine.high %v6852_v31, %v6856_v27  ;;  %v11459_v23 = vcombine.high %v6373_v26, %v6377_v36 }
0x20bc   :  { %12920 = vtanh.f32 %v12485_v33  ;;  %v6390_v33 = vld [vmem:[#allocation23 + $0xd8] sm:$0xff] }
0x20bd   :  { %9615 = vmatpush1.bf16.msra.mxu1 %v11886_v55  ;;  %9779 = vmatpush1.bf16.msra.mxu0 %v11888_v45  ;;  %v6860_v55 = vld [vmem:[#allocation23 + $0xf88] sm:$0xff] }
0x20be   :  { %9616 = vmatprep.subr.bf16.mxu1 %v11895_v1  ;;  %9780 = vmatprep.subr.bf16.mxu0 %v11897_v18  ;;  %v6864_v45 = vld [vmem:[#allocation23 + $0xfa8] sm:$0xff]  ;;  %v11934_v1 = vcombine.low %v6851_v30, %v6855_v5  ;;  %v11936_v18 = vcombine.low %v6852_v31, %v6856_v27  ;;  %v11467_v30 = vcombine.high %v6381_v22, %v6385_v21  ;;  %v6389_v31 = vld [vmem:[#allocation23 + $0xd0] sm:$0xff] }
0x20bf   :  { %v11945_v43 = vcombine.high %v6860_v55, %v6864_v45  ;;  %v6393_v27 = vld [vmem:[#allocation23 + $0xf0] sm:$0xff] }
0x20c1   :  { %9617 = vmatpush1.bf16.msra.mxu1 %v11894_v2  ;;  %9781 = vmatpush1.bf16.msra.mxu0 %v11896_v37  ;;  %v6872_v2 = vld [vmem:[#allocation23 + $0xfe8] sm:$0xff]  ;;  %v11942_v37 = vcombine.low %v6859_v46, %v6863_v54  ;;  %v6397_v54 = vld [vmem:[#allocation23 + $0x110] sm:$0xff] }
0x20c2   :  { %9618 = vmatprep.subr.bf16.mxu1 %v11903_v3  ;;  %9782 = vmatprep.subr.bf16.mxu0 %v11905_v4  ;;  %v11944_v3 = vcombine.low %v6860_v55, %v6864_v45  ;;  %v11951_v4 = vcombine.high %v6867_v11, %v6871_v17  ;;  %v11953_v52 = vcombine.high %v6868_v48, %v6872_v2  ;;  %v6401_v55 = vld [vmem:[#allocation23 + $0x130] sm:$0xff]  ;;  %v6402_v45 = vld [vmem:[#allocation23 + $0x138] sm:$0xff] }
0x20c5   :  { %9619 = vmatpush1.bf16.msra.mxu1 %v11902_v56  ;;  %9783 = vmatpush1.bf16.msra.mxu0 %v11904_v50  ;;  %v6370_v56 = vld [vmem:[#allocation23 + $0x38] sm:$0xff]  ;;  %v11950_v50 = vcombine.low %v6867_v11, %v6871_v17  ;;  %v6405_v11 = vld [vmem:[#allocation23 + $0x150] sm:$0xff] }
0x20c6   :  { %9620 = vmatprep.subr.bf16.mxu1 %v11911_v35  ;;  %9784 = vmatprep.subr.bf16.mxu0 %v11913_v0  ;;  %v11952_v35 = vcombine.low %v6868_v48, %v6872_v2  ;;  %v11451_v0 = vcombine.high %v6365_v6, %v6369_v29  ;;  %v11453_v47 = vcombine.high %v6366_v39, %v6370_v56  ;;  %v12921_v7 = vpop.eup %12920  ;;  %v6409_v17 = vld [vmem:[#allocation23 + $0x170] sm:$0xff]  ;;  %v6406_v48 = vld [vmem:[#allocation23 + $0x158] sm:$0xff] }
0x20c7   :  { %v11452_v15 = vcombine.low %v6366_v39, %v6370_v56  ;;  %v6410_v2 = vld [vmem:[#allocation23 + $0x178] sm:$0xff] }
0x20c8   :  { %v6414_v39 = vld [vmem:[#allocation23 + $0x198] sm:$0xff] }
0x20c9   :  { %9621 = vmatpush1.bf16.msra.mxu1 %v11910_v25  ;;  %9785 = vmatpush1.bf16.msra.mxu0 %v11912_v49  ;;  %v6374_v25 = vld [vmem:[#allocation23 + $0x58] sm:$0xff] }
0x20ca   :  { %9622 = vmatprep.subr.bf16.mxu1 %v11919_v60  ;;  %9786 = vmatprep.subr.bf16.mxu0 %v11921_v14  ;;  %v6378_v49 = vld [vmem:[#allocation23 + $0x78] sm:$0xff]  ;;  %v11450_v60 = vcombine.low %v6365_v6, %v6369_v29  ;;  %v14315_v14 = vpack.c.bf16 %v12921_v7, %v12921_v7  ;;  %v6413_v6 = vld [vmem:[#allocation23 + $0x190] sm:$0xff] }
0x20cb   :  { %v11461_v12 = vcombine.high %v6374_v25, %v6378_v49  ;;  %v6417_v29 = vld [vmem:[#allocation23 + $0x1b0] sm:$0xff]  ;;  %v6418_v56 = vld [vmem:[#allocation23 + $0x1b8] sm:$0xff] }
0x20cc   :  { %v6421_v7 = vld [vmem:[#allocation23 + $0x1d0] sm:$0xff] }
0x20cd   :  { %9623 = vmatpush1.bf16.msra.mxu1 %v11918_v62  ;;  %9787 = vmatpush1.bf16.msra.mxu0 %v11920_v51  ;;  %v6382_v62 = vld [vmem:[#allocation23 + $0x98] sm:$0xff] }
0x20ce   :  { %9624 = vmatprep.subr.bf16.mxu1 %v11927_v63  ;;  %9788 = vmatprep.subr.bf16.mxu0 %v11929_v9  ;;  %v6386_v51 = vld [vmem:[#allocation23 + $0xb8] sm:$0xff]  ;;  %v11458_v63 = vcombine.low %v6373_v26, %v6377_v36  ;;  %v11460_v9 = vcombine.low %v6374_v25, %v6378_v49  ;;  %v6425_v26 = vld [vmem:[#allocation23 + $0x1f0] sm:$0xff]  ;;  %v11498_v49 = vcombine.low %v6413_v6, %v6417_v29 }
0x20cf   :  { %v11469_v5 = vcombine.high %v6382_v62, %v6386_v51  ;;  %v6422_v36 = vld [vmem:[#allocation23 + $0x1d8] sm:$0xff] }
0x20d0   :  { %v6426_v25 = vld [vmem:[#allocation23 + $0x1f8] sm:$0xff] }
0x20d1   :  { %9625 = vmatpush1.bf16.msra.mxu1 %v11926_v16  ;;  %9789 = vmatpush1.bf16.msra.mxu0 %v11928_v34  ;;  %v6394_v16 = vld [vmem:[#allocation23 + $0xf8] sm:$0xff]  ;;  %v11466_v34 = vcombine.low %v6381_v22, %v6385_v21  ;;  %v6433_v22 = vld [vmem:[#allocation23 + $0x230] sm:$0xff] }
0x20d2   :  { %9626 = vmatprep.subr.bf16.mxu1 %v11935_v42  ;;  %9790 = vmatprep.subr.bf16.mxu0 %v11937_v44  ;;  %v11468_v42 = vcombine.low %v6382_v62, %v6386_v51  ;;  %v11475_v44 = vcombine.high %v6389_v31, %v6393_v27  ;;  %v11477_v46 = vcombine.high %v6390_v33, %v6394_v16  ;;  %v6430_v21 = vld [vmem:[#allocation23 + $0x218] sm:$0xff] }
0x20d3   :  { %v6434_v62 = vld [vmem:[#allocation23 + $0x238] sm:$0xff]  ;;  %v11506_v51 = vcombine.low %v6421_v7, %v6425_v26 }
0x20d5   :  { %9627 = vmatpush1.bf16.msra.mxu1 %v11934_v1  ;;  %9791 = vmatpush1.bf16.msra.mxu0 %v11936_v18  ;;  %v11474_v1 = vcombine.low %v6389_v31, %v6393_v27  ;;  %v11476_v18 = vcombine.low %v6390_v33, %v6394_v16  ;;  %v6441_v31 = vld [vmem:[#allocation23 + $0x270] sm:$0xff]  ;;  %v6438_v27 = vld [vmem:[#allocation23 + $0x258] sm:$0xff] }
0x20d6   :  { %9628 = vmatprep.subr.bf16.mxu1 %v11943_v8  ;;  %9792 = vmatprep.subr.bf16.mxu0 %v11945_v43  ;;  %v11483_v8 = vcombine.high %v6397_v54, %v6401_v55  ;;  %v6442_v33 = vld [vmem:[#allocation23 + $0x278] sm:$0xff] }
0x20d9   :  { %9629 = vmatpush1.bf16.msra.mxu1 %v11942_v37  ;;  %9793 = vmatpush1.bf16.msra.mxu0 %v11944_v3  ;;  %v11482_v37 = vcombine.low %v6397_v54, %v6401_v55  ;;  %v6449_v54 = vld [vmem:[#allocation23 + $0x2b0] sm:$0xff]  ;;  %v6446_v55 = vld [vmem:[#allocation23 + $0x298] sm:$0xff] }
0x20da   :  { %9630 = vmatprep.subr.bf16.mxu1 %v11951_v4  ;;  %9794 = vmatprep.subr.bf16.mxu0 %v11953_v52  ;;  %v11491_v4 = vcombine.high %v6405_v11, %v6409_v17  ;;  %v11493_v52 = vcombine.high %v6406_v48, %v6410_v2 }
0x20dd   :  { %9631 = vmatpush1.bf16.msra.mxu1 %v11950_v50  ;;  %9795 = vmatpush1.bf16.msra.mxu0 %v11952_v35  ;;  %v11490_v50 = vcombine.low %v6405_v11, %v6409_v17  ;;  %v11492_v35 = vcombine.low %v6406_v48, %v6410_v2  ;;  %v6457_v11 = vld [vmem:[#allocation23 + $0x2f0] sm:$0xff]  ;;  %v6454_v17 = vld [vmem:[#allocation23 + $0x2d8] sm:$0xff] }
0x20de   :  { %9805 = vmatprep.subr.bf16.mxu1 %v11451_v0  ;;  %9969 = vmatprep.subr.bf16.mxu0 %v11453_v47  ;;  %v11499_v0 = vcombine.high %v6413_v6, %v6417_v29  ;;  %v11501_v47 = vcombine.high %v6414_v39, %v6418_v56  ;;  %v6458_v48 = vld [vmem:[#allocation23 + $0x2f8] sm:$0xff]  ;;  %v6465_v6 = vld [vmem:[#allocation23 + $0x330] sm:$0xff] }
0x20df   :  { %v6462_v29 = vld [vmem:[#allocation23 + $0x318] sm:$0xff] }
0x20e0   :  { %9633 = vmatmul.mubr.bf16.vlgmr.msra.gmra.mrb[64].mxu1 %v14315_v14  ;;  %9797 = vmatmul.mubr.bf16.vlgmr.msra.gmra.mrb[68].mxu0 %v14315_v14 }
0x20e1   :  { %9806 = vmatpush1.bf16.msra.mxu1 %v11450_v60  ;;  %9837 = vmatprep.mubr.bf16.mxu1 %v14263_v40  ;;  %v11500_v60 = vcombine.low %v6414_v39, %v6418_v56  ;;  %v6466_v39 = vld [vmem:[#allocation23 + $0x338] sm:$0xff] }
0x20e2   :  { %9970 = vmatpush1.bf16.msra.mxu0 %v11452_v15  ;;  %10001 = vmatprep.mubr.bf16.mxu0 %v14263_v40  ;;  %v6398_v40 = vld [vmem:[#allocation23 + $0x118] sm:$0xff]  ;;  %v11507_v15 = vcombine.high %v6421_v7, %v6425_v26  ;;  %v6473_v7 = vld [vmem:[#allocation23 + $0x370] sm:$0xff] }
0x20e3   :  { %9807 = vmatprep.subr.bf16.mxu1 %v11459_v23  ;;  %9971 = vmatprep.subr.bf16.mxu0 %v11461_v12  ;;  %v11485_v43 = vcombine.high %v6398_v40, %v6402_v45  ;;  %v11484_v3 = vcombine.low %v6398_v40, %v6402_v45  ;;  %v11509_v23 = vcombine.high %v6422_v36, %v6426_v25  ;;  %v6429_v12 = vld [vmem:[#allocation23 + $0x210] sm:$0xff]  ;;  %v6450_v40 = vld [vmem:[#allocation23 + $0x2b8] sm:$0xff] }
0x20e4   :  { %v11514_v16 = vcombine.low %v6429_v12, %v6433_v22  ;;  %v6470_v26 = vld [vmem:[#allocation23 + $0x358] sm:$0xff] }
0x20e5   :  { %9808 = vmatpush1.bf16.msra.mxu1 %v11458_v63  ;;  %v11508_v63 = vcombine.low %v6422_v36, %v6426_v25  ;;  %v6474_v36 = vld [vmem:[#allocation23 + $0x378] sm:$0xff] }
0x20e6   :  { %9972 = vmatpush1.bf16.msra.mxu0 %v11460_v9  ;;  %9809 = vmatprep.subr.bf16.mxu1 %v11467_v30  ;;  %v11515_v9 = vcombine.high %v6429_v12, %v6433_v22  ;;  %v11517_v30 = vcombine.high %v6430_v21, %v6434_v62  ;;  %v6481_v12 = vld [vmem:[#allocation23 + $0x3b0] sm:$0xff]  ;;  %v6478_v22 = vld [vmem:[#allocation23 + $0x398] sm:$0xff] }
0x20e7   :  { %9973 = vmatprep.subr.bf16.mxu0 %v11469_v5  ;;  %v6437_v5 = vld [vmem:[#allocation23 + $0x250] sm:$0xff] }
0x20e8   :  { %v11522_v45 = vcombine.low %v6437_v5, %v6441_v31 }
0x20e9   :  { %9810 = vmatpush1.bf16.msra.mxu1 %v11466_v34  ;;  %v11516_v34 = vcombine.low %v6430_v21, %v6434_v62  ;;  %v6482_v21 = vld [vmem:[#allocation23 + $0x3b8] sm:$0xff] }
0x20ea   :  { %9974 = vmatpush1.bf16.msra.mxu0 %v11468_v42  ;;  %9811 = vmatprep.subr.bf16.mxu1 %v11475_v44  ;;  %v11523_v42 = vcombine.high %v6437_v5, %v6441_v31  ;;  %v11525_v44 = vcombine.high %v6438_v27, %v6442_v33  ;;  %v6489_v5 = vld [vmem:[#allocation23 + $0x3f0] sm:$0xff]  ;;  %v6486_v31 = vld [vmem:[#allocation23 + $0x3d8] sm:$0xff] }
0x20eb   :  { %9975 = vmatprep.subr.bf16.mxu0 %v11477_v46  ;;  %v6445_v46 = vld [vmem:[#allocation23 + $0x290] sm:$0xff] }
0x20ec   :  { %v11530_v2 = vcombine.low %v6445_v46, %v6449_v54 }
0x20ed   :  { %9812 = vmatpush1.bf16.msra.mxu1 %v11474_v1  ;;  %v11524_v1 = vcombine.low %v6438_v27, %v6442_v33  ;;  %v6490_v27 = vld [vmem:[#allocation23 + $0x3f8] sm:$0xff] }
0x20ee   :  { %9976 = vmatpush1.bf16.msra.mxu0 %v11476_v18  ;;  %9813 = vmatprep.subr.bf16.mxu1 %v11483_v8  ;;  %v11531_v18 = vcombine.high %v6445_v46, %v6449_v54  ;;  %v11533_v8 = vcombine.high %v6446_v55, %v6450_v40  ;;  %v6497_v46 = vld [vmem:[#allocation23 + $0x430] sm:$0xff]  ;;  %v6494_v54 = vld [vmem:[#allocation23 + $0x418] sm:$0xff] }
0x20ef   :  { %9977 = vmatprep.subr.bf16.mxu0 %v11485_v43  ;;  %v6453_v43 = vld [vmem:[#allocation23 + $0x2d0] sm:$0xff] }
0x20f0   :  { %v11538_v56 = vcombine.low %v6453_v43, %v6457_v11 }
0x20f1   :  { %9814 = vmatpush1.bf16.msra.mxu1 %v11482_v37  ;;  %v11532_v37 = vcombine.low %v6446_v55, %v6450_v40  ;;  %v6498_v55 = vld [vmem:[#allocation23 + $0x438] sm:$0xff] }
0x20f2   :  { %9978 = vmatpush1.bf16.msra.mxu0 %v11484_v3  ;;  %9815 = vmatprep.subr.bf16.mxu1 %v11491_v4  ;;  %v11539_v3 = vcombine.high %v6453_v43, %v6457_v11  ;;  %v11541_v4 = vcombine.high %v6454_v17, %v6458_v48  ;;  %v6505_v43 = vld [vmem:[#allocation23 + $0x470] sm:$0xff] }
0x20f3   :  { %9979 = vmatprep.subr.bf16.mxu0 %v11493_v52  ;;  %v6461_v52 = vld [vmem:[#allocation23 + $0x310] sm:$0xff] }
0x20f4   :  { %v11546_v25 = vcombine.low %v6461_v52, %v6465_v6 }
0x20f5   :  { %9816 = vmatpush1.bf16.msra.mxu1 %v11490_v50  ;;  %v11540_v50 = vcombine.low %v6454_v17, %v6458_v48  ;;  %v6502_v17 = vld [vmem:[#allocation23 + $0x458] sm:$0xff] }
0x20f6   :  { %9980 = vmatpush1.bf16.msra.mxu0 %v11492_v35  ;;  %9817 = vmatprep.subr.bf16.mxu1 %v11499_v0  ;;  %v11547_v35 = vcombine.high %v6461_v52, %v6465_v6  ;;  %v11549_v0 = vcombine.high %v6462_v29, %v6466_v39  ;;  %v6506_v48 = vld [vmem:[#allocation23 + $0x478] sm:$0xff] }
0x20f7   :  { %9981 = vmatprep.subr.bf16.mxu0 %v11501_v47  ;;  %v6469_v47 = vld [vmem:[#allocation23 + $0x350] sm:$0xff]  ;;  %v11589_v52 = vcombine.high %v6502_v17, %v6506_v48  ;;  %v6510_v6 = vld [vmem:[#allocation23 + $0x498] sm:$0xff] }
0x20f8   :  { %v11554_v62 = vcombine.low %v6469_v47, %v6473_v7 }
0x20f9   :  { %9818 = vmatpush1.bf16.msra.mxu1 %v11498_v49  ;;  %v11548_v49 = vcombine.low %v6462_v29, %v6466_v39  ;;  %v6514_v29 = vld [vmem:[#allocation23 + $0x4b8] sm:$0xff] }
0x20fa   :  { %9982 = vmatpush1.bf16.msra.mxu0 %v11500_v60  ;;  %9819 = vmatprep.subr.bf16.mxu1 %v11507_v15  ;;  %v11555_v60 = vcombine.high %v6469_v47, %v6473_v7  ;;  %v11557_v15 = vcombine.high %v6470_v26, %v6474_v36  ;;  %v6521_v47 = vld [vmem:[#allocation23 + $0x4f0] sm:$0xff]  ;;  %v6518_v7 = vld [vmem:[#allocation23 + $0x4d8] sm:$0xff] }
0x20fb   :  { %9983 = vmatprep.subr.bf16.mxu0 %v11509_v23  ;;  %v6477_v23 = vld [vmem:[#allocation23 + $0x390] sm:$0xff] }
0x20fc   :  { %v11562_v33 = vcombine.low %v6477_v23, %v6481_v12 }
0x20fd   :  { %9820 = vmatpush1.bf16.msra.mxu1 %v11506_v51  ;;  %v11556_v51 = vcombine.low %v6470_v26, %v6474_v36  ;;  %v6522_v26 = vld [vmem:[#allocation23 + $0x4f8] sm:$0xff] }
0x20fe   :  { %9984 = vmatpush1.bf16.msra.mxu0 %v11508_v63  ;;  %9821 = vmatprep.subr.bf16.mxu1 %v11515_v9  ;;  %v11563_v63 = vcombine.high %v6477_v23, %v6481_v12  ;;  %v11565_v9 = vcombine.high %v6478_v22, %v6482_v21  ;;  %v6526_v23 = vld [vmem:[#allocation23 + $0x518] sm:$0xff] }
0x20ff   :  { %9985 = vmatprep.subr.bf16.mxu0 %v11517_v30  ;;  %v6485_v30 = vld [vmem:[#allocation23 + $0x3d0] sm:$0xff]  ;;  %v6530_v12 = vld [vmem:[#allocation23 + $0x538] sm:$0xff] }
0x2100   :  { %v11570_v40 = vcombine.low %v6485_v30, %v6489_v5 }
0x2101   :  { %9822 = vmatpush1.bf16.msra.mxu1 %v11514_v16  ;;  %v11564_v16 = vcombine.low %v6478_v22, %v6482_v21  ;;  %v11604_v22 = vcombine.low %v6518_v7, %v6522_v26 }
0x2102   :  { %9986 = vmatpush1.bf16.msra.mxu0 %v11516_v34  ;;  %9823 = vmatprep.subr.bf16.mxu1 %v11523_v42  ;;  %v11571_v34 = vcombine.high %v6485_v30, %v6489_v5  ;;  %v11573_v42 = vcombine.high %v6486_v31, %v6490_v27  ;;  %v6538_v30 = vld [vmem:[#allocation23 + $0x578] sm:$0xff] }
0x2103   :  { %9987 = vmatprep.subr.bf16.mxu0 %v11525_v44  ;;  %v6493_v44 = vld [vmem:[#allocation23 + $0x410] sm:$0xff] }
0x2104   :  { %v11578_v11 = vcombine.low %v6493_v44, %v6497_v46 }
0x2105   :  { %9824 = vmatpush1.bf16.msra.mxu1 %v11522_v45  ;;  %v11572_v45 = vcombine.low %v6486_v31, %v6490_v27  ;;  %v11612_v31 = vcombine.low %v6526_v23, %v6530_v12 }
0x2106   :  { %9988 = vmatpush1.bf16.msra.mxu0 %v11524_v1  ;;  %9825 = vmatprep.subr.bf16.mxu1 %v11531_v18  ;;  %v11579_v1 = vcombine.high %v6493_v44, %v6497_v46  ;;  %v11581_v18 = vcombine.high %v6494_v54, %v6498_v55  ;;  %v6546_v44 = vld [vmem:[#allocation23 + $0x5b8] sm:$0xff] }
0x2107   :  { %9989 = vmatprep.subr.bf16.mxu0 %v11533_v8  ;;  %v6501_v8 = vld [vmem:[#allocation23 + $0x450] sm:$0xff] }
0x2108   :  { %v11586_v39 = vcombine.low %v6501_v8, %v6505_v43 }
0x2109   :  { %9826 = vmatpush1.bf16.msra.mxu1 %v11530_v2  ;;  %v11580_v2 = vcombine.low %v6494_v54, %v6498_v55 }
0x210a   :  { %9990 = vmatpush1.bf16.msra.mxu0 %v11532_v37  ;;  %9827 = vmatprep.subr.bf16.mxu1 %v11539_v3  ;;  %v11587_v37 = vcombine.high %v6501_v8, %v6505_v43  ;;  %v6509_v3 = vld [vmem:[#allocation23 + $0x490] sm:$0xff]  ;;  %v6554_v8 = vld [vmem:[#allocation23 + $0x5f8] sm:$0xff] }
0x210b   :  { %9991 = vmatprep.subr.bf16.mxu0 %v11541_v4  ;;  %v6513_v4 = vld [vmem:[#allocation23 + $0x4b0] sm:$0xff] }
0x210c   :  { %v11594_v36 = vcombine.low %v6509_v3, %v6513_v4 }
0x210d   :  { %9828 = vmatpush1.bf16.msra.mxu1 %v11538_v56  ;;  %v11588_v56 = vcombine.low %v6502_v17, %v6506_v48 }
0x210e   :  { %9992 = vmatpush1.bf16.msra.mxu0 %v11540_v50  ;;  %9829 = vmatprep.subr.bf16.mxu1 %v11547_v35  ;;  %v11595_v50 = vcombine.high %v6509_v3, %v6513_v4  ;;  %v11597_v35 = vcombine.high %v6510_v6, %v6514_v29  ;;  %v6558_v3 = vld [vmem:[#allocation23 + $0x618] sm:$0xff] }
0x210f   :  { %9993 = vmatprep.subr.bf16.mxu0 %v11549_v0  ;;  %v6517_v0 = vld [vmem:[#allocation23 + $0x4d0] sm:$0xff]  ;;  %v6562_v4 = vld [vmem:[#allocation23 + $0x638] sm:$0xff] }
0x2111   :  { %9830 = vmatpush1.bf16.msra.mxu1 %v11546_v25  ;;  %v11603_v25 = vcombine.high %v6517_v0, %v6521_v47 }
0x2112   :  { %9994 = vmatpush1.bf16.msra.mxu0 %v11548_v49  ;;  %9831 = vmatprep.subr.bf16.mxu1 %v11555_v60  ;;  %v11605_v49 = vcombine.high %v6518_v7, %v6522_v26  ;;  %v6525_v60 = vld [vmem:[#allocation23 + $0x510] sm:$0xff]  ;;  %v11644_v7 = vcombine.low %v6558_v3, %v6562_v4 }
0x2113   :  { %9995 = vmatprep.subr.bf16.mxu0 %v11557_v15  ;;  %v6529_v15 = vld [vmem:[#allocation23 + $0x530] sm:$0xff] }
0x2114   :  { %v11611_v21 = vcombine.high %v6525_v60, %v6529_v15  ;;  %v11610_v5 = vcombine.low %v6525_v60, %v6529_v15  ;;  %v6578_v60 = vld [vmem:[#allocation23 + $0x6b8] sm:$0xff] }
0x2115   :  { %9832 = vmatpush1.bf16.msra.mxu1 %v11554_v62  ;;  %v11613_v62 = vcombine.high %v6526_v23, %v6530_v12 }
0x2116   :  { %9996 = vmatpush1.bf16.msra.mxu0 %v11556_v51  ;;  %9833 = vmatprep.subr.bf16.mxu1 %v11563_v63  ;;  %v6533_v51 = vld [vmem:[#allocation23 + $0x550] sm:$0xff] }
0x2117   :  { %9997 = vmatprep.subr.bf16.mxu0 %v11565_v9  ;;  %v6537_v63 = vld [vmem:[#allocation23 + $0x570] sm:$0xff]  ;;  %v6534_v9 = vld [vmem:[#allocation23 + $0x558] sm:$0xff] }
0x2118   :  { %v11619_v27 = vcombine.high %v6533_v51, %v6537_v63  ;;  %v11618_v46 = vcombine.low %v6533_v51, %v6537_v63  ;;  %v11620_v54 = vcombine.low %v6534_v9, %v6538_v30  ;;  %v6586_v51 = vld [vmem:[#allocation23 + $0x6f8] sm:$0xff] }
0x2119   :  { %9834 = vmatpush1.bf16.msra.mxu1 %v11562_v33  ;;  %v11621_v33 = vcombine.high %v6534_v9, %v6538_v30 }
0x211a   :  { %9998 = vmatpush1.bf16.msra.mxu0 %v11564_v16  ;;  %9835 = vmatprep.subr.bf16.mxu1 %v11571_v34  ;;  %v6541_v16 = vld [vmem:[#allocation23 + $0x590] sm:$0xff] }
0x211b   :  { %9999 = vmatprep.subr.bf16.mxu0 %v11573_v42  ;;  %v6545_v34 = vld [vmem:[#allocation23 + $0x5b0] sm:$0xff]  ;;  %v6542_v42 = vld [vmem:[#allocation23 + $0x598] sm:$0xff] }
0x211c   :  { %v11627_v55 = vcombine.high %v6541_v16, %v6545_v34  ;;  %v11626_v43 = vcombine.low %v6541_v16, %v6545_v34  ;;  %v6594_v16 = vld [vmem:[#allocation23 + $0x738] sm:$0xff] }
0x211d   :  { %9836 = vmatpush1.bf16.msra.mxu1 %v11570_v40  ;;  %v11629_v40 = vcombine.high %v6542_v42, %v6546_v44 }
0x211e   :  { %10000 = vmatpush1.bf16.msra.mxu0 %v11572_v45  ;;  %9846 = vmatprep.subr.bf16.mxu1 %v11579_v1  ;;  %v6549_v45 = vld [vmem:[#allocation23 + $0x5d0] sm:$0xff] }
0x211f   :  { %10010 = vmatprep.subr.bf16.mxu0 %v11581_v18  ;;  %v6553_v1 = vld [vmem:[#allocation23 + $0x5f0] sm:$0xff]  ;;  %v6550_v18 = vld [vmem:[#allocation23 + $0x5d8] sm:$0xff] }
0x2120   :  { %9838 = vmatmul.mubr.bf16.vlgmr.msra.gmra.mrb[68].mxu1 %v14275_v53  ;;  %v11635_v17 = vcombine.high %v6549_v45, %v6553_v1  ;;  %v11637_v48 = vcombine.high %v6550_v18, %v6554_v8 }
0x2121   :  { %10002 = vmatmul.mubr.bf16.vlgmr.msra.gmra.mrb[72].mxu0 %v14275_v53  ;;  %9847 = vmatpush1.bf16.msra.mxu1 %v11578_v11  ;;  %v11596_v53 = vcombine.low %v6510_v6, %v6514_v29  ;;  %v11628_v11 = vcombine.low %v6542_v42, %v6546_v44  ;;  %v11636_v6 = vcombine.low %v6550_v18, %v6554_v8 }
0x2122   :  { %9878 = vmatprep.mubr.bf16.mxu1 %v14277_v10  ;;  %10011 = vmatpush1.bf16.msra.mxu0 %v11580_v2  ;;  %v6557_v2 = vld [vmem:[#allocation23 + $0x610] sm:$0xff] }
0x2123   :  { %10042 = vmatprep.mubr.bf16.mxu0 %v14277_v10  ;;  %9848 = vmatprep.subr.bf16.mxu1 %v11587_v37  ;;  %v11602_v10 = vcombine.low %v6517_v0, %v6521_v47  ;;  %v6561_v37 = vld [vmem:[#allocation23 + $0x630] sm:$0xff]  ;;  %v6570_v0 = vld [vmem:[#allocation23 + $0x678] sm:$0xff] }
0x2124   :  { %10012 = vmatprep.subr.bf16.mxu0 %v11589_v52  ;;  %v11634_v52 = vcombine.low %v6549_v45, %v6553_v1  ;;  %v11643_v29 = vcombine.high %v6557_v2, %v6561_v37  ;;  %v11642_v47 = vcombine.low %v6557_v2, %v6561_v37  ;;  %v6602_v45 = vld [vmem:[#allocation23 + $0x778] sm:$0xff] }
0x2125   :  { %9849 = vmatpush1.bf16.msra.mxu1 %v11586_v39  ;;  %v11645_v39 = vcombine.high %v6558_v3, %v6562_v4  ;;  %v6610_v2 = vld [vmem:[#allocation23 + $0x7b8] sm:$0xff] }
0x2126   :  { %10013 = vmatpush1.bf16.msra.mxu0 %v11588_v56  ;;  %9850 = vmatprep.subr.bf16.mxu1 %v11595_v50  ;;  %v6565_v56 = vld [vmem:[#allocation23 + $0x650] sm:$0xff] }
0x2127   :  { %10014 = vmatprep.subr.bf16.mxu0 %v11597_v35  ;;  %v6569_v50 = vld [vmem:[#allocation23 + $0x670] sm:$0xff]  ;;  %v6566_v35 = vld [vmem:[#allocation23 + $0x658] sm:$0xff] }
0x2128   :  { %v11651_v26 = vcombine.high %v6565_v56, %v6569_v50  ;;  %v11650_v15 = vcombine.low %v6565_v56, %v6569_v50  ;;  %v11652_v23 = vcombine.low %v6566_v35, %v6570_v0  ;;  %v6618_v56 = vld [vmem:[#allocation23 + $0x7f8] sm:$0xff] }
0x2129   :  { %9851 = vmatpush1.bf16.msra.mxu1 %v11594_v36  ;;  %v11653_v36 = vcombine.high %v6566_v35, %v6570_v0 }
0x212a   :  { %10015 = vmatpush1.bf16.msra.mxu0 %v11596_v53  ;;  %9852 = vmatprep.subr.bf16.mxu1 %v11603_v25  ;;  %v6573_v53 = vld [vmem:[#allocation23 + $0x690] sm:$0xff] }
0x212b   :  { %10016 = vmatprep.subr.bf16.mxu0 %v11605_v49  ;;  %v6577_v25 = vld [vmem:[#allocation23 + $0x6b0] sm:$0xff]  ;;  %v6574_v49 = vld [vmem:[#allocation23 + $0x698] sm:$0xff] }
0x212c   :  { %v11659_v12 = vcombine.high %v6573_v53, %v6577_v25  ;;  %v11658_v63 = vcombine.low %v6573_v53, %v6577_v25  ;;  %v11660_v9 = vcombine.low %v6574_v49, %v6578_v60  ;;  %v6626_v53 = vld [vmem:[#allocation23 + $0x838] sm:$0xff] }
0x212d   :  { %9853 = vmatpush1.bf16.msra.mxu1 %v11602_v10  ;;  %v11661_v10 = vcombine.high %v6574_v49, %v6578_v60 }
0x212e   :  { %10017 = vmatpush1.bf16.msra.mxu0 %v11604_v22  ;;  %9854 = vmatprep.subr.bf16.mxu1 %v11611_v21  ;;  %v6581_v22 = vld [vmem:[#allocation23 + $0x6d0] sm:$0xff] }
0x212f   :  { %10018 = vmatprep.subr.bf16.mxu0 %v11613_v62  ;;  %v6585_v21 = vld [vmem:[#allocation23 + $0x6f0] sm:$0xff]  ;;  %v6582_v62 = vld [vmem:[#allocation23 + $0x6d8] sm:$0xff] }
0x2130   :  { %v11667_v30 = vcombine.high %v6581_v22, %v6585_v21  ;;  %v11666_v34 = vcombine.low %v6581_v22, %v6585_v21  ;;  %v11668_v42 = vcombine.low %v6582_v62, %v6586_v51  ;;  %v6630_v22 = vld [vmem:[#allocation23 + $0x858] sm:$0xff] }
0x2131   :  { %9855 = vmatpush1.bf16.msra.mxu1 %v11610_v5  ;;  %v11669_v5 = vcombine.high %v6582_v62, %v6586_v51  ;;  %v6634_v21 = vld [vmem:[#allocation23 + $0x878] sm:$0xff] }
0x2132   :  { %10019 = vmatpush1.bf16.msra.mxu0 %v11612_v31  ;;  %9856 = vmatprep.subr.bf16.mxu1 %v11619_v27  ;;  %v6589_v31 = vld [vmem:[#allocation23 + $0x710] sm:$0xff] }
0x2133   :  { %10020 = vmatprep.subr.bf16.mxu0 %v11621_v33  ;;  %v6593_v27 = vld [vmem:[#allocation23 + $0x730] sm:$0xff]  ;;  %v6590_v33 = vld [vmem:[#allocation23 + $0x718] sm:$0xff] }
0x2134   :  { %v11675_v44 = vcombine.high %v6589_v31, %v6593_v27  ;;  %v11674_v1 = vcombine.low %v6589_v31, %v6593_v27  ;;  %v11676_v18 = vcombine.low %v6590_v33, %v6594_v16  ;;  %v6642_v31 = vld [vmem:[#allocation23 + $0x8b8] sm:$0xff] }
0x2135   :  { %9857 = vmatpush1.bf16.msra.mxu1 %v11618_v46  ;;  %v11677_v46 = vcombine.high %v6590_v33, %v6594_v16  ;;  %v11716_v33 = vcombine.low %v6630_v22, %v6634_v21 }
0x2136   :  { %10021 = vmatpush1.bf16.msra.mxu0 %v11620_v54  ;;  %9858 = vmatprep.subr.bf16.mxu1 %v11627_v55  ;;  %v6597_v54 = vld [vmem:[#allocation23 + $0x750] sm:$0xff] }
0x2137   :  { %10022 = vmatprep.subr.bf16.mxu0 %v11629_v40  ;;  %v6601_v55 = vld [vmem:[#allocation23 + $0x770] sm:$0xff]  ;;  %v6598_v40 = vld [vmem:[#allocation23 + $0x758] sm:$0xff] }
0x2138   :  { %v11683_v8 = vcombine.high %v6597_v54, %v6601_v55  ;;  %v11682_v37 = vcombine.low %v6597_v54, %v6601_v55  ;;  %v11684_v3 = vcombine.low %v6598_v40, %v6602_v45  ;;  %v6650_v54 = vld [vmem:[#allocation23 + $0x8f8] sm:$0xff] }
0x2139   :  { %9859 = vmatpush1.bf16.msra.mxu1 %v11626_v43  ;;  %v11685_v43 = vcombine.high %v6598_v40, %v6602_v45 }
0x213a   :  { %10023 = vmatpush1.bf16.msra.mxu0 %v11628_v11  ;;  %9860 = vmatprep.subr.bf16.mxu1 %v11635_v17  ;;  %v6605_v11 = vld [vmem:[#allocation23 + $0x790] sm:$0xff] }
0x213b   :  { %10024 = vmatprep.subr.bf16.mxu0 %v11637_v48  ;;  %v6609_v17 = vld [vmem:[#allocation23 + $0x7b0] sm:$0xff]  ;;  %v6606_v48 = vld [vmem:[#allocation23 + $0x798] sm:$0xff] }
0x213c   :  { %v11691_v4 = vcombine.high %v6605_v11, %v6609_v17  ;;  %v11690_v50 = vcombine.low %v6605_v11, %v6609_v17  ;;  %v11692_v35 = vcombine.low %v6606_v48, %v6610_v2 }
0x213d   :  { %9861 = vmatpush1.bf16.msra.mxu1 %v11634_v52  ;;  %v11693_v52 = vcombine.high %v6606_v48, %v6610_v2  ;;  %v6661_v2 = vld [vmem:[#allocation23 + $0x950] sm:$0xff] }
0x213e   :  { %10025 = vmatpush1.bf16.msra.mxu0 %v11636_v6  ;;  %9862 = vmatprep.subr.bf16.mxu1 %v11643_v29  ;;  %v6613_v6 = vld [vmem:[#allocation23 + $0x7d0] sm:$0xff] }
0x213f   :  { %10026 = vmatprep.subr.bf16.mxu0 %v11645_v39  ;;  %v6617_v29 = vld [vmem:[#allocation23 + $0x7f0] sm:$0xff]  ;;  %v6614_v39 = vld [vmem:[#allocation23 + $0x7d8] sm:$0xff] }
0x2140   :  { %v11699_v0 = vcombine.high %v6613_v6, %v6617_v29  ;;  %v11698_v25 = vcombine.low %v6613_v6, %v6617_v29  ;;  %v11700_v49 = vcombine.low %v6614_v39, %v6618_v56 }
0x2141   :  { %9863 = vmatpush1.bf16.msra.mxu1 %v11642_v47  ;;  %v11701_v47 = vcombine.high %v6614_v39, %v6618_v56  ;;  %v6669_v56 = vld [vmem:[#allocation23 + $0x990] sm:$0xff] }
0x2142   :  { %10027 = vmatpush1.bf16.msra.mxu0 %v11644_v7  ;;  %9864 = vmatprep.subr.bf16.mxu1 %v11651_v26  ;;  %v6621_v7 = vld [vmem:[#allocation23 + $0x810] sm:$0xff] }
0x2143   :  { %10028 = vmatprep.subr.bf16.mxu0 %v11653_v36  ;;  %v6625_v26 = vld [vmem:[#allocation23 + $0x830] sm:$0xff]  ;;  %v6622_v36 = vld [vmem:[#allocation23 + $0x818] sm:$0xff] }
0x2144   :  { %v11707_v60 = vcombine.high %v6621_v7, %v6625_v26  ;;  %v11708_v62 = vcombine.low %v6622_v36, %v6626_v53 }
0x2145   :  { %9865 = vmatpush1.bf16.msra.mxu1 %v11650_v15  ;;  %v11709_v15 = vcombine.high %v6622_v36, %v6626_v53  ;;  %v6677_v53 = vld [vmem:[#allocation23 + $0x9d0] sm:$0xff] }
0x2146   :  { %10029 = vmatpush1.bf16.msra.mxu0 %v11652_v23  ;;  %9866 = vmatprep.subr.bf16.mxu1 %v11659_v12  ;;  %v6629_v23 = vld [vmem:[#allocation23 + $0x850] sm:$0xff] }
0x2147   :  { %10030 = vmatprep.subr.bf16.mxu0 %v11661_v10  ;;  %v6633_v12 = vld [vmem:[#allocation23 + $0x870] sm:$0xff]  ;;  %v11706_v10 = vcombine.low %v6621_v7, %v6625_v26 }
0x2148   :  { %v11715_v51 = vcombine.high %v6629_v23, %v6633_v12  ;;  %v11714_v27 = vcombine.low %v6629_v23, %v6633_v12 }
0x2149   :  { %9867 = vmatpush1.bf16.msra.mxu1 %v11658_v63  ;;  %v6637_v63 = vld [vmem:[#allocation23 + $0x890] sm:$0xff] }
0x214a   :  { %10031 = vmatpush1.bf16.msra.mxu0 %v11660_v9  ;;  %9868 = vmatprep.subr.bf16.mxu1 %v11667_v30  ;;  %v6641_v9 = vld [vmem:[#allocation23 + $0x8b0] sm:$0xff]  ;;  %v11717_v30 = vcombine.high %v6630_v22, %v6634_v21 }
0x214b   :  { %10032 = vmatprep.subr.bf16.mxu0 %v11669_v5  ;;  %v6638_v5 = vld [vmem:[#allocation23 + $0x898] sm:$0xff]  ;;  %v11723_v16 = vcombine.high %v6637_v63, %v6641_v9  ;;  %v11722_v55 = vcombine.low %v6637_v63, %v6641_v9  ;;  %v6685_v22 = vld [vmem:[#allocation23 + $0xa10] sm:$0xff] }
0x214c   :  { %v6689_v21 = vld [vmem:[#allocation23 + $0xa30] sm:$0xff] }
0x214d   :  { %9869 = vmatpush1.bf16.msra.mxu1 %v11666_v34  ;;  %v11725_v34 = vcombine.high %v6638_v5, %v6642_v31 }
0x214e   :  { %10033 = vmatpush1.bf16.msra.mxu0 %v11668_v42  ;;  %9870 = vmatprep.subr.bf16.mxu1 %v11675_v44  ;;  %v6645_v42 = vld [vmem:[#allocation23 + $0x8d0] sm:$0xff] }
0x214f   :  { %10034 = vmatprep.subr.bf16.mxu0 %v11677_v46  ;;  %v6649_v44 = vld [vmem:[#allocation23 + $0x8f0] sm:$0xff]  ;;  %v6646_v46 = vld [vmem:[#allocation23 + $0x8d8] sm:$0xff] }
0x2150   :  { %v11731_v40 = vcombine.high %v6645_v42, %v6649_v44  ;;  %v11733_v45 = vcombine.high %v6646_v46, %v6650_v54  ;;  %v11732_v11 = vcombine.low %v6646_v46, %v6650_v54  ;;  %v6701_v54 = vld [vmem:[#allocation23 + $0xa90] sm:$0xff] }
0x2151   :  { %9871 = vmatpush1.bf16.msra.mxu1 %v11674_v1  ;;  %v6653_v1 = vld [vmem:[#allocation23 + $0x910] sm:$0xff] }
0x2152   :  { %10035 = vmatpush1.bf16.msra.mxu0 %v11676_v18  ;;  %9872 = vmatprep.subr.bf16.mxu1 %v11683_v8  ;;  %v6657_v18 = vld [vmem:[#allocation23 + $0x930] sm:$0xff]  ;;  %v6654_v8 = vld [vmem:[#allocation23 + $0x918] sm:$0xff] }
0x2153   :  { %10036 = vmatprep.subr.bf16.mxu0 %v11685_v43  ;;  %v6658_v43 = vld [vmem:[#allocation23 + $0x938] sm:$0xff]  ;;  %v11739_v17 = vcombine.high %v6653_v1, %v6657_v18 }
0x2154   :  { %v11741_v48 = vcombine.high %v6654_v8, %v6658_v43  ;;  %v11740_v6 = vcombine.low %v6654_v8, %v6658_v43  ;;  %v6709_v43 = vld [vmem:[#allocation23 + $0xad0] sm:$0xff] }
0x2155   :  { %9873 = vmatpush1.bf16.msra.mxu1 %v11682_v37  ;;  %v6665_v37 = vld [vmem:[#allocation23 + $0x970] sm:$0xff] }
0x2156   :  { %10037 = vmatpush1.bf16.msra.mxu0 %v11684_v3  ;;  %9874 = vmatprep.subr.bf16.mxu1 %v11691_v4  ;;  %v6662_v3 = vld [vmem:[#allocation23 + $0x958] sm:$0xff]  ;;  %v11747_v29 = vcombine.high %v6661_v2, %v6665_v37 }
0x2157   :  { %10038 = vmatprep.subr.bf16.mxu0 %v11693_v52  ;;  %v6666_v4 = vld [vmem:[#allocation23 + $0x978] sm:$0xff]  ;;  %v11738_v52 = vcombine.low %v6653_v1, %v6657_v18 }
0x2158   :  { %v11749_v39 = vcombine.high %v6662_v3, %v6666_v4  ;;  %v11748_v7 = vcombine.low %v6662_v3, %v6666_v4  ;;  %v6717_v4 = vld [vmem:[#allocation23 + $0xb10] sm:$0xff] }
0x2159   :  { %9875 = vmatpush1.bf16.msra.mxu1 %v11690_v50  ;;  %v6673_v50 = vld [vmem:[#allocation23 + $0x9b0] sm:$0xff] }
0x215a   :  { %10039 = vmatpush1.bf16.msra.mxu0 %v11692_v35  ;;  %9876 = vmatprep.subr.bf16.mxu1 %v11699_v0  ;;  %v6670_v35 = vld [vmem:[#allocation23 + $0x998] sm:$0xff]  ;;  %v11755_v26 = vcombine.high %v6669_v56, %v6673_v50 }
0x215b   :  { %10040 = vmatprep.subr.bf16.mxu0 %v11701_v47  ;;  %v6674_v0 = vld [vmem:[#allocation23 + $0x9b8] sm:$0xff]  ;;  %v11746_v47 = vcombine.low %v6661_v2, %v6665_v37 }
0x215c   :  { %v11757_v36 = vcombine.high %v6670_v35, %v6674_v0  ;;  %v11756_v23 = vcombine.low %v6670_v35, %v6674_v0  ;;  %v6725_v0 = vld [vmem:[#allocation23 + $0xb50] sm:$0xff] }
0x215d   :  { %9877 = vmatpush1.bf16.msra.mxu1 %v11698_v25  ;;  %v6681_v25 = vld [vmem:[#allocation23 + $0x9f0] sm:$0xff] }
0x215e   :  { %10041 = vmatpush1.bf16.msra.mxu0 %v11700_v49  ;;  %9887 = vmatprep.subr.bf16.mxu1 %v11707_v60  ;;  %v6678_v49 = vld [vmem:[#allocation23 + $0x9d8] sm:$0xff]  ;;  %v11763_v12 = vcombine.high %v6677_v53, %v6681_v25  ;;  %v11762_v63 = vcombine.low %v6677_v53, %v6681_v25 }
0x215f   :  { %10051 = vmatprep.subr.bf16.mxu0 %v11709_v15  ;;  %v6682_v60 = vld [vmem:[#allocation23 + $0x9f8] sm:$0xff]  ;;  %v11754_v15 = vcombine.low %v6669_v56, %v6673_v50 }
0x2160   :  { %9879 = vmatmul.mubr.bf16.vlgmr.msra.gmra.mrb[68].mxu1 %v14286_v28  ;;  %v11764_v9 = vcombine.low %v6678_v49, %v6682_v60 }
0x2161   :  { %10043 = vmatmul.mubr.bf16.vlgmr.msra.gmra.mrb[72].mxu0 %v14286_v28  ;;  %9888 = vmatpush1.bf16.msra.mxu1 %v11706_v10  ;;  %v11724_v28 = vcombine.low %v6638_v5, %v6642_v31  ;;  %v11765_v10 = vcombine.high %v6678_v49, %v6682_v60  ;;  %v6693_v31 = vld [vmem:[#allocation23 + $0xa50] sm:$0xff] }
0x2162   :  { %9919 = vmatprep.mubr.bf16.mxu1 %v14300_v24  ;;  %10052 = vmatpush1.bf16.msra.mxu0 %v11708_v62  ;;  %v6686_v62 = vld [vmem:[#allocation23 + $0xa18] sm:$0xff]  ;;  %v6733_v60 = vld [vmem:[#allocation23 + $0xb90] sm:$0xff] }
0x2163   :  { %10083 = vmatprep.mubr.bf16.mxu0 %v14300_v24  ;;  %9889 = vmatprep.subr.bf16.mxu1 %v11715_v51  ;;  %v11730_v24 = vcombine.low %v6645_v42, %v6649_v44  ;;  %v6690_v51 = vld [vmem:[#allocation23 + $0xa38] sm:$0xff] }
0x2164   :  { %10053 = vmatprep.subr.bf16.mxu0 %v11717_v30  ;;  %v11771_v30 = vcombine.high %v6685_v22, %v6689_v21  ;;  %v11773_v5 = vcombine.high %v6686_v62, %v6690_v51  ;;  %v11772_v42 = vcombine.low %v6686_v62, %v6690_v51  ;;  %v6741_v51 = vld [vmem:[#allocation23 + $0xbd0] sm:$0xff] }
0x2165   :  { %9890 = vmatpush1.bf16.msra.mxu1 %v11714_v27  ;;  %v6697_v27 = vld [vmem:[#allocation23 + $0xa70] sm:$0xff] }
0x2166   :  { %10054 = vmatpush1.bf16.msra.mxu0 %v11716_v33  ;;  %9891 = vmatprep.subr.bf16.mxu1 %v11723_v16  ;;  %v6694_v33 = vld [vmem:[#allocation23 + $0xa58] sm:$0xff]  ;;  %v11779_v44 = vcombine.high %v6693_v31, %v6697_v27 }
0x2167   :  { %10055 = vmatprep.subr.bf16.mxu0 %v11725_v34  ;;  %v6698_v16 = vld [vmem:[#allocation23 + $0xa78] sm:$0xff]  ;;  %v11770_v34 = vcombine.low %v6685_v22, %v6689_v21 }
0x2168   :  { %v11781_v46 = vcombine.high %v6694_v33, %v6698_v16  ;;  %v11780_v1 = vcombine.low %v6694_v33, %v6698_v16  ;;  %v6749_v16 = vld [vmem:[#allocation23 + $0xc10] sm:$0xff] }
0x2169   :  { %9892 = vmatpush1.bf16.msra.mxu1 %v11722_v55  ;;  %v6705_v55 = vld [vmem:[#allocation23 + $0xab0] sm:$0xff] }
0x216a   :  { %10056 = vmatpush1.bf16.msra.mxu0 %v11724_v28  ;;  %9893 = vmatprep.subr.bf16.mxu1 %v11731_v40  ;;  %v6702_v28 = vld [vmem:[#allocation23 + $0xa98] sm:$0xff]  ;;  %v11787_v18 = vcombine.high %v6701_v54, %v6705_v55 }
0x216b   :  { %10057 = vmatprep.subr.bf16.mxu0 %v11733_v45  ;;  %v6706_v40 = vld [vmem:[#allocation23 + $0xab8] sm:$0xff]  ;;  %v11778_v45 = vcombine.low %v6693_v31, %v6697_v27 }
0x216c   :  { %v11789_v8 = vcombine.high %v6702_v28, %v6706_v40  ;;  %v11788_v2 = vcombine.low %v6702_v28, %v6706_v40  ;;  %v6757_v40 = vld [vmem:[#allocation23 + $0xc50] sm:$0xff] }
0x216d   :  { %9894 = vmatpush1.bf16.msra.mxu1 %v11730_v24  ;;  %v6713_v24 = vld [vmem:[#allocation23 + $0xaf0] sm:$0xff] }
0x216e   :  { %10058 = vmatpush1.bf16.msra.mxu0 %v11732_v11  ;;  %9895 = vmatprep.subr.bf16.mxu1 %v11739_v17  ;;  %v6710_v11 = vld [vmem:[#allocation23 + $0xad8] sm:$0xff]  ;;  %v11795_v37 = vcombine.high %v6709_v43, %v6713_v24 }
0x216f   :  { %10059 = vmatprep.subr.bf16.mxu0 %v11741_v48  ;;  %v6714_v17 = vld [vmem:[#allocation23 + $0xaf8] sm:$0xff]  ;;  %v11786_v48 = vcombine.low %v6701_v54, %v6705_v55 }
0x2170   :  { %v11797_v3 = vcombine.high %v6710_v11, %v6714_v17  ;;  %v11796_v56 = vcombine.low %v6710_v11, %v6714_v17  ;;  %v6765_v11 = vld [vmem:[#allocation23 + $0xc90] sm:$0xff] }
0x2171   :  { %9896 = vmatpush1.bf16.msra.mxu1 %v11738_v52  ;;  %v6721_v52 = vld [vmem:[#allocation23 + $0xb30] sm:$0xff] }
0x2172   :  { %10060 = vmatpush1.bf16.msra.mxu0 %v11740_v6  ;;  %9897 = vmatprep.subr.bf16.mxu1 %v11747_v29  ;;  %v6718_v6 = vld [vmem:[#allocation23 + $0xb18] sm:$0xff]  ;;  %v11803_v50 = vcombine.high %v6717_v4, %v6721_v52  ;;  %v6769_v17 = vld [vmem:[#allocation23 + $0xcb0] sm:$0xff] }
0x2173   :  { %10061 = vmatprep.subr.bf16.mxu0 %v11749_v39  ;;  %v6722_v29 = vld [vmem:[#allocation23 + $0xb38] sm:$0xff]  ;;  %v11794_v39 = vcombine.low %v6709_v43, %v6713_v24 }
0x2174   :  { %v11805_v35 = vcombine.high %v6718_v6, %v6722_v29  ;;  %v11804_v53 = vcombine.low %v6718_v6, %v6722_v29  ;;  %v6773_v29 = vld [vmem:[#allocation23 + $0xcd0] sm:$0xff] }
0x2175   :  { %9898 = vmatpush1.bf16.msra.mxu1 %v11746_v47  ;;  %v6729_v47 = vld [vmem:[#allocation23 + $0xb70] sm:$0xff] }
0x2176   :  { %10062 = vmatpush1.bf16.msra.mxu0 %v11748_v7  ;;  %9899 = vmatprep.subr.bf16.mxu1 %v11755_v26  ;;  %v6726_v7 = vld [vmem:[#allocation23 + $0xb58] sm:$0xff]  ;;  %v11811_v25 = vcombine.high %v6725_v0, %v6729_v47 }
0x2177   :  { %10063 = vmatprep.subr.bf16.mxu0 %v11757_v36  ;;  %v6730_v26 = vld [vmem:[#allocation23 + $0xb78] sm:$0xff]  ;;  %v11802_v36 = vcombine.low %v6717_v4, %v6721_v52  ;;  %v11851_v52 = vcombine.high %v6765_v11, %v6769_v17 }
0x2178   :  { %v11813_v49 = vcombine.high %v6726_v7, %v6730_v26  ;;  %v11812_v22 = vcombine.low %v6726_v7, %v6730_v26  ;;  %v6781_v7 = vld [vmem:[#allocation23 + $0xd10] sm:$0xff] }
0x2179   :  { %9900 = vmatpush1.bf16.msra.mxu1 %v11754_v15  ;;  %v6737_v15 = vld [vmem:[#allocation23 + $0xbb0] sm:$0xff] }
0x217a   :  { %10064 = vmatpush1.bf16.msra.mxu0 %v11756_v23  ;;  %9901 = vmatprep.subr.bf16.mxu1 %v11763_v12  ;;  %v6734_v23 = vld [vmem:[#allocation23 + $0xb98] sm:$0xff]  ;;  %v11819_v21 = vcombine.high %v6733_v60, %v6737_v15  ;;  %v6785_v26 = vld [vmem:[#allocation23 + $0xd30] sm:$0xff] }
0x217b   :  { %10065 = vmatprep.subr.bf16.mxu0 %v11765_v10  ;;  %v6738_v12 = vld [vmem:[#allocation23 + $0xbb8] sm:$0xff]  ;;  %v11810_v10 = vcombine.low %v6725_v0, %v6729_v47 }
0x217c   :  { %v11821_v62 = vcombine.high %v6734_v23, %v6738_v12  ;;  %v11820_v31 = vcombine.low %v6734_v23, %v6738_v12  ;;  %v6793_v23 = vld [vmem:[#allocation23 + $0xd70] sm:$0xff]  ;;  %v6790_v12 = vld [vmem:[#allocation23 + $0xd58] sm:$0xff] }
0x217d   :  { %9902 = vmatpush1.bf16.msra.mxu1 %v11762_v63  ;;  %v6745_v63 = vld [vmem:[#allocation23 + $0xbf0] sm:$0xff] }
0x217e   :  { %10066 = vmatpush1.bf16.msra.mxu0 %v11764_v9  ;;  %9903 = vmatprep.subr.bf16.mxu1 %v11771_v30  ;;  %v6742_v9 = vld [vmem:[#allocation23 + $0xbd8] sm:$0xff]  ;;  %v11827_v27 = vcombine.high %v6741_v51, %v6745_v63 }
0x217f   :  { %10067 = vmatprep.subr.bf16.mxu0 %v11773_v5  ;;  %v6746_v30 = vld [vmem:[#allocation23 + $0xbf8] sm:$0xff]  ;;  %v11818_v5 = vcombine.low %v6733_v60, %v6737_v15  ;;  %v6789_v15 = vld [vmem:[#allocation23 + $0xd50] sm:$0xff] }
0x2180   :  { %v11829_v33 = vcombine.high %v6742_v9, %v6746_v30  ;;  %v11828_v54 = vcombine.low %v6742_v9, %v6746_v30  ;;  %v6801_v9 = vld [vmem:[#allocation23 + $0xdb0] sm:$0xff]  ;;  %v6798_v30 = vld [vmem:[#allocation23 + $0xd98] sm:$0xff] }
0x2181   :  { %9904 = vmatpush1.bf16.msra.mxu1 %v11770_v34  ;;  %v6753_v34 = vld [vmem:[#allocation23 + $0xc30] sm:$0xff] }
0x2182   :  { %10068 = vmatpush1.bf16.msra.mxu0 %v11772_v42  ;;  %9905 = vmatprep.subr.bf16.mxu1 %v11779_v44  ;;  %v6750_v42 = vld [vmem:[#allocation23 + $0xc18] sm:$0xff]  ;;  %v11835_v55 = vcombine.high %v6749_v16, %v6753_v34 }
0x2183   :  { %10069 = vmatprep.subr.bf16.mxu0 %v11781_v46  ;;  %v6754_v44 = vld [vmem:[#allocation23 + $0xc38] sm:$0xff]  ;;  %v11826_v46 = vcombine.low %v6741_v51, %v6745_v63  ;;  %v6797_v63 = vld [vmem:[#allocation23 + $0xd90] sm:$0xff] }
0x2184   :  { %v11837_v28 = vcombine.high %v6750_v42, %v6754_v44  ;;  %v11836_v43 = vcombine.low %v6750_v42, %v6754_v44  ;;  %v6805_v44 = vld [vmem:[#allocation23 + $0xdd0] sm:$0xff] }
0x2185   :  { %9906 = vmatpush1.bf16.msra.mxu1 %v11778_v45  ;;  %v6761_v45 = vld [vmem:[#allocation23 + $0xc70] sm:$0xff] }
0x2186   :  { %10070 = vmatpush1.bf16.msra.mxu0 %v11780_v1  ;;  %9907 = vmatprep.subr.bf16.mxu1 %v11787_v18  ;;  %v11834_v1 = vcombine.low %v6749_v16, %v6753_v34  ;;  %v6758_v18 = vld [vmem:[#allocation23 + $0xc58] sm:$0xff]  ;;  %v11843_v24 = vcombine.high %v6757_v40, %v6761_v45 }
0x2187   :  { %10071 = vmatprep.subr.bf16.mxu0 %v11789_v8  ;;  %v6762_v8 = vld [vmem:[#allocation23 + $0xc78] sm:$0xff] }
0x2188   :  { %v11844_v4 = vcombine.low %v6758_v18, %v6762_v8 }
0x2189   :  { %9908 = vmatpush1.bf16.msra.mxu1 %v11786_v48  ;;  %v11845_v48 = vcombine.high %v6758_v18, %v6762_v8  ;;  %v11882_v18 = vcombine.low %v6797_v63, %v6801_v9 }
0x218a   :  { %10072 = vmatpush1.bf16.msra.mxu0 %v11788_v2  ;;  %9909 = vmatprep.subr.bf16.mxu1 %v11795_v37  ;;  %v6766_v2 = vld [vmem:[#allocation23 + $0xc98] sm:$0xff] }
0x218b   :  { %10073 = vmatprep.subr.bf16.mxu0 %v11797_v3  ;;  %v6770_v37 = vld [vmem:[#allocation23 + $0xcb8] sm:$0xff]  ;;  %v11842_v3 = vcombine.low %v6757_v40, %v6761_v45 }
0x218c   :  { %v11853_v6 = vcombine.high %v6766_v2, %v6770_v37  ;;  %v6810_v40 = vld [vmem:[#allocation23 + $0xdf8] sm:$0xff] }
0x218d   :  { %9910 = vmatpush1.bf16.msra.mxu1 %v11794_v39  ;;  %v6777_v39 = vld [vmem:[#allocation23 + $0xcf0] sm:$0xff] }
0x218e   :  { %10074 = vmatpush1.bf16.msra.mxu0 %v11796_v56  ;;  %9911 = vmatprep.subr.bf16.mxu1 %v11803_v50  ;;  %v6774_v56 = vld [vmem:[#allocation23 + $0xcd8] sm:$0xff]  ;;  %v11859_v0 = vcombine.high %v6773_v29, %v6777_v39 }
0x218f   :  { %10075 = vmatprep.subr.bf16.mxu0 %v11805_v35  ;;  %v6778_v50 = vld [vmem:[#allocation23 + $0xcf8] sm:$0xff]  ;;  %v11850_v35 = vcombine.low %v6765_v11, %v6769_v17 }
0x2190   :  { %v11861_v47 = vcombine.high %v6774_v56, %v6778_v50 }
0x2191   :  { %9912 = vmatpush1.bf16.msra.mxu1 %v11802_v36  ;;  %v6782_v36 = vld [vmem:[#allocation23 + $0xd18] sm:$0xff] }
0x2192   :  { %10076 = vmatpush1.bf16.msra.mxu0 %v11804_v53  ;;  %9913 = vmatprep.subr.bf16.mxu1 %v11811_v25  ;;  %v6786_v53 = vld [vmem:[#allocation23 + $0xd38] sm:$0xff]  ;;  %v11860_v25 = vcombine.low %v6774_v56, %v6778_v50  ;;  %v6825_v56 = vld [vmem:[#allocation23 + $0xe70] sm:$0xff] }
0x2193   :  { %10077 = vmatprep.subr.bf16.mxu0 %v11813_v49  ;;  %v11867_v49 = vcombine.high %v6781_v7, %v6785_v26  ;;  %v11869_v60 = vcombine.high %v6782_v36, %v6786_v53  ;;  %v6822_v50 = vld [vmem:[#allocation23 + $0xe58] sm:$0xff] }
0x2195   :  { %9914 = vmatpush1.bf16.msra.mxu1 %v11810_v10  ;;  %v6794_v10 = vld [vmem:[#allocation23 + $0xd78] sm:$0xff] }
0x2196   :  { %10078 = vmatpush1.bf16.msra.mxu0 %v11812_v22  ;;  %9915 = vmatprep.subr.bf16.mxu1 %v11819_v21  ;;  %v11866_v22 = vcombine.low %v6781_v7, %v6785_v26  ;;  %v11868_v21 = vcombine.low %v6782_v36, %v6786_v53  ;;  %v11877_v51 = vcombine.high %v6790_v12, %v6794_v10  ;;  %v6829_v26 = vld [vmem:[#allocation23 + $0xe90] sm:$0xff]  ;;  %v6830_v53 = vld [vmem:[#allocation23 + $0xe98] sm:$0xff] }
0x2197   :  { %10079 = vmatprep.subr.bf16.mxu0 %v11821_v62  ;;  %v11875_v62 = vcombine.high %v6789_v15, %v6793_v23  ;;  %v6833_v36 = vld [vmem:[#allocation23 + $0xeb0] sm:$0xff] }
0x2199   :  { %9916 = vmatpush1.bf16.msra.mxu1 %v11818_v5  ;;  %v6802_v5 = vld [vmem:[#allocation23 + $0xdb8] sm:$0xff] }
0x219a   :  { %10080 = vmatpush1.bf16.msra.mxu0 %v11820_v31  ;;  %9917 = vmatprep.subr.bf16.mxu1 %v11827_v27  ;;  %v11874_v31 = vcombine.low %v6789_v15, %v6793_v23  ;;  %v11876_v27 = vcombine.low %v6790_v12, %v6794_v10  ;;  %v11885_v42 = vcombine.high %v6798_v30, %v6802_v5  ;;  %v6837_v23 = vld [vmem:[#allocation23 + $0xed0] sm:$0xff]  ;;  %v6838_v10 = vld [vmem:[#allocation23 + $0xed8] sm:$0xff] }
0x219b   :  { %10081 = vmatprep.subr.bf16.mxu0 %v11829_v33  ;;  %v11883_v33 = vcombine.high %v6797_v63, %v6801_v9  ;;  %v6841_v12 = vld [vmem:[#allocation23 + $0xef0] sm:$0xff] }
0x219c   :  { %v6845_v9 = vld [vmem:[#allocation23 + $0xf10] sm:$0xff] }
0x219d   :  { %9918 = vmatpush1.bf16.msra.mxu1 %v11826_v46  ;;  %v6809_v46 = vld [vmem:[#allocation23 + $0xdf0] sm:$0xff] }
0x219e   :  { %10082 = vmatpush1.bf16.msra.mxu0 %v11828_v54  ;;  %9928 = vmatprep.subr.bf16.mxu1 %v11835_v55  ;;  %v11891_v11 = vcombine.high %v6805_v44, %v6809_v46 }
0x219f   :  { %10092 = vmatprep.subr.bf16.mxu0 %v11837_v28  ;;  %v6806_v28 = vld [vmem:[#allocation23 + $0xdd8] sm:$0xff] }
0x21a0   :  { %9920 = vmatmul.mubr.bf16.vlgmr.msra.gmra.mrb[68].mxu1 %v14302_v13  ;;  %v11893_v17 = vcombine.high %v6806_v28, %v6810_v40 }
0x21a1   :  { %10084 = vmatmul.mubr.bf16.vlgmr.msra.gmra.mrb[72].mxu0 %v14302_v13  ;;  %9929 = vmatpush1.bf16.msra.mxu1 %v11834_v1  ;;  %v11852_v13 = vcombine.low %v6766_v2, %v6770_v37  ;;  %v6817_v2 = vld [vmem:[#allocation23 + $0xe30] sm:$0xff]  ;;  %v6814_v37 = vld [vmem:[#allocation23 + $0xe18] sm:$0xff] }
0x21a2   :  { %9960 = vmatprep.mubr.bf16.mxu1 %v14306_v58  ;;  %10093 = vmatpush1.bf16.msra.mxu0 %v11836_v43 }
0x21a3   :  { %10124 = vmatprep.mubr.bf16.mxu0 %v14306_v58  ;;  %9930 = vmatprep.subr.bf16.mxu1 %v11843_v24  ;;  %v11858_v58 = vcombine.low %v6773_v29, %v6777_v39  ;;  %v11884_v24 = vcombine.low %v6798_v30, %v6802_v5  ;;  %v6821_v39 = vld [vmem:[#allocation23 + $0xe50] sm:$0xff]  ;;  %v14341_v5 = vld [vmem:[#allocation25] sm:$0xff] }
0x21a4   :  { %10094 = vmatprep.subr.bf16.mxu0 %v11845_v48  ;;  %v6813_v48 = vld [vmem:[#allocation23 + $0xe10] sm:$0xff] }
0x21a5   :  { %9931 = vmatpush1.bf16.msra.mxu1 %v11842_v3  ;;  %v6818_v3 = vld [vmem:[#allocation23 + $0xe38] sm:$0xff]  ;;  %v6849_v30 = vld [vmem:[#allocation23 + $0xf30] sm:$0xff] }
0x21a6   :  { %10095 = vmatpush1.bf16.msra.mxu0 %v11844_v4  ;;  %9932 = vmatprep.subr.bf16.mxu1 %v11851_v52  ;;  %v11890_v4 = vcombine.low %v6805_v44, %v6809_v46  ;;  %v11892_v52 = vcombine.low %v6806_v28, %v6810_v40  ;;  %v11901_v29 = vcombine.high %v6814_v37, %v6818_v3  ;;  %v6853_v40 = vld [vmem:[#allocation23 + $0xf50] sm:$0xff] }
0x21a7   :  { %10096 = vmatprep.subr.bf16.mxu0 %v11853_v6  ;;  %v11899_v6 = vcombine.high %v6813_v48, %v6817_v2  ;;  %v11931_v44 = vcombine.high %v6845_v9, %v6849_v30  ;;  %v6884_v46 = vrot.slane %v14341_v5, %v14154_v57  ;;  %v6861_v57 = vld [vmem:[#allocation23 + $0xf90] sm:$0xff] }
0x21a9   :  { %9933 = vmatpush1.bf16.msra.mxu1 %v11850_v35  ;;  %v6826_v35 = vld [vmem:[#allocation23 + $0xe78] sm:$0xff] }
0x21aa   :  { %10097 = vmatpush1.bf16.msra.mxu0 %v11852_v13  ;;  %9934 = vmatprep.subr.bf16.mxu1 %v11859_v0  ;;  %v11898_v13 = vcombine.low %v6813_v48, %v6817_v2  ;;  %v11900_v0 = vcombine.low %v6814_v37, %v6818_v3  ;;  %v11909_v7 = vcombine.high %v6822_v50, %v6826_v35  ;;  %v6865_v2 = vld [vmem:[#allocation23 + $0xfb0] sm:$0xff]  ;;  %v6862_v3 = vld [vmem:[#allocation23 + $0xf98] sm:$0xff] }
0x21ab   :  { %10098 = vmatprep.subr.bf16.mxu0 %v11861_v47  ;;  %v11907_v47 = vcombine.high %v6821_v39, %v6825_v56 }
0x21ad   :  { %9935 = vmatpush1.bf16.msra.mxu1 %v11858_v58  ;;  %v6834_v58 = vld [vmem:[#allocation23 + $0xeb8] sm:$0xff] }
0x21ae   :  { %10099 = vmatpush1.bf16.msra.mxu0 %v11860_v25  ;;  %9936 = vmatprep.subr.bf16.mxu1 %v11867_v49  ;;  %v11906_v25 = vcombine.low %v6821_v39, %v6825_v56  ;;  %v11908_v49 = vcombine.low %v6822_v50, %v6826_v35  ;;  %v11917_v15 = vcombine.high %v6830_v53, %v6834_v58  ;;  %v6869_v39 = vld [vmem:[#allocation23 + $0xfd0] sm:$0xff]  ;;  %v6874_v50 = vld [vmem:[#allocation23 + $0xff8] sm:$0xff] }
0x21af   :  { %10100 = vmatprep.subr.bf16.mxu0 %v11869_v60  ;;  %v11915_v60 = vcombine.high %v6829_v26, %v6833_v36  ;;  %v6873_v56 = vld [vmem:[#allocation23 + $0xff0] sm:$0xff]  ;;  %v11946_v35 = vcombine.low %v6861_v57, %v6865_v2 }
0x21b1   :  { %9937 = vmatpush1.bf16.msra.mxu1 %v11866_v22  ;;  %v6842_v22 = vld [vmem:[#allocation23 + $0xef8] sm:$0xff] }
0x21b2   :  { %10101 = vmatpush1.bf16.msra.mxu0 %v11868_v21  ;;  %9938 = vmatprep.subr.bf16.mxu1 %v11875_v62  ;;  %v11914_v21 = vcombine.low %v6829_v26, %v6833_v36  ;;  %v11916_v62 = vcombine.low %v6830_v53, %v6834_v58  ;;  %v11925_v63 = vcombine.high %v6838_v10, %v6842_v22  ;;  %v12634_v26 = vld [vmem:[%s14583_s14 + $0x40] sm:$0xff]  }
0x21b3   :  { %v14333_v16 = vpop.f32.mrb[64].mxu1  ;;  %v14335_v34 = vpop.f32.mrb[68].mxu0  ;;  %10102 = vmatprep.subr.bf16.mxu0 %v11877_v51  ;;  %v11923_v51 = vcombine.high %v6837_v23, %v6841_v12  ;;  %v12635_v36 = vld [vmem:[%s14583_s14 + $0xc0] sm:$0xff]  }
0x21b4   :  { %v14337_v54 = vpop.f32.mrb[65].mxu1  ;;  %v14339_v55 = vpop.f32.mrb[69].mxu0  ;;  %v12636_v58 = vld [vmem:[%s14583_s14] sm:$0xff]  }
0x21b5   :  { %v9638_v45 = vpop.f32.mrb[66].mxu1  ;;  %v9802_v1 = vpop.f32.mrb[70].mxu0  ;;  %9939 = vmatpush1.bf16.msra.mxu1 %v11874_v31  ;;  %v6846_v31 = vld [vmem:[#allocation23 + $0xf18] sm:$0xff] }
0x21b6   :  { %10103 = vmatpush1.bf16.msra.mxu0 %v11876_v27  ;;  %v9639_v8 = vpop.f32.mrb[67].mxu1  ;;  %v9803_v43 = vpop.f32.mrb[71].mxu0  ;;  %9940 = vmatprep.subr.bf16.mxu1 %v11883_v33  ;;  %v6850_v27 = vld [vmem:[#allocation23 + $0xf38] sm:$0xff]  ;;  %v11922_v33 = vcombine.low %v6837_v23, %v6841_v12  ;;  %v6857_v45 = vld [vmem:[#allocation23 + $0xf70] sm:$0xff]  ;;  %v6892_v1 = vrot.slane %v14341_v5, %v14157_v38 }
0x21b7   :  { %10104 = vmatprep.subr.bf16.mxu0 %v11885_v42  ;;  %v11924_v42 = vcombine.low %v6838_v10, %v6842_v22  ;;  %v11933_v28 = vcombine.high %v6846_v31, %v6850_v27  ;;  %v6858_v8 = vld [vmem:[#allocation23 + $0xf78] sm:$0xff]  ;;  %v11930_v43 = vcombine.low %v6845_v9, %v6849_v30  ;;  %v11938_v38 = vcombine.low %v6853_v40, %v6857_v45  ;;  %v12647_v9 = vld [vmem:[%s14583_s14 + $0xd8] sm:$0xff]  }
0x21b8   :  { %v12490_v37 = vadd.f32 %v14339_v55, %v6892_v1  ;;  %v12639_v23 = vld [vmem:[%s14583_s14 + $0xc8] sm:$0xff]   ;;  %v6880_v30 = vrot.slane %v14341_v5, %v14149_v20  ;;  %v12651_v20 = vld [vmem:[%s14583_s14 + $0xe0] sm:$0xff]   ;;  %v12658_v1 = vld [vmem:[%s14583_s14 + $0x70] sm:$0xff]  }
0x21b9   :  { %9941 = vmatpush1.bf16.msra.mxu1 %v11882_v18  ;;  %v6854_v18 = vld [vmem:[#allocation23 + $0xf58] sm:$0xff] }
0x21ba   :  { %10105 = vmatpush1.bf16.msra.mxu0 %v11884_v24  ;;  %9942 = vmatprep.subr.bf16.mxu1 %v11891_v11  ;;  %v11932_v24 = vcombine.low %v6846_v31, %v6850_v27  ;;  %v11939_v11 = vcombine.high %v6853_v40, %v6857_v45  ;;  %v11941_v48 = vcombine.high %v6854_v18, %v6858_v8  ;;  %v12640_v10 = vld [vmem:[%s14583_s14 + $0x8] sm:$0xff]   ;;  %v12648_v31 = vld [vmem:[%s14583_s14 + $0x18] sm:$0xff]  }
0x21bb   :  { %10106 = vmatprep.subr.bf16.mxu0 %v11893_v17  ;;  %v12488_v17 = vadd.f32 %v14337_v54, %v6884_v46  ;;  %v6870_v54 = vld [vmem:[#allocation23 + $0xfd8] sm:$0xff]  ;;  %v6888_v27 = vrot.slane %v14341_v5, %v14188_v59  ;;  %v12652_v59 = vld [vmem:[%s14583_s14 + $0x20] sm:$0xff]  }
0x21bc   :  { %v12641_v22 = vld [vmem:[%s14583_s14 + $0x88] sm:$0xff]  }
0x21bd   :  { %9943 = vmatpush1.bf16.msra.mxu1 %v11890_v4  ;;  %v6866_v4 = vld [vmem:[#allocation23 + $0xfb8] sm:$0xff]  ;;  %12922 = vtanh.f32 %v12488_v17  ;;  %v12489_v46 = vadd.f32 %v14335_v34, %v6888_v27  ;;  %v12664_v17 = vld [vmem:[%s14583_s14 + $0x38] sm:$0xff]   ;;  %v6908_v27 = vrot.slane %v14341_v5, %v14211_v41 }
0x21be   :  { %10107 = vmatpush1.bf16.msra.mxu0 %v11892_v52  ;;  %9944 = vmatprep.subr.bf16.mxu1 %v11899_v6  ;;  %v11940_v52 = vcombine.low %v6854_v18, %v6858_v8  ;;  %v11947_v6 = vcombine.high %v6861_v57, %v6865_v2  ;;  %12924 = vtanh.f32 %v12490_v37  ;;  %v11948_v55 = vcombine.low %v6862_v3, %v6866_v4  ;;  %v12654_v40 = vld [vmem:[%s14583_s14 + $0x68] sm:$0xff]   ;;  %v12659_v18 = vld [vmem:[%s14583_s14 + $0xf0] sm:$0xff]   ;;  %v12666_v57 = vld [vmem:[%s14583_s14 + $0x140] sm:$0xff]  }
0x21bf   :  { %10108 = vmatprep.subr.bf16.mxu0 %v11901_v29  ;;  %v11949_v29 = vcombine.high %v6862_v3, %v6866_v4  ;;  %v12656_v34 = vld [vmem:[%s14583_s14 + $0x28] sm:$0xff]   ;;  %v12660_v8 = vld [vmem:[%s14583_s14 + $0x30] sm:$0xff]   ;;  %v12667_v37 = vld [vmem:[%s14583_s14 + $0x1c0] sm:$0xff]  }
0x21c0   :  { %v12657_v45 = vld [vmem:[%s14583_s14 + $0xa8] sm:$0xff]   ;;  %v12668_v4 = vld [vmem:[%s14583_s14 + $0x100] sm:$0xff]  }
0x21c1   :  { %9945 = vmatpush1.bf16.msra.mxu1 %v11898_v13  ;;  %v11955_v13 = vcombine.high %v6869_v39, %v6873_v56 }
0x21c2   :  { %10109 = vmatpush1.bf16.msra.mxu0 %v11900_v0  ;;  %9946 = vmatprep.subr.bf16.mxu1 %v11907_v47  ;;  %v11957_v0 = vcombine.high %v6870_v54, %v6874_v50  ;;  %v11954_v47 = vcombine.low %v6869_v39, %v6873_v56  ;;  %v12671_v39 = vld [vmem:[%s14583_s14 + $0x1c8] sm:$0xff]  }
0x21c3   :  { %10110 = vmatprep.subr.bf16.mxu0 %v11909_v7  ;;  %v11956_v7 = vcombine.low %v6870_v54, %v6874_v50  ;;  %v12672_v56 = vld [vmem:[%s14583_s14 + $0x108] sm:$0xff]   ;;  %v12674_v50 = vld [vmem:[%s14583_s14 + $0x150] sm:$0xff]  }
0x21c4   :  { %v12673_v54 = vld [vmem:[%s14583_s14 + $0x188] sm:$0xff]  }
0x21c5   :  { %9947 = vmatpush1.bf16.msra.mxu1 %v11906_v25 }
0x21c6   :  { %10111 = vmatpush1.bf16.msra.mxu0 %v11908_v49  ;;  %9948 = vmatprep.subr.bf16.mxu1 %v11915_v60  ;;  %v12637_v49 = vld [vmem:[%s14583_s14 + $0x80] sm:$0xff]   ;;  %v12638_v60 = vld [vmem:[%s14583_s14 + $0x48] sm:$0xff]  }
0x21c7   :  { %10112 = vmatprep.subr.bf16.mxu0 %v11917_v15  ;;  %v12923_v53 = vpop.eup %12922 }
0x21c8   :  { %v12925_v25 = vpop.eup %12924  ;;  %v10142_v15 = vpack.c.bf16 %v12923_v53, %v12923_v53  ;;  %v12683_v53 = vld [vmem:[%s14583_s14 + $0x1e0] sm:$0xff]  }
0x21c9   :  { %9949 = vmatpush1.bf16.msra.mxu1 %v11914_v21  ;;  %v10144_v12 = vpack.c.bf16 %v12925_v25, %v12925_v25  ;;  %v12642_v21 = vld [vmem:[%s14583_s14 + $0x50] sm:$0xff]   ;;  %v12685_v25 = vld [vmem:[%s14583_s14 + $0x1a0] sm:$0xff]  }
0x21ca   :  { %10113 = vmatpush1.bf16.msra.mxu0 %v11916_v62  ;;  %9950 = vmatprep.subr.bf16.mxu1 %v11923_v51  ;;  %v12644_v62 = vld [vmem:[%s14583_s14 + $0x10] sm:$0xff]  }
0x21cb   :  { %10114 = vmatprep.subr.bf16.mxu0 %v11925_v63  ;;  %v12645_v51 = vld [vmem:[%s14583_s14 + $0x90] sm:$0xff]   ;;  %v12646_v63 = vld [vmem:[%s14583_s14 + $0x58] sm:$0xff]  }
0x21cd   :  { %9951 = vmatpush1.bf16.msra.mxu1 %v11922_v33  ;;  %v12649_v33 = vld [vmem:[%s14583_s14 + $0x98] sm:$0xff]  }
0x21ce   :  { %10115 = vmatpush1.bf16.msra.mxu0 %v11924_v42  ;;  %9952 = vmatprep.subr.bf16.mxu1 %v11931_v44  ;;  %v12650_v42 = vld [vmem:[%s14583_s14 + $0x60] sm:$0xff]   ;;  %v12487_v44 = vadd.f32 %v14333_v16, %v6880_v30  ;;  %v12655_v16 = vld [vmem:[%s14583_s14 + $0xe8] sm:$0xff]   ;;  %v6904_v30 = vrot.slane %v14341_v5, %v14228_v19 }
0x21cf   :  { %10116 = vmatprep.subr.bf16.mxu0 %v11933_v28  ;;  %v12653_v28 = vld [vmem:[%s14583_s14 + $0xa0] sm:$0xff]  }
0x21d0   :  { %12926 = vtanh.f32 %v12487_v44 }
0x21d1   :  { %9953 = vmatpush1.bf16.msra.mxu1 %v11930_v43  ;;  %12928 = vtanh.f32 %v12489_v46  ;;  %v12661_v43 = vld [vmem:[%s14583_s14 + $0xb0] sm:$0xff]  }
0x21d2   :  { %10117 = vmatpush1.bf16.msra.mxu0 %v11932_v24  ;;  %9954 = vmatprep.subr.bf16.mxu1 %v11939_v11  ;;  %v12662_v24 = vld [vmem:[%s14583_s14 + $0x78] sm:$0xff]  }
0x21d3   :  { %10118 = vmatprep.subr.bf16.mxu0 %v11941_v48  ;;  %v12663_v11 = vld [vmem:[%s14583_s14 + $0xf8] sm:$0xff]  }
0x21d4   :  { %v12665_v48 = vld [vmem:[%s14583_s14 + $0xb8] sm:$0xff]  }
0x21d5   :  { %9955 = vmatpush1.bf16.msra.mxu1 %v11938_v38 }
0x21d6   :  { %10119 = vmatpush1.bf16.msra.mxu0 %v11940_v52  ;;  %9956 = vmatprep.subr.bf16.mxu1 %v11947_v6  ;;  %v12669_v52 = vld [vmem:[%s14583_s14 + $0x180] sm:$0xff]   ;;  %v12670_v6 = vld [vmem:[%s14583_s14 + $0x148] sm:$0xff]  }
0x21d7   :  { %10120 = vmatprep.subr.bf16.mxu0 %v11949_v29 }
0x21d9   :  { %9957 = vmatpush1.bf16.msra.mxu1 %v11946_v35  ;;  %v12675_v35 = vld [vmem:[%s14583_s14 + $0x1d0] sm:$0xff]  }
0x21da   :  { %10121 = vmatpush1.bf16.msra.mxu0 %v11948_v55  ;;  %9958 = vmatprep.subr.bf16.mxu1 %v11955_v13  ;;  %v12927_v2 = vpop.eup %12926  ;;  %v12676_v55 = vld [vmem:[%s14583_s14 + $0x110] sm:$0xff]  }
0x21db   :  { %10122 = vmatprep.subr.bf16.mxu0 %v11957_v0  ;;  %v12929_v3 = vpop.eup %12928  ;;  %v10141_v38 = vpack.c.bf16 %v12927_v2, %v12927_v2  ;;  %v12677_v13 = vld [vmem:[%s14583_s14 + $0x190] sm:$0xff]   ;;  %v12678_v0 = vld [vmem:[%s14583_s14 + $0x158] sm:$0xff]  }
0x21dc   :  { %v10143_v29 = vpack.c.bf16 %v12929_v3, %v12929_v3 }
0x21dd   :  { %9959 = vmatpush1.bf16.msra.mxu1 %v11954_v47  ;;  %v12679_v47 = vld [vmem:[%s14583_s14 + $0x1d8] sm:$0xff]  }
0x21de   :  { %10123 = vmatpush1.bf16.msra.mxu0 %v11956_v7  ;;  %12129 = vmatprep.subr.bf16.mxu1 %v12634_v26  ;;  %v12680_v7 = vld [vmem:[%s14583_s14 + $0x118] sm:$0xff]  }
0x21df   :  { %12151 = vmatprep.subr.bf16.mxu0 %v12635_v36  ;;  %v12681_v26 = vld [vmem:[%s14583_s14 + $0x198] sm:$0xff]   ;;  %v12682_v36 = vld [vmem:[%s14583_s14 + $0x160] sm:$0xff]  }
0x21e0   :  { %9961 = vmatmul.mubr.bf16.vlgmr.msra.gmra.mrb[68].mxu1 %v14315_v14 }
0x21e1   :  { %10125 = vmatmul.mubr.bf16.vlgmr.msra.gmra.mrb[72].mxu0 %v14315_v14  ;;  %12130 = vmatpush3.bf16.msra.mxu1 %v12636_v58  ;;  %v12643_v14 = vld [vmem:[%s14583_s14 + $0xd0] sm:$0xff]   ;;  %v12684_v58 = vld [vmem:[%s14583_s14 + $0x120] sm:$0xff]  }
0x21e2   :  { %10700 = vmatprep.mubr.bf16.mxu1 %v10142_v15  ;;  %12152 = vmatpush3.bf16.msra.mxu0 %v12637_v49  ;;  %v12686_v49 = vld [vmem:[%s14583_s14 + $0x168] sm:$0xff]  }
0x21e3   :  { %10740 = vmatprep.mubr.bf16.mxu0 %v10144_v12  ;;  %12131 = vmatprep.subr.bf16.mxu1 %v12638_v60  ;;  %v12687_v60 = vld [vmem:[%s14583_s14 + $0x1e8] sm:$0xff]   ;;  %v12690_v12 = vld [vmem:[%s14583_s14 + $0x170] sm:$0xff]  }
0x21e4   :  { %12153 = vmatprep.subr.bf16.mxu0 %v12639_v23  ;;  %v12688_v15 = vld [vmem:[%s14583_s14 + $0x128] sm:$0xff]  }
0x21e5   :  { %12132 = vmatpush3.bf16.msra.mxu1 %v12640_v10  ;;  %v12689_v23 = vld [vmem:[%s14583_s14 + $0x1a8] sm:$0xff]   ;;  %v12691_v10 = vld [vmem:[%s14583_s14 + $0x1f0] sm:$0xff]  }
0x21e6   :  { %12154 = vmatpush3.bf16.msra.mxu0 %v12641_v22  ;;  %12133 = vmatprep.subr.bf16.mxu1 %v12642_v21  ;;  %v12692_v22 = vld [vmem:[%s14583_s14 + $0x130] sm:$0xff]  }
0x21e7   :  { %12155 = vmatprep.subr.bf16.mxu0 %v12643_v14  ;;  %v12693_v21 = vld [vmem:[%s14583_s14 + $0x1b0] sm:$0xff]   ;;  %v12694_v14 = vld [vmem:[%s14583_s14 + $0x178] sm:$0xff]  }
0x21e9   :  { %12134 = vmatpush3.bf16.msra.mxu1 %v12644_v62  ;;  %v12695_v62 = vld [vmem:[%s14583_s14 + $0x1f8] sm:$0xff]  }
0x21ea   :  { %12156 = vmatpush3.bf16.msra.mxu0 %v12645_v51  ;;  %12135 = vmatprep.subr.bf16.mxu1 %v12646_v63  ;;  %v12696_v51 = vld [vmem:[%s14583_s14 + $0x138] sm:$0xff]  }
0x21eb   :  { %12157 = vmatprep.subr.bf16.mxu0 %v12647_v9  ;;  %v12697_v63 = vld [vmem:[%s14583_s14 + $0x1b8] sm:$0xff]   ;;  %v6896_v9 = vrot.slane %v14341_v5, %v14208_v32  ;;  %s13322_s14 = smov [#allocation28]  }
0x21ec   :  { %s10836_s2 = sshll.u32 %s13322_s14, 4  ;;  %s10837_s2 = int_to_ptr.vmem [resolvable:$true] %s10836_s2 }
0x21ed   :  { %12136 = vmatpush3.bf16.msra.mxu1 %v12648_v31  ;;  %v6900_v31 = vrot.slane %v14341_v5, %v14191_v61  ;;  %s13260_s22 = scalar_lea.vmem %s10837_s2, 32  ;;  %p13265_p1 = scmp.lt.s32.totalorder %s10837_s2, %s10837_s2 }
0x21ee   :  { %12158 = vmatpush3.bf16.msra.mxu0 %v12649_v33  ;;  %12137 = vmatprep.subr.bf16.mxu1 %v12650_v42  ;;  %p13261_p0 = scmp.ne.s32.totalorder %s10837_s2, %s13260_s22  ;;  %p13266_p2 = scmp.lt.s32.totalorder %s13260_s22, %s13260_s22 }
0x21ef   :  { %12159 = vmatprep.subr.bf16.mxu0 %v12651_v20 }
0x21f0   :  { %p13267_p3 = por %p13266_p2, %p13265_p1 }
0x21f1   :  { %12138 = vmatpush3.bf16.msra.mxu1 %v12652_v59 }
0x21f2   :  { %12160 = vmatpush3.bf16.msra.mxu0 %v12653_v28  ;;  %12139 = vmatprep.subr.bf16.mxu1 %v12654_v40  ;;  %p13268_p4 = pnand %p13267_p3, %p13261_p0 }
0x21f3   :  { %12161 = vmatprep.subr.bf16.mxu0 %v12655_v16 }
0x21f5   :  { %12140 = vmatpush3.bf16.msra.mxu1 %v12656_v34 }
0x21f6   :  { %12162 = vmatpush3.bf16.msra.mxu0 %v12657_v45  ;;  %12141 = vmatprep.subr.bf16.mxu1 %v12658_v1 }
0x21f7   :  { %12163 = vmatprep.subr.bf16.mxu0 %v12659_v18 }
0x21f9   :  { %12142 = vmatpush3.bf16.msra.mxu1 %v12660_v8 }
0x21fa   :  { %12164 = vmatpush3.bf16.msra.mxu0 %v12661_v43  ;;  %12143 = vmatprep.subr.bf16.mxu1 %v12662_v24 }
0x21fb   :  { %12165 = vmatprep.subr.bf16.mxu0 %v12663_v11 }
0x21fd   :  { %12144 = vmatpush3.bf16.msra.mxu1 %v12664_v17  ;;  %v11958_v17 = vld [vmem:[#allocation26] ss:$0 sm:$0xff] }
0x21fe   :  { %12166 = vmatpush3.bf16.msra.mxu0 %v12665_v48  ;;  %12173 = vmatprep.subr.bf16.mxu1 %v12666_v57 }
0x21ff   :  { %12195 = vmatprep.subr.bf16.mxu0 %v12667_v37 }
0x2200   :  { %10701 = vmatmul.mubr.bf16.vlgmr.msra.gmra.mrb[72].mxu1 %v10141_v38 }
0x2201   :  { %10741 = vmatmul.mubr.bf16.vlgmr.msra.gmra.mrb[76].mxu0 %v10143_v29  ;;  %12174 = vmatpush3.bf16.msra.mxu1 %v12668_v4 }
0x2202   :  { %12196 = vmatpush3.bf16.msra.mxu0 %v12669_v52  ;;  %12175 = vmatprep.subr.bf16.mxu1 %v12670_v6 }
0x2203   :  { %12197 = vmatprep.subr.bf16.mxu0 %v12671_v39 }
0x2205   :  { %12176 = vmatpush3.bf16.msra.mxu1 %v12672_v56 }
0x2206   :  { %12198 = vmatpush3.bf16.msra.mxu0 %v12673_v54  ;;  %12177 = vmatprep.subr.bf16.mxu1 %v12674_v50 }
0x2207   :  { %12199 = vmatprep.subr.bf16.mxu0 %v12675_v35 }
0x2209   :  { %12178 = vmatpush3.bf16.msra.mxu1 %v12676_v55 }
0x220a   :  { %12200 = vmatpush3.bf16.msra.mxu0 %v12677_v13  ;;  %12179 = vmatprep.subr.bf16.mxu1 %v12678_v0 }
0x220b   :  { %12201 = vmatprep.subr.bf16.mxu0 %v12679_v47 }
0x220d   :  { %12180 = vmatpush3.bf16.msra.mxu1 %v12680_v7 }
0x220e   :  { %12202 = vmatpush3.bf16.msra.mxu0 %v12681_v26  ;;  %12181 = vmatprep.subr.bf16.mxu1 %v12682_v36 }
0x220f   :  { %12203 = vmatprep.subr.bf16.mxu0 %v12683_v53 }
0x2211   :  { %12182 = vmatpush3.bf16.msra.mxu1 %v12684_v58 }
0x2212   :  { %12204 = vmatpush3.bf16.msra.mxu0 %v12685_v25  ;;  %12183 = vmatprep.subr.bf16.mxu1 %v12686_v49 }
0x2213   :  { %12205 = vmatprep.subr.bf16.mxu0 %v12687_v60 }
0x2215   :  { %12184 = vmatpush3.bf16.msra.mxu1 %v12688_v15 }
0x2216   :  { %12206 = vmatpush3.bf16.msra.mxu0 %v12689_v23  ;;  %12185 = vmatprep.subr.bf16.mxu1 %v12690_v12 }
0x2217   :  { %12207 = vmatprep.subr.bf16.mxu0 %v12691_v10 }
0x2219   :  { %12186 = vmatpush3.bf16.msra.mxu1 %v12692_v22 }
0x221a   :  { %12208 = vmatpush3.bf16.msra.mxu0 %v12693_v21  ;;  %12187 = vmatprep.subr.bf16.mxu1 %v12694_v14 }
0x221b   :  { %12209 = vmatprep.subr.bf16.mxu0 %v12695_v62 }
0x221d   :  { %12188 = vmatpush3.bf16.msra.mxu1 %v12696_v51 }
0x221e   :  { %12210 = vmatpush3.bf16.msra.mxu0 %v12697_v63 }
0x22b3   :  { %v9962_v33 = vpop.f32.mrb[68].mxu1 }
0x22b4   :  { %v12491_v42 = vadd.f32 %v9962_v33, %v6896_v9  ;;  %v10126_v20 = vpop.f32.mrb[72].mxu0  ;;  %v9964_v44 = vpop.f32.mrb[69].mxu1 }
0x22b5   :  { %v12493_v59 = vadd.f32 %v10126_v20, %v6904_v30  ;;  %v12492_v46 = vadd.f32 %v9964_v44, %v6900_v31  ;;  %v10128_v28 = vpop.f32.mrb[73].mxu0  ;;  %v9966_v40 = vpop.f32.mrb[70].mxu1 }
0x22b6   :  { %12930 = vtanh.f32 %v12491_v42  ;;  %v12494_v16 = vadd.f32 %v10128_v28, %v6908_v27  ;;  %v10130_v32 = vpop.f32.mrb[74].mxu0  ;;  %v9967_v34 = vpop.f32.mrb[71].mxu1 }
0x22b7   :  { %12932 = vtanh.f32 %v12493_v59  ;;  %v10131_v19 = vpop.f32.mrb[75].mxu0 }
0x22b8   :  { %12934 = vtanh.f32 %v12492_v46 }
0x22b9   :  { %12936 = vtanh.f32 %v12494_v16 }
0x22c0   :  { %v12931_v61 = vpop.eup %12930 }
0x22c1   :  { %v12933_v45 = vpop.eup %12932  ;;  %v10145_v18 = vpack.c.bf16 %v12931_v61, %v12931_v61 }
0x22c2   :  { %v12935_v1 = vpop.eup %12934  ;;  %v10147_v43 = vpack.c.bf16 %v12933_v45, %v12933_v45 }
0x22c3   :  { %v12937_v41 = vpop.eup %12936  ;;  %v10146_v5 = vpack.c.bf16 %v12935_v1, %v12935_v1 }
0x22c4   :  { %v10148_v8 = vpack.c.bf16 %v12937_v41, %v12937_v41 }
0x22c5   :  { %10780 = vmatprep.mubr.bf16.mxu1 %v10146_v5 }
0x22c6   :  { %10820 = vmatprep.mubr.bf16.mxu0 %v10148_v8  ;;  %10781 = vmatmul.mubr.bf16.vlgmr.msra.gmra.mrb[76].mxu1 %v10145_v18 }
0x22c7   :  { %10821 = vmatmul.mubr.bf16.vlgmr.msra.gmra.mrb[80].mxu0 %v10147_v43 }
0x22d3   :  { %v12145_v24 = vpop.f32.mrb[72].mxu1 }
0x22d4   :  { %v12167_v11 = vpop.f32.mrb[76].mxu0  ;;  %v12146_v48 = vpop.f32.mrb[73].mxu1 }
0x22d5   :  { %v12147_v57 = vadd.f32 %v12146_v48, %v12145_v24  ;;  %v12168_v2 = vpop.f32.mrb[77].mxu0  ;;  %v12148_v37 = vpop.f32.mrb[74].mxu1 }
0x22d6   :  { %v12169_v3 = vadd.f32 %v12168_v2, %v12167_v11  ;;  %v12170_v4 = vpop.f32.mrb[78].mxu0  ;;  %v12149_v38 = vpop.f32.mrb[75].mxu1 }
0x22d7   :  { %v10703_v52 = vadd.f32 %v12147_v57, %v11958_v17  ;;  %v12171_v6 = vpop.f32.mrb[79].mxu0 }
0x22d9   :  { %v10743_v29 = vadd.f32 %v12169_v3, %v10703_v52 }
0x2399   :  { %v12189_v39 = vpop.f32.mrb[76].mxu1 }
0x239a   :  { %v12211_v56 = vpop.f32.mrb[80].mxu0  ;;  %v12190_v54 = vpop.f32.mrb[77].mxu1 }
0x239b   :  { %v12191_v50 = vadd.f32 %v12190_v54, %v12189_v39  ;;  %v12212_v35 = vpop.f32.mrb[81].mxu0  ;;  %v12192_v55 = vpop.f32.mrb[78].mxu1 }
0x239c   :  { %v12213_v13 = vadd.f32 %v12212_v35, %v12211_v56  ;;  %v12214_v0 = vpop.f32.mrb[82].mxu0  ;;  %v12193_v47 = vpop.f32.mrb[79].mxu1 }
0x239d   :  { %v10783_v7 = vadd.f32 %v12191_v50, %v10743_v29  ;;  %v12215_v26 = vpop.f32.mrb[83].mxu0 }
0x239f   :  { %v10823_v36 = vadd.f32 %v12213_v13, %v10783_v7 }
0x23a1   :  { %10829 = vst.msk [vmem:[#allocation28] sm:$0x3] %vm10828_vm6, %v10823_v36 }
0x23a2   :  { %13271 = shalt.err (!%p13268_p4)
}
0x23a3   :  { %s14591_s7 = sld [smem:[#allocation39_spill]] }
0x23a9   :  { %s13272_s24 = scalar_lea.hbm %s14591_s7, 32 }
0x23aa   :  { %p13273_p5 = scmp.ne.s32.totalorder %s14591_s7, %s13272_s24  ;;  %p13276_p6 = scmp.lt.u32.totalorder %s13272_s24, %s14591_s7 }
0x23ac   :  { %p13278_p7 = pnand %p13276_p6, %p13273_p5 }
0x23ae   :  { %13281 = shalt.err (!%p13278_p7)
}
0x23af   :  { %10839 = dma.vmem_to_hbm [thread:$0]  %s10837_s2, 32, %s14591_s7, [#allocation7]  }
0x23b0   :  { %13298 = dma.done.wait [#allocation7], 32  }
0x23b1   :  { %13299 = vsyncadd [#allocation7], 4294967264 }
0x23b2   :  { %10843 = vsyncpa [#allocation6], 1 }
0x23b3   :  { %10844 = vsyncpa [#allocation9], 1 }
0x23b4   :  { %10845 = vsyncpa [#allocation12], 1 }
0x23b5   :  { %10846 = vsyncpa [#allocation15], 1 }
0x23b6   :  { %10847 = vsyncpa [#allocation18], 1 }
0x23b7   :  { %10848 = vsyncpa [#allocation21], 1 }
0x23b8   :  { %10849 = vsyncpa [#allocation24], 1 }
0x23b9   :  { %10850 = vsyncpa [#allocation27], 1 }
0x23ba   :  { %10851 = vsyncpa [#allocation7], 1 }

</bundles_post_ra>
